<compile_context>
chip_gen: v7x
topology: tpu7x:2x2x1
jax: 0.10.0
libtpu: 0.0.40
codegen_flags: <defaults>
</compile_context>

<pallas_src>
import functools

import jax
import jax.numpy as jnp
from jax.experimental import pallas as pl
from jax.experimental.pallas import tpu as pltpu


def _key_proj_kernel(x_ref, w_ref, b_ref, out_ref, *, tH, kd, need_s, need_e):
    # x_ref:   (1, H+2, W+2, Cin_pad)   bf16 padded input, full image per batch
    # w_ref:   (3, 3, Cin_pad, Cout_pad) bf16 fused weights (key|shrink|sel)
    # b_ref:   (1, Cout_pad)            f32 fused bias
    # out_ref: (1, tH, W, Cout_pad)     f32 fused output row-tile
    r = pl.program_id(1)
    Wp = x_ref.shape[2]
    cin = x_ref.shape[3]
    W = out_ref.shape[2]
    cout = out_ref.shape[3]

    row0 = pl.multiple_of(r * tH, tH)

    # f32 accumulator for this row tile (tH chosen so this stays vreg-resident).
    acc = jnp.zeros((tH, W, cout), jnp.float32)

    # 3x3 cross-correlation: slice the wide (Cin) input only along dy; do one
    # fused lane-dense matmul per tap; shift the narrow Cout-wide result by dx.
    for dy in range(3):
        slab = x_ref[0, pl.ds(row0 + dy, tH), :, :].reshape(tH * Wp, cin)
        for dx in range(3):
            res = jnp.dot(slab, w_ref[dy, dx],
                          preferred_element_type=jnp.float32)
            res = res.reshape(tH, Wp, cout)
            acc = acc + res[:, dx:dx + W, :]

    acc = acc + b_ref[...].reshape(1, 1, cout).astype(jnp.float32)

    # Per-column epilogue on the fused slab (full-width ops + selects, so the
    # final store is a single unmasked lane-dense write):
    #   cols [0, kd)                 -> identity              (key)
    #   col  kd (if need_s)          -> x^2 + 1               (shrinkage)
    #   cols [sel_lo, sel_lo + kd)   -> sigmoid(x)            (selection)
    out = acc
    if need_s or need_e:
        col = jax.lax.broadcasted_iota(jnp.int32, (tH, W, cout), 2)
        if need_s:
            out = jnp.where(col == kd, acc * acc + 1.0, out)
        if need_e:
            sel_lo = kd + (1 if need_s else 0)
            out = jnp.where((col >= sel_lo) & (col < sel_lo + kd),
                            jax.nn.sigmoid(acc), out)
    out_ref[0] = out.astype(out_ref.dtype)


def _pick_row_tile(H, W, cout_pad, budget_bytes=128 * 1024):
    """Largest divisor of H whose f32 accumulator fits in ~budget_bytes."""
    budget_rows = max(1, budget_bytes // ((W + 2) * cout_pad * 4))
    th = 1
    for d in range(1, H + 1):
        if H % d == 0 and d <= budget_rows:
            th = d
    return th


@functools.partial(jax.jit, static_argnames=("need_s", "need_e"))
def key_projection_forward(x_nchw, params, need_s=True, need_e=True):
    """Forward pass matching PyTorch KeyProjection.forward.

    x_nchw: (N, Cin, H, W) float32
    returns: (key (N, keydim, H, W), shrinkage (N, 1, H, W) | None,
              selection (N, keydim, H, W) | None)
    """
    wk, bk, wd, bd, we, be = (params["wk"], params["bk"], params["wd"],
                              params["bd"], params["we"], params["be"])
    N, Cin, H, W = x_nchw.shape
    kd = wk.shape[0]

    # --- fuse weights/biases along Cout for the projections actually needed ---
    w_list, b_list = [wk], [bk]
    if need_s:
        w_list.append(wd)
        b_list.append(bd)
    if need_e:
        w_list.append(we)
        b_list.append(be)
    w_fused = jnp.concatenate(w_list, axis=0)       # (Cf, Cin, 3, 3)
    b_fused = jnp.concatenate(b_list, axis=0)       # (Cf,)
    Cf = kd + (1 if need_s else 0) + (kd if need_e else 0)

    cout_pad = pl.cdiv(Cf, 128) * 128
    cin_pad = pl.cdiv(Cin, 128) * 128

    # (Cf, Cin, 3, 3) -> (3, 3, Cin_pad, Cout_pad), bf16 for the MXU.
    w_hwio = jnp.transpose(w_fused, (2, 3, 1, 0))
    w_hwio = jnp.pad(w_hwio, ((0, 0), (0, 0),
                              (0, cin_pad - Cin), (0, cout_pad - Cf)))
    w_hwio = w_hwio.astype(jnp.bfloat16)
    b_pad = jnp.pad(b_fused, (0, cout_pad - Cf)).reshape(1, cout_pad)
    b_pad = b_pad.astype(jnp.float32)

    # NCHW -> NHWC, pad H/W by 1 (conv padding=1) and Cin to a lane multiple.
    x = jnp.transpose(x_nchw, (0, 2, 3, 1))
    xpad = jnp.pad(x, ((0, 0), (1, 1), (1, 1), (0, cin_pad - Cin)))
    xpad = xpad.astype(jnp.bfloat16)

    Hp, Wp = H + 2, W + 2
    tH = _pick_row_tile(H, W, cout_pad)

    kernel = functools.partial(_key_proj_kernel, tH=tH, kd=kd,
                               need_s=need_s, need_e=need_e)

    fused = pl.pallas_call(
        kernel,
        out_shape=jax.ShapeDtypeStruct((N, H, W, cout_pad), jnp.float32),
        grid_spec=pltpu.PrefetchScalarGridSpec(
            num_scalar_prefetch=0,
            grid=(N, H // tH),
            in_specs=[
                # Full padded image per batch; constant along the row-tile axis
                # so it stays VMEM-resident across row tiles.
                pl.BlockSpec((1, Hp, Wp, cin_pad), lambda n, r: (n, 0, 0, 0)),
                pl.BlockSpec((3, 3, cin_pad, cout_pad), lambda n, r: (0, 0, 0, 0)),
                pl.BlockSpec((1, cout_pad), lambda n, r: (0, 0)),
            ],
            out_specs=pl.BlockSpec((1, tH, W, cout_pad),
                                   lambda n, r: (n, r, 0, 0)),
        ),
        compiler_params=pltpu.CompilerParams(
            dimension_semantics=("parallel", "parallel"),
            vmem_limit_bytes=64 * 1024 * 1024),
    )(xpad, w_hwio, b_pad)

    # Slice the fused lane-dense slab and go back to NCHW.
    key = jnp.transpose(fused[..., :kd], (0, 3, 1, 2))
    off = kd
    shrinkage = None
    if need_s:
        shrinkage = jnp.transpose(fused[..., off:off + 1], (0, 3, 1, 2))
        off += 1
    selection = None
    if need_e:
        selection = jnp.transpose(fused[..., off:off + kd], (0, 3, 1, 2))
    return key, shrinkage, selection


def init_params(in_dim, keydim, key):
    """Deterministic parameter init mirroring KeyProjection.__init__ shapes."""
    k1, k2, k3 = jax.random.split(key, 3)
    fan_in = in_dim * 9

    # key_proj: orthogonal_ on the (keydim, in_dim*3*3) flattened weight, zero bias.
    a = jax.random.normal(k1, (fan_in, keydim), dtype=jnp.float32)
    q, r = jnp.linalg.qr(a)                       # q: (fan_in, keydim)
    q = q * jnp.sign(jnp.diag(r))[None, :]        # sign-fix (torch convention)
    wk = q.T.reshape(keydim, in_dim, 3, 3)
    bk = jnp.zeros((keydim,), jnp.float32)

    # d_proj / e_proj: default PyTorch conv init (uniform(-b, b), b = 1/sqrt(fan_in)).
    bound = 1.0 / jnp.sqrt(float(fan_in))
    wd = jax.random.uniform(k2, (1, in_dim, 3, 3), jnp.float32, -bound, bound)
    bd = jnp.zeros((1,), jnp.float32)
    we = jax.random.uniform(k3, (keydim, in_dim, 3, 3), jnp.float32, -bound, bound)
    be = jnp.zeros((keydim,), jnp.float32)

    return {"wk": wk, "bk": bk, "wd": wd, "bd": bd, "we": we, "be": be}


def _ref_conv(x_nchw, w, b):
    out = jax.lax.conv_general_dilated(
        x_nchw, w, window_strides=(1, 1), padding=((1, 1), (1, 1)),
        dimension_numbers=("NCHW", "OIHW", "NCHW"))
    return out + b.reshape(1, -1, 1, 1)


if __name__ == "__main__":
    N, C_in, H, W = 2, 4, 16, 16
    keydim = 8

    root = jax.random.PRNGKey(0)
    kx, kp = jax.random.split(root)
    x = jax.random.normal(kx, (N, C_in, H, W), dtype=jnp.float32)
    params = init_params(C_in, keydim, kp)

    key_out, shrinkage, selection = key_projection_forward(
        x, params, need_s=True, need_e=True)
    jax.block_until_ready((key_out, shrinkage, selection))

    # Pure-JAX reference, with inputs/weights quantized through bf16 exactly as
    # the kernel's MXU path does (f32 accumulation in both).
    xq = x.astype(jnp.bfloat16).astype(jnp.float32)
    wkq = params["wk"].astype(jnp.bfloat16).astype(jnp.float32)
    wdq = params["wd"].astype(jnp.bfloat16).astype(jnp.float32)
    weq = params["we"].astype(jnp.bfloat16).astype(jnp.float32)
    ref_key = _ref_conv(xq, wkq, params["bk"])
    ref_shr = _ref_conv(xq, wdq, params["bd"]) ** 2 + 1.0
    ref_sel = jax.nn.sigmoid(_ref_conv(xq, weq, params["be"]))

    assert key_out.shape == (N, keydim, H, W)
    assert shrinkage.shape == (N, 1, H, W)
    assert selection.shape == (N, keydim, H, W)
    assert jnp.allclose(key_out, ref_key, rtol=1e-3, atol=1e-3)
    assert jnp.allclose(shrinkage, ref_shr, rtol=1e-3, atol=1e-3)
    assert jnp.allclose(selection, ref_sel, rtol=1e-3, atol=1e-3)

    # Static need_s/need_e=False variant: drops those matmuls/outputs entirely.
    key_only, s_none, e_none = key_projection_forward(
        x, params, need_s=False, need_e=False)
    jax.block_until_ready(key_only)
    assert s_none is None and e_none is None
    assert jnp.allclose(key_only, ref_key, rtol=1e-3, atol=1e-3)

    print("KERNEL_OK")
</pallas_src>

<mosaic_0001>
module attributes {stable_mosaic.version = 11 : i64} {
  func.func @_key_proj_kernel(%arg0: i32, %arg1: i32, %arg2: memref<1x18x18x128xbf16, #tpu.memory_space<vmem>>, %arg3: memref<3x3x128x128xbf16, #tpu.memory_space<vmem>>, %arg4: memref<1x128xf32, #tpu.memory_space<vmem>>, %arg5: memref<1x8x16x128xf32, #tpu.memory_space<vmem>>) attributes {dimension_semantics = [#tpu.dimension_semantics<parallel>, #tpu.dimension_semantics<parallel>], iteration_bounds = array<i64: 2, 2>, scalar_prefetch = 0 : i64, scratch_operands = 0 : i64, tpu.core_type = #tpu.core_type<tc>, window_params = [{transform_indices = @transform_0, window_bounds = array<i64: 1, 18, 18, 128>}, {pipeline_mode = #tpu.pipeline_mode<synchronous>, transform_indices = @transform_1, window_bounds = array<i64: 3, 3, 128, 128>}, {pipeline_mode = #tpu.pipeline_mode<synchronous>, transform_indices = @transform_2, window_bounds = array<i64: 1, 128>}, {transform_indices = @transform_3, window_bounds = array<i64: 1, 8, 16, 128>}]} {
    %c8_i32 = arith.constant 8 : i32
    %0 = arith.muli %arg1, %c8_i32 : i32
    %1 = tpu.assume_multiple %0, 8 : i32
    %cst = arith.constant 0.000000e+00 : f32
    %2 = vector.broadcast %cst : f32 to vector<8x16x128xf32>
    %c0_i32 = arith.constant 0 : i32
    %3 = arith.addi %1, %c0_i32 : i32
    %c0 = arith.constant 0 : index
    %4 = arith.index_cast %3 : i32 to index
    %c0_0 = arith.constant 0 : index
    %c0_1 = arith.constant 0 : index
    %5 = vector.load %arg2[%c0, %4, %c0_0, %c0_1] : memref<1x18x18x128xbf16, #tpu.memory_space<vmem>>, vector<1x8x18x128xbf16>
    %6 = vector.shape_cast %5 : vector<1x8x18x128xbf16> to vector<8x18x128xbf16>
    %7 = vector.shape_cast %6 : vector<8x18x128xbf16> to vector<144x128xbf16>
    %c0_2 = arith.constant 0 : index
    %c0_3 = arith.constant 0 : index
    %c0_4 = arith.constant 0 : index
    %c0_5 = arith.constant 0 : index
    %8 = vector.load %arg3[%c0_2, %c0_3, %c0_4, %c0_5] : memref<3x3x128x128xbf16, #tpu.memory_space<vmem>>, vector<1x1x128x128xbf16>
    %9 = vector.shape_cast %8 : vector<1x1x128x128xbf16> to vector<128x128xbf16>
    %cst_6 = arith.constant dense<0.000000e+00> : vector<144x128xf32>
    %10 = tpu.matmul %7, %9, %cst_6 {dimension_numbers = #tpu.dot_dimension_numbers<[1], [0], [0], [1], [0, 0, 1, 1], [], []>} : vector<144x128xbf16>, vector<128x128xbf16>, vector<144x128xf32> -> vector<144x128xf32>
    %11 = vector.shape_cast %10 : vector<144x128xf32> to vector<8x18x128xf32>
    %12 = vector.extract_strided_slice %11 {offsets = [0, 0, 0], sizes = [8, 16, 128], strides = [1, 1, 1]} : vector<8x18x128xf32> to vector<8x16x128xf32>
    %13 = arith.addf %2, %12 : vector<8x16x128xf32>
    %c0_7 = arith.constant 0 : index
    %c1 = arith.constant 1 : index
    %c0_8 = arith.constant 0 : index
    %c0_9 = arith.constant 0 : index
    %14 = vector.load %arg3[%c0_7, %c1, %c0_8, %c0_9] : memref<3x3x128x128xbf16, #tpu.memory_space<vmem>>, vector<1x1x128x128xbf16>
    %15 = vector.shape_cast %14 : vector<1x1x128x128xbf16> to vector<128x128xbf16>
    %cst_10 = arith.constant dense<0.000000e+00> : vector<144x128xf32>
    %16 = tpu.matmul %7, %15, %cst_10 {dimension_numbers = #tpu.dot_dimension_numbers<[1], [0], [0], [1], [0, 0, 1, 1], [], []>} : vector<144x128xbf16>, vector<128x128xbf16>, vector<144x128xf32> -> vector<144x128xf32>
    %17 = vector.shape_cast %16 : vector<144x128xf32> to vector<8x18x128xf32>
    %18 = vector.extract_strided_slice %17 {offsets = [0, 1, 0], sizes = [8, 16, 128], strides = [1, 1, 1]} : vector<8x18x128xf32> to vector<8x16x128xf32>
    %19 = arith.addf %13, %18 : vector<8x16x128xf32>
    %c0_11 = arith.constant 0 : index
    %c2 = arith.constant 2 : index
    %c0_12 = arith.constant 0 : index
    %c0_13 = arith.constant 0 : index
    %20 = vector.load %arg3[%c0_11, %c2, %c0_12, %c0_13] : memref<3x3x128x128xbf16, #tpu.memory_space<vmem>>, vector<1x1x128x128xbf16>
    %21 = vector.shape_cast %20 : vector<1x1x128x128xbf16> to vector<128x128xbf16>
    %cst_14 = arith.constant dense<0.000000e+00> : vector<144x128xf32>
    %22 = tpu.matmul %7, %21, %cst_14 {dimension_numbers = #tpu.dot_dimension_numbers<[1], [0], [0], [1], [0, 0, 1, 1], [], []>} : vector<144x128xbf16>, vector<128x128xbf16>, vector<144x128xf32> -> vector<144x128xf32>
    %23 = vector.shape_cast %22 : vector<144x128xf32> to vector<8x18x128xf32>
    %24 = vector.extract_strided_slice %23 {offsets = [0, 2, 0], sizes = [8, 16, 128], strides = [1, 1, 1]} : vector<8x18x128xf32> to vector<8x16x128xf32>
    %25 = arith.addf %19, %24 : vector<8x16x128xf32>
    %c1_i32 = arith.constant 1 : i32
    %26 = arith.addi %1, %c1_i32 : i32
    %c0_15 = arith.constant 0 : index
    %27 = arith.index_cast %26 : i32 to index
    %c0_16 = arith.constant 0 : index
    %c0_17 = arith.constant 0 : index
    %28 = vector.load %arg2[%c0_15, %27, %c0_16, %c0_17] : memref<1x18x18x128xbf16, #tpu.memory_space<vmem>>, vector<1x8x18x128xbf16>
    %29 = vector.shape_cast %28 : vector<1x8x18x128xbf16> to vector<8x18x128xbf16>
    %30 = vector.shape_cast %29 : vector<8x18x128xbf16> to vector<144x128xbf16>
    %c1_18 = arith.constant 1 : index
    %c0_19 = arith.constant 0 : index
    %c0_20 = arith.constant 0 : index
    %c0_21 = arith.constant 0 : index
    %31 = vector.load %arg3[%c1_18, %c0_19, %c0_20, %c0_21] : memref<3x3x128x128xbf16, #tpu.memory_space<vmem>>, vector<1x1x128x128xbf16>
    %32 = vector.shape_cast %31 : vector<1x1x128x128xbf16> to vector<128x128xbf16>
    %cst_22 = arith.constant dense<0.000000e+00> : vector<144x128xf32>
    %33 = tpu.matmul %30, %32, %cst_22 {dimension_numbers = #tpu.dot_dimension_numbers<[1], [0], [0], [1], [0, 0, 1, 1], [], []>} : vector<144x128xbf16>, vector<128x128xbf16>, vector<144x128xf32> -> vector<144x128xf32>
    %34 = vector.shape_cast %33 : vector<144x128xf32> to vector<8x18x128xf32>
    %35 = vector.extract_strided_slice %34 {offsets = [0, 0, 0], sizes = [8, 16, 128], strides = [1, 1, 1]} : vector<8x18x128xf32> to vector<8x16x128xf32>
    %36 = arith.addf %25, %35 : vector<8x16x128xf32>
    %c1_23 = arith.constant 1 : index
    %c1_24 = arith.constant 1 : index
    %c0_25 = arith.constant 0 : index
    %c0_26 = arith.constant 0 : index
    %37 = vector.load %arg3[%c1_23, %c1_24, %c0_25, %c0_26] : memref<3x3x128x128xbf16, #tpu.memory_space<vmem>>, vector<1x1x128x128xbf16>
    %38 = vector.shape_cast %37 : vector<1x1x128x128xbf16> to vector<128x128xbf16>
    %cst_27 = arith.constant dense<0.000000e+00> : vector<144x128xf32>
    %39 = tpu.matmul %30, %38, %cst_27 {dimension_numbers = #tpu.dot_dimension_numbers<[1], [0], [0], [1], [0, 0, 1, 1], [], []>} : vector<144x128xbf16>, vector<128x128xbf16>, vector<144x128xf32> -> vector<144x128xf32>
    %40 = vector.shape_cast %39 : vector<144x128xf32> to vector<8x18x128xf32>
    %41 = vector.extract_strided_slice %40 {offsets = [0, 1, 0], sizes = [8, 16, 128], strides = [1, 1, 1]} : vector<8x18x128xf32> to vector<8x16x128xf32>
    %42 = arith.addf %36, %41 : vector<8x16x128xf32>
    %c1_28 = arith.constant 1 : index
    %c2_29 = arith.constant 2 : index
    %c0_30 = arith.constant 0 : index
    %c0_31 = arith.constant 0 : index
    %43 = vector.load %arg3[%c1_28, %c2_29, %c0_30, %c0_31] : memref<3x3x128x128xbf16, #tpu.memory_space<vmem>>, vector<1x1x128x128xbf16>
    %44 = vector.shape_cast %43 : vector<1x1x128x128xbf16> to vector<128x128xbf16>
    %cst_32 = arith.constant dense<0.000000e+00> : vector<144x128xf32>
    %45 = tpu.matmul %30, %44, %cst_32 {dimension_numbers = #tpu.dot_dimension_numbers<[1], [0], [0], [1], [0, 0, 1, 1], [], []>} : vector<144x128xbf16>, vector<128x128xbf16>, vector<144x128xf32> -> vector<144x128xf32>
    %46 = vector.shape_cast %45 : vector<144x128xf32> to vector<8x18x128xf32>
    %47 = vector.extract_strided_slice %46 {offsets = [0, 2, 0], sizes = [8, 16, 128], strides = [1, 1, 1]} : vector<8x18x128xf32> to vector<8x16x128xf32>
    %48 = arith.addf %42, %47 : vector<8x16x128xf32>
    %c2_i32 = arith.constant 2 : i32
    %49 = arith.addi %1, %c2_i32 : i32
    %c0_33 = arith.constant 0 : index
    %50 = arith.index_cast %49 : i32 to index
    %c0_34 = arith.constant 0 : index
    %c0_35 = arith.constant 0 : index
    %51 = vector.load %arg2[%c0_33, %50, %c0_34, %c0_35] : memref<1x18x18x128xbf16, #tpu.memory_space<vmem>>, vector<1x8x18x128xbf16>
    %52 = vector.shape_cast %51 : vector<1x8x18x128xbf16> to vector<8x18x128xbf16>
    %53 = vector.shape_cast %52 : vector<8x18x128xbf16> to vector<144x128xbf16>
    %c2_36 = arith.constant 2 : index
    %c0_37 = arith.constant 0 : index
    %c0_38 = arith.constant 0 : index
    %c0_39 = arith.constant 0 : index
    %54 = vector.load %arg3[%c2_36, %c0_37, %c0_38, %c0_39] : memref<3x3x128x128xbf16, #tpu.memory_space<vmem>>, vector<1x1x128x128xbf16>
    %55 = vector.shape_cast %54 : vector<1x1x128x128xbf16> to vector<128x128xbf16>
    %cst_40 = arith.constant dense<0.000000e+00> : vector<144x128xf32>
    %56 = tpu.matmul %53, %55, %cst_40 {dimension_numbers = #tpu.dot_dimension_numbers<[1], [0], [0], [1], [0, 0, 1, 1], [], []>} : vector<144x128xbf16>, vector<128x128xbf16>, vector<144x128xf32> -> vector<144x128xf32>
    %57 = vector.shape_cast %56 : vector<144x128xf32> to vector<8x18x128xf32>
    %58 = vector.extract_strided_slice %57 {offsets = [0, 0, 0], sizes = [8, 16, 128], strides = [1, 1, 1]} : vector<8x18x128xf32> to vector<8x16x128xf32>
    %59 = arith.addf %48, %58 : vector<8x16x128xf32>
    %c2_41 = arith.constant 2 : index
    %c1_42 = arith.constant 1 : index
    %c0_43 = arith.constant 0 : index
    %c0_44 = arith.constant 0 : index
    %60 = vector.load %arg3[%c2_41, %c1_42, %c0_43, %c0_44] : memref<3x3x128x128xbf16, #tpu.memory_space<vmem>>, vector<1x1x128x128xbf16>
    %61 = vector.shape_cast %60 : vector<1x1x128x128xbf16> to vector<128x128xbf16>
    %cst_45 = arith.constant dense<0.000000e+00> : vector<144x128xf32>
    %62 = tpu.matmul %53, %61, %cst_45 {dimension_numbers = #tpu.dot_dimension_numbers<[1], [0], [0], [1], [0, 0, 1, 1], [], []>} : vector<144x128xbf16>, vector<128x128xbf16>, vector<144x128xf32> -> vector<144x128xf32>
    %63 = vector.shape_cast %62 : vector<144x128xf32> to vector<8x18x128xf32>
    %64 = vector.extract_strided_slice %63 {offsets = [0, 1, 0], sizes = [8, 16, 128], strides = [1, 1, 1]} : vector<8x18x128xf32> to vector<8x16x128xf32>
    %65 = arith.addf %59, %64 : vector<8x16x128xf32>
    %c2_46 = arith.constant 2 : index
    %c2_47 = arith.constant 2 : index
    %c0_48 = arith.constant 0 : index
    %c0_49 = arith.constant 0 : index
    %66 = vector.load %arg3[%c2_46, %c2_47, %c0_48, %c0_49] : memref<3x3x128x128xbf16, #tpu.memory_space<vmem>>, vector<1x1x128x128xbf16>
    %67 = vector.shape_cast %66 : vector<1x1x128x128xbf16> to vector<128x128xbf16>
    %cst_50 = arith.constant dense<0.000000e+00> : vector<144x128xf32>
    %68 = tpu.matmul %53, %67, %cst_50 {dimension_numbers = #tpu.dot_dimension_numbers<[1], [0], [0], [1], [0, 0, 1, 1], [], []>} : vector<144x128xbf16>, vector<128x128xbf16>, vector<144x128xf32> -> vector<144x128xf32>
    %69 = vector.shape_cast %68 : vector<144x128xf32> to vector<8x18x128xf32>
    %70 = vector.extract_strided_slice %69 {offsets = [0, 2, 0], sizes = [8, 16, 128], strides = [1, 1, 1]} : vector<8x18x128xf32> to vector<8x16x128xf32>
    %71 = arith.addf %65, %70 : vector<8x16x128xf32>
    %c0_51 = arith.constant 0 : index
    %c0_52 = arith.constant 0 : index
    %72 = vector.load %arg4[%c0_51, %c0_52] : memref<1x128xf32, #tpu.memory_space<vmem>>, vector<1x128xf32>
    %73 = vector.shape_cast %72 : vector<1x128xf32> to vector<1x1x128xf32>
    %74 = vector.broadcast %73 : vector<1x1x128xf32> to vector<8x16x128xf32>
    %75 = arith.addf %71, %74 : vector<8x16x128xf32>
    %76 = tpu.iota {dimensions = array<i32: 2>} : vector<8x16x128xi32>
    %c8_i32_53 = arith.constant 8 : i32
    %77 = vector.broadcast %c8_i32_53 : i32 to vector<8x16x128xi32>
    %78 = arith.cmpi eq, %76, %77 : vector<8x16x128xi32>
    %79 = arith.mulf %75, %75 : vector<8x16x128xf32>
    %cst_54 = arith.constant 1.000000e+00 : f32
    %80 = vector.broadcast %cst_54 : f32 to vector<8x16x128xf32>
    %81 = arith.addf %79, %80 : vector<8x16x128xf32>
    %82 = arith.select %78, %81, %75 : vector<8x16x128xi1>, vector<8x16x128xf32>
    %c9_i32 = arith.constant 9 : i32
    %83 = vector.broadcast %c9_i32 : i32 to vector<8x16x128xi32>
    %84 = arith.cmpi sge, %76, %83 : vector<8x16x128xi32>
    %c17_i32 = arith.constant 17 : i32
    %85 = vector.broadcast %c17_i32 : i32 to vector<8x16x128xi32>
    %86 = arith.cmpi slt, %76, %85 : vector<8x16x128xi32>
    %87 = arith.andi %84, %86 : vector<8x16x128xi1>
    %88 = arith.negf %75 : vector<8x16x128xf32>
    %89 = math.exp %88 : vector<8x16x128xf32>
    %cst_55 = arith.constant 1.000000e+00 : f32
    %90 = vector.broadcast %cst_55 : f32 to vector<8x16x128xf32>
    %91 = arith.addf %90, %89 : vector<8x16x128xf32>
    %92 = arith.divf %90, %91 : vector<8x16x128xf32>
    %93 = arith.select %87, %92, %82 : vector<8x16x128xi1>, vector<8x16x128xf32>
    %c0_56 = arith.constant 0 : index
    %c0_57 = arith.constant 0 : index
    %c0_58 = arith.constant 0 : index
    %c0_59 = arith.constant 0 : index
    %94 = vector.load %arg5[%c0_56, %c0_57, %c0_58, %c0_59] : memref<1x8x16x128xf32, #tpu.memory_space<vmem>>, vector<1x8x16x128xf32>
    %95 = vector.shape_cast %94 : vector<1x8x16x128xf32> to vector<8x16x128xf32>
    %96 = vector.shape_cast %93 : vector<8x16x128xf32> to vector<1x8x16x128xf32>
    tpu.vector_store %arg5[%c0_56, %c0_57, %c0_58, %c0_59], %96 {strides = array<i32>} : memref<1x8x16x128xf32, #tpu.memory_space<vmem>>, vector<1x8x16x128xf32>,
    return
  }
  func.func @transform_0(%arg0: i32, %arg1: i32) -> (i32, i32, i32, i32) {
    %c0_i32 = arith.constant 0 : i32
    %c0_i32_0 = arith.constant 0 : i32
    %c0_i32_1 = arith.constant 0 : i32
    %c0_i32_2 = arith.constant 0 : i32
    return %arg0, %c0_i32, %c0_i32_0, %c0_i32_1 : i32, i32, i32, i32
  }
  func.func @transform_1(%arg0: i32, %arg1: i32) -> (i32, i32, i32, i32) {
    %c0_i32 = arith.constant 0 : i32
    %c0_i32_0 = arith.constant 0 : i32
    %c0_i32_1 = arith.constant 0 : i32
    %c0_i32_2 = arith.constant 0 : i32
    %c0_i32_3 = arith.constant 0 : i32
    return %c0_i32, %c0_i32_0, %c0_i32_1, %c0_i32_2 : i32, i32, i32, i32
  }
  func.func @transform_2(%arg0: i32, %arg1: i32) -> (i32, i32) {
    %c0_i32 = arith.constant 0 : i32
    %c0_i32_0 = arith.constant 0 : i32
    %c0_i32_1 = arith.constant 0 : i32
    return %c0_i32, %c0_i32_0 : i32, i32
  }
  func.func @transform_3(%arg0: i32, %arg1: i32) -> (i32, i32, i32, i32) {
    %c0_i32 = arith.constant 0 : i32
    %c0_i32_0 = arith.constant 0 : i32
    %c0_i32_1 = arith.constant 0 : i32
    return %arg0, %arg1, %c0_i32, %c0_i32_0 : i32, i32, i32, i32
  }
}

</mosaic_0001>

<bundles_post_ra>
// kernel: key_projection_forward.1
= control target key start
LH: loop header
LB: loop body
LE: loop exit
PB: predicated region body
PF: predicated region fallthrough
CT: control target
= control target key end

     0   :  { %s17918_s0 = inlined_call_operand.hbm [shape: bf16[2,18,18,128], index: 0, kind: input, shape index: {}]   ;;  %s17919_s1 = inlined_call_operand.hbm [shape: bf16[3,3,128,128], index: 1, kind: input, shape index: {}]   ;;  %s17920_s2 = inlined_call_operand.hbm [shape: f32[1,128], index: 2, kind: input, shape index: {}]   ;;  %s17921_s3 = inlined_call_operand.hbm [shape: f32[2,16,16,128], index: 3, kind: output, shape index: {}]  }
   0x1   :  { %18158 = sst [smem:[#allocation165_spill]] %s17919_s1 }
   0x2   :  { %18159 = sst [smem:[#allocation166_spill]] %s17920_s2 }
   0x3   :  { %8 = vsyncpa [#allocation3], 0 }
   0x4   :  { %10 = vsyncpa [#allocation3 + $0x1], 0 }
   0x5   :  { %11 = vsyncpa [#allocation6], 0 }
   0x6   :  { %12 = vsyncpa [#allocation4], 0 }
   0x7   :  { %14 = vsyncpa [#allocation4 + $0x1], 0  ;;  %s12929_s12 = smov 0   ;;  %s12931_s13 = smov 0  }
   0x8   :  { %s12933_s14 = smov 0   ;;  %s12935_s15 = smov 0  }
   0x9   :  { %s12937_s16 = smov 0   ;;  %s12939_s17 = smov 0  }
   0xa   :  { %s12941_s18 = smov 0   ;;  %s12943_s19 = smov 0  }
   0xb   :  { %s12945_s20 = smov 0   ;;  %s12947_s21 = smov 0  }
   0xc   :  { %s12949_s22 = smov 0  }
   0xd LB: > { %18160 = sst [smem:[#allocation12_spill]] %s12855_s12  ;;  %s11252_s23 = sadd.s32 4294967295, %s12895_s22   ;;  %s12895_s22 = sphi %s12949_s22, %s20_s22   ;;  %s12891_s21 = sphi %s12947_s21, %s18960_s21   ;;  %s12887_s20 = sphi %s12945_s20, %s18951_s20   ;;  %s12883_s19 = sphi %s12943_s19, %s18959_s19   ;;  %s12879_s18 = sphi %s12941_s18, %s18950_s18   ;;  %s12875_s17 = sphi %s12939_s17, %s18958_s17   ;;  %s12871_s16 = sphi %s12937_s16, %s18957_s16   ;;  %s12867_s15 = sphi %s12935_s15, %s18956_s15   ;;  %s12863_s14 = sphi %s12933_s14, %s18955_s14   ;;  %s12859_s13 = sphi %s12931_s13, %s18954_s13   ;;  %s12855_s12 = sphi %s12929_s12, %s18953_s12  }
   0xe   : > { %18161 = sst [smem:[#allocation13_spill]] %s12887_s20  ;;  %s11253_s24 = sadd.s32 4294967294, %s12895_s22  }
   0xf   : > { %p52_p0 = scmp.ne.s32.totalorder %s12871_s16, %s12867_s15  ;;  %p12985_p1 = scmp.eq.s32.totalorder %s11252_s23, 0 }
  0x10   : > { %p119_p2 = scmp.ne.s32.totalorder %s12863_s14, %s12859_s13  ;;  %p120_p4 = scmp.eq.s32.totalorder %s11252_s23, 3 }
  0x11   : > { %s18162_s25 = scalar_select %p12985_p1, 1, 0 }
  0x12   : > { %p12994_p3 = por %p12985_p1, %p52_p0  ;;  %p125_p5 = scmp.ne.s32.totalorder %s12859_s13, %s12855_s12 }
  0x13   : > { %p126_p6 = scmp.eq.s32.totalorder %s11253_s24, 3  ;;  %p13000_p7 = por %p120_p4, %p119_p2 }
  0x14   : > { %s18163_s27 = scalar_select %p12994_p3, 1, 0 }
  0x15   : > { %s18164_s28 = scalar_select %p13000_p7, 1, 0 }
  0x16   : > { %p11254_p8 = scmp.ge.s32.totalorder %s12895_s22, 1  ;;  %p13005_p9 = por %p126_p6, %p125_p5 }
  0x17   : > { %p133_p10 = scmp.lt.s32.totalorder %s12895_s22, 5  ;;  %s12897_s4 = smov [#allocation5]  }
  0x18   : > { %s18165_s29 = scalar_select %p13005_p9, 1, 0 }
  0x19   : > { %p13010_p11 = pnand %p11254_p8, %p133_p10  ;;  %s145_s5 = sshll.u32 %s12897_s4, 4  ;;  %s146_s5 = int_to_ptr.vmem [resolvable:$true] %s145_s5 }
  0x1a   : > { %18166 = sst [smem:[#allocation14_spill]] %s18165_s29  ;;  %s12898_s7 = smov [#allocation7]  }
  0x1b   : > { %s18167_s30 = scalar_select %p13010_p11, 1, 0 }
  0x1c   : > { %p12236_p12 = pneg %p13010_p11  ;;  %s159_s8 = sshll.u32 %s12898_s7, 4  ;;  %s13022_s8 = int_to_ptr.vmem [resolvable:$true] %s159_s8 }
  0x1d   : > { %s18169_s1 = sld [smem:[#allocation165_spill]] }
  0x1e   : > { %p13018_p13 = pnand %p12236_p12, %p12985_p1 }
  0x20   : > { %p12685_p2 = pneg %p13018_p13 }
  0x23   : > { %s12683_s11 = scalar_lea.hbm %s18169_s1, 9216 }
  0x24   : > { %p12684_p0 = scmp.ne.s32.totalorder %s18169_s1, %s12683_s11  ;;  %p12690_p6 = scmp.lt.u32.totalorder %s12683_s11, %s18169_s1 }
  0x26   : > { %p12686_p4 = pnand %p12685_p2, %p12684_p0 }
  0x28   : > { %p12687_p5 = pneg %p12686_p4 }
  0x2a   : > { %p12692_p8 = pnand %p12690_p6, %p12687_p5 }
  0x2c   : > { %12695 = shalt.err (!%p12692_p8)
}
  0x2d   : > { %s12696_s7 = scalar_lea.vmem %s146_s5, 9216  ;;  %p12704_p7 = scmp.lt.s32.totalorder %s146_s5, %s146_s5 }
  0x2e   : > { %p12697_p10 = scmp.ne.s32.totalorder %s146_s5, %s12696_s7  ;;  %p12705_p1 = scmp.lt.s32.totalorder %s12696_s7, %s12696_s7 }
  0x30   : > { %p12699_p12 = pnand %p12697_p10, %p12685_p2  ;;  %p12706_p3 = por %p12705_p1, %p12704_p7 }
  0x32   : > { %p12700_p9 = pneg %p12699_p12 }
  0x34   : > { %p12707_p11 = pnand %p12706_p3, %p12700_p9 }
  0x36   : > { %12710 = shalt.err (!%p12707_p11)
}
  0x37   : > { %s17929_s9 = smov 64   ;;  %s17930_s10 = smov 4  }
  0x38   : > { %12239 = dma.hbm_to_vmem [thread:$0]  (!%p13018_p13), %s18169_s1, 9216, %s146_s5, [#allocation6], %s17929_s9, %s17929_s9, %s17930_s10  }
  0x39   : > { %s18170_s2 = sld [smem:[#allocation166_spill]] }
  0x3f   : > { %s12711_s4 = scalar_lea.hbm %s18170_s2, 16 }
  0x40   : > { %p12712_p1 = scmp.ne.s32.totalorder %s18170_s2, %s12711_s4  ;;  %p12718_p9 = scmp.lt.u32.totalorder %s12711_s4, %s18170_s2 }
  0x42   : > { %p12714_p3 = pnand %p12712_p1, %p12685_p2 }
  0x44   : > { %p12715_p7 = pneg %p12714_p3 }
  0x46   : > { %p12720_p11 = pnand %p12718_p9, %p12715_p7 }
  0x48   : > { %12723 = shalt.err (!%p12720_p11)
}
  0x49   : > { %s12724_s5 = scalar_lea.vmem %s13022_s8, 16  ;;  %s12731_s26 = scalar_lea.vmem %s13022_s8, 32 }
  0x4a   : > { %p12725_p0 = scmp.ne.s32.totalorder %s13022_s8, %s12724_s5  ;;  %p12732_p6 = scmp.lt.s32.totalorder %s13022_s8, %s13022_s8 }
  0x4b   : > { %p12733_p8 = scmp.lt.s32.totalorder %s12731_s26, %s12724_s5 }
  0x4c   : > { %p12727_p4 = pnand %p12725_p0, %p12685_p2 }
  0x4d   : > { %p12734_p10 = por %p12733_p8, %p12732_p6 }
  0x4e   : > { %p12728_p5 = pneg %p12727_p4 }
  0x50   : > { %p12735_p12 = pnand %p12734_p10, %p12728_p5 }
  0x52   : > { %12738 = shalt.err (!%p12735_p12)
}
  0x53   : > { %12242 = dma.hbm_to_vmem [thread:$0]  (!%p13018_p13), %s18170_s2, 16, %s13022_s8, [#allocation6]  }
  0x54   : > { %s29_s11 = sadd.s32 1, %s12887_s20  ;;  %s32_s15 = sadd.s32 1, %s12891_s21 }
  0x55   : > { %p30_p2 = scmp.ge.s32.totalorder %s29_s11, 2  ;;  %s39_s6 = sadd.s32 1, %s12875_s17 }
  0x56   : > { %p46_p1 = scmp.ne.s32.totalorder %s12875_s17, %s12871_s16  ;;  %p47_p3 = scmp.eq.s32.totalorder %s12895_s22, 0 }
  0x57   : > { %s18962_s11 = smov (%p30_p2, %s29_s11), 0  ;;  %s18964_s15 = smov (!%p30_p2, %s32_s15), %s12891_s21 }
  0x58   : > { %18171 = sst [smem:[#allocation15_spill]] %s18962_s11  ;;  %p13084_p7 = por %p47_p3, %p46_p1 }
  0x59   : > { %s105_s24 = ssub.s32 %s12887_s20, %s18962_s11  ;;  %p34_p13 = scmp.ge.s32.totalorder %s18964_s15, 2 }
  0x5a   : > { %p12253_p9 = scmp.lt.s32.totalorder %s12895_s22, 4  ;;  %s170_s8 = sand.u32 1, %s12875_s17  }
  0x5b   : > { %s12222_s4 = smul.u32 3456, %s12891_s21  ;;  %s18966_s15 = smov (%p34_p13, %s18964_s15), 0 }
  0x5c   : > { %s12221_s7 = smul.u32 216, %s170_s8  ;;  %s36_s5 = ssub.s32 %s12891_s21, %s18966_s15 }
  0x5d   : > { %s13100_s29 = scalar_lea.hbm %s17918_s0, %s12222_s4  ;;  %p37_p11 = scmp.eq.s32.totalorder %s36_s5, 0 }
  0x5e   : > { %s106_s9 = sor.u32 %s105_s24, %s36_s5  ;;  %s18173_s1 = sadd.s32 1, %s12863_s14 }
  0x5f   : > { %p107_p0 = scmp.eq.s32.totalorder %s106_s9, 0  ;;  %s174_s11 = scalar_lea.vmem [#allocation2], %s12221_s7 }
  0x60   : > { %s13103_s10 = scalar_select %p37_p11, %s12875_s17, %s39_s6  }
  0x61   : > { %s13108_s2 = scalar_select %p107_p0, %s12863_s14, %s18173_s1  }
  0x62   : > { %s181_s20 = sshll.u32 %s174_s11, 4  ;;  %p13114_p4 = pnand %p12253_p9, %p13084_p7  ;;  %s13118_s20 = int_to_ptr.vmem [resolvable:$true] %s181_s20 }
  0x63   : > { %s13120_s24 = scalar_lea.sflag [#allocation3], %s170_s8  ;;  %s12739_s9 = scalar_lea.hbm %s13100_s29, 3456 }
  0x64   : > { %p12740_p5 = scmp.ne.s32.totalorder %s13100_s29, %s12739_s9  ;;  %p12741_p6 = pneg %p13114_p4 }
  0x65   : > { %s12744_s6 = scalar_lea.hbm %s17918_s0, 6912  ;;  %p12745_p12 = scmp.lt.u32.totalorder %s13100_s29, %s17918_s0 }
  0x66   : > { %p12742_p8 = pnand %p12741_p6, %p12740_p5  ;;  %p12746_p2 = scmp.lt.u32.totalorder %s12744_s6, %s12739_s9 }
  0x67   : > { %p12748_p3 = scmp.lt.u32.totalorder %s12739_s9, %s13100_s29 }
  0x68   : > { %p12743_p10 = pneg %p12742_p8  ;;  %p12747_p1 = por %p12746_p2, %p12745_p12 }
  0x6a   : > { %p12749_p7 = por %p12748_p3, %p12747_p1 }
  0x6c   : > { %p12750_p13 = pnand %p12749_p7, %p12743_p10 }
  0x6e   : > { %12753 = shalt.err (!%p12750_p13)
}
  0x6f   : > { %s12754_s8 = scalar_lea.vmem %s13118_s20, 3456  ;;  %s12901_s7 = smov [#allocation2]  }
  0x70   : > { %p12755_p9 = scmp.ne.s32.totalorder %s13118_s20, %s12754_s8  ;;  %s12759_s5 = sshll.u32 %s12901_s7, 4  ;;  %s12760_s5 = int_to_ptr.vmem [resolvable:$false] %s12759_s5 }
  0x71   : > { %s12761_s12 = scalar_lea.vmem %s12760_s5, 6912  ;;  %p12762_p5 = scmp.lt.s32.totalorder %s13118_s20, %s12760_s5 }
  0x72   : > { %p12757_p11 = pnand %p12755_p9, %p12741_p6  ;;  %p12763_p8 = scmp.lt.s32.totalorder %s12761_s12, %s12754_s8 }
  0x74   : > { %p12758_p0 = pneg %p12757_p11  ;;  %p12764_p12 = por %p12763_p8, %p12762_p5 }
  0x76   : > { %p12765_p2 = pnand %p12764_p12, %p12758_p0 }
  0x78   : > { %12768 = shalt.err (!%p12765_p2)
}
  0x79   : > { %s18175_s9 = smov 4   ;;  %s18176_s1 = smov 64  }
  0x7a   : > { %12246 = dma.hbm_to_vmem [thread:$0]  (!%p13114_p4), %s13100_s29, 3456, %s13118_s20, %s13120_s24, %s18176_s1, %s18176_s1, %s18175_s9  }
  0x7b   : > { %p18177_p6 = scmp.ne.s32.totalorder %s18167_s30, 0 }
  0x7d   : > { %193 = sbr.rel (%p18177_p6) target bundleno = 1135 (0x46f), region = 32 }
  0x84   : > { %s195_s11 = sand.u32 1, %s12871_s16   ;;  %p18178_p10 = scmp.ne.s32.totalorder %s18163_s27, 0 }
  0x85   : > { %s12223_s6 = smul.u32 216, %s195_s11  ;;  %s196_s23 = scalar_lea.sflag [#allocation3], %s195_s11 }
  0x87   : > { %s199_s4 = scalar_lea.vmem [#allocation2], %s12223_s6 }
  0x88   : > { %12842 = dma.done.wait (%p18178_p10), %s196_s23, 3456  }
  0x89   : > { %12844 = vsyncadd (%p18178_p10), %s196_s23, 4294963840  ;;  %p18179_p1 = scmp.ne.s32.totalorder %s18162_s25, 0 }
  0x8b   : > { %12846 = dma.done.wait (%p18179_p1), [#allocation6], 9232  }
  0x8c   : > { %12848 = vsyncadd (%p18179_p1), [#allocation6], 4294958064  ;;  %v17934_v0 = vmov 0.0   ;;  %vm12903_vm0 = vmmov 0   ;;  %v12904_v1 = vmov 1966171168   ;;  %v17933_v3 = vlaneseq }
  0x8d   : > { %12205 = vmatprep.subr.bf16.mxu1 %v17934_v0  ;;  %11737 = vmatprep.subr.bf16.mxu0 %v17934_v0  ;;  %v293_v2 = vunpack.c.l.s4 %v12904_v1  ;;  %v12355_v4 = vld [vmem:[#allocation5] sm:$0xff]   ;;  %s11582_s20 = smul.u32 96, %s12879_s18  ;;  %v12356_v7 = vld [vmem:[#allocation5 + $0x8] sm:$0xff]   ;;  %v12357_v9 = vld [vmem:[#allocation5 + $0x10] sm:$0xff]   ;;  %vm2341_vm1 = vcmask 1040384   ;;  %vm2342_vm2 = vcmask 1042434  }
  0x8e   : > { %11769 = vmatprep.mubr.msk.bf16.mxu1 %vm12903_vm0, %v17934_v0  ;;  %11753 = vmatprep.mubr.msk.bf16.mxu0 %vm12903_vm0, %v17934_v0  ;;  %v13170_v6 = vshrl.u32 %v17933_v3, 7  ;;  %v12358_v14 = vld [vmem:[#allocation5 + $0x18] sm:$0xff]   ;;  %v12359_v25 = vld [vmem:[#allocation5 + $0x20] sm:$0xff]   ;;  %v12360_v36 = vld [vmem:[#allocation5 + $0x28] sm:$0xff]   ;;  %vm2344_vm3 = vcmask 1044484   ;;  %vm2346_vm4 = vcmask 1046534  }
  0x8f   : > { %v294_v5 = vunpack.c.0.s8 %v293_v2  ;;  %12213 = vmatpush3.bf16.msra.mxu1 %v12355_v4  ;;  %11738 = vmatpush3.bf16.msra.mxu0 %v12355_v4  ;;  %s13174_s25 = scalar_lea.vmem %s199_s4, %s11582_s20 [#allocation2]  ;;  %v12361_v53 = vld [vmem:[#allocation5 + $0x30] sm:$0xff]   ;;  %vm14321_vm5 = vmor %vm2341_vm1, %vm2342_vm2  ;;  %s227_s27 = sand.u32 1, %s12859_s13  }
  0x90   : > { %12206 = vmatprep.subr.bf16.mxu1 %v17934_v0  ;;  %11739 = vmatprep.subr.bf16.mxu0 %v17934_v0  ;;  %v11276_v10 = vld.sshfl [vmem:[%s13174_s25 + $0x28] sm:$0x33 pattern:$0x75316420]  ;;  %vm14348_vm6 = vmor %vm14321_vm5, %vm2344_vm3  ;;  %s11262_s30 = sshll.u32 %s227_s27, 7  ;;  %s11583_s26 = sshll.u32 %s12879_s18, 4 }
  0x91   : > { %v13177_v8 = vsub.s32 %v294_v5, %v13170_v6  ;;  %v11277_v11 = vld.sshfl [vmem:[%s13174_s25 + $0x2c] sm:$0x1 pattern:$0x75316420]  ;;  %v501_v12 = vcombine.high %v11276_v10, %v11276_v10  ;;  %vm14372_vm7 = vmor %vm14348_vm6, %vm2346_vm4  ;;  %s17077_s29 = scalar_lea.vmem [#allocation8], %s11262_s30  ;;  %s11578_s24 = sshll.u32 %s12883_s19, 5 }
  0x92   : > { %v11278_v15 = vld.sshfl [vmem:[%s13174_s25 + $0x30] sm:$0x33 pattern:$0x75316420]  ;;  %s11133_s8 = sadd.s32 %s11583_s26, %s11578_s24  ;;  %s11136_s5 = sshll.u32 %s17077_s29, 4  ;;  %s17850_s5 = int_to_ptr.vmem [resolvable:$true] %s11136_s5 }
  0x93   : > { %12214 = vmatpush3.bf16.msra.mxu1 %v12356_v7  ;;  %11740 = vmatpush3.bf16.msra.mxu0 %v12356_v7  ;;  %v13184_v13 = vrot.slane %v11276_v10, %v13177_v8  ;;  %v531_v16 = vrot.slane %v11277_v11, %v13177_v8  ;;  %v13191_v17 = vrot.slane %v501_v12, %v13177_v8  ;;  %v11266_v20 = vld.sshfl [vmem:[%s13174_s25] sm:$0x33 pattern:$0x75316420]  ;;  %s11579_s7 = sshll.u32 %s11133_s8, 7  ;;  %s17857_s19 = scalar_lea.sflag [#allocation4], %s227_s27 }
  0x94   : > { %12207 = vmatprep.subr.bf16.mxu1 %v17934_v0  ;;  %11741 = vmatprep.subr.bf16.mxu0 %v17934_v0  ;;  %v539_v19 = vcombine.high %v11278_v15, %v11278_v15  ;;  %v546_v21 = vrot.slane %v11278_v15, %v13177_v8  ;;  %v11267_v22 = vld.sshfl [vmem:[%s13174_s25 + $0x4] sm:$0x33 pattern:$0x75316420]  ;;  %v291_v23 = vcombine.high %v11266_v20, %v11266_v20  ;;  %s17848_s18 = scalar_lea.hbm %s17921_s3, %s11579_s7  ;;  %s12769_s1 = scalar_lea.vmem %s17850_s5, 2048 }
  0x95   : > { %v516_v18 = vcombine.high %v13184_v13, %v13184_v13  ;;  %v298_v24 = vrot.slane %v11266_v20, %v13177_v8  ;;  %v517_v26 = vcombine.high %v13191_v17, %v13191_v17  ;;  %v315_v29 = vcombine.high %v11267_v22, %v11267_v22  ;;  %v11279_v32 = vld.sshfl [vmem:[%s13174_s25 + $0x34] sm:$0x33 pattern:$0x75316420]  ;;  %p12770_p4 = scmp.ne.s32.totalorder %s17850_s5, %s12769_s1  ;;  %p18946_p3 = scmp.ne.s32.totalorder %s18164_s28, 0 }
  0x96   : > { %v553_v27 = vrot.slane %v539_v19, %v13177_v8  ;;  %v305_v30 = vrot.slane %v291_v23, %v13177_v8  ;;  %v322_v31 = vrot.slane %v11267_v22, %v13177_v8  ;;  %v563_v44 = vcombine.high %v11279_v32, %v11279_v32  ;;  %v11280_v48 = vld.sshfl [vmem:[%s13174_s25 + $0x38] sm:$0x1 pattern:$0x75316420]  ;;  %s12906_s11 = smov [#allocation8]  }
  0x97   : > { %12215 = vmatpush3.bf16.msra.mxu1 %v12357_v9  ;;  %11742 = vmatpush3.bf16.msra.mxu0 %v12357_v9  ;;  %v992_v28 = vcombine.low %v13191_v17, %v516_v18  ;;  %v993_v33 = vcombine.low %v517_v26, %v531_v16  ;;  %v329_v38 = vrot.slane %v315_v29, %v13177_v8  ;;  %v11281_v52 = vld.sshfl [vmem:[%s13174_s25 + $0x3c] sm:$0x33 pattern:$0x75316420]  ;;  %p12771_p7 = pnand %p12770_p4, %p18946_p3  ;;  %s12773_s6 = sshll.u32 %s12906_s11, 4  ;;  %s12774_s6 = int_to_ptr.vmem [resolvable:$false] %s12773_s6 }
  0x98   : > { %12208 = vmatprep.subr.bf16.mxu1 %v17934_v0  ;;  %11743 = vmatprep.subr.bf16.mxu0 %v17934_v0  ;;  %v994_v34 = vcombine.low %v546_v21, %v553_v27  ;;  %v11294_v35 = vcombine.high %v546_v21, %v553_v27  ;;  %v796_v39 = vcombine.low %v298_v24, %v305_v30  ;;  %v11268_v62 = vld.sshfl [vmem:[%s13174_s25 + $0x8] sm:$0x1 pattern:$0x75316420]  ;;  %s12775_s23 = scalar_lea.vmem %s12774_s6, 4096  ;;  %p12776_p9 = scmp.lt.s32.totalorder %s17850_s5, %s12774_s6 }
  0x99   : > { %v1002_v37 = vrot.slane %v992_v28, %v13177_v8  ;;  %v11290_v40 = vcombine.high %v298_v24, %v305_v30  ;;  %v1009_v41 = vrot.slane %v993_v33, %v13177_v8  ;;  %v798_v45 = vcombine.low %v322_v31, %v329_v38  ;;  %v11269_v4 = vld.sshfl [vmem:[%s13174_s25 + $0xc] sm:$0x33 pattern:$0x75316420]  ;;  %p12772_p13 = pneg %p12771_p7  ;;  %p12777_p11 = scmp.lt.s32.totalorder %s12775_s23, %s12769_s1 }
  0x9a   : > { %v1016_v42 = vrot.slane %v994_v34, %v13177_v8  ;;  %v1023_v43 = vrot.slane %v11294_v35, %v13177_v8  ;;  %v11291_v46 = vcombine.high %v322_v31, %v329_v38  ;;  %v806_v47 = vrot.slane %v796_v39, %v13177_v8  ;;  %v11270_v18 = vld.sshfl [vmem:[%s13174_s25 + $0x10] sm:$0x33 pattern:$0x75316420]  ;;  %v12362_v21 = vld [vmem:[#allocation5 + $0x38] sm:$0xff]  }
  0x9b   : > { %12216 = vmatpush3.bf16.msra.mxu1 %v12358_v14  ;;  %11744 = vmatpush3.bf16.msra.mxu0 %v12358_v14  ;;  %v1024_v49 = vcombine.low %v1002_v37, %v1009_v41  ;;  %v813_v51 = vrot.slane %v11290_v40, %v13177_v8  ;;  %v820_v54 = vrot.slane %v798_v45, %v13177_v8  ;;  %v11282_v35 = vld.sshfl [vmem:[%s13174_s25 + $0x40] sm:$0x33 pattern:$0x75316420]  ;;  %v12363_v37 = vld [vmem:[#allocation5 + $0x40] sm:$0xff]   ;;  %p12778_p0 = por %p12777_p11, %p12776_p9 }
  0x9c   : > { %12209 = vmatprep.subr.bf16.mxu1 %v17934_v0  ;;  %11745 = vmatprep.subr.bf16.mxu0 %v17934_v0  ;;  %v1025_v50 = vcombine.low %v1016_v42, %v1023_v43  ;;  %v827_v55 = vrot.slane %v11291_v46, %v13177_v8  ;;  %v13222_v56 = vrot.slane %v11279_v32, %v13177_v8  ;;  %v12365_v38 = vld [vmem:[#allocation5 + $0x80] sm:$0xff]  }
  0x9d   : > { %v13225_v57 = vrot.slane %v563_v44, %v13177_v8  ;;  %v1032_v58 = vrot.slane %v1024_v49, %v13177_v8  ;;  %v828_v60 = vcombine.low %v806_v47, %v813_v51  ;;  %v13230_v61 = vrot.slane %v11280_v48, %v13177_v8  ;;  %v11283_v47 = vld.sshfl [vmem:[%s13174_s25 + $0x44] sm:$0x1 pattern:$0x75316420]  ;;  %v12366_v51 = vld [vmem:[#allocation5 + $0x88] sm:$0xff]   ;;  %p12779_p5 = pnand %p12778_p0, %p12772_p13 }
  0x9e   : > { %v1039_v59 = vrot.slane %v1025_v50, %v13177_v8  ;;  %v829_v63 = vcombine.low %v820_v54, %v827_v55  ;;  %v601_v1 = vcombine.high %v11281_v52, %v11281_v52  ;;  %v13234_v2 = vrot.slane %v11281_v52, %v13177_v8  ;;  %v12364_v50 = vld [vmem:[#allocation5 + $0x48] sm:$0xff]   ;;  %v11284_v55 = vld.sshfl [vmem:[%s13174_s25 + $0x48] sm:$0x33 pattern:$0x75316420] }
  0x9f   : > { %12217 = vmatpush3.bf16.msra.mxu1 %v12359_v25  ;;  %11746 = vmatpush3.bf16.msra.mxu0 %v12359_v25  ;;  %v836_v7 = vrot.slane %v828_v60, %v13177_v8  ;;  %v1041_v9 = vcombine.low %v13222_v56, %v13225_v57  ;;  %v11295_v14 = vcombine.high %v13222_v56, %v13225_v57 }
  0xa0   : > { %12210 = vmatprep.subr.bf16.mxu1 %v17934_v0  ;;  %11747 = vmatprep.subr.bf16.mxu0 %v17934_v0  ;;  %v13239_v5 = vcombine.low %v1032_v58, %v1039_v59  ;;  %v843_v10 = vrot.slane %v829_v63, %v13177_v8  ;;  %v13246_v11 = vrot.slane %v601_v1, %v13177_v8 }
  0xa1   : > { %v616_v12 = vcombine.high %v13234_v2, %v13234_v2  ;;  %v1043_v15 = vcombine.low %v13230_v61, %v13234_v2  ;;  %v1051_v16 = vrot.slane %v1041_v9, %v13177_v8  ;;  %v345_v19 = vrot.slane %v11268_v62, %v13177_v8  ;;  %v12367_v9 = vld [vmem:[#allocation5 + $0x50] sm:$0xff]  }
  0xa2   : > { %v353_v20 = vcombine.high %v11269_v4, %v11269_v4  ;;  %v13257_v22 = vcombine.low %v836_v7, %v843_v10  ;;  %v1058_v24 = vrot.slane %v11295_v14, %v13177_v8  ;;  %v13265_v26 = vrot.slane %v11269_v4, %v13177_v8  ;;  %v11271_v4 = vld.sshfl [vmem:[%s13174_s25 + $0x14] sm:$0x1 pattern:$0x75316420] }
  0xa3   : > { %12218 = vmatpush3.bf16.msra.mxu1 %v12360_v36  ;;  %11748 = vmatpush3.bf16.msra.mxu0 %v12360_v36  ;;  %v1044_v23 = vcombine.low %v13246_v11, %v616_v12  ;;  %v1065_v25 = vrot.slane %v1043_v15, %v13177_v8  ;;  %v377_v30 = vcombine.high %v11270_v18, %v11270_v18  ;;  %v11272_v7 = vld.sshfl [vmem:[%s13174_s25 + $0x18] sm:$0x33 pattern:$0x75316420] }
  0xa4   : > { %12211 = vmatprep.subr.bf16.mxu1 %v17934_v0  ;;  %11749 = vmatprep.subr.bf16.mxu0 %v17934_v0  ;;  %v13268_v27 = vrot.slane %v353_v20, %v13177_v8  ;;  %v1073_v29 = vcombine.low %v1051_v16, %v1058_v24  ;;  %v13272_v31 = vrot.slane %v11270_v18, %v13177_v8  ;;  %v11273_v15 = vld.sshfl [vmem:[%s13174_s25 + $0x1c] sm:$0x33 pattern:$0x75316420] }
  0xa5   : > { %v1072_v28 = vrot.slane %v1044_v23, %v13177_v8  ;;  %v368_v32 = vcombine.high %v13265_v26, %v13265_v26  ;;  %v845_v34 = vcombine.low %v345_v19, %v13265_v26  ;;  %v617_v36 = vcombine.high %v13246_v11, %v13246_v11 }
  0xa6   : > { %v369_v33 = vcombine.high %v13268_v27, %v13268_v27  ;;  %v1081_v40 = vrot.slane %v1073_v29, %v13177_v8  ;;  %v13284_v41 = vrot.slane %v377_v30, %v13177_v8  ;;  %v392_v42 = vcombine.high %v13272_v31, %v13272_v31 }
  0xa7   : > { %12219 = vmatpush3.bf16.msra.mxu1 %v12361_v53  ;;  %11750 = vmatpush3.bf16.msra.mxu0 %v12361_v53  ;;  %v1074_v39 = vcombine.low %v1065_v25, %v1072_v28  ;;  %v846_v43 = vcombine.low %v13268_v27, %v368_v32  ;;  %v855_v46 = vrot.slane %v845_v34, %v13177_v8 }
  0xa8   : > { %12212 = vmatprep.subr.bf16.mxu1 %v17934_v0  ;;  %11751 = vmatprep.subr.bf16.mxu0 %v17934_v0  ;;  %v847_v44 = vcombine.low %v369_v33, %v13272_v31  ;;  %v625_v48 = vcombine.high %v11282_v35, %v11282_v35  ;;  %v13296_v49 = vrot.slane %v11282_v35, %v13177_v8 }
  0xa9   : > { %v1088_v45 = vrot.slane %v1074_v39, %v13177_v8  ;;  %v848_v52 = vcombine.low %v13284_v41, %v392_v42  ;;  %v862_v53 = vrot.slane %v846_v43, %v13177_v8  ;;  %v13316_v1 = vrot.slane %v11283_v47, %v13177_v8  ;;  %v12369_v39 = vld [vmem:[#allocation5 + $0x58] sm:$0xff]   ;;  %v11286_v47 = vld.sshfl [vmem:[%s13174_s25 + $0x50] sm:$0x1 pattern:$0x75316420] }
  0xaa   : > { %v869_v54 = vrot.slane %v847_v44, %v13177_v8  ;;  %v13307_v59 = vrot.slane %v625_v48, %v13177_v8  ;;  %v640_v60 = vcombine.high %v13296_v49, %v13296_v49  ;;  %v663_v12 = vcombine.high %v11284_v55, %v11284_v55  ;;  %v12370_v44 = vld [vmem:[#allocation5 + $0x98] sm:$0xff]  }
  0xab   : > { %12220 = vmatpush3.bf16.msra.mxu1 %v12362_v21  ;;  %11752 = vmatpush3.bf16.msra.mxu0 %v12362_v21  ;;  %v13304_v58 = vcombine.low %v1081_v40, %v1088_v45  ;;  %v876_v62 = vrot.slane %v848_v52, %v13177_v8  ;;  %v877_v63 = vcombine.low %v855_v46, %v862_v53  ;;  %v12368_v21 = vld [vmem:[#allocation5 + $0x90] sm:$0xff]   ;;  %v13373_v52 = vld.sshfl [vmem:[%s13174_s25 + $0x54] sm:$0x33 pattern:$0x75316420] }
  0xac   : > { %11789 = vmatprep.subr.bf16.mxu1 %v17934_v0  ;;  %11841 = vmatprep.subr.bf16.mxu0 %v17934_v0  ;;  %v641_v10 = vcombine.high %v13307_v59, %v13307_v59  ;;  %v13326_v14 = vrot.slane %v11284_v55, %v13177_v8  ;;  %v1090_v19 = vcombine.low %v617_v36, %v13296_v49  ;;  %v11285_v36 = vld.sshfl [vmem:[%s13174_s25 + $0x4c] sm:$0x33 pattern:$0x75316420] }
  0xad   : > { %v878_v16 = vcombine.low %v869_v54, %v876_v62  ;;  %v885_v18 = vrot.slane %v877_v63, %v13177_v8  ;;  %v1091_v20 = vcombine.low %v13307_v59, %v640_v60  ;;  %v13333_v23 = vrot.slane %v663_v12, %v13177_v8  ;;  %v11274_v60 = vld.sshfl [vmem:[%s13174_s25 + $0x20] sm:$0x1 pattern:$0x75316420] }
  0xae   : > { %11770 = vmatmul.mubr.bf16.vlgmr.msra.gmra.mrb[0].mxu1 %v13239_v5  ;;  %11754 = vmatmul.mubr.bf16.vlgmr.msra.gmra.mrb[0].mxu0 %v13257_v22  ;;  %v1092_v24 = vcombine.low %v641_v10, %v13316_v1  ;;  %v393_v25 = vcombine.high %v13284_v41, %v13284_v41  ;;  %v1100_v29 = vrot.slane %v1090_v19, %v13177_v8 }
  0xaf   : > { %11790 = vmatpush3.bf16.msra.mxu1 %v12363_v37  ;;  %11842 = vmatpush3.bf16.msra.mxu0 %v12365_v38  ;;  %v892_v28 = vrot.slane %v878_v16, %v13177_v8  ;;  %v1107_v30 = vrot.slane %v1091_v20, %v13177_v8  ;;  %v1093_v32 = vcombine.low %v13326_v14, %v13333_v23 }
  0xb0   : > { %11791 = vmatprep.subr.bf16.mxu1 %v17934_v0  ;;  %11773 = vmatprep.mubr.msk.bf16.mxu1 %vm12903_vm0, %v17934_v0  ;;  %v1114_v33 = vrot.slane %v1092_v24, %v13177_v8  ;;  %v13347_v34 = vrot.slane %v11271_v4, %v13177_v8  ;;  %v415_v35 = vcombine.high %v11272_v7, %v11272_v7 }
  0xb1   : > { %11843 = vmatprep.subr.bf16.mxu0 %v17934_v0  ;;  %11757 = vmatprep.mubr.msk.bf16.mxu0 %vm12903_vm0, %v17934_v0  ;;  %v13351_v37 = vcombine.low %v885_v18, %v892_v28  ;;  %v1122_v38 = vcombine.low %v1100_v29, %v1107_v30  ;;  %v13354_v40 = vrot.slane %v11272_v7, %v13177_v8  ;;  %v12371_v18 = vld [vmem:[#allocation5 + $0x60] sm:$0xff]  }
  0xb2   : > { %v439_v42 = vcombine.high %v11273_v15, %v11273_v15  ;;  %v1121_v43 = vrot.slane %v1093_v32, %v13177_v8  ;;  %v13358_v45 = vrot.slane %v415_v35, %v13177_v8  ;;  %v13361_v46 = vrot.slane %v11273_v15, %v13177_v8  ;;  %v12372_v15 = vld [vmem:[#allocation5 + $0xa0] sm:$0xff]  }
  0xb3   : > { %11792 = vmatpush3.bf16.msra.mxu1 %v12364_v50  ;;  %11844 = vmatpush3.bf16.msra.mxu0 %v12366_v51  ;;  %v1130_v48 = vrot.slane %v1122_v38, %v13177_v8  ;;  %v894_v51 = vcombine.low %v393_v25, %v13347_v34  ;;  %v687_v4 = vcombine.high %v11285_v36, %v11285_v36 }
  0xb4   : > { %11793 = vmatprep.subr.bf16.mxu1 %v17934_v0  ;;  %11845 = vmatprep.subr.bf16.mxu0 %v17934_v0  ;;  %v13369_v50 = vrot.slane %v439_v42, %v13177_v8  ;;  %v1123_v53 = vcombine.low %v1114_v33, %v1121_v43  ;;  %v895_v54 = vcombine.low %v13354_v40, %v13358_v45  ;;  %v12374_v42 = vld [vmem:[#allocation5 + $0xa8] sm:$0xff]  }
  0xb5   : > { %v11292_v55 = vcombine.high %v13354_v40, %v13358_v45  ;;  %v904_v63 = vrot.slane %v894_v51, %v13177_v8  ;;  %v13388_v7 = vrot.slane %v11285_v36, %v13177_v8  ;;  %v13397_v19 = vrot.slane %v687_v4, %v13177_v8 }
  0xb6   : > { %11774 = vmatmul.mubr.bf16.gmra.mrb[4].mxu1 %v13304_v58  ;;  %11758 = vmatmul.mubr.bf16.gmra.mrb[4].mxu0 %v13351_v37  ;;  %v897_v62 = vcombine.low %v13361_v46, %v13369_v50  ;;  %v911_v10 = vrot.slane %v895_v54, %v13177_v8  ;;  %v13400_v20 = vrot.slane %v11286_v47, %v13177_v8 }
  0xb7   : > { %11794 = vmatpush3.bf16.msra.mxu1 %v12367_v9  ;;  %11846 = vmatpush3.bf16.msra.mxu0 %v12368_v21  ;;  %v1137_v9 = vrot.slane %v1123_v53, %v13177_v8  ;;  %v918_v12 = vrot.slane %v11292_v55, %v13177_v8  ;;  %v11275_v21 = vld.sshfl [vmem:[%s13174_s25 + $0x24] sm:$0x33 pattern:$0x75316420]  ;;  %v13407_v28 = vrot.slane %v13373_v52, %v13177_v8 }
  0xb8   : > { %11777 = vmatprep.mubr.msk.bf16.mxu1 %vm12903_vm0, %v17934_v0  ;;  %11795 = vmatprep.subr.bf16.mxu1 %v17934_v0  ;;  %v925_v16 = vrot.slane %v897_v62, %v13177_v8  ;;  %v926_v25 = vcombine.low %v904_v63, %v911_v10  ;;  %v11296_v29 = vcombine.high %v13326_v14, %v13333_v23  ;;  %v11288_v55 = vld.sshfl [vmem:[%s13174_s25 + $0x58] sm:$0x33 pattern:$0x75316420] }
  0xb9   : > { %11847 = vmatprep.subr.bf16.mxu0 %v17934_v0  ;;  %11761 = vmatprep.mubr.msk.bf16.mxu0 %vm12903_vm0, %v17934_v0  ;;  %v13403_v24 = vcombine.low %v1130_v48, %v1137_v9  ;;  %v1140_v32 = vcombine.low %v13388_v7, %v13397_v19  ;;  %v11297_v33 = vcombine.high %v13388_v7, %v13397_v19  ;;  %v12373_v48 = vld [vmem:[#allocation5 + $0x68] sm:$0xff]  }
  0xba   : > { %v927_v30 = vcombine.low %v918_v12, %v925_v16  ;;  %v13416_v35 = vrot.slane %v11274_v60, %v13177_v8  ;;  %v934_v36 = vrot.slane %v926_v25, %v13177_v8  ;;  %v1142_v38 = vcombine.low %v13400_v20, %v13407_v28  ;;  %v12375_v16 = vld [vmem:[#allocation5 + $0xb0] sm:$0xff]  }
  0xbb   : > { %11796 = vmatpush3.bf16.msra.mxu1 %v12369_v39  ;;  %11848 = vmatpush3.bf16.msra.mxu0 %v12370_v44  ;;  %v1149_v39 = vrot.slane %v11296_v29, %v13177_v8  ;;  %v1156_v44 = vrot.slane %v1140_v32, %v13177_v8  ;;  %v1163_v47 = vrot.slane %v11297_v33, %v13177_v8  ;;  %v12376_v25 = vld [vmem:[#allocation5 + $0x70] sm:$0xff]  }
  0xbc   : > { %11797 = vmatprep.subr.bf16.mxu1 %v17934_v0  ;;  %11849 = vmatprep.subr.bf16.mxu0 %v17934_v0  ;;  %v941_v43 = vrot.slane %v927_v30, %v13177_v8  ;;  %v1170_v51 = vrot.slane %v1142_v38, %v13177_v8  ;;  %v477_v53 = vcombine.high %v11275_v21, %v11275_v21 }
  0xbd   : > { %v13432_v54 = vrot.slane %v11275_v21, %v13177_v8  ;;  %v1171_v62 = vcombine.low %v1149_v39, %v1156_v44  ;;  %v11293_v63 = vcombine.high %v13361_v46, %v13369_v50  ;;  %v725_v4 = vcombine.high %v13373_v52, %v13373_v52 }
  0xbe   : > { %11778 = vmatmul.mubr.bf16.gmra.mrb[8].mxu1 %v13403_v24  ;;  %v13435_v60 = vcombine.low %v934_v36, %v941_v43  ;;  %v1172_v9 = vcombine.low %v1163_v47, %v1170_v51  ;;  %v13442_v10 = vrot.slane %v477_v53, %v13177_v8  ;;  %v740_v38 = vcombine.high %v13407_v28, %v13407_v28  ;;  %v12377_v51 = vld [vmem:[#allocation5 + $0xb8] sm:$0xff]  }
  0xbf   : > { %11850 = vmatpush3.bf16.msra.mxu0 %v12372_v15  ;;  %11798 = vmatpush3.bf16.msra.mxu1 %v12371_v18  ;;  %v492_v12 = vcombine.high %v13432_v54, %v13432_v54  ;;  %v944_v15 = vcombine.low %v13416_v35, %v13432_v54  ;;  %v11289_v18 = vld.sshfl [vmem:[%s13174_s25 + $0x5c] sm:$0x1 pattern:$0x75316420]  ;;  %v1179_v21 = vrot.slane %v1171_v62, %v13177_v8 }
  0xc0   : > { %11781 = vmatprep.mubr.msk.bf16.mxu1 %vm12903_vm0, %v17934_v0  ;;  %11799 = vmatprep.subr.bf16.mxu1 %v17934_v0  ;;  %v953_v52 = vrot.slane %v11293_v63, %v13177_v8  ;;  %v13453_v29 = vrot.slane %v725_v4, %v13177_v8  ;;  %v1186_v30 = vrot.slane %v1172_v9, %v13177_v8  ;;  %v12378_v9 = vld [vmem:[#allocation5 + $0x78] sm:$0xff]  }
  0xc1   : > { %11851 = vmatprep.subr.bf16.mxu0 %v17934_v0  ;;  %11762 = vmatmul.mubr.bf16.gmra.mrb[8].mxu0 %v13435_v60  ;;  %v493_v32 = vcombine.high %v13442_v10, %v13442_v10  ;;  %v945_v33 = vcombine.low %v13442_v10, %v492_v12  ;;  %v960_v36 = vrot.slane %v944_v15, %v13177_v8 }
  0xc2   : > { %11765 = vmatprep.mubr.msk.bf16.mxu0 %vm12903_vm0, %v17934_v0  ;;  %v741_v39 = vcombine.high %v13453_v29, %v13453_v29  ;;  %v13468_v43 = vcombine.low %v1179_v21, %v1186_v30  ;;  %v13473_v53 = vrot.slane %v11288_v55, %v13177_v8  ;;  %v13479_v63 = vrot.slane %v11289_v18, %v13177_v8 }
  0xc3   : > { %11852 = vmatpush3.bf16.msra.mxu0 %v12374_v42  ;;  %11800 = vmatpush3.bf16.msra.mxu1 %v12373_v48  ;;  %v749_v42 = vcombine.high %v11288_v55, %v11288_v55  ;;  %v946_v44 = vcombine.low %v493_v32, %v13184_v13  ;;  %v967_v47 = vrot.slane %v945_v33, %v13177_v8 }
  0xc4   : > { %11853 = vmatprep.subr.bf16.mxu0 %v17934_v0  ;;  %11801 = vmatprep.subr.bf16.mxu1 %v17934_v0  ;;  %v975_v48 = vcombine.low %v953_v52, %v960_v36  ;;  %v1188_v4 = vcombine.low %v13453_v29, %v740_v38  ;;  %v3859_v55 = vcombine.low %v13265_v26, %v13268_v27 }
  0xc5   : > { %v13476_v62 = vrot.slane %v749_v42, %v13177_v8  ;;  %v974_v12 = vrot.slane %v946_v44, %v13177_v8  ;;  %v1189_v21 = vcombine.low %v741_v39, %v13473_v53  ;;  %v11380_v30 = vcombine.high %v13265_v26, %v13268_v27 }
  0xc6   : > { %11782 = vmatmul.mubr.bf16.gmra.mrb[12].mxu1 %v13468_v43  ;;  %v983_v15 = vrot.slane %v975_v48, %v13177_v8  ;;  %v1198_v52 = vrot.slane %v1188_v4, %v13177_v8  ;;  %v3861_v32 = vcombine.low %v13272_v31, %v13284_v41  ;;  %v11381_v42 = vcombine.high %v13272_v31, %v13284_v41 }
  0xc7   : > { %11854 = vmatpush3.bf16.msra.mxu0 %v12375_v16  ;;  %11802 = vmatpush3.bf16.msra.mxu1 %v12376_v25  ;;  %v764_v16 = vcombine.high %v13473_v53, %v13473_v53  ;;  %v765_v18 = vcombine.high %v13476_v62, %v13476_v62  ;;  %v976_v25 = vcombine.low %v967_v47, %v974_v12 }
  0xc8   : > { %11855 = vmatprep.subr.bf16.mxu0 %v17934_v0  ;;  %11785 = vmatprep.mubr.msk.bf16.mxu1 %vm12903_vm0, %v17934_v0  ;;  %v1205_v38 = vrot.slane %v1189_v21, %v13177_v8  ;;  %v3869_v26 = vrot.slane %v3859_v55, %v13177_v8  ;;  %v3876_v27 = vrot.slane %v11380_v30, %v13177_v8  ;;  %v11364_v30 = vld.sshfl [vmem:[%s13174_s25 + $0x2c] sm:$0x1 pattern:$0x75316420] }
  0xc9   : > { %11803 = vmatprep.subr.bf16.mxu1 %v17934_v0  ;;  %v1190_v33 = vcombine.low %v13476_v62, %v764_v16  ;;  %v1191_v36 = vcombine.low %v765_v18, %v13479_v63  ;;  %v990_v39 = vrot.slane %v976_v25, %v13177_v8  ;;  %v3430_v31 = vcombine.high %v13354_v40, %v13354_v40 }
  0xca   : > { %v1220_v48 = vcombine.low %v1198_v52, %v1205_v38  ;;  %v3891_v12 = vcombine.low %v3869_v26, %v3876_v27  ;;  %v3431_v16 = vcombine.high %v13358_v45, %v13358_v45  ;;  %v3454_v18 = vcombine.high %v13361_v46, %v13361_v46 }
  0xcb   : > { %11856 = vmatpush3.bf16.msra.mxu0 %v12377_v51  ;;  %11804 = vmatpush3.bf16.msra.mxu1 %v12378_v9  ;;  %v1212_v44 = vrot.slane %v1190_v33, %v13177_v8  ;;  %v1219_v47 = vrot.slane %v1191_v36, %v13177_v8  ;;  %v3883_v51 = vrot.slane %v3861_v32, %v13177_v8 }
  0xcc   : > { %11945 = vmatprep.subr.bf16.mxu0 %v17934_v0  ;;  %11893 = vmatprep.subr.bf16.mxu1 %v17934_v0  ;;  %v13514_v4 = vcombine.low %v983_v15, %v990_v39  ;;  %v3890_v9 = vrot.slane %v11381_v42, %v13177_v8  ;;  %v1228_v55 = vrot.slane %v1220_v48, %v13177_v8  ;;  %v11365_v39 = vld.sshfl [vmem:[%s13174_s25 + $0x30] sm:$0x33 pattern:$0x75316420] }
  0xcd   : > { %v1221_v41 = vcombine.low %v1212_v44, %v1219_v47  ;;  %v3899_v21 = vrot.slane %v3891_v12, %v13177_v8  ;;  %v3908_v52 = vcombine.low %v13347_v34, %v13354_v40  ;;  %v3909_v25 = vcombine.low %v13358_v45, %v3430_v31 }
  0xce   : > { %11766 = vmatmul.mubr.bf16.gmra.mrb[12].mxu0 %v13514_v4  ;;  %v3892_v15 = vcombine.low %v3883_v51, %v3890_v9  ;;  %v3910_v33 = vcombine.low %v3431_v16, %v13361_v46  ;;  %v3911_v36 = vcombine.low %v13369_v50, %v3454_v18  ;;  %v3455_v38 = vcombine.high %v13369_v50, %v13369_v50  ;;  %v12380_v9 = vld [vmem:[#allocation5 + $0x100] sm:$0xff]  }
  0xcf   : > { %v1235_v32 = vrot.slane %v1221_v41, %v13177_v8  ;;  %11857 = vmatprep.mubr.msk.bf16.mxu0 %vm12903_vm0, %v17934_v0  ;;  %v3918_v34 = vrot.slane %v3908_v52, %v13177_v8  ;;  %v3925_v40 = vrot.slane %v3909_v25, %v13177_v8  ;;  %v3958_v45 = vcombine.low %v13432_v54, %v13442_v10  ;;  %v12379_v25 = vld [vmem:[#allocation5 + $0xc0] sm:$0xff]  }
  0xd0   : > { %v3906_v42 = vrot.slane %v3892_v15, %v13177_v8  ;;  %v3932_v27 = vrot.slane %v3910_v33, %v13177_v8  ;;  %v3939_v46 = vrot.slane %v3911_v36, %v13177_v8  ;;  %v3957_v44 = vcombine.low %v3455_v38, %v13416_v35 }
  0xd1   : > { %v13543_v26 = vcombine.low %v1228_v55, %v1235_v32  ;;  %v3940_v50 = vcombine.low %v3918_v34, %v3925_v40  ;;  %v11382_v48 = vcombine.high %v13432_v54, %v13442_v10  ;;  %v3960_v51 = vcombine.low %v13184_v13, %v13191_v17 }
  0xd2   : > { %v13548_v47 = vcombine.low %v3899_v21, %v3906_v42  ;;  %v3941_v12 = vcombine.low %v3932_v27, %v3939_v46  ;;  %v3967_v31 = vrot.slane %v3957_v44, %v13177_v8  ;;  %v3974_v41 = vrot.slane %v3958_v45, %v13177_v8 }
  0xd3   : > { %11786 = vmatmul.mubr.bf16.gmra.mrb[16].mxu1 %v13543_v26  ;;  %v13558_v55 = vrot.slane %v11364_v30, %v13177_v8  ;;  %v3948_v35 = vrot.slane %v3940_v50, %v13177_v8  ;;  %v3981_v54 = vrot.slane %v11382_v48, %v13177_v8  ;;  %v3988_v10 = vrot.slane %v3960_v51, %v13177_v8  ;;  %v12382_v30 = vld [vmem:[#allocation5 + $0x108] sm:$0xff]  }
  0xd4   : > { %11805 = vmatprep.mubr.msk.bf16.mxu1 %vm12903_vm0, %v17934_v0  ;;  %v3539_v16 = vcombine.high %v11365_v39, %v11365_v39  ;;  %v3955_v18 = vrot.slane %v3941_v12, %v13177_v8  ;;  %v3989_v15 = vcombine.low %v3967_v31, %v3974_v41  ;;  %v13567_v21 = vrot.slane %v11365_v39, %v13177_v8  ;;  %v12384_v31 = vld [vmem:[#allocation5 + $0x110] sm:$0xff]  }
  0xd5   : > { %v11383_v52 = vcombine.high %v13184_v13, %v13191_v17  ;;  %v3990_v32 = vcombine.low %v3981_v54, %v3988_v10  ;;  %v3578_v36 = vcombine.high %v13222_v56, %v13222_v56  ;;  %v3579_v38 = vcombine.high %v13225_v57, %v13225_v57 }
  0xd6   : > { %11858 = vmatmul.mubr.bf16.vlgmr.msra.gmra.mrb[16].mxu0 %v13257_v22  ;;  %v13573_v33 = vrot.slane %v3539_v16, %v13177_v8  ;;  %v13581_v39 = vcombine.low %v3948_v35, %v3955_v18  ;;  %v3997_v13 = vrot.slane %v3989_v15, %v13177_v8  ;;  %v3554_v17 = vcombine.high %v13567_v21, %v13567_v21 }
  0xd7   : > { %11861 = vmatprep.mubr.msk.bf16.mxu0 %vm12903_vm0, %v17934_v0  ;;  %11946 = vmatpush3.bf16.msra.mxu0 %v12380_v9  ;;  %v4004_v42 = vrot.slane %v3990_v32, %v13177_v8  ;;  %v4007_v40 = vcombine.low %v13558_v55, %v13567_v21  ;;  %v4016_v45 = vrot.slane %v11383_v52, %v13177_v8 }
  0xd8   : > { %11947 = vmatprep.subr.bf16.mxu0 %v17934_v0  ;;  %v3555_v34 = vcombine.high %v13573_v33, %v13573_v33  ;;  %v4008_v27 = vcombine.low %v13573_v33, %v3554_v17  ;;  %v4055_v46 = vcombine.low %v13225_v57, %v3578_v36  ;;  %v4056_v44 = vcombine.low %v3579_v38, %v13230_v61  ;;  %v12383_v38 = vld [vmem:[#allocation5 + $0xd0] sm:$0xff]  }
  0xd9   : > { %v4057_v50 = vcombine.low %v13234_v2, %v13246_v11  ;;  %v13598_v48 = vcombine.low %v3997_v13, %v4004_v42  ;;  %v4023_v9 = vrot.slane %v4007_v40, %v13177_v8  ;;  %v11384_v12 = vcombine.high %v13234_v2, %v13246_v11 }
  0xda   : > { %v4009_v51 = vcombine.low %v3555_v34, %v13222_v56  ;;  %v4030_v57 = vrot.slane %v4008_v27, %v13177_v8  ;;  %v4065_v61 = vrot.slane %v4055_v46, %v13177_v8  ;;  %v4072_v41 = vrot.slane %v4056_v44, %v13177_v8  ;;  %v12381_v56 = vld [vmem:[#allocation5 + $0xc8] sm:$0xff]   ;;  %v12388_v46 = vld [vmem:[#allocation5 + $0x120] sm:$0xff]  }
  0xdb   : > { %11806 = vmatmul.mubr.bf16.vlgmr.msra.gmra.mrb[20].mxu1 %v13257_v22  ;;  %11948 = vmatpush3.bf16.msra.mxu0 %v12382_v30  ;;  %v4038_v54 = vcombine.low %v4016_v45, %v4023_v9  ;;  %v4079_v2 = vrot.slane %v4057_v50, %v13177_v8  ;;  %v4086_v11 = vrot.slane %v11384_v12, %v13177_v8  ;;  %v12385_v9 = vld [vmem:[#allocation5 + $0xd8] sm:$0xff]  }
  0xdc   : > { %11894 = vmatpush3.bf16.msra.mxu1 %v12379_v25  ;;  %11809 = vmatprep.mubr.msk.bf16.mxu1 %vm12903_vm0, %v17934_v0  ;;  %v4037_v35 = vrot.slane %v4009_v51, %v13177_v8  ;;  %v4087_v22 = vcombine.low %v4065_v61, %v4072_v41  ;;  %v3678_v10 = vcombine.high %v13326_v14, %v13326_v14  ;;  %v12386_v25 = vld [vmem:[#allocation5 + $0x118] sm:$0xff]  }
  0xdd   : > { %11895 = vmatprep.subr.bf16.mxu1 %v17934_v0  ;;  %11949 = vmatprep.subr.bf16.mxu0 %v17934_v0  ;;  %v4046_v18 = vrot.slane %v4038_v54, %v13177_v8  ;;  %v4104_v15 = vcombine.low %v13296_v49, %v13307_v59  ;;  %v11385_v52 = vcombine.high %v13296_v49, %v13307_v59 }
  0xde   : > { %11862 = vmatmul.mubr.bf16.gmra.mrb[20].mxu0 %v13351_v37  ;;  %v4039_v16 = vcombine.low %v4030_v57, %v4037_v35  ;;  %v4088_v30 = vcombine.low %v4079_v2, %v4086_v11  ;;  %v4095_v32 = vrot.slane %v4087_v22, %v13177_v8  ;;  %v4106_v36 = vcombine.low %v13316_v1, %v13326_v14  ;;  %v12390_v35 = vld [vmem:[#allocation5 + $0x128] sm:$0xff]   ;;  %v12387_v22 = vld [vmem:[#allocation5 + $0xe0] sm:$0xff]  }
  0xdf   : > { %11865 = vmatprep.mubr.msk.bf16.mxu0 %vm12903_vm0, %v17934_v0  ;;  %11950 = vmatpush3.bf16.msra.mxu0 %v12384_v31  ;;  %v4107_v17 = vcombine.low %v13333_v23, %v3678_v10  ;;  %v4114_v49 = vrot.slane %v4104_v15, %v13177_v8  ;;  %v4121_v42 = vrot.slane %v11385_v52, %v13177_v8 }
  0xe0   : > { %11896 = vmatpush3.bf16.msra.mxu1 %v12381_v56  ;;  %11951 = vmatprep.subr.bf16.mxu0 %v17934_v0  ;;  %v4053_v13 = vrot.slane %v4039_v16, %v13177_v8  ;;  %v4102_v59 = vrot.slane %v4088_v30, %v13177_v8  ;;  %v4128_v34 = vrot.slane %v4106_v36, %v13177_v8 }
  0xe1   : > { %11897 = vmatprep.subr.bf16.mxu1 %v17934_v0  ;;  %v3679_v1 = vcombine.high %v13333_v23, %v13333_v23  ;;  %v4135_v40 = vrot.slane %v4107_v17, %v13177_v8  ;;  %v3702_v45 = vcombine.high %v13388_v7, %v13388_v7  ;;  %v3703_v27 = vcombine.high %v13397_v19, %v13397_v19  ;;  %v13650_v23 = vld.sshfl [vmem:[%s13174_s25 + $0x60] sm:$0x33 pattern:$0x75316420]  ;;  %v12394_v17 = vld [vmem:[#allocation5 + $0x138] sm:$0xff]  }
  0xe2   : > { %v13638_v14 = vcombine.low %v4046_v18, %v4053_v13  ;;  %v13646_v44 = vcombine.low %v4095_v32, %v4102_v59  ;;  %v4136_v50 = vcombine.low %v4114_v49, %v4121_v42  ;;  %v11386_v2 = vcombine.high %v13407_v28, %v13453_v29  ;;  %v12392_v32 = vld [vmem:[#allocation5 + $0x130] sm:$0xff]  }
  0xe3   : > { %11810 = vmatmul.mubr.bf16.gmra.mrb[24].mxu1 %v13351_v37  ;;  %11952 = vmatpush3.bf16.msra.mxu0 %v12386_v25  ;;  %v4153_v51 = vcombine.low %v3679_v1, %v13388_v7  ;;  %v4137_v12 = vcombine.low %v4128_v34, %v4135_v40  ;;  %v4154_v31 = vcombine.low %v13397_v19, %v3702_v45  ;;  %v12391_v59 = vld [vmem:[#allocation5 + $0xf0] sm:$0xff]   ;;  %v12393_v34 = vld [vmem:[#allocation5 + $0xf8] sm:$0xff]   ;;  %v11453_v40 = vld.sshfl [vmem:[%s13174_s25 + $0x34] sm:$0x33 pattern:$0x75316420] }
  0xe4   : > { %11813 = vmatprep.mubr.msk.bf16.mxu1 %vm12903_vm0, %v17934_v0  ;;  %11898 = vmatpush3.bf16.msra.mxu1 %v12383_v38  ;;  %v4155_v57 = vcombine.low %v3703_v27, %v13400_v20  ;;  %v4144_v37 = vrot.slane %v4136_v50, %v13177_v8  ;;  %v4156_v7 = vcombine.low %v13407_v28, %v13453_v29  ;;  %v13711_v1 = vld.sshfl [vmem:[%s13174_s25 + $0x28] sm:$0x33 pattern:$0x75316420] }
  0xe5   : > { %11899 = vmatprep.subr.bf16.mxu1 %v17934_v0  ;;  %11953 = vmatprep.subr.bf16.mxu0 %v17934_v0  ;;  %v4163_v61 = vrot.slane %v4153_v51, %v13177_v8  ;;  %v4151_v41 = vrot.slane %v4137_v12, %v13177_v8  ;;  %v4170_v56 = vrot.slane %v4154_v31, %v13177_v8 }
  0xe6   : > { %11866 = vmatmul.mubr.bf16.gmra.mrb[24].mxu0 %v13435_v60  ;;  %v4177_v19 = vrot.slane %v4155_v57, %v13177_v8  ;;  %v13668_v20 = vrot.slane %v13650_v23, %v13177_v8  ;;  %v4184_v54 = vrot.slane %v4156_v7, %v13177_v8  ;;  %v4203_v11 = vcombine.low %v13473_v53, %v13476_v62 }
  0xe7   : > { %11869 = vmatprep.mubr.msk.bf16.mxu0 %vm12903_vm0, %v17934_v0  ;;  %11954 = vmatpush3.bf16.msra.mxu0 %v12388_v46  ;;  %v13678_v10 = vcombine.low %v4144_v37, %v4151_v41  ;;  %v4185_v16 = vcombine.low %v4163_v61, %v4170_v56  ;;  %v11387_v18 = vcombine.high %v13473_v53, %v13476_v62 }
  0xe8   : > { %11900 = vmatpush3.bf16.msra.mxu1 %v12385_v9  ;;  %11955 = vmatprep.subr.bf16.mxu0 %v17934_v0  ;;  %v4186_v15 = vcombine.low %v4177_v19, %v4184_v54  ;;  %v4205_v52 = vcombine.low %v13479_v63, %v13668_v20  ;;  %v4212_v28 = vrot.slane %v11386_v2, %v13177_v8  ;;  %v12389_v63 = vld [vmem:[#allocation5 + $0xe8] sm:$0xff]   ;;  %v11379_v54 = vld.sshfl [vmem:[%s13174_s25 + $0x68] sm:$0x1 pattern:$0x75316420] }
  0xe9   : > { %11901 = vmatprep.subr.bf16.mxu1 %v17934_v0  ;;  %v4219_v29 = vrot.slane %v4203_v11, %v13177_v8  ;;  %v4193_v25 = vrot.slane %v4185_v16, %v13177_v8  ;;  %v4226_v30 = vrot.slane %v11387_v18, %v13177_v8  ;;  %v6557_v46 = vcombine.high %v11453_v40, %v11453_v40 }
  0xea   : > { %v4200_v53 = vrot.slane %v4186_v15, %v13177_v8  ;;  %v4233_v62 = vrot.slane %v4205_v52, %v13177_v8  ;;  %v13731_v50 = vrot.slane %v11453_v40, %v13177_v8  ;;  %v11472_v12 = vcombine.high %v13567_v21, %v13573_v33  ;;  %v12401_v40 = vld [vmem:[#allocation5 + $0x158] sm:$0xff]  }
  0xeb   : > { %11814 = vmatmul.mubr.bf16.gmra.mrb[28].mxu1 %v13435_v60  ;;  %11956 = vmatpush3.bf16.msra.mxu0 %v12390_v35  ;;  %v4234_v36 = vcombine.low %v4212_v28, %v4219_v29  ;;  %v13734_v51 = vrot.slane %v6557_v46, %v13177_v8  ;;  %v3787_v19 = vcombine.high %v13650_v23, %v13650_v23  ;;  %v12396_v28 = vld [vmem:[#allocation5 + $0x180] sm:$0xff]  }
  0xec   : > { %11817 = vmatprep.mubr.msk.bf16.mxu1 %vm12903_vm0, %v17934_v0  ;;  %11902 = vmatpush3.bf16.msra.mxu1 %v12387_v22  ;;  %v13696_v38 = vcombine.low %v4193_v25, %v4200_v53  ;;  %v4235_v13 = vcombine.low %v4226_v30, %v4233_v62  ;;  %v13793_v22 = vrot.slane %v11379_v54, %v13177_v8  ;;  %v12403_v46 = vld [vmem:[#allocation5 + $0x160] sm:$0xff]  }
  0xed   : > { %11903 = vmatprep.subr.bf16.mxu1 %v17934_v0  ;;  %11957 = vmatprep.subr.bf16.mxu0 %v17934_v0  ;;  %v4242_v60 = vrot.slane %v4234_v36, %v13177_v8  ;;  %v7016_v31 = vcombine.low %v13731_v50, %v13734_v51  ;;  %v13780_v2 = vrot.slane %v3787_v19, %v13177_v8 }
  0xee   : > { %11870 = vmatmul.mubr.bf16.gmra.mrb[28].mxu0 %v13514_v4  ;;  %v4249_v49 = vrot.slane %v4235_v13, %v13177_v8 }
  0xef   : > { %11873 = vmatprep.mubr.msk.bf16.mxu0 %vm12903_vm0, %v17934_v0  ;;  %11958 = vmatpush3.bf16.msra.mxu0 %v12392_v32  ;;  %v7044_v7 = vrot.slane %v7016_v31, %v13177_v8  ;;  %v11476_v16 = vcombine.high %v13668_v20, %v13780_v2  ;;  %v12407_v31 = vld [vmem:[#allocation5 + $0x170] sm:$0xff]  }
  0xf0   : > { %11904 = vmatpush3.bf16.msra.mxu1 %v12389_v63  ;;  %11959 = vmatprep.subr.bf16.mxu0 %v17934_v0  ;;  %v13705_v42 = vcombine.low %v4242_v60, %v4249_v49  ;;  %v12395_v63 = vld [vmem:[#allocation5 + $0x140] sm:$0xff]   ;;  %v12397_v49 = vld [vmem:[#allocation5 + $0x148] sm:$0xff]  }
  0xf1   : > { %11905 = vmatprep.subr.bf16.mxu1 %v17934_v0  ;;  %v7268_v29 = vrot.slane %v11476_v16, %v13177_v8 }
  0xf3   : > { %11818 = vmatmul.mubr.bf16.gmra.mrb[32].mxu1 %v13514_v4  ;;  %11960 = vmatpush3.bf16.msra.mxu0 %v12394_v17  ;;  %v6495_v4 = vcombine.high %v13711_v1, %v13711_v1  ;;  %v12400_v17 = vld [vmem:[#allocation5 + $0x190] sm:$0xff]  }
  0xf4   : > { %11821 = vmatprep.mubr.msk.bf16.mxu1 %vm12903_vm0, %v17934_v0  ;;  %11906 = vmatpush3.bf16.msra.mxu1 %v12391_v59  ;;  %v12402_v59 = vld [vmem:[#allocation5 + $0x198] sm:$0xff]  }
  0xf5   : > { %11907 = vmatprep.subr.bf16.mxu1 %v17934_v0  ;;  %12049 = vmatprep.subr.bf16.mxu0 %v17934_v0  ;;  %v13723_v45 = vrot.slane %v6495_v4, %v13177_v8  ;;  %v12404_v4 = vld [vmem:[#allocation5 + $0x1a0] sm:$0xff]  }
  0xf6   : > { %11874 = vmatmul.mubr.bf16.gmra.mrb[32].mxu0 %v13239_v5 }
  0xf7   : > { %11877 = vmatprep.mubr.msk.bf16.mxu0 %vm12903_vm0, %v17934_v0  ;;  %v6511_v27 = vcombine.high %v13723_v45, %v13723_v45 }
  0xf8   : > { %11908 = vmatpush3.bf16.msra.mxu1 %v12393_v34  ;;  %v12399_v34 = vld [vmem:[#allocation5 + $0x150] sm:$0xff]  }
  0xf9   : > { %11997 = vmatprep.subr.bf16.mxu1 %v17934_v0  ;;  %v7013_v9 = vcombine.low %v6511_v27, %v13558_v55  ;;  %v7037_v55 = vrot.slane %v11472_v12, %v13177_v8  ;;  %v12406_v27 = vld [vmem:[#allocation5 + $0x1a8] sm:$0xff]   ;;  %v12410_v12 = vld [vmem:[#allocation5 + $0x1b8] sm:$0xff]  }
  0xfb   : > { %11822 = vmatmul.mubr.bf16.gmra.mrb[36].mxu1 %v13239_v5  ;;  %v7014_v5 = vcombine.low %v13567_v21, %v13573_v33  ;;  %v7023_v57 = vrot.slane %v7013_v9, %v13177_v8  ;;  %v7046_v41 = vcombine.low %v7037_v55, %v7044_v7  ;;  %v12408_v9 = vld [vmem:[#allocation5 + $0x1b0] sm:$0xff]   ;;  %v3803_v55 = vcombine.high %v13780_v2, %v13780_v2 }
  0xfc   : > { %11825 = vmatprep.mubr.msk.bf16.mxu1 %vm12903_vm0, %v17934_v0 }
  0xfd   : > { %v7030_v37 = vrot.slane %v7014_v5, %v13177_v8  ;;  %v7060_v33 = vrot.slane %v7046_v41, %v13177_v8  ;;  %v12405_v5 = vld [vmem:[#allocation5 + $0x168] sm:$0xff]  }
  0xfe   : > { %11878 = vmatmul.mubr.bf16.gmra.mrb[36].mxu0 %v13304_v58  ;;  %v11446_v41 = vld.sshfl [vmem:[%s13174_s25 + $0x18] sm:$0x33 pattern:$0x75316420] }
  0xff   : > { %11881 = vmatprep.mubr.msk.bf16.mxu0 %vm12903_vm0, %v17934_v0  ;;  %v7045_v61 = vcombine.low %v7023_v57, %v7030_v37  ;;  %v12409_v57 = vld [vmem:[#allocation5 + $0x178] sm:$0xff]   ;;  %v3802_v37 = vcombine.high %v13668_v20, %v13668_v20 }
 0x101   : > { %v7053_v21 = vrot.slane %v7045_v61, %v13177_v8 }
 0x103   : > { %11826 = vmatmul.mubr.bf16.gmra.mrb[40].mxu1 %v13304_v58  ;;  %v13758_v56 = vcombine.low %v7053_v21, %v7060_v33  ;;  %v11378_v58 = vld.sshfl [vmem:[%s13174_s25 + $0x64] sm:$0x33 pattern:$0x75316420]  ;;  %v6409_v33 = vcombine.high %v11446_v41, %v11446_v41 }
 0x104   : > { %11829 = vmatprep.mubr.msk.bf16.mxu1 %vm12903_vm0, %v17934_v0  ;;  %v3811_v35 = vcombine.high %v11378_v58, %v11378_v58  ;;  %v11447_v21 = vld.sshfl [vmem:[%s13174_s25 + $0x1c] sm:$0x33 pattern:$0x75316420] }
 0x105   : > { %v6433_v16 = vcombine.high %v11447_v21, %v11447_v21 }
 0x106   : > { %11882 = vmatmul.mubr.bf16.gmra.mrb[40].mxu0 %v13403_v24  ;;  %v13786_v23 = vrot.slane %v3811_v35, %v13177_v8 }
 0x107   : > { %11885 = vmatprep.mubr.msk.bf16.mxu0 %vm12903_vm0, %v17934_v0 }
 0x108   : > { %v3827_v61 = vcombine.high %v13786_v23, %v13786_v23 }
 0x10a   : > { %v4254_v54 = vcombine.low %v3827_v61, %v13793_v22 }
 0x10b   : > { %11830 = vmatmul.mubr.bf16.gmra.mrb[44].mxu1 %v13403_v24  ;;  %v13775_v24 = vld.sshfl [vmem:[%s13174_s25 + $0x6c] sm:$0x33 pattern:$0x75316420] }
 0x10c   : > { %11833 = vmatprep.mubr.msk.bf16.mxu1 %vm12903_vm0, %v17934_v0  ;;  %v13790_v11 = vrot.slane %v13775_v24, %v13177_v8 }
 0x10e   : > { %11886 = vmatmul.mubr.bf16.gmra.mrb[44].mxu0 %v13468_v43  ;;  %v7261_v52 = vcombine.low %v13793_v22, %v13790_v11  ;;  %v4282_v22 = vrot.slane %v4254_v54, %v13177_v8 }
 0x10f   : > { %11889 = vmatprep.mubr.msk.bf16.mxu0 %vm12903_vm0, %v17934_v0 }
 0x110   : > { %v7289_v32 = vrot.slane %v7261_v52, %v13177_v8  ;;  %v6423_v52 = vrot.slane %v6409_v33, %v13177_v8  ;;  %v11455_v33 = vld.sshfl [vmem:[%s13174_s25 + $0x3c] sm:$0x33 pattern:$0x75316420] }
 0x113   : > { %11834 = vmatmul.mubr.bf16.gmra.mrb[48].mxu1 %v13468_v43  ;;  %v13783_v43 = vrot.slane %v11378_v58, %v13177_v8  ;;  %v4251_v58 = vcombine.low %v13780_v2, %v3802_v37 }
 0x114   : > { %11837 = vmatprep.mubr.msk.bf16.mxu1 %vm12903_vm0, %v17934_v0 }
 0x115   : > { %v7259_v18 = vcombine.low %v13783_v43, %v13786_v23  ;;  %v11477_v15 = vcombine.high %v13783_v43, %v13786_v23  ;;  %v3826_v7 = vcombine.high %v13783_v43, %v13783_v43  ;;  %v4252_v19 = vcombine.low %v3803_v55, %v13783_v43 }
 0x116   : > { %11890 = vmatmul.mubr.bf16.gmra.mrb[48].mxu0 %v13543_v26 }
 0x117   : > { %11961 = vmatprep.mubr.msk.bf16.mxu0 %vm12903_vm0, %v17934_v0  ;;  %v7275_v25 = vrot.slane %v7259_v18, %v13177_v8  ;;  %v7282_v30 = vrot.slane %v11477_v15, %v13177_v8  ;;  %v4253_v35 = vcombine.low %v13786_v23, %v3826_v7  ;;  %v11449_v18 = vld.sshfl [vmem:[%s13174_s25 + $0x24] sm:$0x33 pattern:$0x75316420]  ;;  %v6416_v15 = vrot.slane %v11446_v41, %v13177_v8 }
 0x118   : > { %v4268_v43 = vrot.slane %v4252_v19, %v13177_v8 }
 0x119   : > { %v7290_v53 = vcombine.low %v7268_v29, %v7275_v25  ;;  %v7291_v62 = vcombine.low %v7282_v30, %v7289_v32  ;;  %v4275_v23 = vrot.slane %v4253_v35, %v13177_v8  ;;  %v6440_v29 = vrot.slane %v11447_v21, %v13177_v8 }
 0x11a   : > { %v6447_v25 = vrot.slane %v6433_v16, %v13177_v8  ;;  %v6471_v30 = vcombine.high %v11449_v18, %v11449_v18  ;;  %v6915_v32 = vcombine.low %v6416_v15, %v6423_v52 }
 0x11b   : > { %11838 = vmatmul.mubr.bf16.gmra.mrb[52].mxu1 %v13543_v26  ;;  %v12398_v26 = vld [vmem:[#allocation5 + $0x188] sm:$0xff]   ;;  %v7298_v36 = vrot.slane %v7290_v53, %v13177_v8  ;;  %v7305_v13 = vrot.slane %v7291_v62, %v13177_v8  ;;  %v11470_v53 = vcombine.high %v6416_v15, %v6423_v52 }
 0x11c   : > { %11909 = vmatprep.mubr.msk.bf16.mxu1 %vm12903_vm0, %v17934_v0  ;;  %v11454_v52 = vld.sshfl [vmem:[%s13174_s25 + $0x38] sm:$0x1 pattern:$0x75316420] }
 0x11d   : > { %v13816_v60 = vcombine.low %v7298_v36, %v7305_v13  ;;  %v6478_v36 = vrot.slane %v11449_v18, %v13177_v8  ;;  %v11471_v13 = vcombine.high %v6440_v29, %v6447_v25  ;;  %v6595_v18 = vcombine.high %v11455_v33, %v11455_v33 }
 0x11e   : > { %11962 = vmatmul.mubr.bf16.vlgmr.msra.gmra.mrb[52].mxu0 %v13548_v47 }
 0x11f   : > { %11965 = vmatprep.mubr.msk.bf16.mxu0 %vm12903_vm0, %v17934_v0  ;;  %12050 = vmatpush3.bf16.msra.mxu0 %v12396_v28  ;;  %v4261_v28 = vrot.slane %v4251_v58, %v13177_v8 }
 0x120   : > { %12051 = vmatprep.subr.bf16.mxu0 %v17934_v0 }
 0x121   : > { %v4283_v62 = vcombine.low %v4261_v28, %v4268_v43  ;;  %v6602_v28 = vrot.slane %v11455_v33, %v13177_v8 }
 0x123   : > { %11910 = vmatmul.mubr.bf16.vlgmr.msra.gmra.mrb[56].mxu1 %v13548_v47  ;;  %12052 = vmatpush3.bf16.msra.mxu0 %v12398_v26  ;;  %v4284_v26 = vcombine.low %v4275_v23, %v4282_v22  ;;  %v6609_v22 = vrot.slane %v6595_v18, %v13177_v8 }
 0x124   : > { %11998 = vmatpush3.bf16.msra.mxu1 %v12395_v63  ;;  %11913 = vmatprep.mubr.msk.bf16.mxu1 %vm12903_vm0, %v17934_v0  ;;  %v6917_v63 = vcombine.low %v6440_v29, %v6447_v25  ;;  %v12412_v29 = vld [vmem:[#allocation5 + $0x200] sm:$0xff]   ;;  %v11456_v25 = vld.sshfl [vmem:[%s13174_s25 + $0x40] sm:$0x33 pattern:$0x75316420] }
 0x125   : > { %11999 = vmatprep.subr.bf16.mxu1 %v17934_v0  ;;  %12053 = vmatprep.subr.bf16.mxu0 %v17934_v0 }
 0x126   : > { %11966 = vmatmul.mubr.bf16.gmra.mrb[56].mxu0 %v13581_v39 }
 0x127   : > { %11969 = vmatprep.mubr.msk.bf16.mxu0 %vm12903_vm0, %v17934_v0  ;;  %12054 = vmatpush3.bf16.msra.mxu0 %v12400_v17  ;;  %v11448_v17 = vld.sshfl [vmem:[%s13174_s25 + $0x20] sm:$0x1 pattern:$0x75316420] }
 0x128   : > { %12000 = vmatpush3.bf16.msra.mxu1 %v12397_v49  ;;  %12055 = vmatprep.subr.bf16.mxu0 %v17934_v0  ;;  %v6485_v49 = vrot.slane %v6471_v30, %v13177_v8  ;;  %v6587_v30 = vrot.slane %v11454_v52, %v13177_v8 }
 0x129   : > { %12001 = vmatprep.subr.bf16.mxu1 %v17934_v0 }
 0x12b   : > { %11914 = vmatmul.mubr.bf16.gmra.mrb[60].mxu1 %v13581_v39  ;;  %12056 = vmatpush3.bf16.msra.mxu0 %v12402_v59  ;;  %v6502_v59 = vrot.slane %v13711_v1, %v13177_v8  ;;  %v6939_v1 = vrot.slane %v6917_v63, %v13177_v8  ;;  %v6619_v63 = vcombine.high %v11456_v25, %v11456_v25 }
 0x12c   : > { %11917 = vmatprep.mubr.msk.bf16.mxu1 %vm12903_vm0, %v17934_v0  ;;  %12002 = vmatpush3.bf16.msra.mxu1 %v12399_v34  ;;  %v6925_v34 = vrot.slane %v6915_v32, %v13177_v8 }
 0x12d   : > { %12003 = vmatprep.subr.bf16.mxu1 %v17934_v0  ;;  %12057 = vmatprep.subr.bf16.mxu0 %v17934_v0 }
 0x12e   : > { %11970 = vmatmul.mubr.bf16.gmra.mrb[60].mxu0 %v13598_v48 }
 0x12f   : > { %11973 = vmatprep.mubr.msk.bf16.mxu0 %vm12903_vm0, %v17934_v0  ;;  %12058 = vmatpush3.bf16.msra.mxu0 %v12404_v4  ;;  %v6932_v4 = vrot.slane %v11470_v53, %v13177_v8  ;;  %v6610_v53 = vcombine.high %v6602_v28, %v6602_v28 }
 0x130   : > { %12004 = vmatpush3.bf16.msra.mxu1 %v12401_v40  ;;  %12059 = vmatprep.subr.bf16.mxu0 %v17934_v0  ;;  %v4291_v40 = vrot.slane %v4283_v62, %v13177_v8 }
 0x131   : > { %12005 = vmatprep.subr.bf16.mxu1 %v17934_v0 }
 0x133   : > { %11918 = vmatmul.mubr.bf16.gmra.mrb[64].mxu1 %v13598_v48  ;;  %12060 = vmatpush3.bf16.msra.mxu0 %v12406_v27  ;;  %v4298_v27 = vrot.slane %v4284_v26, %v13177_v8  ;;  %v6611_v26 = vcombine.high %v6609_v22, %v6609_v22 }
 0x134   : > { %11921 = vmatprep.mubr.msk.bf16.mxu1 %vm12903_vm0, %v17934_v0  ;;  %12006 = vmatpush3.bf16.msra.mxu1 %v12403_v46  ;;  %v6463_v46 = vrot.slane %v11448_v17, %v13177_v8  ;;  %v11458_v17 = vld.sshfl [vmem:[%s13174_s25 + $0x48] sm:$0x33 pattern:$0x75316420] }
 0x135   : > { %12007 = vmatprep.subr.bf16.mxu1 %v17934_v0  ;;  %12061 = vmatprep.subr.bf16.mxu0 %v17934_v0  ;;  %v13910_v7 = vcombine.low %v4291_v40, %v4298_v27 }
 0x136   : > { %11974 = vmatmul.mubr.bf16.gmra.mrb[64].mxu0 %v13638_v14  ;;  %v6964_v37 = vcombine.low %v6463_v46, %v6478_v36  ;;  %v11457_v46 = vld.sshfl [vmem:[%s13174_s25 + $0x44] sm:$0x1 pattern:$0x75316420] }
 0x137   : > { %11977 = vmatprep.mubr.msk.bf16.mxu0 %vm12903_vm0, %v17934_v0  ;;  %12062 = vmatpush3.bf16.msra.mxu0 %v12408_v9  ;;  %v6486_v9 = vcombine.high %v6478_v36, %v6478_v36  ;;  %v6626_v36 = vrot.slane %v11456_v25, %v13177_v8 }
 0x138   : > { %12008 = vmatpush3.bf16.msra.mxu1 %v12405_v5  ;;  %12063 = vmatprep.subr.bf16.mxu0 %v17934_v0  ;;  %v6946_v5 = vrot.slane %v11471_v13, %v13177_v8  ;;  %v6974_v19 = vrot.slane %v6964_v37, %v13177_v8  ;;  %v12414_v13 = vld [vmem:[#allocation5 + $0x208] sm:$0xff]  }
 0x139   : > { %12009 = vmatprep.subr.bf16.mxu1 %v17934_v0  ;;  %v6965_v55 = vcombine.low %v6485_v49, %v6486_v9  ;;  %v7065_v27 = vcombine.low %v6611_v26, %v6626_v36  ;;  %v6633_v9 = vrot.slane %v6619_v63, %v13177_v8  ;;  %v6634_v37 = vcombine.high %v6626_v36, %v6626_v36 }
 0x13a   : > { %v6948_v61 = vcombine.low %v6939_v1, %v6946_v5  ;;  %v6657_v1 = vcombine.high %v11458_v17, %v11458_v17  ;;  %v12416_v5 = vld [vmem:[#allocation5 + $0x210] sm:$0xff]  }
 0x13b   : > { %11922 = vmatmul.mubr.bf16.gmra.mrb[68].mxu1 %v13638_v14  ;;  %12064 = vmatpush3.bf16.msra.mxu0 %v12410_v12  ;;  %v6487_v12 = vcombine.high %v6485_v49, %v6485_v49  ;;  %v6981_v35 = vrot.slane %v6965_v55, %v13177_v8  ;;  %v12411_v49 = vld [vmem:[#allocation5 + $0x1c0] sm:$0xff]   ;;  %v7111_v18 = vcombine.low %v6633_v9, %v6634_v37  ;;  %v11463_v37 = vld.sshfl [vmem:[%s13174_s25 + $0x5c] sm:$0x1 pattern:$0x75316420] }
 0x13c   : > { %11925 = vmatprep.mubr.msk.bf16.mxu1 %vm12903_vm0, %v17934_v0  ;;  %12010 = vmatpush3.bf16.msra.mxu1 %v12407_v31  ;;  %v6510_v31 = vcombine.high %v6502_v59, %v6502_v59  ;;  %v6962_v54 = vrot.slane %v6948_v61, %v13177_v8  ;;  %v11461_v55 = vld.sshfl [vmem:[%s13174_s25 + $0x54] sm:$0x33 pattern:$0x75316420]  ;;  %v7093_v61 = vrot.slane %v7065_v27, %v13177_v8 }
 0x13d   : > { %12011 = vmatprep.subr.bf16.mxu1 %v17934_v0  ;;  %12153 = vmatprep.subr.bf16.mxu0 %v17934_v0  ;;  %v6966_v41 = vcombine.low %v6487_v12, %v6502_v59  ;;  %v6996_v15 = vcombine.low %v6974_v19, %v6981_v35  ;;  %v11473_v59 = vcombine.high %v13731_v50, %v13734_v51  ;;  %v12413_v50 = vld [vmem:[#allocation5 + $0x1c8] sm:$0xff]   ;;  %v12415_v35 = vld [vmem:[#allocation5 + $0x1d0] sm:$0xff]  }
 0x13e   : > { %11978 = vmatmul.mubr.bf16.gmra.mrb[68].mxu0 %v13646_v44  ;;  %v6967_v21 = vcombine.low %v13723_v45, %v6510_v31  ;;  %v11459_v31 = vld.sshfl [vmem:[%s13174_s25 + $0x4c] sm:$0x33 pattern:$0x75316420]  ;;  %v6671_v33 = vrot.slane %v6657_v1, %v13177_v8 }
 0x13f   : > { %11981 = vmatprep.mubr.msk.bf16.mxu0 %vm12903_vm0, %v17934_v0  ;;  %v6988_v16 = vrot.slane %v6966_v41, %v13177_v8  ;;  %v7004_v32 = vrot.slane %v6996_v15, %v13177_v8  ;;  %v7072_v51 = vrot.slane %v11473_v59, %v13177_v8  ;;  %v6635_v41 = vcombine.high %v6633_v9, %v6633_v9  ;;  %v11460_v15 = vld.sshfl [vmem:[%s13174_s25 + $0x50] sm:$0x1 pattern:$0x75316420] }
 0x140   : > { %12012 = vmatpush3.bf16.msra.mxu1 %v12409_v57  ;;  %v6947_v57 = vcombine.low %v6925_v34, %v6932_v4  ;;  %v6995_v45 = vrot.slane %v6967_v21, %v13177_v8  ;;  %v7063_v34 = vcombine.low %v6587_v30, %v6602_v28  ;;  %v7064_v4 = vcombine.low %v6609_v22, %v6610_v53  ;;  %v12417_v53 = vld [vmem:[#allocation5 + $0x1d8] sm:$0xff]   ;;  %v12419_v9 = vld [vmem:[#allocation5 + $0x1e0] sm:$0xff]  }
 0x141   : > { %12101 = vmatprep.subr.bf16.mxu1 %v17934_v0  ;;  %v6664_v21 = vrot.slane %v11458_v17, %v13177_v8  ;;  %v6681_v19 = vcombine.high %v11459_v31, %v11459_v31  ;;  %v6688_v25 = vrot.slane %v11459_v31, %v13177_v8 }
 0x142   : > { %v6955_v58 = vrot.slane %v6947_v57, %v13177_v8  ;;  %v6997_v23 = vcombine.low %v6988_v16, %v6995_v45  ;;  %v7079_v12 = vrot.slane %v7063_v34, %v13177_v8  ;;  %v7086_v57 = vrot.slane %v7064_v4, %v13177_v8 }
 0x143   : > { %11926 = vmatmul.mubr.bf16.gmra.mrb[72].mxu1 %v13646_v44  ;;  %v6726_v16 = vrot.slane %v11461_v55, %v13177_v8  ;;  %v11474_v22 = vcombine.high %v6664_v21, %v6671_v33  ;;  %v6695_v30 = vrot.slane %v6681_v19, %v13177_v8  ;;  %v12424_v19 = vld [vmem:[#allocation5 + $0x230] sm:$0xff]  }
 0x144   : > { %11929 = vmatprep.mubr.msk.bf16.mxu1 %vm12903_vm0, %v17934_v0  ;;  %v13928_v43 = vcombine.low %v6955_v58, %v6962_v54  ;;  %v7011_v62 = vrot.slane %v6997_v23, %v13177_v8  ;;  %v12418_v58 = vld [vmem:[#allocation5 + $0x218] sm:$0xff]   ;;  %v6719_v54 = vcombine.high %v11461_v55, %v11461_v55  ;;  %v7094_v45 = vcombine.low %v7072_v51, %v7079_v12 }
 0x145   : > { %v7095_v52 = vcombine.low %v7086_v57, %v7093_v61  ;;  %v7113_v23 = vcombine.low %v6664_v21, %v6671_v33  ;;  %v6734_v36 = vcombine.high %v6726_v16, %v6726_v16  ;;  %v7142_v34 = vrot.slane %v11474_v22, %v13177_v8  ;;  %v11468_v61 = vld.sshfl [vmem:[%s13174_s25 + $0x70] sm:$0x33 pattern:$0x75316420]  ;;  %v12421_v33 = vld [vmem:[#allocation5 + $0x1e8] sm:$0xff]  }
 0x146   : > { %11982 = vmatmul.mubr.bf16.gmra.mrb[72].mxu0 %v13678_v10  ;;  %v13946_v40 = vcombine.low %v7004_v32, %v7011_v62  ;;  %v12420_v32 = vld [vmem:[#allocation5 + $0x220] sm:$0xff]   ;;  %v6711_v62 = vrot.slane %v11460_v15, %v13177_v8  ;;  %v6733_v26 = vrot.slane %v6719_v54, %v13177_v8  ;;  %v7102_v63 = vrot.slane %v7094_v45, %v13177_v8 }
 0x147   : > { %11985 = vmatprep.mubr.msk.bf16.mxu0 %vm12903_vm0, %v17934_v0  ;;  %v7109_v17 = vrot.slane %v7095_v52, %v13177_v8  ;;  %v7135_v59 = vrot.slane %v7113_v23, %v13177_v8  ;;  %v7160_v4 = vcombine.low %v6688_v25, %v6695_v30  ;;  %v11475_v27 = vcombine.high %v6688_v25, %v6695_v30 }
 0x148   : > { %v7162_v1 = vcombine.low %v6711_v62, %v6726_v16  ;;  %v6773_v54 = vrot.slane %v11463_v37, %v13177_v8  ;;  %v6843_v52 = vcombine.high %v13775_v24, %v13775_v24  ;;  %v7212_v62 = vcombine.low %v13668_v20, %v13780_v2  ;;  %v11469_v2 = vld.sshfl [vmem:[%s13174_s25 + $0x74] sm:$0x1 pattern:$0x75316420] }
 0x149   : > { %v13994_v12 = vcombine.low %v7102_v63, %v7109_v17  ;;  %v7144_v57 = vcombine.low %v7135_v59, %v7142_v34  ;;  %v7177_v55 = vrot.slane %v11475_v27, %v13177_v8  ;;  %v6874_v59 = vrot.slane %v11468_v61, %v13177_v8 }
 0x14a   : > { %v6897_v37 = vrot.slane %v11469_v2, %v13177_v8 }
 0x14b   : > { %11930 = vmatmul.mubr.bf16.gmra.mrb[76].mxu1 %v13678_v10 }
 0x14c   : > { %11933 = vmatprep.mubr.msk.bf16.mxu1 %vm12903_vm0, %v17934_v0 }
 0x14e   : > { %11986 = vmatmul.mubr.bf16.gmra.mrb[76].mxu0 %v13696_v38 }
 0x14f   : > { %11989 = vmatprep.mubr.msk.bf16.mxu0 %vm12903_vm0, %v17934_v0 }
 0x153   : > { %11934 = vmatmul.mubr.bf16.gmra.mrb[80].mxu1 %v13696_v38 }
 0x154   : > { %11937 = vmatprep.mubr.msk.bf16.mxu1 %vm12903_vm0, %v17934_v0 }
 0x156   : > { %11990 = vmatmul.mubr.bf16.gmra.mrb[80].mxu0 %v13705_v42 }
 0x157   : > { %11993 = vmatprep.mubr.msk.bf16.mxu0 %vm12903_vm0, %v17934_v0 }
 0x15b   : > { %11938 = vmatmul.mubr.bf16.gmra.mrb[84].mxu1 %v13705_v42 }
 0x15c   : > { %11941 = vmatprep.mubr.msk.bf16.mxu1 %vm12903_vm0, %v17934_v0 }
 0x15e   : > { %11994 = vmatmul.mubr.bf16.gmra.mrb[84].mxu0 %v13910_v7 }
 0x15f   : > { %12065 = vmatprep.mubr.msk.bf16.mxu0 %vm12903_vm0, %v17934_v0 }
 0x163   : > { %11942 = vmatmul.mubr.bf16.gmra.mrb[88].mxu1 %v13910_v7 }
 0x164   : > { %12013 = vmatprep.mubr.msk.bf16.mxu1 %vm12903_vm0, %v17934_v0 }
 0x166   : > { %12066 = vmatmul.mubr.bf16.vlgmr.msra.gmra.mrb[88].mxu0 %v13928_v43 }
 0x167   : > { %12154 = vmatpush3.bf16.msra.mxu0 %v12412_v29  ;;  %12069 = vmatprep.mubr.msk.bf16.mxu0 %vm12903_vm0, %v17934_v0  ;;  %v11462_v29 = vld.sshfl [vmem:[%s13174_s25 + $0x58] sm:$0x33 pattern:$0x75316420] }
 0x168   : > { %12155 = vmatprep.subr.bf16.mxu0 %v17934_v0 }
 0x16b   : > { %12014 = vmatmul.mubr.bf16.vlgmr.msra.gmra.mrb[92].mxu1 %v13548_v47  ;;  %12156 = vmatpush3.bf16.msra.mxu0 %v12414_v13  ;;  %v6649_v47 = vrot.slane %v11457_v46, %v13177_v8  ;;  %v6743_v13 = vcombine.high %v11462_v29, %v11462_v29  ;;  %v12422_v46 = vld [vmem:[#allocation5 + $0x228] sm:$0xff]  }
 0x16c   : > { %12102 = vmatpush3.bf16.msra.mxu1 %v12411_v49  ;;  %12017 = vmatprep.mubr.msk.bf16.mxu1 %vm12903_vm0, %v17934_v0 }
 0x16d   : > { %12103 = vmatprep.subr.bf16.mxu1 %v17934_v0  ;;  %12157 = vmatprep.subr.bf16.mxu0 %v17934_v0  ;;  %v7112_v28 = vcombine.low %v6635_v41, %v6649_v47  ;;  %v6757_v51 = vrot.slane %v6743_v13, %v13177_v8  ;;  %v7170_v47 = vrot.slane %v7160_v4, %v13177_v8  ;;  %v12426_v13 = vld [vmem:[#allocation5 + $0x238] sm:$0xff]  }
 0x16e   : > { %12070 = vmatmul.mubr.bf16.gmra.mrb[92].mxu0 %v13946_v40  ;;  %v7184_v41 = vrot.slane %v7162_v1, %v13177_v8 }
 0x16f   : > { %12073 = vmatprep.mubr.msk.bf16.mxu0 %vm12903_vm0, %v17934_v0  ;;  %12158 = vmatpush3.bf16.msra.mxu0 %v12416_v5  ;;  %v7128_v49 = vrot.slane %v7112_v28, %v13177_v8  ;;  %v7163_v5 = vcombine.low %v6733_v26, %v6734_v36  ;;  %v6867_v28 = vcombine.high %v11468_v61, %v11468_v61 }
 0x170   : > { %12104 = vmatpush3.bf16.msra.mxu1 %v12413_v50  ;;  %12159 = vmatprep.subr.bf16.mxu0 %v17934_v0  ;;  %v6750_v50 = vrot.slane %v11462_v29, %v13177_v8  ;;  %v7192_v29 = vcombine.low %v7170_v47, %v7177_v55 }
 0x171   : > { %12105 = vmatprep.subr.bf16.mxu1 %v17934_v0  ;;  %v7191_v21 = vrot.slane %v7163_v5, %v13177_v8  ;;  %v6881_v34 = vrot.slane %v6867_v28, %v13177_v8 }
 0x172   : > { %v7200_v20 = vrot.slane %v7192_v29, %v13177_v8 }
 0x173   : > { %12018 = vmatmul.mubr.bf16.gmra.mrb[96].mxu1 %v13581_v39  ;;  %12160 = vmatpush3.bf16.msra.mxu0 %v12418_v58  ;;  %v7121_v39 = vrot.slane %v7111_v18, %v13177_v8  ;;  %v6735_v58 = vcombine.high %v6733_v26, %v6733_v26  ;;  %v7158_v18 = vrot.slane %v7144_v57, %v13177_v8  ;;  %v12423_v26 = vld [vmem:[#allocation5 + $0x1f0] sm:$0xff]  }
 0x174   : > { %12021 = vmatprep.mubr.msk.bf16.mxu1 %vm12903_vm0, %v17934_v0  ;;  %12106 = vmatpush3.bf16.msra.mxu1 %v12415_v35  ;;  %v6759_v35 = vcombine.high %v6757_v51, %v6757_v51  ;;  %v6883_v57 = vcombine.high %v6881_v34, %v6881_v34 }
 0x175   : > { %12107 = vmatprep.subr.bf16.mxu1 %v17934_v0  ;;  %12161 = vmatprep.subr.bf16.mxu0 %v17934_v0  ;;  %v7143_v31 = vcombine.low %v7121_v39, %v7128_v49  ;;  %v6857_v49 = vrot.slane %v6843_v52, %v13177_v8  ;;  %v12905_v52 = vmov 1983009808  }
 0x176   : > { %12074 = vmatmul.mubr.bf16.gmra.mrb[96].mxu0 %v13758_v56  ;;  %v7211_v39 = vcombine.low %v6759_v35, %v6773_v54  ;;  %v1419_v28 = vunpack.c.l.s4 %v12905_v52 }
 0x177   : > { %12077 = vmatprep.mubr.msk.bf16.mxu0 %vm12903_vm0, %v17934_v0  ;;  %12162 = vmatpush3.bf16.msra.mxu0 %v12420_v32  ;;  %v7151_v45 = vrot.slane %v7143_v31, %v13177_v8  ;;  %v7193_v32 = vcombine.low %v7184_v41, %v7191_v21  ;;  %v6882_v31 = vcombine.high %v6874_v59, %v6874_v59 }
 0x178   : > { %12108 = vmatpush3.bf16.msra.mxu1 %v12417_v53  ;;  %12163 = vmatprep.subr.bf16.mxu0 %v17934_v0  ;;  %v7209_v53 = vcombine.low %v6735_v58, %v6750_v50  ;;  %v7233_v5 = vrot.slane %v7211_v39, %v13177_v8 }
 0x179   : > { %12109 = vmatprep.subr.bf16.mxu1 %v17934_v0  ;;  %v14026_v17 = vcombine.low %v7151_v45, %v7158_v18  ;;  %v7207_v4 = vrot.slane %v7193_v32, %v13177_v8  ;;  %v7309_v54 = vcombine.low %v6881_v34, %v6882_v31  ;;  %v7310_v45 = vcombine.low %v6883_v57, %v6897_v37 }
 0x17a   : > { %v7219_v27 = vrot.slane %v7209_v53, %v13177_v8 }
 0x17b   : > { %12022 = vmatmul.mubr.bf16.gmra.mrb[100].mxu1 %v13598_v48  ;;  %12164 = vmatpush3.bf16.msra.mxu0 %v12422_v46  ;;  %v6758_v48 = vcombine.high %v6750_v50, %v6750_v50  ;;  %v7240_v46 = vrot.slane %v7212_v62, %v13177_v8  ;;  %v14055_v41 = vcombine.low %v7200_v20, %v7207_v4 }
 0x17c   : > { %12025 = vmatprep.mubr.msk.bf16.mxu1 %vm12903_vm0, %v17934_v0  ;;  %12110 = vmatpush3.bf16.msra.mxu1 %v12419_v9  ;;  %v12425_v9 = vld [vmem:[#allocation5 + $0x1f8] sm:$0xff]   ;;  %v7331_v53 = vrot.slane %v7309_v54, %v13177_v8 }
 0x17d   : > { %12111 = vmatprep.subr.bf16.mxu1 %v17934_v0  ;;  %12165 = vmatprep.subr.bf16.mxu0 %v17934_v0  ;;  %v7210_v63 = vcombine.low %v6757_v51, %v6758_v48  ;;  %v6859_v51 = vcombine.high %v6857_v49, %v6857_v49  ;;  %v7242_v58 = vcombine.low %v7233_v5, %v7240_v46 }
 0x17e   : > { %12078 = vmatmul.mubr.bf16.gmra.mrb[100].mxu0 %v13994_v12 }
 0x17f   : > { %12081 = vmatprep.mubr.msk.bf16.mxu0 %vm12903_vm0, %v17934_v0  ;;  %12166 = vmatpush3.bf16.msra.mxu0 %v12424_v19  ;;  %v7226_v1 = vrot.slane %v7210_v63, %v13177_v8  ;;  %v7308_v35 = vcombine.low %v6859_v51, %v6874_v59 }
 0x180   : > { %12112 = vmatpush3.bf16.msra.mxu1 %v12421_v33  ;;  %12167 = vmatprep.subr.bf16.mxu0 %v17934_v0 }
 0x181   : > { %v14009_v16 = vpop.f32.mrb[0].mxu1  ;;  %v14013_v15 = vpop.f32.mrb[0].mxu0  ;;  %12113 = vmatprep.subr.bf16.mxu1 %v17934_v0  ;;  %v7241_v33 = vcombine.low %v7219_v27, %v7226_v1  ;;  %v7324_v32 = vrot.slane %v7308_v35, %v13177_v8 }
 0x182   : > { %v11771_v23 = vpop.f32.mrb[1].mxu1  ;;  %v11755_v22 = vpop.f32.mrb[1].mxu0  ;;  %v1417_v2 = vcombine.high %v14013_v15, %v14013_v15 }
 0x183   : > { %v14019_v25 = vpop.f32.mrb[2].mxu1  ;;  %v14021_v30 = vpop.f32.mrb[2].mxu0  ;;  %12026 = vmatmul.mubr.bf16.gmra.mrb[104].mxu1 %v13638_v14  ;;  %v6858_v14 = vcombine.high %v13790_v11, %v13790_v11  ;;  %12168 = vmatpush3.bf16.msra.mxu0 %v12426_v13  ;;  %v7249_v23 = vrot.slane %v7241_v33, %v13177_v8  ;;  %v7256_v22 = vrot.slane %v7242_v58, %v13177_v8 }
 0x184   : > { %v11772_v24 = vpop.f32.mrb[3].mxu1  ;;  %v11756_v36 = vpop.f32.mrb[3].mxu0  ;;  %12029 = vmatprep.mubr.msk.bf16.mxu1 %vm12903_vm0, %v17934_v0  ;;  %12114 = vmatpush3.bf16.msra.mxu1 %v12423_v26  ;;  %v1420_v26 = vunpack.c.0.s8 %v1419_v28  ;;  %v1568_v1 = vcombine.high %v14019_v25, %v14019_v25 }
 0x185   : > { %12115 = vmatprep.subr.bf16.mxu1 %v17934_v0  ;;  %v7307_v48 = vcombine.low %v6857_v49, %v6858_v14  ;;  %v14075_v39 = vcombine.low %v7249_v23, %v7256_v22 }
 0x186   : > { %12082 = vmatmul.mubr.bf16.gmra.mrb[104].mxu0 %v14026_v17  ;;  %v14079_v59 = vsub.s32 %v1420_v26, %v13170_v6  ;;  %v1552_v6 = vcombine.high %v14009_v16, %v14009_v16 }
 0x187   : > { %12085 = vmatprep.mubr.msk.bf16.mxu0 %vm12903_vm0, %v17934_v0  ;;  %v7317_v29 = vrot.slane %v7307_v48, %v13177_v8 }
 0x188   : > { %12116 = vmatpush3.bf16.msra.mxu1 %v12425_v9  ;;  %v14098_v9 = vrot.slane %v14009_v16, %v14079_v59  ;;  %v14104_v5 = vrot.slane %v14013_v15, %v14079_v59  ;;  %v14110_v14 = vrot.slane %v14019_v25, %v14079_v59  ;;  %v14117_v16 = vrot.slane %v1417_v2, %v14079_v59 }
 0x189   : > { %v14046_v50 = vpop.f32.mrb[4].mxu1  ;;  %v14053_v61 = vpop.f32.mrb[4].mxu0  ;;  %v7339_v13 = vcombine.low %v7317_v29, %v7324_v32  ;;  %v14122_v15 = vrot.slane %v1552_v6, %v14079_v59  ;;  %v14128_v25 = vrot.slane %v14021_v30, %v14079_v59  ;;  %v14138_v58 = vrot.slane %v1568_v1, %v14079_v59 }
 0x18a   : > { %v11775_v47 = vpop.f32.mrb[5].mxu1  ;;  %v11759_v21 = vpop.f32.mrb[5].mxu0  ;;  %18182 = vst [vmem:[#allocation18_spill] sm:$0xff] %v14098_v9  ;;  %v1585_v51 = vcombine.high %v14046_v50, %v14046_v50  ;;  %v14151_v54 = vrot.slane %v14046_v50, %v14079_v59  ;;  %v14168_v50 = vrot.slane %v14053_v61, %v14079_v59 }
 0x18b   : > { %v14051_v55 = vpop.f32.mrb[6].mxu1  ;;  %v14057_v19 = vpop.f32.mrb[6].mxu0  ;;  %12030 = vmatmul.mubr.bf16.gmra.mrb[108].mxu1 %v13646_v44  ;;  %v7338_v44 = vrot.slane %v7310_v45, %v13177_v8  ;;  %v7347_v27 = vrot.slane %v7339_v13, %v13177_v8  ;;  %18183 = vst [vmem:[#allocation19_spill] sm:$0xff] %v14122_v15 }
 0x18c   : > { %v11776_v11 = vpop.f32.mrb[7].mxu1  ;;  %v11760_v18 = vpop.f32.mrb[7].mxu0  ;;  %12033 = vmatprep.mubr.msk.bf16.mxu1 %vm12903_vm0, %v17934_v0  ;;  %v1602_v47 = vcombine.high %v14051_v55, %v14051_v55  ;;  %18184 = vst [vmem:[#allocation20_spill] sm:$0xff] %v14151_v54  ;;  %v14154_v45 = vrot.slane %v1585_v51, %v14079_v59  ;;  %v14160_v52 = vrot.slane %v14051_v55, %v14079_v59 }
 0x18d   : > { %v7340_v49 = vcombine.low %v7331_v53, %v7338_v44  ;;  %v1451_v11 = vcombine.high %v14053_v61, %v14053_v61  ;;  %v1468_v18 = vcombine.high %v14057_v19, %v14057_v19  ;;  %v14197_v13 = vrot.slane %v14057_v19, %v14079_v59 }
 0x18e   : > { %12086 = vmatmul.mubr.bf16.gmra.mrb[108].mxu0 %v14055_v41  ;;  %18185 = vst [vmem:[#allocation21_spill] sm:$0xff] %v14154_v45  ;;  %v14172_v22 = vrot.slane %v1602_v47, %v14079_v59 }
 0x18f   : > { %12089 = vmatprep.mubr.msk.bf16.mxu0 %vm12903_vm0, %v17934_v0  ;;  %v14179_v32 = vrot.slane %v1451_v11, %v14079_v59  ;;  %18187 = vst [vmem:[#allocation23_spill] sm:$0xff] %v14197_v13 }
 0x190   : > { %18186 = vst [vmem:[#allocation22_spill] sm:$0xff] %v14172_v22 }
 0x191   : > { %v14069_v62 = vpop.f32.mrb[8].mxu1 }
 0x192   : > { %v11779_v24 = vpop.f32.mrb[9].mxu1  ;;  %v1619_v23 = vcombine.high %v14069_v62, %v14069_v62 }
 0x193   : > { %v14073_v36 = vpop.f32.mrb[10].mxu1  ;;  %12034 = vmatmul.mubr.bf16.gmra.mrb[112].mxu1 %v13678_v10  ;;  %v7354_v10 = vrot.slane %v7340_v49, %v13177_v8  ;;  %v1434_v8 = vcombine.high %v14021_v30, %v14021_v30  ;;  %v14200_v49 = vrot.slane %v1468_v18, %v14079_v59 }
 0x194   : > { %18180 = vst [vmem:[#allocation16_spill] sm:$0xff] %v14073_v36  ;;  %v11780_v63 = vpop.f32.mrb[11].mxu1  ;;  %12037 = vmatprep.mubr.msk.bf16.mxu1 %vm12903_vm0, %v17934_v0  ;;  %v14083_v34 = vpop.f32.mrb[8].mxu0  ;;  %v1636_v55 = vcombine.high %v14073_v36, %v14073_v36 }
 0x195   : > { %18181 = vst [vmem:[#allocation17_spill] sm:$0xff] %v14083_v34  ;;  %v11763_v20 = vpop.f32.mrb[9].mxu0  ;;  %v14119_v37 = vcombine.low %v7347_v27, %v7354_v10  ;;  %v14143_v35 = vrot.slane %v1434_v8, %v14079_v59  ;;  %v1485_v44 = vcombine.high %v14083_v34, %v14083_v34  ;;  %v14206_v27 = vrot.slane %v14069_v62, %v14079_v59 }
 0x196   : > { %12090 = vmatmul.mubr.bf16.gmra.mrb[112].mxu0 %v14075_v39  ;;  %v14088_v4 = vpop.f32.mrb[10].mxu0  ;;  %v14209_v10 = vrot.slane %v1619_v23, %v14079_v59  ;;  %v14216_v1 = vrot.slane %v1636_v55, %v14079_v59 }
 0x197   : > { %12093 = vmatprep.mubr.msk.bf16.mxu0 %vm12903_vm0, %v17934_v0  ;;  %v11764_v46 = vpop.f32.mrb[11].mxu0  ;;  %v1501_v26 = vcombine.high %v14088_v4, %v14088_v4  ;;  %18188 = vst [vmem:[#allocation24_spill] sm:$0xff] %v14206_v27  ;;  %v14228_v47 = vrot.slane %v1485_v44, %v14079_v59  ;;  %v14232_v11 = vrot.slane %v14088_v4, %v14079_v59 }
 0x198   : > { %18189 = vst [vmem:[#allocation25_spill] sm:$0xff] %v14209_v10 }
 0x199   : > { %v14114_v31 = vpop.f32.mrb[12].mxu1  ;;  %18191 = vst [vmem:[#allocation27_spill] sm:$0xff] %v14232_v11 }
 0x19a   : > { %v11783_v57 = vpop.f32.mrb[13].mxu1  ;;  %v1652_v62 = vcombine.high %v14114_v31, %v14114_v31 }
 0x19b   : > { %12038 = vmatmul.mubr.bf16.gmra.mrb[116].mxu1 %v13696_v38  ;;  %v14133_v21 = vpop.f32.mrb[14].mxu1  ;;  %v14225_v57 = vrot.slane %v14114_v31, %v14079_v59 }
 0x19c   : > { %v11784_v30 = vpop.f32.mrb[15].mxu1  ;;  %12041 = vmatprep.mubr.msk.bf16.mxu1 %vm12903_vm0, %v17934_v0  ;;  %v1669_v23 = vcombine.high %v14133_v21, %v14133_v21  ;;  %v14255_v19 = vrot.slane %v1652_v62, %v14079_v59 }
 0x19d   : > { %18190 = vst [vmem:[#allocation26_spill] sm:$0xff] %v14225_v57  ;;  %v14235_v30 = vrot.slane %v1501_v26, %v14079_v59 }
 0x19e   : > { %12094 = vmatmul.mubr.bf16.gmra.mrb[116].mxu0 %v13816_v60  ;;  %18192 = vst [vmem:[#allocation28_spill] sm:$0xff] %v14255_v19  ;;  %v14274_v63 = vrot.slane %v1669_v23, %v14079_v59 }
 0x19f   : > { %12097 = vmatprep.mubr.msk.bf16.mxu0 %vm12903_vm0, %v17934_v0 }
 0x1a0   : > { %18194 = vst [vmem:[#allocation30_spill] sm:$0xff] %v14274_v63 }
 0x1a1   : > { %v1352_v20 = vpop.f32.mrb[12].mxu0 }
 0x1a2   : > { %v11767_v46 = vpop.f32.mrb[13].mxu0  ;;  %v1518_v55 = vcombine.high %v1352_v20, %v1352_v20  ;;  %v14277_v26 = vrot.slane %v1352_v20, %v14079_v59 }
 0x1a3   : > { %12042 = vmatmul.mubr.bf16.gmra.mrb[120].mxu1 %v13705_v42  ;;  %v1355_v51 = vpop.f32.mrb[14].mxu0 }
 0x1a4   : > { %12045 = vmatprep.mubr.msk.bf16.mxu1 %vm12903_vm0, %v17934_v0  ;;  %v11768_v18 = vpop.f32.mrb[15].mxu0  ;;  %v14280_v61 = vrot.slane %v1518_v55, %v14079_v59  ;;  %v14286_v62 = vrot.slane %v1355_v51, %v14079_v59 }
 0x1a5   : > { %v1535_v18 = vcombine.high %v1355_v51, %v1355_v51 }
 0x1a6   : > { %v1392_v46 = vpop.f32.mrb[16].mxu1  ;;  %12098 = vmatmul.mubr.bf16.gmra.mrb[120].mxu0 %v14119_v37  ;;  %18196 = vst [vmem:[#allocation32_spill] sm:$0xff] %v14286_v62 }
 0x1a7   : > { %v1686_v4 = vcombine.high %v1392_v46, %v1392_v46  ;;  %v11787_v2 = vpop.f32.mrb[17].mxu1  ;;  %12169 = vmatprep.mubr.msk.bf16.mxu0 %vm12903_vm0, %v17934_v0  ;;  %v14283_v3 = vrot.slane %v1392_v46, %v14079_v59 }
 0x1a8   : > { %v1395_v24 = vpop.f32.mrb[18].mxu1  ;;  %v14271_v2 = vrot.slane %v14133_v21, %v14079_v59  ;;  %v14289_v21 = vrot.slane %v1535_v18, %v14079_v59 }
 0x1a9   : > { %v11788_v38 = vpop.f32.mrb[19].mxu1  ;;  %v2775_v33 = vpop.f32.mrb[16].mxu0  ;;  %18195 = vst [vmem:[#allocation31_spill] sm:$0xff] %v14283_v3  ;;  %v14294_v31 = vrot.slane %v1686_v4, %v14079_v59  ;;  %v1703_v55 = vcombine.high %v1395_v24, %v1395_v24 }
 0x1aa   : > { %18193 = vst [vmem:[#allocation29_spill] sm:$0xff] %v14271_v2  ;;  %18197 = vst [vmem:[#allocation33_spill] sm:$0xff] %v14289_v21  ;;  %v2864_v44 = vcombine.high %v2775_v33, %v2775_v33  ;;  %v11859_v23 = vpop.f32.mrb[17].mxu0  ;;  %v14297_v38 = vrot.slane %v1395_v24, %v14079_v59  ;;  %v14301_v51 = vrot.slane %v2775_v33, %v14079_v59 }
 0x1ab   : > { %18198 = vst [vmem:[#allocation34_spill] sm:$0xff] %v14294_v31  ;;  %12046 = vmatmul.mubr.bf16.gmra.mrb[124].mxu1 %v13910_v7  ;;  %v2778_v46 = vpop.f32.mrb[18].mxu0  ;;  %v14338_v8 = vrot.slane %v1703_v55, %v14079_v59 }
 0x1ac   : > { %18199 = vst [vmem:[#allocation35_spill] sm:$0xff] %v14297_v38  ;;  %v14304_v18 = vrot.slane %v2864_v44, %v14079_v59  ;;  %12117 = vmatprep.mubr.msk.bf16.mxu1 %vm12903_vm0, %v17934_v0  ;;  %v2881_v23 = vcombine.high %v2778_v46, %v2778_v46  ;;  %v14309_v4 = vrot.slane %v2778_v46, %v14079_v59  ;;  %v11860_v20 = vpop.f32.mrb[19].mxu0 }
 0x1ad   : > { %18202 = vst [vmem:[#allocation36_spill] sm:$0xff] %v14338_v8  ;;  %v2879_v55 = vcombine.high %v14301_v51, %v14301_v51 }
 0x1ae   : > { %v1946_v24 = vpop.f32.mrb[20].mxu1  ;;  %v14332_v33 = vrot.slane %v2881_v23, %v14079_v59  ;;  %12170 = vmatmul.mubr.bf16.vlgmr.msra.gmra.mrb[124].mxu0 %v13928_v43 }
 0x1af   : > { %v2035_v6 = vcombine.high %v1946_v24, %v1946_v24  ;;  %v2042_v20 = vrot.slane %v1946_v24, %v14079_v59  ;;  %v11807_v53 = vpop.f32.mrb[21].mxu1  ;;  %12173 = vmatprep.mubr.msk.bf16.mxu0 %vm12903_vm0, %v17934_v0 }
 0x1b0   : > { %v1949_v23 = vpop.f32.mrb[22].mxu1 }
 0x1b1   : > { %v2049_v44 = vrot.slane %v2035_v6, %v14079_v59  ;;  %v2050_v7 = vcombine.high %v2042_v20, %v2042_v20  ;;  %v2052_v29 = vcombine.high %v1949_v23, %v1949_v23  ;;  %v11808_v28 = vpop.f32.mrb[23].mxu1  ;;  %v14361_v48 = vpop.f32.mrb[20].mxu0  ;;  %v11314_v0 = vrot.slane %v2042_v20, 9 }
 0x1b2   : > { %v2059_v8 = vrot.slane %v1949_v23, %v14079_v59  ;;  %v2898_v51 = vcombine.high %v14361_v48, %v14361_v48  ;;  %v11863_v24 = vpop.f32.mrb[21].mxu0 }
 0x1b3   : > { %v2051_v36 = vcombine.high %v2049_v44, %v2049_v44  ;;  %v2350_v6 = vrot.slane %v2050_v7, 7  ;;  %v2353_v15 = vrot.slane %v2049_v44, 7  ;;  %v2066_v28 = vrot.slane %v2052_v29, %v14079_v59  ;;  %12118 = vmatmul.mubr.bf16.vlgmr.msra.gmra.mrb[128].mxu1 %v13928_v43  ;;  %v14377_v20 = vpop.f32.mrb[22].mxu0 }
 0x1b4   : > { %v2067_v23 = vcombine.high %v2059_v8, %v2059_v8  ;;  %v2359_v34 = vrot.slane %v2059_v8, 7  ;;  %v14380_v24 = vrot.slane %v2898_v51, %v14079_v59  ;;  %v18207_v7 = vmov 0.0   ;;  %v11864_v44 = vpop.f32.mrb[23].mxu0 }
 0x1b5   : > { %12121 = vmatprep.mubr.msk.bf16.mxu1 %vm12903_vm0, %v18207_v7  ;;  %v2352_v46 = vrot.slane %v2350_v6, 2  ;;  %v14386_v53 = vrot.slane %v2353_v15, 2  ;;  %v14388_v38 = vrot.slane %v2051_v36, 7  ;;  %v2068_v43 = vcombine.high %v2066_v28, %v2066_v28 }
 0x1b6   : > { %v14390_v31 = vrot.slane %v2359_v34, 2  ;;  %v14392_v3 = vrot.slane %v2067_v23, 7  ;;  %v2365_v8 = vrot.slane %v2066_v28, 7  ;;  %v2351_v51 = vsel %vm14372_vm7, %v11314_v0, %v2350_v6  ;;  %v1954_v63 = vpop.f32.mrb[24].mxu1  ;;  %12174 = vmatmul.mubr.bf16.gmra.mrb[128].mxu0 %v13946_v40 }
 0x1b7   : > { %18208 = vst [vmem:[#allocation37_spill] sm:$0xff] %v14386_v53  ;;  %18209 = vst [vmem:[#allocation38_spill] sm:$0xff] %v14388_v38  ;;  %v2358_v29 = vrot.slane %v14388_v38, 2  ;;  %v14398_v44 = vrot.slane %v2068_v43, 7  ;;  %v2354_v36 = vsel %vm14372_vm7, %v2352_v46, %v2353_v15  ;;  %v2612_v53 = vadd.f32 %v2351_v51, %v14104_v5  ;;  %v11811_v19 = vpop.f32.mrb[25].mxu1  ;;  %12177 = vmatprep.mubr.msk.bf16.mxu0 %vm12903_vm0, %v18207_v7 }
 0x1b8   : > { %18210 = vst [vmem:[#allocation39_spill] sm:$0xff] %v14390_v31  ;;  %v2364_v28 = vrot.slane %v14392_v3, 2  ;;  %v14406_v23 = vrot.slane %v2365_v8, 2  ;;  %v18212_v0 = vcombine.high %v14104_v5, %v14104_v5  ;;  %v2069_v31 = vcombine.high %v1954_v63, %v1954_v63  ;;  %v1957_v43 = vpop.f32.mrb[26].mxu1 }
 0x1b9   : > { %v2370_v38 = vrot.slane %v14398_v44, 2  ;;  %v14412_v2 = vadd.f32 %v2879_v55, %v2612_v53  ;;  %v2360_v15 = vsel %vm14372_vm7, %v2358_v29, %v2359_v34  ;;  %v2076_v19 = vrot.slane %v1954_v63, %v14079_v59  ;;  %v11812_v46 = vpop.f32.mrb[27].mxu1  ;;  %v14417_v51 = vpop.f32.mrb[24].mxu0 }
 0x1ba   : > { %18211 = vst [vmem:[#allocation40_spill] sm:$0xff] %v14406_v23  ;;  %v2613_v6 = vadd.f32 %v2354_v36, %v18212_v0  ;;  %v2366_v5 = vsel %vm14372_vm7, %v2364_v28, %v2365_v8  ;;  %v18215_v36 = vcombine.high %v14117_v16, %v14117_v16  ;;  %v2083_v55 = vrot.slane %v2069_v31, %v14079_v59  ;;  %v11867_v53 = vpop.f32.mrb[25].mxu0 }
 0x1bb   : > { %18213 = vst [vmem:[#allocation41_spill] sm:$0xff] %v14412_v2  ;;  %v18216_v34 = vcombine.high %v14128_v25, %v14128_v25  ;;  %v2084_v29 = vcombine.high %v2076_v19, %v2076_v19  ;;  %v2371_v46 = vrot.slane %v2076_v19, 7  ;;  %v2086_v2 = vcombine.high %v1957_v43, %v1957_v43  ;;  %12122 = vmatmul.mubr.bf16.gmra.mrb[132].mxu1 %v13946_v40 }
 0x1bc   : > { %v14420_v23 = vadd.f32 %v14304_v18, %v2613_v6  ;;  %v2615_v0 = vadd.f32 %v2360_v15, %v18215_v36  ;;  %v14432_v6 = vpop.f32.mrb[26].mxu0  ;;  %v2085_v28 = vcombine.high %v2083_v55, %v2083_v55  ;;  %v2093_v15 = vrot.slane %v1957_v43, %v14079_v59  ;;  %12125 = vmatprep.mubr.msk.bf16.mxu1 %vm12903_vm0, %v18207_v7 }
 0x1bd   : > { %v2617_v63 = vadd.f32 %v2366_v5, %v18216_v34  ;;  %v11868_v31 = vpop.f32.mrb[27].mxu0  ;;  %v11315_v19 = vrot.slane %v2084_v29, 9  ;;  %v2100_v36 = vrot.slane %v2086_v2, %v14079_v59  ;;  %v2372_v40 = vsel %vm14372_vm7, %v2370_v38, %v2371_v46 }
 0x1be   : > { %18214 = vst [vmem:[#allocation42_spill] sm:$0xff] %v14420_v23  ;;  %v14435_v8 = vadd.f32 %v14309_v4, %v2615_v0  ;;  %v2375_v23 = vrot.slane %v2083_v55, 7  ;;  %v14448_v0 = vrot.slane %v2085_v28, 7  ;;  %v2101_v55 = vcombine.high %v2093_v15, %v2093_v15  ;;  %v1962_v43 = vpop.f32.mrb[28].mxu1  ;;  %12178 = vmatmul.mubr.bf16.gmra.mrb[132].mxu0 %v13758_v56 }
 0x1bf   : > { %v14441_v5 = vadd.f32 %v14332_v33, %v2617_v63  ;;  %v2381_v34 = vrot.slane %v2093_v15, 7  ;;  %v2387_v31 = vrot.slane %v2100_v36, 7  ;;  %v18221_v2 = vcombine.high %v14143_v35, %v14143_v35  ;;  %12181 = vmatprep.mubr.msk.bf16.mxu0 %vm12903_vm0, %v18207_v7 }
 0x1c0   : > { %18217 = vst [vmem:[#allocation43_spill] sm:$0xff] %v14435_v8  ;;  %v14446_v53 = vrot.slane %v2375_v23, 2  ;;  %18220 = vst [vmem:[#allocation46_spill] sm:$0xff] %v14448_v0  ;;  %v2102_v8 = vcombine.high %v2100_v36, %v2100_v36  ;;  %v2376_v63 = vsel %vm14372_vm7, %v11315_v19, %v2375_v23  ;;  %v2380_v38 = vrot.slane %v14448_v0, 2 }
 0x1c1   : > { %18218 = vst [vmem:[#allocation44_spill] sm:$0xff] %v14441_v5  ;;  %v2619_v29 = vadd.f32 %v2372_v40, %v18221_v2  ;;  %v11815_v5 = vpop.f32.mrb[29].mxu1  ;;  %v14459_v46 = vrot.slane %v2381_v34, 2  ;;  %v14461_v28 = vrot.slane %v2101_v55, 7  ;;  %v18224_v15 = vcombine.high %v14168_v50, %v14168_v50  ;;  %v14477_v55 = vpop.f32.mrb[28].mxu0 }
 0x1c2   : > { %18219 = vst [vmem:[#allocation45_spill] sm:$0xff] %v14446_v53  ;;  %v1965_v53 = vpop.f32.mrb[30].mxu1  ;;  %v14466_v23 = vrot.slane %v2387_v31, 2  ;;  %v14468_v19 = vrot.slane %v2102_v8, 7  ;;  %v18227_v40 = vrot.slane %v14361_v48, %v14079_v59  ;;  %v2382_v8 = vsel %vm14372_vm7, %v2380_v38, %v2381_v34 }
 0x1c3   : > { %18222 = vst [vmem:[#allocation47_spill] sm:$0xff] %v14459_v46  ;;  %18223 = vst [vmem:[#allocation48_spill] sm:$0xff] %v14461_v28  ;;  %v2620_v36 = vadd.f32 %v2376_v63, %v18224_v15  ;;  %v11816_v46 = vpop.f32.mrb[31].mxu1  ;;  %v2386_v0 = vrot.slane %v14461_v28, 2  ;;  %v14487_v63 = vrot.slane %v14377_v20, %v14079_v59  ;;  %v11871_v15 = vpop.f32.mrb[29].mxu0  ;;  %v2103_v5 = vcombine.high %v1962_v43, %v1962_v43 }
 0x1c4   : > { %18225 = vst [vmem:[#allocation49_spill] sm:$0xff] %v14466_v23  ;;  %18226 = vst [vmem:[#allocation50_spill] sm:$0xff] %v14468_v19  ;;  %v14475_v2 = vadd.f32 %v18227_v40, %v2619_v29  ;;  %v2392_v48 = vrot.slane %v14468_v19, 2  ;;  %v18231_v29 = vcombine.high %v14179_v32, %v14179_v32  ;;  %v18232_v40 = vcombine.high %v14377_v20, %v14377_v20  ;;  %v14500_v34 = vpop.f32.mrb[30].mxu0 }
 0x1c5   : > { %v14481_v50 = vadd.f32 %v14380_v24, %v2620_v36  ;;  %18230 = vst [vmem:[#allocation53_spill] sm:$0xff] %v14487_v63  ;;  %12126 = vmatmul.mubr.bf16.gmra.mrb[136].mxu1 %v13758_v56  ;;  %v2388_v38 = vsel %vm14372_vm7, %v2386_v0, %v2387_v31  ;;  %v11872_v20 = vpop.f32.mrb[31].mxu0  ;;  %v2117_v0 = vrot.slane %v2103_v5, %v14079_v59 }
 0x1c6   : > { %18228 = vst [vmem:[#allocation51_spill] sm:$0xff] %v14475_v2  ;;  %v2622_v46 = vadd.f32 %v2382_v8, %v18231_v29  ;;  %v14497_v36 = vrot.slane %v18232_v40, %v14079_v59  ;;  %v2110_v2 = vrot.slane %v1962_v43, %v14079_v59  ;;  %v2120_v8 = vcombine.high %v1965_v53, %v1965_v53  ;;  %v1970_v19 = vpop.f32.mrb[32].mxu1 }
 0x1c7   : > { %18229 = vst [vmem:[#allocation52_spill] sm:$0xff] %v14481_v50  ;;  %12129 = vmatprep.mubr.msk.bf16.mxu1 %vm12903_vm0, %v18207_v7  ;;  %v18234_v29 = vcombine.high %v14197_v13, %v14197_v13  ;;  %v2127_v43 = vrot.slane %v1965_v53, %v14079_v59  ;;  %12182 = vmatmul.mubr.bf16.gmra.mrb[136].mxu0 %v13994_v12  ;;  %v11819_v56 = vpop.f32.mrb[33].mxu1 }
 0x1c8   : > { %18233 = vst [vmem:[#allocation54_spill] sm:$0xff] %v14497_v36  ;;  %v14515_v50 = vadd.f32 %v14487_v63, %v2622_v46  ;;  %v2118_v31 = vcombine.high %v2110_v2, %v2110_v2  ;;  %v2393_v15 = vrot.slane %v2110_v2, 7  ;;  %v2134_v23 = vrot.slane %v2120_v8, %v14079_v59  ;;  %12185 = vmatprep.mubr.msk.bf16.mxu0 %vm12903_vm0, %v18207_v7 }
 0x1c9   : > { %v2624_v40 = vadd.f32 %v2388_v38, %v18234_v29  ;;  %v2119_v38 = vcombine.high %v2117_v0, %v2117_v0  ;;  %v11316_v29 = vrot.slane %v2117_v0, 9  ;;  %v2931_v46 = vcombine.high %v14417_v51, %v14417_v51 }
 0x1ca   : > { %18235 = vst [vmem:[#allocation55_spill] sm:$0xff] %v14515_v50  ;;  %v14528_v5 = vrot.slane %v2393_v15, 2  ;;  %v14530_v53 = vrot.slane %v2118_v31, 7  ;;  %v2135_v2 = vcombine.high %v2127_v43, %v2127_v43  ;;  %v2136_v8 = vcombine.high %v2134_v23, %v2134_v23  ;;  %v1973_v50 = vpop.f32.mrb[34].mxu1 }
 0x1cb   : > { %v14522_v20 = vadd.f32 %v14497_v36, %v2624_v40  ;;  %v2400_v63 = vrot.slane %v2119_v38, 7  ;;  %v2403_v13 = vrot.slane %v2127_v43, 7  ;;  %v2409_v40 = vrot.slane %v2134_v23, 7  ;;  %v14534_v36 = vpop.f32.mrb[32].mxu0 }
 0x1cc   : > { %18237 = vst [vmem:[#allocation57_spill] sm:$0xff] %v14528_v5  ;;  %18238 = vst [vmem:[#allocation58_spill] sm:$0xff] %v14530_v53  ;;  %v2394_v0 = vsel %vm14372_vm7, %v2392_v48, %v2393_v15  ;;  %v14536_v56 = vrot.slane %v2135_v2, 7  ;;  %v14538_v28 = vrot.slane %v2136_v8, 7  ;;  %v18241_v31 = vcombine.high %v14200_v49, %v14200_v49  ;;  %v11875_v43 = vpop.f32.mrb[33].mxu0 }
 0x1cd   : > { %18236 = vst [vmem:[#allocation56_spill] sm:$0xff] %v14522_v20  ;;  %v11820_v20 = vpop.f32.mrb[35].mxu1  ;;  %v14545_v53 = vrot.slane %v14417_v51, %v14079_v59  ;;  %v2402_v23 = vrot.slane %v2400_v63, 2  ;;  %v14547_v38 = vrot.slane %v2403_v13, 2  ;;  %v14549_v48 = vrot.slane %v2409_v40, 2  ;;  %12130 = vmatmul.mubr.bf16.gmra.mrb[140].mxu1 %v13994_v12 }
 0x1ce   : > { %18239 = vst [vmem:[#allocation59_spill] sm:$0xff] %v14536_v56  ;;  %18240 = vst [vmem:[#allocation60_spill] sm:$0xff] %v14538_v28  ;;  %v2626_v5 = vadd.f32 %v2394_v0, %v18241_v31  ;;  %v2401_v15 = vsel %vm14372_vm7, %v11316_v29, %v2400_v63  ;;  %v14554_v20 = vpop.f32.mrb[34].mxu0  ;;  %v2408_v2 = vrot.slane %v14536_v56, 2  ;;  %v2414_v8 = vrot.slane %v14538_v28, 2  ;;  %12133 = vmatprep.mubr.msk.bf16.mxu1 %vm12903_vm0, %v18207_v7 }
 0x1cf   : > { %18242 = vst [vmem:[#allocation61_spill] sm:$0xff] %v14547_v38  ;;  %18243 = vst [vmem:[#allocation62_spill] sm:$0xff] %v14549_v48  ;;  %v2628_v51 = vadd.f32 %v2401_v15, %v14228_v47  ;;  %v2945_v0 = vrot.slane %v2931_v46, %v14079_v59  ;;  %v11876_v31 = vpop.f32.mrb[35].mxu0  ;;  %v2404_v12 = vsel %vm14372_vm7, %v2402_v23, %v2403_v13  ;;  %12186 = vmatmul.mubr.bf16.gmra.mrb[140].mxu0 %v14026_v17 }
 0x1d0   : > { %v14565_v63 = vadd.f32 %v14545_v53, %v2626_v5  ;;  %v2948_v29 = vcombine.high %v14432_v6, %v14432_v6  ;;  %v2410_v46 = vsel %vm14372_vm7, %v2408_v2, %v2409_v40  ;;  %v18245_v15 = vcombine.high %v14228_v47, %v14228_v47  ;;  %v14580_v5 = vpop.f32.mrb[36].mxu1  ;;  %12189 = vmatprep.mubr.msk.bf16.mxu0 %vm12903_vm0, %v18207_v7 }
 0x1d1   : > { %v2947_v48 = vcombine.high %v2945_v0, %v2945_v0  ;;  %v14578_v43 = vrot.slane %v14432_v6, %v14079_v59  ;;  %v18247_v13 = vcombine.high %v14232_v11, %v14232_v11  ;;  %v2137_v40 = vcombine.high %v1970_v19, %v1970_v19  ;;  %v11823_v47 = vpop.f32.mrb[37].mxu1 }
 0x1d2   : > { %18244 = vst [vmem:[#allocation63_spill] sm:$0xff] %v14565_v63  ;;  %v2629_v31 = vadd.f32 %v2404_v12, %v18245_v15  ;;  %v14587_v0 = vrot.slane %v2948_v29, %v14079_v59  ;;  %v2144_v2 = vrot.slane %v1970_v19, %v14079_v59  ;;  %v2154_v63 = vcombine.high %v1973_v50, %v1973_v50 }
 0x1d3   : > { %18246 = vst [vmem:[#allocation64_spill] sm:$0xff] %v14578_v43  ;;  %v2631_v23 = vadd.f32 %v2410_v46, %v18247_v13  ;;  %v14592_v6 = vadd.f32 %v2947_v48, %v2628_v51  ;;  %v14599_v46 = vpop.f32.mrb[38].mxu1  ;;  %v2151_v13 = vrot.slane %v2137_v40, %v14079_v59  ;;  %v14607_v51 = vpop.f32.mrb[36].mxu0  ;;  %v2161_v12 = vrot.slane %v1973_v50, %v14079_v59 }
 0x1d4   : > { %18248 = vst [vmem:[#allocation65_spill] sm:$0xff] %v14587_v0  ;;  %v14597_v15 = vadd.f32 %v14578_v43, %v2629_v31  ;;  %v2152_v47 = vcombine.high %v2144_v2, %v2144_v2  ;;  %v11824_v48 = vpop.f32.mrb[39].mxu1  ;;  %v2415_v11 = vrot.slane %v2144_v2, 7  ;;  %v2168_v31 = vrot.slane %v2154_v63, %v14079_v59  ;;  %v11879_v43 = vpop.f32.mrb[37].mxu0 }
 0x1d5   : > { %18249 = vst [vmem:[#allocation66_spill] sm:$0xff] %v14592_v6  ;;  %v14604_v19 = vadd.f32 %v14587_v0, %v2631_v23  ;;  %v2153_v28 = vcombine.high %v2151_v13, %v2151_v13  ;;  %v2421_v23 = vrot.slane %v2151_v13, 7  ;;  %v14617_v40 = vrot.slane %v14477_v55, %v14079_v59  ;;  %12134 = vmatmul.mubr.bf16.gmra.mrb[144].mxu1 %v14026_v17  ;;  %v14620_v48 = vpop.f32.mrb[38].mxu0 }
 0x1d6   : > { %18250 = vst [vmem:[#allocation67_spill] sm:$0xff] %v14597_v15  ;;  %v2965_v15 = vcombine.high %v14477_v55, %v14477_v55  ;;  %v14613_v29 = vrot.slane %v2152_v47, 7  ;;  %v14622_v2 = vrot.slane %v2415_v11, 2  ;;  %v2169_v50 = vcombine.high %v2161_v12, %v2161_v12  ;;  %12137 = vmatprep.mubr.msk.bf16.mxu1 %vm12903_vm0, %v18207_v7  ;;  %v11880_v43 = vpop.f32.mrb[39].mxu0  ;;  %v14638_v56 = vpop.f32.mrb[40].mxu1 }
 0x1d7   : > { %18251 = vst [vmem:[#allocation68_spill] sm:$0xff] %v14604_v19  ;;  %18252 = vst [vmem:[#allocation69_spill] sm:$0xff] %v14617_v40  ;;  %v2170_v63 = vcombine.high %v2168_v31, %v2168_v31  ;;  %v2425_v19 = vrot.slane %v2161_v12, 7  ;;  %v11317_v13 = vrot.slane %v2153_v28, 9  ;;  %v2431_v0 = vrot.slane %v2168_v31, 7  ;;  %12190 = vmatmul.mubr.bf16.gmra.mrb[144].mxu0 %v14055_v41  ;;  %v11827_v31 = vpop.f32.mrb[41].mxu1 }
 0x1d8   : > { %18253 = vst [vmem:[#allocation70_spill] sm:$0xff] %v14622_v2  ;;  %v2420_v47 = vrot.slane %v14613_v29, 2  ;;  %v2416_v55 = vsel %vm14372_vm7, %v2414_v8, %v2415_v11  ;;  %v14631_v17 = vrot.slane %v2169_v50, 7  ;;  %v18256_v12 = vcombine.high %v14235_v30, %v14235_v30  ;;  %12193 = vmatprep.mubr.msk.bf16.mxu0 %vm12903_vm0, %v18207_v7 }
 0x1d9   : > { %v14629_v6 = vrot.slane %v2425_v19, 2  ;;  %v14633_v38 = vrot.slane %v2170_v63, 7  ;;  %v14641_v43 = vrot.slane %v2431_v0, 2  ;;  %v2979_v11 = vrot.slane %v2965_v15, %v14079_v59 }
 0x1da   : > { %v2633_v2 = vadd.f32 %v2416_v55, %v18256_v12  ;;  %v2422_v28 = vsel %vm14372_vm7, %v2420_v47, %v2421_v23  ;;  %v2430_v50 = vrot.slane %v14631_v17, 2  ;;  %v18258_v55 = vcombine.high %v14277_v26, %v14277_v26  ;;  %v14658_v23 = vpop.f32.mrb[42].mxu1 }
 0x1db   : > { %18254 = vst [vmem:[#allocation71_spill] sm:$0xff] %v14629_v6  ;;  %18255 = vst [vmem:[#allocation72_spill] sm:$0xff] %v14633_v38  ;;  %v2436_v63 = vrot.slane %v14633_v38, 2  ;;  %v2426_v15 = vsel %vm14372_vm7, %v11317_v13, %v2425_v19  ;;  %v2981_v47 = vcombine.high %v14500_v34, %v14500_v34  ;;  %v14666_v31 = vrot.slane %v14500_v34, %v14079_v59  ;;  %v11828_v38 = vpop.f32.mrb[43].mxu1 }
 0x1dc   : > { %18257 = vst [vmem:[#allocation73_spill] sm:$0xff] %v14641_v43  ;;  %v2635_v12 = vadd.f32 %v2422_v28, %v18258_v55  ;;  %v14656_v43 = vadd.f32 %v14617_v40, %v2633_v2  ;;  %v2171_v8 = vcombine.high %v14580_v5, %v14580_v5  ;;  %v14670_v28 = vpop.f32.mrb[40].mxu0  ;;  %v2432_v55 = vsel %vm14372_vm7, %v2430_v50, %v2431_v0 }
 0x1dd   : > { %18260 = vst [vmem:[#allocation75_spill] sm:$0xff] %v14666_v31  ;;  %v18262_v19 = vcombine.high %v14280_v61, %v14280_v61  ;;  %v11883_v34 = vpop.f32.mrb[41].mxu0  ;;  %v18263_v40 = vcombine.high %v14286_v62, %v14286_v62  ;;  %v14685_v38 = vrot.slane %v2981_v47, %v14079_v59  ;;  %12138 = vmatmul.mubr.bf16.gmra.mrb[148].mxu1 %v14055_v41 }
 0x1de   : > { %18259 = vst [vmem:[#allocation74_spill] sm:$0xff] %v14656_v43  ;;  %v14672_v2 = vadd.f32 %v2979_v11, %v2635_v12  ;;  %v2178_v43 = vrot.slane %v14580_v5, %v14079_v59  ;;  %v2185_v0 = vrot.slane %v2171_v8, %v14079_v59  ;;  %v14691_v61 = vpop.f32.mrb[42].mxu0  ;;  %12141 = vmatprep.mubr.msk.bf16.mxu1 %vm12903_vm0, %v18207_v7  ;;  %v14712_v11 = vpop.f32.mrb[44].mxu1 }
 0x1df   : > { %v2636_v13 = vadd.f32 %v2426_v15, %v18262_v19  ;;  %v2638_v6 = vadd.f32 %v2432_v55, %v18263_v40  ;;  %18264 = vst [vmem:[#allocation77_spill] sm:$0xff] %v14685_v38  ;;  %v2188_v40 = vcombine.high %v14599_v46, %v14599_v46  ;;  %v11884_v15 = vpop.f32.mrb[43].mxu0  ;;  %12194 = vmatmul.mubr.bf16.gmra.mrb[148].mxu0 %v14075_v39 }
 0x1e0   : > { %18261 = vst [vmem:[#allocation76_spill] sm:$0xff] %v14672_v2  ;;  %v2186_v5 = vcombine.high %v2178_v43, %v2178_v43  ;;  %v2437_v12 = vrot.slane %v2178_v43, 7  ;;  %v2187_v41 = vcombine.high %v2185_v0, %v2185_v0  ;;  %v2443_v55 = vrot.slane %v2185_v0, 7  ;;  %12197 = vmatprep.mubr.msk.bf16.mxu0 %vm12903_vm0, %v18207_v7 }
 0x1e1   : > { %v14694_v50 = vadd.f32 %v14666_v31, %v2636_v13  ;;  %v14703_v8 = vadd.f32 %v14685_v38, %v2638_v6  ;;  %v2195_v43 = vrot.slane %v14599_v46, %v14079_v59  ;;  %v2202_v34 = vrot.slane %v2188_v40, %v14079_v59 }
 0x1e2   : > { %v14705_v19 = vrot.slane %v2437_v12, 2  ;;  %v14707_v13 = vrot.slane %v2186_v5, 7  ;;  %v14715_v15 = vrot.slane %v2443_v55, 2  ;;  %v14717_v47 = vrot.slane %v2187_v41, 7  ;;  %v11831_v5 = vpop.f32.mrb[45].mxu1 }
 0x1e3   : > { %18265 = vst [vmem:[#allocation78_spill] sm:$0xff] %v14694_v50  ;;  %18266 = vst [vmem:[#allocation79_spill] sm:$0xff] %v14703_v8  ;;  %v2438_v6 = vsel %vm14372_vm7, %v2436_v63, %v2437_v12  ;;  %v2998_v0 = vcombine.high %v14534_v36, %v14534_v36  ;;  %v2203_v40 = vcombine.high %v2195_v43, %v2195_v43  ;;  %v11318_v8 = vrot.slane %v2195_v43, 9  ;;  %v14726_v38 = vpop.f32.mrb[46].mxu1  ;;  %v14738_v50 = vpop.f32.mrb[44].mxu0 }
 0x1e4   : > { %18267 = vst [vmem:[#allocation80_spill] sm:$0xff] %v14705_v19  ;;  %18268 = vst [vmem:[#allocation81_spill] sm:$0xff] %v14707_v13  ;;  %v2442_v46 = vrot.slane %v14707_v13, 2  ;;  %v2204_v19 = vcombine.high %v2202_v34, %v2202_v34  ;;  %v18271_v41 = vcombine.high %v14289_v21, %v14289_v21  ;;  %v14733_v63 = vrot.slane %v14534_v36, %v14079_v59  ;;  %v11832_v5 = vpop.f32.mrb[47].mxu1 }
 0x1e5   : > { %18269 = vst [vmem:[#allocation82_spill] sm:$0xff] %v14715_v15  ;;  %18270 = vst [vmem:[#allocation83_spill] sm:$0xff] %v14717_v47  ;;  %v2453_v15 = vrot.slane %v2202_v34, 7  ;;  %v14736_v12 = vrot.slane %v2998_v0, %v14079_v59  ;;  %v2450_v13 = vrot.slane %v2203_v40, 7  ;;  %v3015_v34 = vcombine.high %v14554_v20, %v14554_v20  ;;  %12142 = vmatmul.mubr.bf16.gmra.mrb[152].mxu1 %v14075_v39 }
 0x1e6   : > { %v2640_v47 = vadd.f32 %v2438_v6, %v18271_v41  ;;  %18272 = vst [vmem:[#allocation84_spill] sm:$0xff] %v14733_v63  ;;  %v14740_v2 = vrot.slane %v2204_v19, 7  ;;  %v2444_v43 = vsel %vm14372_vm7, %v2442_v46, %v2443_v55  ;;  %v11887_v6 = vpop.f32.mrb[45].mxu0  ;;  %v18276_v36 = vcombine.high %v14098_v9, %v14098_v9  ;;  %12145 = vmatprep.mubr.msk.bf16.mxu1 %vm12903_vm0, %v18207_v7 }
 0x1e7   : > { %18273 = vst [vmem:[#allocation85_spill] sm:$0xff] %v14736_v12  ;;  %v14746_v41 = vrot.slane %v2453_v15, 2  ;;  %v14756_v40 = vpop.f32.mrb[46].mxu0  ;;  %v2452_v55 = vrot.slane %v2450_v13, 2  ;;  %v3022_v19 = vrot.slane %v14554_v20, %v14079_v59  ;;  %v14773_v5 = vrot.slane %v3015_v34, %v14079_v59  ;;  %12198 = vmatmul.mubr.bf16.gmra.mrb[152].mxu0 %v13816_v60 }
 0x1e8   : > { %18274 = vst [vmem:[#allocation86_spill] sm:$0xff] %v14740_v2  ;;  %v2642_v0 = vadd.f32 %v2444_v43, %v18276_v36  ;;  %v2458_v46 = vrot.slane %v14740_v2, 2  ;;  %v14760_v6 = vadd.f32 %v14733_v63, %v2640_v47  ;;  %v11888_v43 = vpop.f32.mrb[47].mxu0  ;;  %v18279_v20 = vcombine.high %v14110_v14, %v14110_v14  ;;  %12201 = vmatprep.mubr.msk.bf16.mxu0 %vm12903_vm0, %v18207_v7 }
 0x1e9   : > { %18275 = vst [vmem:[#allocation87_spill] sm:$0xff] %v14746_v41  ;;  %v2451_v41 = vsel %vm14372_vm7, %v11318_v8, %v2450_v13  ;;  %v2454_v47 = vsel %vm14372_vm7, %v2452_v55, %v2453_v15  ;;  %v2205_v8 = vcombine.high %v14638_v56, %v14638_v56  ;;  %v2212_v13 = vrot.slane %v14638_v56, %v14079_v59  ;;  %v14783_v43 = vpop.f32.mrb[48].mxu1 }
 0x1ea   : > { %18277 = vst [vmem:[#allocation88_spill] sm:$0xff] %v14760_v6  ;;  %v14767_v36 = vadd.f32 %v14736_v12, %v2642_v0  ;;  %v2644_v39 = vadd.f32 %v2451_v41, %v14110_v14  ;;  %v2222_v0 = vcombine.high %v14658_v23, %v14658_v23  ;;  %v2645_v34 = vadd.f32 %v2454_v47, %v18279_v20  ;;  %v11835_v6 = vpop.f32.mrb[49].mxu1 }
 0x1eb   : > { %v3030_v41 = vcombine.high %v3022_v19, %v3022_v19  ;;  %v2229_v55 = vrot.slane %v14658_v23, %v14079_v59  ;;  %v2219_v56 = vrot.slane %v2205_v8, %v14079_v59  ;;  %v2459_v2 = vrot.slane %v2212_v13, 7  ;;  %v14797_v63 = vpop.f32.mrb[50].mxu1  ;;  %v14804_v6 = vpop.f32.mrb[48].mxu0 }
 0x1ec   : > { %18278 = vst [vmem:[#allocation89_spill] sm:$0xff] %v14767_v36  ;;  %v2220_v36 = vcombine.high %v2212_v13, %v2212_v13  ;;  %v2236_v12 = vrot.slane %v2222_v0, %v14079_v59  ;;  %v14802_v19 = vadd.f32 %v14773_v5, %v2645_v34  ;;  %v11836_v23 = vpop.f32.mrb[51].mxu1  ;;  %v11891_v31 = vpop.f32.mrb[49].mxu0 }
 0x1ed   : > { %v14799_v14 = vadd.f32 %v3030_v41, %v2644_v39  ;;  %v2237_v47 = vcombine.high %v2229_v55, %v2229_v55  ;;  %v2471_v20 = vrot.slane %v2229_v55, 7  ;;  %v2221_v15 = vcombine.high %v2219_v56, %v2219_v56  ;;  %12146 = vmatmul.mubr.bf16.gmra.mrb[156].mxu1 %v13816_v60  ;;  %v14813_v34 = vpop.f32.mrb[50].mxu0 }
 0x1ee   : > { %v14806_v9 = vrot.slane %v2459_v2, 2  ;;  %v14808_v8 = vrot.slane %v2220_v36, 7  ;;  %v2465_v13 = vrot.slane %v2219_v56, 7  ;;  %v2238_v0 = vcombine.high %v2236_v12, %v2236_v12  ;;  %v11892_v56 = vpop.f32.mrb[51].mxu0  ;;  %12149 = vmatprep.mubr.msk.bf16.mxu1 %vm12903_vm0, %v18207_v7 }
 0x1ef   : > { %v11319_v21 = vrot.slane %v2237_v47, 9  ;;  %v2475_v62 = vrot.slane %v2236_v12, 7  ;;  %v2460_v39 = vsel %vm14372_vm7, %v2458_v46, %v2459_v2  ;;  %v14818_v23 = vrot.slane %v2221_v15, 7  ;;  %12202 = vmatmul.mubr.bf16.gmra.mrb[156].mxu0 %v14119_v37 }
 0x1f0   : > { %v2464_v41 = vrot.slane %v14808_v8, 2  ;;  %v14816_v55 = vrot.slane %v2465_v13, 2  ;;  %v18281_v36 = vcombine.high %v14138_v58, %v14138_v58  ;;  %v14827_v2 = vrot.slane %v2238_v0, 7  ;;  %v14842_v0 = vpop.f32.mrb[52].mxu1 }
 0x1f1   : > { %v14825_v12 = vrot.slane %v2475_v62, 2  ;;  %v3032_v60 = vcombine.high %v14607_v51, %v14607_v51  ;;  %v14833_v46 = vrot.slane %v14607_v51, %v14079_v59  ;;  %v2470_v15 = vrot.slane %v14818_v23, 2 }
 0x1f2   : > { %18280 = vst [vmem:[#allocation90_spill] sm:$0xff] %v14816_v55  ;;  %v2647_v31 = vadd.f32 %v2460_v39, %v18281_v36  ;;  %18283 = vst [vmem:[#allocation92_spill] sm:$0xff] %v14827_v2  ;;  %v2466_v47 = vsel %vm14372_vm7, %v2464_v41, %v2465_v13  ;;  %v2476_v39 = vsel %vm14372_vm7, %v11319_v21, %v2475_v62  ;;  %v2480_v36 = vrot.slane %v14827_v2, 2  ;;  %v11839_v62 = vpop.f32.mrb[53].mxu1 }
 0x1f3   : > { %18282 = vst [vmem:[#allocation91_spill] sm:$0xff] %v14825_v12  ;;  %18284 = vst [vmem:[#allocation93_spill] sm:$0xff] %v14833_v46  ;;  %v3049_v7 = vcombine.high %v14620_v48, %v14620_v48  ;;  %v18285_v51 = vcombine.high %v14151_v54, %v14151_v54  ;;  %v14850_v12 = vrot.slane %v3032_v60, %v14079_v59 }
 0x1f4   : > { %v14855_v21 = vadd.f32 %v14833_v46, %v2647_v31  ;;  %v2472_v41 = vsel %vm14372_vm7, %v2470_v15, %v2471_v20  ;;  %v18288_v2 = vcombine.high %v14160_v52, %v14160_v52  ;;  %v18290_v31 = vcombine.high %v14154_v45, %v14154_v45 }
 0x1f5   : > { %v2649_v56 = vadd.f32 %v2466_v47, %v18285_v51  ;;  %18286 = vst [vmem:[#allocation94_spill] sm:$0xff] %v14850_v12  ;;  %v3056_v47 = vrot.slane %v14620_v48, %v14079_v59  ;;  %v14864_v51 = vpop.f32.mrb[54].mxu1  ;;  %v14875_v20 = vrot.slane %v3049_v7, %v14079_v59  ;;  %v2239_v48 = vcombine.high %v14712_v11, %v14712_v11 }
 0x1f6   : > { %18287 = vst [vmem:[#allocation95_spill] sm:$0xff] %v14855_v21  ;;  %v2652_v55 = vadd.f32 %v2476_v39, %v18288_v2  ;;  %v2651_v13 = vadd.f32 %v2472_v41, %v18290_v31  ;;  %v11840_v52 = vpop.f32.mrb[55].mxu1  ;;  %v14877_v2 = vpop.f32.mrb[52].mxu0  ;;  %v2246_v15 = vrot.slane %v14712_v11, %v14079_v59  ;;  %v2256_v39 = vcombine.high %v14726_v38, %v14726_v38 }
 0x1f7   : > { %v14869_v62 = vadd.f32 %v14850_v12, %v2649_v56  ;;  %18291 = vst [vmem:[#allocation97_spill] sm:$0xff] %v14875_v20  ;;  %v2263_v56 = vrot.slane %v14726_v38, %v14079_v59  ;;  %v11963_v60 = vpop.f32.mrb[53].mxu0  ;;  %v3065_v52 = vcombine.high %v14670_v28, %v14670_v28  ;;  %12150 = vmatmul.mubr.bf16.gmra.mrb[160].mxu1 %v14119_v37 }
 0x1f8   : > { %v14889_v41 = vadd.f32 %v3056_v47, %v2651_v13  ;;  %v14892_v31 = vadd.f32 %v14875_v20, %v2652_v55  ;;  %v14897_v11 = vpop.f32.mrb[54].mxu0  ;;  %v2253_v21 = vrot.slane %v2239_v48, %v14079_v59  ;;  %v2481_v38 = vrot.slane %v2246_v15, 7  ;;  %v14912_v20 = vpop.f32.mrb[56].mxu1 }
 0x1f9   : > { %18289 = vst [vmem:[#allocation96_spill] sm:$0xff] %v14869_v62  ;;  %v2254_v62 = vcombine.high %v2246_v15, %v2246_v15  ;;  %v2270_v60 = vrot.slane %v2256_v39, %v14079_v59  ;;  %v11964_v12 = vpop.f32.mrb[55].mxu0  ;;  %v2271_v7 = vcombine.high %v2263_v56, %v2263_v56  ;;  %v2493_v13 = vrot.slane %v2263_v56, 7  ;;  %v11911_v46 = vpop.f32.mrb[57].mxu1 }
 0x1fa   : > { %18292 = vst [vmem:[#allocation98_spill] sm:$0xff] %v14889_v41  ;;  %18293 = vst [vmem:[#allocation99_spill] sm:$0xff] %v14892_v31  ;;  %v14903_v55 = vrot.slane %v14670_v28, %v14079_v59  ;;  %v14906_v47 = vrot.slane %v3065_v52, %v14079_v59  ;;  %v2255_v41 = vcombine.high %v2253_v21, %v2253_v21  ;;  %v14908_v37 = vrot.slane %v2481_v38, 2 }
 0x1fb   : > { %v14910_v31 = vrot.slane %v2254_v62, 7  ;;  %v2487_v48 = vrot.slane %v2253_v21, 7  ;;  %v2272_v15 = vcombine.high %v2270_v60, %v2270_v60  ;;  %v14914_v39 = vrot.slane %v2493_v13, 2 }
 0x1fc   : > { %18294 = vst [vmem:[#allocation100_spill] sm:$0xff] %v14903_v55  ;;  %18295 = vst [vmem:[#allocation101_spill] sm:$0xff] %v14906_v47  ;;  %v14916_v12 = vrot.slane %v2271_v7, 7  ;;  %v11320_v56 = vrot.slane %v2270_v60, 9  ;;  %v14921_v52 = vrot.slane %v2255_v41, 7  ;;  %v2482_v62 = vsel %vm14372_vm7, %v2480_v36, %v2481_v38 }
 0x1fd   : > { %18296 = vst [vmem:[#allocation102_spill] sm:$0xff] %v14908_v37  ;;  %18297 = vst [vmem:[#allocation103_spill] sm:$0xff] %v14910_v31  ;;  %v2486_v28 = vrot.slane %v14910_v31, 2  ;;  %v14919_v45 = vrot.slane %v2487_v48, 2  ;;  %v14925_v37 = vpop.f32.mrb[58].mxu1  ;;  %v2500_v21 = vrot.slane %v2272_v15, 7  ;;  %v18302_v54 = vcombine.high %v14172_v22, %v14172_v22 }
 0x1fe   : > { %18298 = vst [vmem:[#allocation104_spill] sm:$0xff] %v14914_v39  ;;  %18299 = vst [vmem:[#allocation105_spill] sm:$0xff] %v14916_v12  ;;  %v11912_v60 = vpop.f32.mrb[59].mxu1  ;;  %v14934_v12 = vpop.f32.mrb[56].mxu0  ;;  %v2492_v41 = vrot.slane %v14921_v52, 2  ;;  %v3082_v38 = vcombine.high %v14691_v61, %v14691_v61  ;;  %v18304_v46 = vcombine.high %v14206_v27, %v14206_v27 }
 0x1ff   : > { %18300 = vst [vmem:[#allocation106_spill] sm:$0xff] %v14919_v45  ;;  %18301 = vst [vmem:[#allocation107_spill] sm:$0xff] %v14921_v52  ;;  %v2654_v39 = vadd.f32 %v2482_v62, %v18302_v54  ;;  %v2488_v36 = vsel %vm14372_vm7, %v2486_v28, %v2487_v48  ;;  %v14943_v54 = vrot.slane %v14691_v61, %v14079_v59  ;;  %v11967_v15 = vpop.f32.mrb[57].mxu0  ;;  %v2502_v62 = vrot.slane %v2500_v21, 2 }
 0x200   : > { %v2656_v60 = vadd.f32 %v2488_v36, %v18304_v46  ;;  %v2501_v45 = vsel %vm14372_vm7, %v11320_v56, %v2500_v21  ;;  %v14953_v48 = vpop.f32.mrb[58].mxu0  ;;  %v2494_v28 = vsel %vm14372_vm7, %v2492_v41, %v2493_v13  ;;  %v3096_v15 = vrot.slane %v3082_v38, %v14079_v59  ;;  %v14977_v38 = vpop.f32.mrb[60].mxu1 }
 0x201   : > { %18303 = vst [vmem:[#allocation108_spill] sm:$0xff] %v14943_v54  ;;  %v14949_v7 = vadd.f32 %v14903_v55, %v2654_v39  ;;  %v2660_v61 = vadd.f32 %v2501_v45, %v14216_v1  ;;  %v11968_v27 = vpop.f32.mrb[59].mxu0  ;;  %v18307_v39 = vcombine.high %v14209_v10, %v14209_v10  ;;  %v2273_v21 = vcombine.high %v14783_v43, %v14783_v43 }
 0x202   : > { %v14962_v46 = vadd.f32 %v14906_v47, %v2656_v60  ;;  %v2280_v13 = vrot.slane %v14783_v43, %v14079_v59  ;;  %v3098_v45 = vcombine.high %v3096_v15, %v3096_v15  ;;  %v2290_v41 = vcombine.high %v14797_v63, %v14797_v63  ;;  %v11915_v43 = vpop.f32.mrb[61].mxu1 }
 0x203   : > { %18305 = vst [vmem:[#allocation109_spill] sm:$0xff] %v14949_v7  ;;  %v2658_v56 = vadd.f32 %v2494_v28, %v18307_v39  ;;  %v2297_v27 = vrot.slane %v14797_v63, %v14079_v59  ;;  %v3099_v36 = vcombine.high %v14738_v50, %v14738_v50  ;;  %v2287_v28 = vrot.slane %v2273_v21, %v14079_v59  ;;  %v14986_v63 = vpop.f32.mrb[62].mxu1 }
 0x204   : > { %18306 = vst [vmem:[#allocation110_spill] sm:$0xff] %v14962_v46  ;;  %v2288_v39 = vcombine.high %v2280_v13, %v2280_v13  ;;  %v2503_v52 = vrot.slane %v2280_v13, 7  ;;  %v14983_v15 = vadd.f32 %v3098_v45, %v2660_v61  ;;  %v2304_v7 = vrot.slane %v2290_v41, %v14079_v59 }
 0x205   : > { %v14980_v60 = vadd.f32 %v14943_v54, %v2658_v56  ;;  %v2305_v46 = vcombine.high %v2297_v27, %v2297_v27  ;;  %v2515_v47 = vrot.slane %v2297_v27, 7  ;;  %v2289_v55 = vcombine.high %v2287_v28, %v2287_v28  ;;  %v14992_v54 = vpop.f32.mrb[60].mxu0 }
 0x206   : > { %18309 = vst [vmem:[#allocation112_spill] sm:$0xff] %v14983_v15  ;;  %v14988_v10 = vrot.slane %v2503_v52, 2  ;;  %v14990_v31 = vrot.slane %v2288_v39, 7  ;;  %v2509_v56 = vrot.slane %v2287_v28, 7  ;;  %v2306_v21 = vcombine.high %v2304_v7, %v2304_v7  ;;  %v11971_v41 = vpop.f32.mrb[61].mxu0 }
 0x207   : > { %18308 = vst [vmem:[#allocation111_spill] sm:$0xff] %v14980_v60  ;;  %v11916_v60 = vpop.f32.mrb[63].mxu1  ;;  %v14994_v13 = vrot.slane %v2515_v47, 2  ;;  %v14996_v61 = vrot.slane %v2305_v46, 7  ;;  %v2521_v45 = vrot.slane %v2304_v7, 7  ;;  %v15001_v15 = vrot.slane %v2289_v55, 7 }
 0x208   : > { %18310 = vst [vmem:[#allocation113_spill] sm:$0xff] %v14988_v10  ;;  %18311 = vst [vmem:[#allocation114_spill] sm:$0xff] %v14990_v31  ;;  %v2508_v27 = vrot.slane %v14990_v31, 2  ;;  %v14999_v43 = vrot.slane %v2509_v56, 2  ;;  %v2504_v39 = vsel %vm14372_vm7, %v2502_v62, %v2503_v52  ;;  %v15005_v28 = vpop.f32.mrb[62].mxu0  ;;  %v11321_v10 = vrot.slane %v2306_v21, 9 }
 0x209   : > { %18312 = vst [vmem:[#allocation115_spill] sm:$0xff] %v14994_v13  ;;  %18313 = vst [vmem:[#allocation116_spill] sm:$0xff] %v14996_v61  ;;  %v2520_v60 = vrot.slane %v14996_v61, 2  ;;  %v18316_v46 = vcombine.high %v14216_v1, %v14216_v1  ;;  %v15013_v7 = vrot.slane %v14738_v50, %v14079_v59  ;;  %v11972_v41 = vpop.f32.mrb[63].mxu0  ;;  %v2514_v55 = vrot.slane %v15001_v15, 2 }
 0x20a   : > { %18314 = vst [vmem:[#allocation117_spill] sm:$0xff] %v14999_v43  ;;  %18315 = vst [vmem:[#allocation118_spill] sm:$0xff] %v15001_v15  ;;  %v2510_v43 = vsel %vm14372_vm7, %v2508_v27, %v2509_v56  ;;  %v15019_v52 = vrot.slane %v3099_v36, %v14079_v59  ;;  %v3116_v62 = vcombine.high %v14756_v40, %v14756_v40  ;;  %v15033_v56 = vpop.f32.mrb[64].mxu1  ;;  %v18321_v41 = vld [vmem:[#allocation29_spill] sm:$0xff] }
 0x20b   : > { %v2661_v13 = vadd.f32 %v2504_v39, %v18316_v46  ;;  %18317 = vst [vmem:[#allocation119_spill] sm:$0xff] %v15013_v7  ;;  %v18319_v1 = vcombine.high %v14225_v57, %v14225_v57  ;;  %v2522_v46 = vsel %vm14372_vm7, %v2520_v60, %v2521_v45  ;;  %v2516_v27 = vsel %vm14372_vm7, %v2514_v55, %v2515_v47  ;;  %v18325_v45 = vld [vmem:[#allocation28_spill] sm:$0xff] }
 0x20c   : > { %18318 = vst [vmem:[#allocation120_spill] sm:$0xff] %v15019_v52  ;;  %v15044_v50 = vrot.slane %v14756_v40, %v14079_v59  ;;  %v18326_v60 = vcombine.high %v18325_v45, %v18325_v45  ;;  %v3130_v36 = vrot.slane %v3116_v62, %v14079_v59  ;;  %v2307_v47 = vcombine.high %v14842_v0, %v14842_v0  ;;  %v15067_v62 = vpop.f32.mrb[64].mxu0 }
 0x20d   : > { %v2663_v21 = vadd.f32 %v2510_v43, %v18319_v1  ;;  %v15029_v39 = vadd.f32 %v15013_v7, %v2661_v13  ;;  %v18322_v43 = vcombine.high %v18321_v41, %v18321_v41  ;;  %v11919_v13 = vpop.f32.mrb[65].mxu1  ;;  %v2314_v40 = vrot.slane %v14842_v0, %v14079_v59 }
 0x20e   : > { %18323 = vst [vmem:[#allocation122_spill] sm:$0xff] %v15044_v50  ;;  %v2665_v61 = vadd.f32 %v2516_v27, %v18326_v60  ;;  %v15055_v55 = vpop.f32.mrb[66].mxu1  ;;  %v2324_v0 = vcombine.high %v14864_v51, %v14864_v51 }
 0x20f   : > { %18320 = vst [vmem:[#allocation121_spill] sm:$0xff] %v15029_v39  ;;  %v2667_v1 = vadd.f32 %v2522_v46, %v18322_v43  ;;  %v15047_v39 = vadd.f32 %v15019_v52, %v2663_v21  ;;  %v3132_v21 = vcombine.high %v14804_v6, %v14804_v6  ;;  %v15065_v43 = vrot.slane %v14804_v6, %v14079_v59  ;;  %v11920_v27 = vpop.f32.mrb[67].mxu1 }
 0x210   : > { %v15070_v13 = vadd.f32 %v15044_v50, %v2665_v61  ;;  %v2321_v46 = vrot.slane %v2307_v47, %v14079_v59  ;;  %v2322_v41 = vcombine.high %v2314_v40, %v2314_v40  ;;  %v2525_v52 = vrot.slane %v2314_v40, 7 }
 0x211   : > { %18324 = vst [vmem:[#allocation123_spill] sm:$0xff] %v15047_v39  ;;  %18327 = vst [vmem:[#allocation124_spill] sm:$0xff] %v15065_v43  ;;  %v15072_v60 = vadd.f32 %v3130_v36, %v2667_v1  ;;  %v11975_v39 = vpop.f32.mrb[65].mxu0  ;;  %v15078_v7 = vrot.slane %v3132_v21, %v14079_v59  ;;  %v2331_v36 = vrot.slane %v14864_v51, %v14079_v59 }
 0x212   : > { %18328 = vst [vmem:[#allocation125_spill] sm:$0xff] %v15070_v13  ;;  %v15082_v27 = vpop.f32.mrb[66].mxu0  ;;  %v2323_v61 = vcombine.high %v2321_v46, %v2321_v46  ;;  %v2531_v13 = vrot.slane %v2321_v46, 7  ;;  %v2338_v1 = vrot.slane %v2324_v0, %v14079_v59  ;;  %v15089_v39 = vrot.slane %v2322_v41, 7  ;;  %v18335_v46 = vld [vmem:[#allocation30_spill] sm:$0xff] }
 0x213   : > { %18329 = vst [vmem:[#allocation126_spill] sm:$0xff] %v15072_v60  ;;  %18330 = vst [vmem:[#allocation127_spill] sm:$0xff] %v15078_v7  ;;  %v11976_v47 = vpop.f32.mrb[67].mxu0  ;;  %v15087_v60 = vrot.slane %v2525_v52, 2  ;;  %v2526_v40 = vsel %vm14372_vm7, %v11321_v10, %v2525_v52  ;;  %v18336_v51 = vcombine.high %v18335_v46, %v18335_v46  ;;  %v2339_v0 = vcombine.high %v2331_v36, %v2331_v36 }
 0x214   : > { %18332 = vst [vmem:[#allocation129_spill] sm:$0xff] %v15089_v39  ;;  %v15095_v6 = vrot.slane %v2531_v13, 2  ;;  %v15097_v50 = vrot.slane %v2323_v61, 7  ;;  %v15102_v47 = vpop.f32.mrb[68].mxu1  ;;  %v2530_v41 = vrot.slane %v15089_v39, 2  ;;  %v2537_v57 = vrot.slane %v2331_v36, 7 }
 0x215   : > { %18331 = vst [vmem:[#allocation128_spill] sm:$0xff] %v15087_v60  ;;  %v2668_v45 = vadd.f32 %v2526_v40, %v18336_v51  ;;  %v2340_v60 = vcombine.high %v2338_v1, %v2338_v1  ;;  %v2543_v15 = vrot.slane %v2338_v1, 7  ;;  %v11923_v10 = vpop.f32.mrb[69].mxu1  ;;  %v15109_v61 = vrot.slane %v2339_v0, 7 }
 0x216   : > { %18333 = vst [vmem:[#allocation130_spill] sm:$0xff] %v15095_v6  ;;  %18334 = vst [vmem:[#allocation131_spill] sm:$0xff] %v15097_v50  ;;  %v2536_v52 = vrot.slane %v15097_v50, 2  ;;  %v3149_v46 = vcombine.high %v14813_v34, %v14813_v34  ;;  %v15113_v40 = vpop.f32.mrb[70].mxu1  ;;  %v2532_v51 = vsel %vm14372_vm7, %v2530_v41, %v2531_v13  ;;  %v15117_v6 = vrot.slane %v2537_v57, 2  ;;  %v15123_v50 = vpop.f32.mrb[68].mxu0 }
 0x217   : > { %v15107_v21 = vadd.f32 %v15065_v43, %v2668_v45  ;;  %18338 = vst [vmem:[#allocation132_spill] sm:$0xff] %v15109_v61  ;;  %v15119_v36 = vrot.slane %v2543_v15, 2  ;;  %v15121_v1 = vrot.slane %v2340_v60, 7  ;;  %v11924_v10 = vpop.f32.mrb[71].mxu1  ;;  %v18342_v45 = vld [vmem:[#allocation31_spill] sm:$0xff]  ;;  %v2542_v39 = vrot.slane %v15109_v61, 2 }
 0x218   : > { %18339 = vst [vmem:[#allocation133_spill] sm:$0xff] %v15117_v6  ;;  %v18343_v0 = vcombine.high %v18342_v45, %v18342_v45  ;;  %v15133_v13 = vrot.slane %v14813_v34, %v14079_v59  ;;  %v11979_v41 = vpop.f32.mrb[69].mxu0 }
 0x219   : > { %18337 = vst [vmem:[#allocation30_spill] sm:$0xff] %v15107_v21  ;;  %18340 = vst [vmem:[#allocation134_spill] sm:$0xff] %v15119_v36  ;;  %v2538_v21 = vsel %vm14372_vm7, %v2536_v52, %v2537_v57  ;;  %v18345_v36 = vld [vmem:[#allocation34_spill] sm:$0xff]  ;;  %v15145_v6 = vpop.f32.mrb[70].mxu0  ;;  %v2544_v34 = vsel %vm14372_vm7, %v2542_v39, %v2543_v15  ;;  %v5115_v52 = vcombine.high %v14897_v11, %v14897_v11  ;;  %v18349_v41 = vld [vmem:[#allocation35_spill] sm:$0xff] }
 0x21a   : > { %18341 = vst [vmem:[#allocation135_spill] sm:$0xff] %v15121_v1  ;;  %v2670_v43 = vadd.f32 %v2532_v51, %v18343_v0  ;;  %18344 = vst [vmem:[#allocation136_spill] sm:$0xff] %v15133_v13  ;;  %v18346_v60 = vcombine.high %v18345_v36, %v18345_v36  ;;  %v15139_v1 = vrot.slane %v3149_v46, %v14079_v59  ;;  %v11980_v46 = vpop.f32.mrb[71].mxu0 }
 0x21b   : > { %v5098_v51 = vcombine.high %v14877_v2, %v14877_v2  ;;  %v5105_v0 = vrot.slane %v14877_v2, %v14079_v59  ;;  %v15172_v46 = vrot.slane %v5115_v52, %v14079_v59  ;;  %v18357_v2 = vld [vmem:[#allocation37_spill] sm:$0xff] }
 0x21c   : > { %v2672_v10 = vadd.f32 %v2538_v21, %v18346_v60  ;;  %18347 = vst [vmem:[#allocation137_spill] sm:$0xff] %v15139_v1  ;;  %v15148_v57 = vadd.f32 %v15078_v7, %v2670_v43  ;;  %v18350_v60 = vcombine.high %v18349_v41, %v18349_v41  ;;  %v15169_v21 = vrot.slane %v14897_v11, %v14079_v59  ;;  %v15174_v41 = vpop.f32.mrb[72].mxu1 }
 0x21d   : > { %v5113_v15 = vcombine.high %v5105_v0, %v5105_v0  ;;  %v11404_v39 = vrot.slane %v5105_v0, 9  ;;  %18354 = vst [vmem:[#allocation142_spill] sm:$0xff] %v15172_v46  ;;  %v11927_v11 = vpop.f32.mrb[73].mxu1 }
 0x21e   : > { %18348 = vst [vmem:[#allocation138_spill] sm:$0xff] %v15148_v57  ;;  %v2674_v61 = vadd.f32 %v2544_v34, %v18350_v60  ;;  %v15162_v43 = vadd.f32 %v15133_v13, %v2672_v10  ;;  %v15165_v57 = vrot.slane %v5098_v51, %v14079_v59  ;;  %18353 = vst [vmem:[#allocation141_spill] sm:$0xff] %v15169_v21  ;;  %v18356_v60 = vld [vmem:[#allocation38_spill] sm:$0xff]  ;;  %v15201_v11 = vpop.f32.mrb[72].mxu0 }
 0x21f   : > { %v2357_v0 = vsel %vm14372_vm7, %v18357_v2, %v18356_v60  ;;  %v5130_v52 = vcombine.high %v15169_v21, %v15169_v21  ;;  %v18030_v2 = vrot.slane %v15172_v46, 7 }
 0x220   : > { %18351 = vst [vmem:[#allocation139_spill] sm:$0xff] %v15162_v43  ;;  %18352 = vst [vmem:[#allocation140_spill] sm:$0xff] %v15165_v57  ;;  %v15177_v34 = vadd.f32 %v15139_v1, %v2674_v61  ;;  %v5114_v10 = vcombine.high %v15165_v57, %v15165_v57  ;;  %v18029_v51 = vrot.slane %v15165_v57, 7  ;;  %v15186_v43 = vrot.slane %v5113_v15, 7  ;;  %v15193_v1 = vpop.f32.mrb[74].mxu1  ;;  %v11983_v57 = vpop.f32.mrb[73].mxu0 }
 0x221   : > { %v5131_v61 = vcombine.high %v15172_v46, %v15172_v46  ;;  %v2614_v15 = vadd.f32 %v2357_v0, %v14117_v16  ;;  %v11928_v60 = vpop.f32.mrb[75].mxu1  ;;  %v15206_v31 = vrot.slane %v5130_v52, 7  ;;  %v18361_v16 = vcombine.high %v14304_v18, %v14304_v18  ;;  %v15218_v36 = vpop.f32.mrb[74].mxu0  ;;  %v18364_v52 = vld [vmem:[#allocation40_spill] sm:$0xff] }
 0x222   : > { %18355 = vst [vmem:[#allocation143_spill] sm:$0xff] %v15177_v34  ;;  %v18031_v34 = vrot.slane %v15169_v21, 7  ;;  %v5411_v13 = vrot.slane %v18029_v51, 2  ;;  %v15197_v7 = vrot.slane %v5114_v10, 7  ;;  %v5423_v51 = vrot.slane %v18030_v2, 2  ;;  %v11984_v10 = vpop.f32.mrb[75].mxu0 }
 0x223   : > { %18359 = vst [vmem:[#allocation37_spill] sm:$0xff] %v15206_v31  ;;  %v15208_v22 = vrot.slane %v5131_v61, 7  ;;  %v3232_v0 = vadd.f32 %v18361_v16, %v2614_v15  ;;  %v4480_v60 = vcombine.high %v14912_v20, %v14912_v20  ;;  %v4487_v57 = vrot.slane %v14912_v20, %v14079_v59  ;;  %v18363_v16 = vld [vmem:[#allocation39_spill] sm:$0xff]  ;;  %v15244_v21 = vpop.f32.mrb[76].mxu1 }
 0x224   : > { %18358 = vst [vmem:[#allocation38_spill] sm:$0xff] %v15197_v7  ;;  %v5417_v45 = vrot.slane %v18031_v34, 2  ;;  %v5407_v2 = vsel %vm14372_vm7, %v11404_v39, %v15186_v43  ;;  %v5413_v15 = vsel %vm14372_vm7, %v5411_v13, %v15197_v7  ;;  %v2363_v61 = vsel %vm14372_vm7, %v18363_v16, %v14392_v3  ;;  %v18365_v39 = vld [vmem:[#allocation41_spill] sm:$0xff]  ;;  %v18366_v16 = vld [vmem:[#allocation42_spill] sm:$0xff] }
 0x225   : > { %18360 = vst [vmem:[#allocation144_spill] sm:$0xff] %v15208_v22  ;;  %v15228_v18 = vrot.slane %v4480_v60, %v14079_v59  ;;  %v2369_v20 = vsel %vm14372_vm7, %v18364_v52, %v14398_v44  ;;  %v4495_v34 = vcombine.high %v4487_v57, %v4487_v57  ;;  %v4846_v10 = vadd.f32 %v4487_v57, %v18365_v39  ;;  %v11931_v52 = vpop.f32.mrb[77].mxu1 }
 0x226   : > { %v2616_v60 = vadd.f32 %v2363_v61, %v14128_v25  ;;  %v2618_v46 = vadd.f32 %v2369_v20, %v14143_v35  ;;  %v4497_v3 = vcombine.high %v14925_v37, %v14925_v37  ;;  %v4504_v44 = vrot.slane %v14925_v37, %v14079_v59  ;;  %v15264_v39 = vpop.f32.mrb[78].mxu1 }
 0x227   : > { %18362 = vst [vmem:[#allocation145_spill] sm:$0xff] %v15228_v18  ;;  %v4848_v7 = vadd.f32 %v15228_v18, %v3232_v0  ;;  %v15254_v57 = vadd.f32 %v4495_v34, %v18366_v16  ;;  %v15256_v25 = vadd.f32 %v5407_v2, %v4846_v10  ;;  %v18368_v35 = vcombine.high %v14309_v4, %v14309_v4  ;;  %v11932_v2 = vpop.f32.mrb[79].mxu1  ;;  %v15274_v10 = vpop.f32.mrb[76].mxu0 }
 0x228   : > { %v18369_v20 = vcombine.high %v14332_v33, %v14332_v33  ;;  %v15269_v37 = vrot.slane %v4497_v3, %v14079_v59  ;;  %v4512_v52 = vcombine.high %v4504_v44, %v4504_v44  ;;  %v5419_v34 = vsel %vm14372_vm7, %v5417_v45, %v15206_v31  ;;  %v18373_v45 = vld [vmem:[#allocation44_spill] sm:$0xff] }
 0x229   : > { %18367 = vst [vmem:[#allocation39_spill] sm:$0xff] %v15256_v25  ;;  %v3234_v61 = vadd.f32 %v18368_v35, %v2616_v60  ;;  %v15266_v13 = vadd.f32 %v5413_v15, %v4848_v7  ;;  %v5425_v33 = vsel %vm14372_vm7, %v5423_v51, %v15208_v22  ;;  %v5132_v7 = vcombine.high %v14934_v12, %v14934_v12  ;;  %v11987_v15 = vpop.f32.mrb[77].mxu0 }
 0x22a   : > { %v3236_v0 = vadd.f32 %v18369_v20, %v2618_v46  ;;  %18371 = vst [vmem:[#allocation41_spill] sm:$0xff] %v15269_v37  ;;  %v15283_v46 = vrot.slane %v14934_v12, %v14079_v59  ;;  %v15288_v3 = vadd.f32 %v4512_v52, %v18373_v45  ;;  %v5149_v16 = vcombine.high %v14953_v48, %v14953_v48  ;;  %v15293_v51 = vpop.f32.mrb[78].mxu0  ;;  %v18379_v45 = vld [vmem:[#allocation46_spill] sm:$0xff] }
 0x22b   : > { %18370 = vst [vmem:[#allocation40_spill] sm:$0xff] %v15266_v13  ;;  %v4850_v4 = vadd.f32 %v4504_v44, %v3234_v61  ;;  %v5146_v61 = vrot.slane %v5132_v7, %v14079_v59  ;;  %v11988_v2 = vpop.f32.mrb[79].mxu0 }
 0x22c   : > { %18372 = vst [vmem:[#allocation42_spill] sm:$0xff] %v15283_v46  ;;  %18374 = vst [vmem:[#allocation44_spill] sm:$0xff] %v15288_v3  ;;  %v4852_v44 = vadd.f32 %v15269_v37, %v3236_v0  ;;  %v5147_v12 = vcombine.high %v15283_v46, %v15283_v46  ;;  %v15305_v0 = vrot.slane %v14953_v48, %v14079_v59  ;;  %v15315_v2 = vpop.f32.mrb[80].mxu1  ;;  %v15340_v13 = vpop.f32.mrb[80].mxu0 }
 0x22d   : > { %v15295_v35 = vadd.f32 %v5419_v34, %v4850_v4  ;;  %v15308_v52 = vrot.slane %v5149_v16, %v14079_v59  ;;  %v18380_v34 = vld [vmem:[#allocation45_spill] sm:$0xff]  ;;  %v5148_v7 = vcombine.high %v5146_v61, %v5146_v61 }
 0x22e   : > { %v15301_v15 = vadd.f32 %v5425_v33, %v4852_v44  ;;  %18377 = vst [vmem:[#allocation148_spill] sm:$0xff] %v15305_v0  ;;  %v2379_v4 = vsel %vm14372_vm7, %v18380_v34, %v18379_v45  ;;  %v11405_v60 = vrot.slane %v5147_v12, 9  ;;  %v5164_v33 = vcombine.high %v15305_v0, %v15305_v0 }
 0x22f   : > { %18375 = vst [vmem:[#allocation146_spill] sm:$0xff] %v15295_v35  ;;  %18378 = vst [vmem:[#allocation149_spill] sm:$0xff] %v15308_v52  ;;  %v5431_v35 = vrot.slane %v5146_v61, 7  ;;  %v2621_v20 = vadd.f32 %v2379_v4, %v14179_v32  ;;  %v5165_v48 = vcombine.high %v15308_v52, %v15308_v52  ;;  %v18039_v44 = vrot.slane %v15305_v0, 7 }
 0x230   : > { %18376 = vst [vmem:[#allocation147_spill] sm:$0xff] %v15301_v15  ;;  %v18041_v16 = vrot.slane %v15308_v52, 7  ;;  %v11935_v15 = vpop.f32.mrb[81].mxu1  ;;  %v15323_v45 = vrot.slane %v5148_v7, 7  ;;  %v18382_v61 = vcombine.high %v14380_v24, %v14380_v24  ;;  %v4514_v12 = vcombine.high %v14977_v38, %v14977_v38  ;;  %v18387_v24 = vld [vmem:[#allocation47_spill] sm:$0xff]  ;;  %v18389_v52 = vld [vmem:[#allocation49_spill] sm:$0xff] }
 0x231   : > { %v5433_v22 = vrot.slane %v5431_v35, 2  ;;  %v15330_v34 = vpop.f32.mrb[82].mxu1  ;;  %v5439_v4 = vrot.slane %v18039_v44, 2  ;;  %v15334_v46 = vrot.slane %v5164_v33, 7  ;;  %v15338_v37 = vrot.slane %v5165_v48, 7  ;;  %v11991_v44 = vpop.f32.mrb[81].mxu0 }
 0x232   : > { %18381 = vst [vmem:[#allocation46_spill] sm:$0xff] %v15323_v45  ;;  %v3239_v32 = vadd.f32 %v18382_v61, %v2621_v20  ;;  %v5445_v15 = vrot.slane %v18041_v16, 2  ;;  %v11936_v7 = vpop.f32.mrb[83].mxu1  ;;  %v4521_v20 = vrot.slane %v14977_v38, %v14079_v59  ;;  %v15346_v61 = vrot.slane %v4514_v12, %v14079_v59  ;;  %v18386_v16 = vld [vmem:[#allocation48_spill] sm:$0xff]  ;;  %v15359_v0 = vpop.f32.mrb[82].mxu0  ;;  %v18388_v44 = vld [vmem:[#allocation50_spill] sm:$0xff] }
 0x233   : > { %18383 = vst [vmem:[#allocation45_spill] sm:$0xff] %v15334_v46  ;;  %18384 = vst [vmem:[#allocation150_spill] sm:$0xff] %v15338_v37  ;;  %v5432_v33 = vsel %vm14372_vm7, %v11405_v60, %v5431_v35  ;;  %v5435_v7 = vsel %vm14372_vm7, %v5433_v22, %v15323_v45  ;;  %v2385_v38 = vsel %vm14372_vm7, %v18387_v24, %v18386_v16  ;;  %v11992_v3 = vpop.f32.mrb[83].mxu0  ;;  %v18390_v22 = vld [vmem:[#allocation23_spill] sm:$0xff] }
 0x234   : > { %18385 = vst [vmem:[#allocation151_spill] sm:$0xff] %v15346_v61  ;;  %v4529_v12 = vcombine.high %v4521_v20, %v4521_v20  ;;  %v4855_v35 = vadd.f32 %v15346_v61, %v3239_v32  ;;  %v2391_v48 = vsel %vm14372_vm7, %v18389_v52, %v18388_v44  ;;  %v2623_v45 = vadd.f32 %v2385_v38, %v18390_v22  ;;  %v18391_v20 = vld [vmem:[#allocation52_spill] sm:$0xff]  ;;  %v15383_v52 = vpop.f32.mrb[84].mxu1  ;;  %v18395_v44 = vld [vmem:[#allocation54_spill] sm:$0xff]  ;;  %v18421_v61 = vld [vmem:[#allocation27_spill] sm:$0xff] }
 0x235   : > { %v2625_v25 = vadd.f32 %v2391_v48, %v14200_v49  ;;  %v4531_v16 = vcombine.high %v14986_v63, %v14986_v63  ;;  %v4538_v24 = vrot.slane %v14986_v63, %v14079_v59  ;;  %v5441_v32 = vsel %vm14372_vm7, %v5439_v4, %v15334_v46  ;;  %v18393_v49 = vld [vmem:[#allocation53_spill] sm:$0xff]  ;;  %v11939_v22 = vpop.f32.mrb[85].mxu1 }
 0x236   : > { %v4854_v60 = vadd.f32 %v4529_v12, %v18391_v20  ;;  %v15375_v31 = vadd.f32 %v5435_v7, %v4855_v35  ;;  %v5447_v3 = vsel %vm14372_vm7, %v5445_v15, %v15338_v37  ;;  %v18394_v48 = vcombine.high %v18393_v49, %v18393_v49  ;;  %v15404_v49 = vpop.f32.mrb[86].mxu1 }
 0x237   : > { %v18396_v63 = vcombine.high %v18395_v44, %v18395_v44  ;;  %v15392_v7 = vrot.slane %v4531_v16, %v14079_v59  ;;  %v4546_v35 = vcombine.high %v4538_v24, %v4538_v24  ;;  %v5166_v15 = vcombine.high %v14992_v54, %v14992_v54 }
 0x238   : > { %18392 = vst [vmem:[#allocation48_spill] sm:$0xff] %v15375_v31  ;;  %v3241_v38 = vadd.f32 %v18394_v48, %v2623_v45  ;;  %v15394_v4 = vadd.f32 %v5432_v33, %v4854_v60  ;;  %v15400_v20 = vrot.slane %v14992_v54, %v14079_v59  ;;  %v5183_v45 = vcombine.high %v15005_v28, %v15005_v28  ;;  %v18400_v48 = vld [vmem:[#allocation56_spill] sm:$0xff]  ;;  %v11940_v60 = vpop.f32.mrb[87].mxu1 }
 0x239   : > { %v3243_v12 = vadd.f32 %v18396_v63, %v2625_v25  ;;  %18397 = vst [vmem:[#allocation47_spill] sm:$0xff] %v15392_v7  ;;  %v15409_v44 = vadd.f32 %v4546_v35, %v18400_v48  ;;  %v15412_v63 = vpop.f32.mrb[84].mxu0  ;;  %v5180_v54 = vrot.slane %v5166_v15, %v14079_v59  ;;  %v15420_v31 = vrot.slane %v15005_v28, %v14079_v59  ;;  %v18406_v48 = vld [vmem:[#allocation58_spill] sm:$0xff]  ;;  %v18407_v60 = vld [vmem:[#allocation57_spill] sm:$0xff] }
 0x23a   : > { %18398 = vst [vmem:[#allocation50_spill] sm:$0xff] %v15394_v4  ;;  %18399 = vst [vmem:[#allocation49_spill] sm:$0xff] %v15400_v20  ;;  %v4857_v16 = vadd.f32 %v4538_v24, %v3241_v38  ;;  %v5181_v22 = vcombine.high %v15400_v20, %v15400_v20  ;;  %v11995_v24 = vpop.f32.mrb[85].mxu0  ;;  %v2397_v15 = vsel %vm14372_vm7, %v18407_v60, %v18406_v48  ;;  %v18410_v60 = vld [vmem:[#allocation17_spill] sm:$0xff] }
 0x23b   : > { %18401 = vst [vmem:[#allocation23_spill] sm:$0xff] %v15409_v44  ;;  %v4859_v33 = vadd.f32 %v15392_v7, %v3243_v12  ;;  %18402 = vst [vmem:[#allocation52_spill] sm:$0xff] %v15420_v31  ;;  %v15427_v12 = vrot.slane %v5183_v45, %v14079_v59  ;;  %v15433_v25 = vpop.f32.mrb[86].mxu0  ;;  %v5182_v37 = vcombine.high %v5180_v54, %v5180_v54  ;;  %v18408_v7 = vrot.slane %v15400_v20, 7 }
 0x23c   : > { %v15422_v38 = vadd.f32 %v5441_v32, %v4857_v16  ;;  %v5452_v44 = vrot.slane %v5181_v22, 7  ;;  %v11406_v24 = vrot.slane %v5180_v54, 9  ;;  %v11996_v32 = vpop.f32.mrb[87].mxu0  ;;  %v18050_v16 = vrot.slane %v15420_v31, 7  ;;  %v15452_v22 = vpop.f32.mrb[88].mxu1 }
 0x23d   : > { %v15424_v35 = vadd.f32 %v5447_v3, %v4859_v33  ;;  %18405 = vst [vmem:[#allocation56_spill] sm:$0xff] %v15427_v12  ;;  %v5451_v28 = vrot.slane %v18408_v7, 2  ;;  %v5198_v3 = vcombine.high %v15420_v31, %v15420_v31  ;;  %v5199_v45 = vcombine.high %v15427_v12, %v15427_v12  ;;  %v18420_v31 = vld [vmem:[#allocation62_spill] sm:$0xff] }
 0x23e   : > { %18403 = vst [vmem:[#allocation53_spill] sm:$0xff] %v15422_v38  ;;  %v18052_v33 = vrot.slane %v15427_v12, 7  ;;  %v15443_v48 = vrot.slane %v5182_v37, 7  ;;  %v4548_v7 = vcombine.high %v15033_v56, %v15033_v56  ;;  %v4555_v54 = vrot.slane %v15033_v56, %v14079_v59 }
 0x23f   : > { %18404 = vst [vmem:[#allocation54_spill] sm:$0xff] %v15424_v35  ;;  %v18411_v35 = vrot.slane %v18410_v60, %v14079_v59  ;;  %v5461_v32 = vrot.slane %v18050_v16, 2  ;;  %v15456_v20 = vrot.slane %v5198_v3, 7  ;;  %v15460_v46 = vrot.slane %v5199_v45, 7  ;;  %v11943_v60 = vpop.f32.mrb[89].mxu1  ;;  %v18419_v45 = vld [vmem:[#allocation60_spill] sm:$0xff] }
 0x240   : > { %18409 = vst [vmem:[#allocation58_spill] sm:$0xff] %v15443_v48  ;;  %v5467_v37 = vrot.slane %v18052_v33, 2  ;;  %v15467_v56 = vrot.slane %v4548_v7, %v14079_v59  ;;  %v5453_v16 = vsel %vm14372_vm7, %v5451_v28, %v5452_v44  ;;  %v15471_v3 = vpop.f32.mrb[90].mxu1  ;;  %v5457_v60 = vsel %vm14372_vm7, %v11406_v24, %v15443_v48  ;;  %v18416_v33 = vld [vmem:[#allocation59_spill] sm:$0xff]  ;;  %v15482_v7 = vpop.f32.mrb[88].mxu0 }
 0x241   : > { %v2627_v38 = vadd.f32 %v2397_v15, %v18411_v35  ;;  %18412 = vst [vmem:[#allocation57_spill] sm:$0xff] %v15456_v20  ;;  %18413 = vst [vmem:[#allocation17_spill] sm:$0xff] %v15460_v46  ;;  %v18414_v15 = vcombine.high %v14545_v53, %v14545_v53  ;;  %v18417_v35 = vld [vmem:[#allocation61_spill] sm:$0xff]  ;;  %v2413_v24 = vsel %vm14372_vm7, %v18420_v31, %v18419_v45  ;;  %v12067_v48 = vpop.f32.mrb[89].mxu0 }
 0x242   : > { %18415 = vst [vmem:[#allocation152_spill] sm:$0xff] %v15467_v56  ;;  %v2407_v53 = vsel %vm14372_vm7, %v18417_v35, %v18416_v33  ;;  %v2632_v33 = vadd.f32 %v2413_v24, %v14235_v30  ;;  %v4564_v35 = vcombine.high %v15055_v55, %v15055_v55  ;;  %v5463_v31 = vsel %vm14372_vm7, %v5461_v32, %v15456_v20  ;;  %v18424_v48 = vld [vmem:[#allocation64_spill] sm:$0xff]  ;;  %v18448_v20 = vld [vmem:[#allocation33_spill] sm:$0xff] }
 0x243   : > { %v3245_v4 = vadd.f32 %v18414_v15, %v2627_v38  ;;  %v11944_v38 = vpop.f32.mrb[91].mxu1  ;;  %v18418_v15 = vld [vmem:[#allocation66_spill] sm:$0xff]  ;;  %v2630_v18 = vadd.f32 %v2407_v53, %v18421_v61  ;;  %v5469_v30 = vsel %vm14372_vm7, %v5467_v37, %v15460_v46  ;;  %v18425_v45 = vcombine.high %v18424_v48, %v18424_v48  ;;  %v18431_v48 = vld [vmem:[#allocation68_spill] sm:$0xff] }
 0x244   : > { %v4862_v12 = vadd.f32 %v15467_v56, %v18418_v15  ;;  %v4571_v38 = vrot.slane %v15055_v55, %v14079_v59  ;;  %v18426_v55 = vld [vmem:[#allocation65_spill] sm:$0xff]  ;;  %v5200_v32 = vcombine.high %v15067_v62, %v15067_v62  ;;  %v5217_v37 = vcombine.high %v15082_v27, %v15082_v27 }
 0x245   : > { %v4861_v28 = vadd.f32 %v4555_v54, %v3245_v4  ;;  %v15498_v4 = vpop.f32.mrb[90].mxu0  ;;  %v3248_v53 = vadd.f32 %v18425_v45, %v2630_v18  ;;  %v18427_v24 = vcombine.high %v18426_v55, %v18426_v55  ;;  %v15529_v18 = vrot.slane %v15082_v27, %v14079_v59 }
 0x246   : > { %v15502_v15 = vadd.f32 %v5457_v60, %v4862_v12  ;;  %v12068_v61 = vpop.f32.mrb[91].mxu0  ;;  %v15517_v12 = vrot.slane %v4564_v35, %v14079_v59  ;;  %v4579_v60 = vcombine.high %v4571_v38, %v4571_v38  ;;  %v15546_v46 = vrot.slane %v5217_v37, %v14079_v59 }
 0x247   : > { %v15500_v54 = vadd.f32 %v5453_v16, %v4861_v28  ;;  %v3250_v16 = vadd.f32 %v18427_v24, %v2632_v33  ;;  %v15523_v28 = vrot.slane %v15067_v62, %v14079_v59  ;;  %18430 = vst [vmem:[#allocation62_spill] sm:$0xff] %v15529_v18  ;;  %v15531_v61 = vpop.f32.mrb[92].mxu1  ;;  %v4864_v35 = vadd.f32 %v4571_v38, %v3248_v53 }
 0x248   : > { %18423 = vst [vmem:[#allocation61_spill] sm:$0xff] %v15502_v15  ;;  %18428 = vst [vmem:[#allocation66_spill] sm:$0xff] %v15517_v12  ;;  %v15536_v45 = vadd.f32 %v4579_v60, %v18431_v48  ;;  %v12015_v62 = vpop.f32.mrb[93].mxu1  ;;  %v15540_v24 = vrot.slane %v5200_v32, %v14079_v59  ;;  %v18063_v60 = vrot.slane %v15529_v18, 7  ;;  %v15557_v48 = vpop.f32.mrb[92].mxu0 }
 0x249   : > { %18422 = vst [vmem:[#allocation59_spill] sm:$0xff] %v15500_v54  ;;  %18429 = vst [vmem:[#allocation60_spill] sm:$0xff] %v15523_v28  ;;  %v4866_v55 = vadd.f32 %v15517_v12, %v3250_v16  ;;  %v5215_v44 = vcombine.high %v15523_v28, %v15523_v28  ;;  %v18061_v27 = vrot.slane %v15523_v28, 7  ;;  %v15548_v54 = vpop.f32.mrb[94].mxu1  ;;  %v15550_v38 = vadd.f32 %v5463_v31, %v4864_v35  ;;  %v18447_v12 = vld [vmem:[#allocation32_spill] sm:$0xff] }
 0x24a   : > { %18432 = vst [vmem:[#allocation27_spill] sm:$0xff] %v15536_v45  ;;  %18433 = vst [vmem:[#allocation64_spill] sm:$0xff] %v15540_v24  ;;  %v5232_v16 = vcombine.high %v15529_v18, %v15529_v18  ;;  %v12016_v32 = vpop.f32.mrb[95].mxu1  ;;  %v5216_v62 = vcombine.high %v15540_v24, %v15540_v24  ;;  %v5233_v35 = vcombine.high %v15546_v46, %v15546_v46 }
 0x24b   : > { %18434 = vst [vmem:[#allocation65_spill] sm:$0xff] %v15546_v46  ;;  %18435 = vst [vmem:[#allocation68_spill] sm:$0xff] %v15550_v38  ;;  %v15552_v53 = vadd.f32 %v5469_v30, %v4866_v55  ;;  %v5473_v37 = vrot.slane %v18061_v27, 2  ;;  %v15563_v33 = vrot.slane %v5215_v44, 7  ;;  %v12071_v30 = vpop.f32.mrb[93].mxu0  ;;  %v5483_v55 = vrot.slane %v18063_v60, 2 }
 0x24c   : > { %v15570_v32 = vrot.slane %v5232_v16, 7  ;;  %v15573_v38 = vpop.f32.mrb[94].mxu0  ;;  %v15576_v27 = vrot.slane %v5216_v62, 9  ;;  %v18440_v44 = vld [vmem:[#allocation70_spill] sm:$0xff]  ;;  %v4581_v31 = vcombine.high %v15102_v47, %v15102_v47  ;;  %v15587_v24 = vrot.slane %v5233_v35, 7  ;;  %v15600_v16 = vpop.f32.mrb[96].mxu1 }
 0x24d   : > { %18436 = vst [vmem:[#allocation153_spill] sm:$0xff] %v15552_v53  ;;  %18437 = vst [vmem:[#allocation154_spill] sm:$0xff] %v15563_v33  ;;  %v18065_v53 = vrot.slane %v15546_v46, 7  ;;  %v2419_v30 = vsel %vm14372_vm7, %v18440_v44, %v14613_v29  ;;  %v12072_v18 = vpop.f32.mrb[95].mxu0  ;;  %v4588_v62 = vrot.slane %v15102_v47, %v14079_v59  ;;  %v5475_v29 = vsel %vm14372_vm7, %v5473_v37, %v15563_v33  ;;  %v18445_v47 = vld [vmem:[#allocation72_spill] sm:$0xff]  ;;  %v18446_v46 = vld [vmem:[#allocation73_spill] sm:$0xff] }
 0x24e   : > { %18438 = vst [vmem:[#allocation155_spill] sm:$0xff] %v15570_v32  ;;  %18439 = vst [vmem:[#allocation156_spill] sm:$0xff] %v15576_v27  ;;  %v2634_v28 = vadd.f32 %v2419_v30, %v14277_v26  ;;  %v4595_v27 = vrot.slane %v4581_v31, %v14079_v59  ;;  %v18442_v18 = vld [vmem:[#allocation71_spill] sm:$0xff]  ;;  %v2435_v31 = vsel %vm14372_vm7, %v18446_v46, %v18445_v47  ;;  %v12019_v33 = vpop.f32.mrb[97].mxu1  ;;  %v18453_v47 = vld [vmem:[#allocation78_spill] sm:$0xff] }
 0x24f   : > { %v5489_v60 = vrot.slane %v18065_v53, 2  ;;  %18441 = vst [vmem:[#allocation70_spill] sm:$0xff] %v15587_v24  ;;  %v2429_v44 = vsel %vm14372_vm7, %v18442_v18, %v14631_v17  ;;  %v18443_v53 = vld [vmem:[#allocation69_spill] sm:$0xff]  ;;  %v4596_v45 = vcombine.high %v4588_v62, %v4588_v62  ;;  %v2639_v17 = vadd.f32 %v2435_v31, %v18448_v20  ;;  %v15614_v35 = vpop.f32.mrb[98].mxu1  ;;  %v18451_v20 = vld [vmem:[#allocation76_spill] sm:$0xff] }
 0x250   : > { %v18444_v26 = vcombine.high %v18443_v53, %v18443_v53  ;;  %v2637_v37 = vadd.f32 %v2429_v44, %v18447_v12  ;;  %v4597_v15 = vcombine.high %v4595_v27, %v4595_v27  ;;  %v4598_v18 = vcombine.high %v15113_v40, %v15113_v40  ;;  %v18449_v53 = vld [vmem:[#allocation75_spill] sm:$0xff]  ;;  %v12020_v33 = vpop.f32.mrb[99].mxu1  ;;  %v15624_v27 = vpop.f32.mrb[96].mxu0 }
 0x251   : > { %v4605_v46 = vrot.slane %v15113_v40, %v14079_v59  ;;  %v5485_v12 = vsel %vm14372_vm7, %v5483_v55, %v15570_v32  ;;  %v15627_v44 = vadd.f32 %v4596_v45, %v18451_v20  ;;  %v12075_v40 = vpop.f32.mrb[97].mxu0  ;;  %v5491_v45 = vsel %vm14372_vm7, %v5489_v60, %v15587_v24 }
 0x252   : > { %v3252_v30 = vadd.f32 %v18444_v26, %v2634_v28  ;;  %v18450_v28 = vcombine.high %v18449_v53, %v18449_v53  ;;  %v15630_v31 = vadd.f32 %v4597_v15, %v18453_v47  ;;  %v15636_v53 = vrot.slane %v4598_v18, %v14079_v59  ;;  %v15643_v20 = vpop.f32.mrb[98].mxu0  ;;  %v18461_v18 = vld [vmem:[#allocation79_spill] sm:$0xff]  ;;  %v18468_v15 = vld [vmem:[#allocation80_spill] sm:$0xff] }
 0x253   : > { %18452 = vst [vmem:[#allocation71_spill] sm:$0xff] %v15627_v44  ;;  %v4613_v55 = vcombine.high %v4605_v46, %v4605_v46  ;;  %18459 = vst [vmem:[#allocation32_spill] sm:$0xff] %v15643_v20  ;;  %v5251_v60 = vcombine.high %v15145_v6, %v15145_v6 }
 0x254   : > { %v4868_v56 = vadd.f32 %v4588_v62, %v3252_v30  ;;  %v3255_v26 = vadd.f32 %v18450_v28, %v2637_v37  ;;  %18454 = vst [vmem:[#allocation69_spill] sm:$0xff] %v15630_v31  ;;  %v18455_v62 = vld [vmem:[#allocation77_spill] sm:$0xff]  ;;  %18457 = vst [vmem:[#allocation72_spill] sm:$0xff] %v15636_v53  ;;  %v18473_v31 = vld [vmem:[#allocation18_spill] sm:$0xff] }
 0x255   : > { %v18456_v30 = vcombine.high %v18455_v62, %v18455_v62  ;;  %v5258_v62 = vrot.slane %v15145_v6, %v14079_v59 }
 0x256   : > { %v15638_v28 = vadd.f32 %v5475_v29, %v4868_v56  ;;  %v4871_v33 = vadd.f32 %v4605_v46, %v3255_v26  ;;  %v15652_v56 = vrot.slane %v15123_v50, %v14079_v59  ;;  %v12076_v29 = vpop.f32.mrb[99].mxu0  ;;  %v15655_v26 = vadd.f32 %v4613_v55, %v18461_v18  ;;  %v15671_v55 = vpop.f32.mrb[100].mxu1  ;;  %v18467_v18 = vld [vmem:[#allocation81_spill] sm:$0xff] }
 0x257   : > { %v3257_v37 = vadd.f32 %v18456_v30, %v2639_v17  ;;  %v5234_v17 = vcombine.high %v15123_v50, %v15123_v50  ;;  %v11408_v29 = vrot.slane %v5258_v62, 9  ;;  %v2441_v6 = vsel %vm14372_vm7, %v18468_v15, %v18467_v18  ;;  %v18470_v18 = vld [vmem:[#allocation83_spill] sm:$0xff] }
 0x258   : > { %18458 = vst [vmem:[#allocation73_spill] sm:$0xff] %v15638_v28  ;;  %18460 = vst [vmem:[#allocation33_spill] sm:$0xff] %v15652_v56  ;;  %v15657_v46 = vadd.f32 %v5485_v12, %v4871_v33  ;;  %v5249_v50 = vcombine.high %v15652_v56, %v15652_v56  ;;  %v18077_v40 = vrot.slane %v15652_v56, 7  ;;  %v15674_v12 = vrot.slane %v5251_v60, %v14079_v59 }
 0x259   : > { %v4873_v47 = vadd.f32 %v15636_v53, %v3257_v37  ;;  %18462 = vst [vmem:[#allocation75_spill] sm:$0xff] %v15655_v26  ;;  %v15666_v37 = vrot.slane %v5234_v17, %v14079_v59  ;;  %v5266_v33 = vcombine.high %v5258_v62, %v5258_v62  ;;  %v2641_v32 = vadd.f32 %v2441_v6, %v18473_v31 }
 0x25a   : > { %18463 = vst [vmem:[#allocation76_spill] sm:$0xff] %v15657_v46  ;;  %18466 = vst [vmem:[#allocation79_spill] sm:$0xff] %v15674_v12  ;;  %v5495_v17 = vrot.slane %v18077_v40, 2  ;;  %v5267_v62 = vcombine.high %v15674_v12, %v15674_v12  ;;  %v18083_v15 = vrot.slane %v15674_v12, 7  ;;  %v15698_v40 = vpop.f32.mrb[100].mxu0  ;;  %v4622_v31 = vrot.slane %v15174_v41, %v14079_v59 }
 0x25b   : > { %v15663_v30 = vadd.f32 %v5491_v45, %v4873_v47  ;;  %18465 = vst [vmem:[#allocation77_spill] sm:$0xff] %v15666_v37  ;;  %v12023_v45 = vpop.f32.mrb[101].mxu1  ;;  %v5250_v47 = vcombine.high %v15666_v37, %v15666_v37  ;;  %v18084_v46 = vrot.slane %v15666_v37, 7  ;;  %v15691_v24 = vrot.slane %v5266_v33, 7  ;;  %18472 = vst [vmem:[#allocation80_spill] sm:$0xff] %v15698_v40  ;;  %v12079_v33 = vpop.f32.mrb[101].mxu0 }
 0x25c   : > { %v15687_v60 = vpop.f32.mrb[102].mxu1  ;;  %v18471_v45 = vld [vmem:[#allocation82_spill] sm:$0xff]  ;;  %v5511_v20 = vrot.slane %v18083_v15, 2  ;;  %v18476_v40 = vld [vmem:[#allocation84_spill] sm:$0xff] }
 0x25d   : > { %18464 = vst [vmem:[#allocation78_spill] sm:$0xff] %v15663_v30  ;;  %v15684_v30 = vrot.slane %v5249_v50, 7  ;;  %18469 = vst [vmem:[#allocation81_spill] sm:$0xff] %v15687_v60  ;;  %v2447_v53 = vsel %vm14372_vm7, %v18471_v45, %v18470_v18  ;;  %v12024_v56 = vpop.f32.mrb[103].mxu1  ;;  %v5501_v26 = vrot.slane %v18084_v46, 2  ;;  %v5502_v28 = vrot.slane %v5250_v47, 7 }
 0x25e   : > { %v15707_v60 = vrot.slane %v5267_v62, 7  ;;  %v18475_v18 = vld [vmem:[#allocation19_spill] sm:$0xff]  ;;  %v15710_v45 = vpop.f32.mrb[102].mxu0  ;;  %v18477_v50 = vcombine.high %v18476_v40, %v18476_v40  ;;  %v4615_v47 = vcombine.high %v15174_v41, %v15174_v41  ;;  %v18480_v40 = vld [vmem:[#allocation86_spill] sm:$0xff]  ;;  %v4630_v46 = vcombine.high %v4622_v31, %v4622_v31 }
 0x25f   : > { %v2643_v56 = vadd.f32 %v2447_v53, %v18475_v18  ;;  %v5497_v6 = vsel %vm14372_vm7, %v5495_v17, %v15684_v30  ;;  %v12080_v62 = vpop.f32.mrb[103].mxu0  ;;  %v18478_v53 = vld [vmem:[#allocation85_spill] sm:$0xff] }
 0x260   : > { %18474 = vst [vmem:[#allocation83_spill] sm:$0xff] %v15707_v60  ;;  %v3259_v37 = vadd.f32 %v18477_v50, %v2641_v32  ;;  %v18479_v18 = vcombine.high %v18478_v53, %v18478_v53  ;;  %v5503_v32 = vsel %vm14372_vm7, %v5501_v26, %v5502_v28  ;;  %v18481_v50 = vld [vmem:[#allocation87_spill] sm:$0xff]  ;;  %v4629_v41 = vrot.slane %v4615_v47, %v14079_v59  ;;  %v15734_v62 = vpop.f32.mrb[104].mxu1 }
 0x261   : > { %v2457_v15 = vsel %vm14372_vm7, %v18481_v50, %v18480_v40  ;;  %v4631_v53 = vcombine.high %v15193_v1, %v15193_v1  ;;  %v5507_v28 = vsel %vm14372_vm7, %v11408_v29, %v15691_v24  ;;  %v5513_v26 = vsel %vm14372_vm7, %v5511_v20, %v15707_v60  ;;  %v12027_v47 = vpop.f32.mrb[105].mxu1 }
 0x262   : > { %v3261_v44 = vadd.f32 %v18479_v18, %v2643_v56  ;;  %v4875_v12 = vadd.f32 %v4622_v31, %v3259_v37  ;;  %v2646_v17 = vadd.f32 %v2457_v15, %v14138_v58  ;;  %v4638_v56 = vrot.slane %v15193_v1, %v14079_v59  ;;  %v18482_v37 = vld [vmem:[#allocation89_spill] sm:$0xff]  ;;  %v15754_v1 = vpop.f32.mrb[106].mxu1  ;;  %v15762_v47 = vpop.f32.mrb[104].mxu0 }
 0x263   : > { %v15747_v31 = vadd.f32 %v4630_v46, %v18482_v37  ;;  %v18483_v18 = vcombine.high %v14773_v5, %v14773_v5  ;;  %v15757_v50 = vrot.slane %v4631_v53, %v14079_v59  ;;  %v5268_v20 = vcombine.high %v15201_v11, %v15201_v11  ;;  %v12028_v46 = vpop.f32.mrb[107].mxu1 }
 0x264   : > { %v4877_v58 = vadd.f32 %v4629_v41, %v3261_v44  ;;  %v15749_v15 = vadd.f32 %v5497_v6, %v4875_v12  ;;  %v4646_v29 = vcombine.high %v4638_v56, %v4638_v56  ;;  %v4878_v33 = vadd.f32 %v4638_v56, %v14799_v14  ;;  %v12083_v14 = vpop.f32.mrb[105].mxu0 }
 0x265   : > { %v3264_v40 = vadd.f32 %v18483_v18, %v2646_v17  ;;  %18484 = vst [vmem:[#allocation82_spill] sm:$0xff] %v15757_v50  ;;  %v15768_v5 = vrot.slane %v15201_v11, %v14079_v59  ;;  %v5285_v12 = vcombine.high %v15218_v36, %v15218_v36  ;;  %v15774_v6 = vrot.slane %v15218_v36, %v14079_v59  ;;  %v15784_v11 = vpop.f32.mrb[106].mxu0 }
 0x266   : > { %v15764_v44 = vadd.f32 %v5503_v32, %v4877_v58  ;;  %v15779_v17 = vadd.f32 %v4646_v29, %v14802_v19  ;;  %v15782_v53 = vadd.f32 %v5507_v28, %v4878_v33  ;;  %18487 = vst [vmem:[#allocation84_spill] sm:$0xff] %v15784_v11  ;;  %v15787_v56 = vrot.slane %v5268_v20, %v14079_v59  ;;  %v12084_v18 = vpop.f32.mrb[107].mxu0  ;;  %v18490_v33 = vld [vmem:[#allocation90_spill] sm:$0xff] }
 0x267   : > { %18485 = vst [vmem:[#allocation18_spill] sm:$0xff] %v15768_v5  ;;  %18486 = vst [vmem:[#allocation19_spill] sm:$0xff] %v15774_v6  ;;  %v4880_v32 = vadd.f32 %v15757_v50, %v3264_v40  ;;  %v5283_v36 = vcombine.high %v15768_v5, %v15768_v5  ;;  %v18086_v37 = vrot.slane %v15768_v5, 7  ;;  %v5299_v58 = vrot.slane %v5285_v12, %v14079_v59  ;;  %v15809_v12 = vpop.f32.mrb[108].mxu1 }
 0x268   : > { %18488 = vst [vmem:[#allocation85_spill] sm:$0xff] %v15787_v56  ;;  %v5300_v19 = vcombine.high %v15774_v6, %v15774_v6  ;;  %v2463_v28 = vsel %vm14372_vm7, %v14806_v9, %v14808_v8  ;;  %v5284_v40 = vcombine.high %v15787_v56, %v15787_v56  ;;  %v2469_v9 = vsel %vm14372_vm7, %v18490_v33, %v14818_v23  ;;  %v12031_v8 = vpop.f32.mrb[109].mxu1  ;;  %v18492_v6 = vld [vmem:[#allocation20_spill] sm:$0xff] }
 0x269   : > { %v15793_v46 = vadd.f32 %v5513_v26, %v4880_v32  ;;  %v5517_v29 = vrot.slane %v18086_v37, 2  ;;  %v15806_v20 = vrot.slane %v5283_v36, 7  ;;  %v18093_v26 = vrot.slane %v15787_v56, 7  ;;  %v15821_v5 = vpop.f32.mrb[110].mxu1  ;;  %v15828_v8 = vpop.f32.mrb[108].mxu0 }
 0x26a   : > { %v5301_v14 = vcombine.high %v5299_v58, %v5299_v58  ;;  %v11409_v32 = vrot.slane %v5300_v19, 9  ;;  %v5531_v18 = vrot.slane %v5299_v58, 7  ;;  %v15818_v36 = vrot.slane %v5284_v40, 7  ;;  %v18494_v58 = vld [vmem:[#allocation21_spill] sm:$0xff]  ;;  %v12032_v33 = vpop.f32.mrb[111].mxu1  ;;  %18495 = vst [vmem:[#allocation90_spill] sm:$0xff] %v15828_v8 }
 0x26b   : > { %18489 = vst [vmem:[#allocation86_spill] sm:$0xff] %v15793_v46  ;;  %v5523_v37 = vrot.slane %v18093_v26, 2  ;;  %v2648_v60 = vadd.f32 %v2463_v28, %v18492_v6  ;;  %v2650_v11 = vadd.f32 %v2469_v9, %v18494_v58  ;;  %v4648_v23 = vcombine.high %v15244_v21, %v15244_v21  ;;  %v18496_v26 = vld [vmem:[#allocation93_spill] sm:$0xff]  ;;  %v18498_v58 = vld [vmem:[#allocation94_spill] sm:$0xff]  ;;  %v18502_v46 = vld [vmem:[#allocation92_spill] sm:$0xff] }
 0x26c   : > { %18491 = vst [vmem:[#allocation87_spill] sm:$0xff] %v15818_v36  ;;  %v5533_v50 = vrot.slane %v5531_v18, 2  ;;  %v15823_v19 = vrot.slane %v5301_v14, 7  ;;  %v18497_v40 = vcombine.high %v18496_v26, %v18496_v26  ;;  %v4655_v6 = vrot.slane %v15244_v21, %v14079_v59  ;;  %v12087_v14 = vpop.f32.mrb[109].mxu0  ;;  %v18504_v9 = vld [vmem:[#allocation22_spill] sm:$0xff] }
 0x26d   : > { %v5519_v28 = vsel %vm14372_vm7, %v5517_v29, %v15806_v20  ;;  %v18499_v33 = vcombine.high %v18498_v58, %v18498_v58  ;;  %v15844_v41 = vrot.slane %v4648_v23, %v14079_v59  ;;  %v15849_v26 = vpop.f32.mrb[110].mxu0  ;;  %v18503_v29 = vld [vmem:[#allocation91_spill] sm:$0xff]  ;;  %v4665_v58 = vcombine.high %v15264_v39, %v15264_v39 }
 0x26e   : > { %18493 = vst [vmem:[#allocation89_spill] sm:$0xff] %v15823_v19  ;;  %v3266_v56 = vadd.f32 %v18497_v40, %v2648_v60  ;;  %v5525_v60 = vsel %vm14372_vm7, %v5523_v37, %v15818_v36  ;;  %18501 = vst [vmem:[#allocation21_spill] sm:$0xff] %v15849_v26  ;;  %v4663_v21 = vcombine.high %v4655_v6, %v4655_v6 }
 0x26f   : > { %v3268_v8 = vadd.f32 %v18499_v33, %v2650_v11  ;;  %18500 = vst [vmem:[#allocation20_spill] sm:$0xff] %v15844_v41  ;;  %v2479_v14 = vsel %vm14372_vm7, %v18503_v29, %v18502_v46  ;;  %v12088_v11 = vpop.f32.mrb[111].mxu0  ;;  %v4672_v26 = vrot.slane %v15264_v39, %v14079_v59  ;;  %v15869_v46 = vrot.slane %v4665_v58, %v14079_v59 }
 0x270   : > { %v4882_v40 = vadd.f32 %v4655_v6, %v3266_v56  ;;  %v2653_v37 = vadd.f32 %v2479_v14, %v18504_v9  ;;  %v18505_v56 = vld [vmem:[#allocation96_spill] sm:$0xff]  ;;  %v5532_v29 = vsel %vm14372_vm7, %v11409_v32, %v5531_v18  ;;  %v15873_v11 = vpop.f32.mrb[112].mxu1  ;;  %v5302_v32 = vcombine.high %v15274_v10, %v15274_v10 }
 0x271   : > { %v4884_v33 = vadd.f32 %v15844_v41, %v3268_v8  ;;  %v15864_v6 = vadd.f32 %v4663_v21, %v18505_v56  ;;  %18507 = vst [vmem:[#allocation94_spill] sm:$0xff] %v15869_v46  ;;  %v18509_v8 = vld [vmem:[#allocation97_spill] sm:$0xff]  ;;  %v4680_v39 = vcombine.high %v4672_v26, %v4672_v26  ;;  %v12035_v21 = vpop.f32.mrb[113].mxu1  ;;  %v15889_v18 = vrot.slane %v15274_v10, %v14079_v59  ;;  %v18513_v26 = vld [vmem:[#allocation99_spill] sm:$0xff] }
 0x272   : > { %v15866_v36 = vadd.f32 %v5519_v28, %v4882_v40  ;;  %v18510_v9 = vcombine.high %v18509_v8, %v18509_v8  ;;  %v5535_v28 = vsel %vm14372_vm7, %v5533_v50, %v15823_v19  ;;  %v15893_v58 = vpop.f32.mrb[114].mxu1  ;;  %v18515_v56 = vld [vmem:[#allocation103_spill] sm:$0xff]  ;;  %v18516_v8 = vld [vmem:[#allocation102_spill] sm:$0xff]  ;;  %v15905_v21 = vpop.f32.mrb[112].mxu0  ;;  %v15908_v40 = vrot.slane %v5302_v32, %v14079_v59 }
 0x273   : > { %v15875_v23 = vadd.f32 %v5525_v60, %v4884_v33  ;;  %18511 = vst [vmem:[#allocation91_spill] sm:$0xff] %v15889_v18  ;;  %v5319_v60 = vcombine.high %v15293_v51, %v15293_v51  ;;  %18512 = vst [vmem:[#allocation22_spill] sm:$0xff] %v15893_v58  ;;  %v4886_v33 = vadd.f32 %v4680_v39, %v18513_v26  ;;  %v12036_v10 = vpop.f32.mrb[115].mxu1 }
 0x274   : > { %18506 = vst [vmem:[#allocation93_spill] sm:$0xff] %v15866_v36  ;;  %v3271_v14 = vadd.f32 %v18510_v9, %v2653_v37  ;;  %v15899_v37 = vrot.slane %v15293_v51, %v14079_v59  ;;  %v2485_v9 = vsel %vm14372_vm7, %v18516_v8, %v18515_v56  ;;  %18517 = vst [vmem:[#allocation97_spill] sm:$0xff] %v15905_v21  ;;  %v12091_v51 = vpop.f32.mrb[113].mxu0  ;;  %v15941_v36 = vpop.f32.mrb[116].mxu1 }
 0x275   : > { %18508 = vst [vmem:[#allocation92_spill] sm:$0xff] %v15875_v23  ;;  %18518 = vst [vmem:[#allocation99_spill] sm:$0xff] %v15908_v40  ;;  %v5317_v39 = vcombine.high %v15889_v18, %v15889_v18  ;;  %v5333_v26 = vrot.slane %v5319_v60, %v14079_v59  ;;  %v15914_v19 = vadd.f32 %v5532_v29, %v4886_v33  ;;  %v15921_v10 = vpop.f32.mrb[114].mxu0  ;;  %v18108_v29 = vrot.slane %v15908_v40, 7 }
 0x276   : > { %v4887_v50 = vadd.f32 %v15869_v46, %v3271_v14  ;;  %18514 = vst [vmem:[#allocation96_spill] sm:$0xff] %v15899_v37  ;;  %v18104_v14 = vrot.slane %v15889_v18, 7  ;;  %v5334_v56 = vcombine.high %v15899_v37, %v15899_v37  ;;  %v18106_v8 = vrot.slane %v15899_v37, 7  ;;  %18521 = vst [vmem:[#allocation157_spill] sm:$0xff] %v15921_v10  ;;  %v12092_v60 = vpop.f32.mrb[115].mxu0  ;;  %v18524_v18 = vld [vmem:[#allocation107_spill] sm:$0xff] }
 0x277   : > { %18519 = vst [vmem:[#allocation103_spill] sm:$0xff] %v15914_v19  ;;  %v5318_v32 = vcombine.high %v15908_v40, %v15908_v40  ;;  %v15927_v23 = vrot.slane %v5317_v39, 7  ;;  %v11410_v51 = vrot.slane %v5333_v26, 9  ;;  %v5545_v10 = vrot.slane %v18108_v29, 2  ;;  %18526 = vst [vmem:[#allocation107_spill] sm:$0xff] %v15941_v36  ;;  %v18528_v37 = vld [vmem:[#allocation24_spill] sm:$0xff] }
 0x278   : > { %v15916_v46 = vadd.f32 %v5535_v28, %v4887_v50  ;;  %v5539_v21 = vrot.slane %v18104_v14, 2  ;;  %v5335_v28 = vcombine.high %v5333_v26, %v5333_v26  ;;  %v5551_v33 = vrot.slane %v18106_v8, 2  ;;  %v18525_v14 = vld [vmem:[#allocation106_spill] sm:$0xff]  ;;  %v12039_v40 = vpop.f32.mrb[117].mxu1 }
 0x279   : > { %18522 = vst [vmem:[#allocation158_spill] sm:$0xff] %v15927_v23  ;;  %v5552_v50 = vrot.slane %v5334_v56, 7  ;;  %v15935_v19 = vrot.slane %v5318_v32, 7  ;;  %v2491_v39 = vsel %vm14372_vm7, %v18525_v14, %v18524_v18  ;;  %v2655_v8 = vadd.f32 %v2485_v9, %v18528_v37  ;;  %v18529_v56 = vld [vmem:[#allocation25_spill] sm:$0xff]  ;;  %v15958_v37 = vpop.f32.mrb[118].mxu1 }
 0x27a   : > { %18520 = vst [vmem:[#allocation102_spill] sm:$0xff] %v15916_v46  ;;  %v15943_v60 = vrot.slane %v5335_v28, 7  ;;  %v2657_v26 = vadd.f32 %v2491_v39, %v18529_v56  ;;  %v4682_v46 = vcombine.high %v15315_v2, %v15315_v2  ;;  %v4689_v29 = vrot.slane %v15315_v2, %v14079_v59  ;;  %18530 = vst [vmem:[#allocation24_spill] sm:$0xff] %v15958_v37  ;;  %v18531_v28 = vld [vmem:[#allocation100_spill] sm:$0xff]  ;;  %v18533_v56 = vld [vmem:[#allocation101_spill] sm:$0xff] }
 0x27b   : > { %18523 = vst [vmem:[#allocation159_spill] sm:$0xff] %v15935_v19  ;;  %v5541_v18 = vsel %vm14372_vm7, %v5539_v21, %v15927_v23  ;;  %v5547_v14 = vsel %vm14372_vm7, %v5545_v10, %v15935_v19  ;;  %v18532_v40 = vcombine.high %v18531_v28, %v18531_v28  ;;  %v18534_v32 = vcombine.high %v18533_v56, %v18533_v56  ;;  %v12040_v21 = vpop.f32.mrb[119].mxu1  ;;  %v15970_v23 = vpop.f32.mrb[116].mxu0  ;;  %v18536_v10 = vld [vmem:[#allocation105_spill] sm:$0xff]  ;;  %v18537_v19 = vld [vmem:[#allocation104_spill] sm:$0xff] }
 0x27c   : > { %18527 = vst [vmem:[#allocation106_spill] sm:$0xff] %v15943_v60  ;;  %v15968_v36 = vrot.slane %v4682_v46, %v14079_v59  ;;  %18535 = vst [vmem:[#allocation25_spill] sm:$0xff] %v15970_v23  ;;  %v4697_v58 = vcombine.high %v4689_v29, %v4689_v29  ;;  %v2497_v9 = vsel %vm14372_vm7, %v18537_v19, %v18536_v10  ;;  %v18538_v56 = vld [vmem:[#allocation16_spill] sm:$0xff]  ;;  %v18541_v19 = vld [vmem:[#allocation110_spill] sm:$0xff] }
 0x27d   : > { %v3273_v39 = vadd.f32 %v18532_v40, %v2655_v8  ;;  %v3275_v2 = vadd.f32 %v18534_v32, %v2657_v26  ;;  %v4699_v28 = vcombine.high %v15330_v34, %v15330_v34  ;;  %v4706_v8 = vrot.slane %v15330_v34, %v14079_v59  ;;  %v12095_v40 = vpop.f32.mrb[117].mxu0 }
 0x27e   : > { %v18539_v21 = vrot.slane %v18538_v56, %v14079_v59  ;;  %v15986_v37 = vpop.f32.mrb[118].mxu0  ;;  %v15989_v10 = vadd.f32 %v4697_v58, %v18541_v19  ;;  %v5553_v34 = vsel %vm14372_vm7, %v5551_v33, %v5552_v50  ;;  %v18544_v33 = vld [vmem:[#allocation112_spill] sm:$0xff]  ;;  %v18549_v19 = vld [vmem:[#allocation114_spill] sm:$0xff] }
 0x27f   : > { %v4889_v26 = vadd.f32 %v4689_v29, %v3273_v39  ;;  %v4891_v32 = vadd.f32 %v15968_v36, %v3275_v2  ;;  %18540 = vst [vmem:[#allocation100_spill] sm:$0xff] %v15986_v37  ;;  %v15992_v41 = vrot.slane %v4699_v28, %v14079_v59  ;;  %v5557_v29 = vsel %vm14372_vm7, %v11410_v51, %v15943_v60  ;;  %v12096_v39 = vpop.f32.mrb[119].mxu0  ;;  %v18560_v60 = vld [vmem:[#allocation118_spill] sm:$0xff] }
 0x280   : > { %v2659_v23 = vadd.f32 %v2497_v9, %v18539_v21  ;;  %v18542_v9 = vld [vmem:[#allocation108_spill] sm:$0xff]  ;;  %v5336_v28 = vcombine.high %v15340_v13, %v15340_v13  ;;  %v16014_v51 = vrot.slane %v15340_v13, %v14079_v59  ;;  %v18550_v39 = vld [vmem:[#allocation113_spill] sm:$0xff] }
 0x281   : > { %v15999_v2 = vadd.f32 %v5541_v18, %v4889_v26  ;;  %v16001_v40 = vadd.f32 %v5547_v14, %v4891_v32  ;;  %v18543_v56 = vcombine.high %v18542_v9, %v18542_v9  ;;  %v4894_v50 = vadd.f32 %v15992_v41, %v18544_v33  ;;  %v16018_v14 = vpop.f32.mrb[120].mxu1 }
 0x282   : > { %18545 = vst [vmem:[#allocation101_spill] sm:$0xff] %v16014_v51  ;;  %v5353_v18 = vcombine.high %v15359_v0, %v15359_v0  ;;  %18546 = vst [vmem:[#allocation105_spill] sm:$0xff] %v16018_v14  ;;  %v16025_v32 = vrot.slane %v15359_v0, %v14079_v59  ;;  %v2507_v9 = vsel %vm14372_vm7, %v18550_v39, %v18549_v19  ;;  %v12043_v13 = vpop.f32.mrb[121].mxu1  ;;  %v16048_v39 = vpop.f32.mrb[120].mxu0 }
 0x283   : > { %v3277_v58 = vadd.f32 %v18543_v56, %v2659_v23  ;;  %v16021_v23 = vrot.slane %v5336_v28, %v14079_v59  ;;  %v16031_v56 = vadd.f32 %v5557_v29, %v4894_v50  ;;  %v5351_v33 = vcombine.high %v16014_v51, %v16014_v51  ;;  %v16039_v28 = vpop.f32.mrb[122].mxu1  ;;  %18554 = vst [vmem:[#allocation114_spill] sm:$0xff] %v16048_v39  ;;  %v12099_v46 = vpop.f32.mrb[121].mxu0 }
 0x284   : > { %18548 = vst [vmem:[#allocation16_spill] sm:$0xff] %v16025_v32  ;;  %18553 = vst [vmem:[#allocation112_spill] sm:$0xff] %v16039_v28  ;;  %v5368_v29 = vcombine.high %v16025_v32, %v16025_v32  ;;  %v12044_v50 = vpop.f32.mrb[123].mxu1  ;;  %v16064_v39 = vpop.f32.mrb[122].mxu0  ;;  %v18561_v46 = vld [vmem:[#allocation117_spill] sm:$0xff] }
 0x285   : > { %v4893_v26 = vadd.f32 %v4706_v8, %v3277_v58  ;;  %18547 = vst [vmem:[#allocation104_spill] sm:$0xff] %v16021_v23  ;;  %18551 = vst [vmem:[#allocation110_spill] sm:$0xff] %v16031_v56  ;;  %v18121_v8 = vrot.slane %v16014_v51, 7  ;;  %v16037_v58 = vrot.slane %v5353_v18, %v14079_v59  ;;  %v5352_v21 = vcombine.high %v16021_v23, %v16021_v23  ;;  %v18562_v50 = vld [vmem:[#allocation26_spill] sm:$0xff] }
 0x286   : > { %v18123_v19 = vrot.slane %v16021_v23, 7  ;;  %v16052_v18 = vrot.slane %v5351_v33, 7  ;;  %v16061_v14 = vrot.slane %v5368_v29, 7  ;;  %18558 = vst [vmem:[#allocation162_spill] sm:$0xff] %v16064_v39  ;;  %v18563_v39 = vld [vmem:[#allocation28_spill] sm:$0xff]  ;;  %v4715_v33 = vcombine.high %v15383_v52, %v15383_v52 }
 0x287   : > { %18552 = vst [vmem:[#allocation108_spill] sm:$0xff] %v16037_v58  ;;  %v16041_v0 = vadd.f32 %v5553_v34, %v4893_v26  ;;  %v5561_v13 = vrot.slane %v18121_v8, 2  ;;  %v5369_v34 = vcombine.high %v16037_v58, %v16037_v58  ;;  %v18128_v26 = vrot.slane %v16025_v32, 7  ;;  %v18569_v29 = vld [vmem:[#allocation116_spill] sm:$0xff] }
 0x288   : > { %18555 = vst [vmem:[#allocation113_spill] sm:$0xff] %v16052_v18  ;;  %v5567_v37 = vrot.slane %v18123_v19, 2  ;;  %v16059_v28 = vrot.slane %v5352_v21, 7  ;;  %18557 = vst [vmem:[#allocation161_spill] sm:$0xff] %v16061_v14  ;;  %v2513_v19 = vsel %vm14372_vm7, %v18561_v46, %v18560_v60  ;;  %v12100_v21 = vpop.f32.mrb[123].mxu0  ;;  %v2662_v58 = vadd.f32 %v2507_v9, %v18562_v50  ;;  %v16089_v46 = vpop.f32.mrb[124].mxu1 }
 0x289   : > { %v5573_v8 = vrot.slane %v18128_v26, 2  ;;  %v16069_v56 = vrot.slane %v5369_v34, 9  ;;  %v2664_v51 = vadd.f32 %v2513_v19, %v18563_v39  ;;  %v4722_v34 = vrot.slane %v15383_v52, %v14079_v59  ;;  %18564 = vst [vmem:[#allocation118_spill] sm:$0xff] %v16089_v46  ;;  %v18565_v21 = vld [vmem:[#allocation119_spill] sm:$0xff]  ;;  %v18567_v39 = vld [vmem:[#allocation120_spill] sm:$0xff]  ;;  %v12047_v32 = vpop.f32.mrb[125].mxu1 }
 0x28a   : > { %18556 = vst [vmem:[#allocation160_spill] sm:$0xff] %v16059_v28  ;;  %v5563_v26 = vsel %vm14372_vm7, %v5561_v13, %v16052_v18  ;;  %v5569_v60 = vsel %vm14372_vm7, %v5567_v37, %v16059_v28  ;;  %v18566_v9 = vcombine.high %v18565_v21, %v18565_v21  ;;  %v18568_v50 = vcombine.high %v18567_v39, %v18567_v39  ;;  %v18570_v52 = vld [vmem:[#allocation115_spill] sm:$0xff]  ;;  %v18572_v28 = vld [vmem:[#allocation29_spill] sm:$0xff] }
 0x28b   : > { %18559 = vst [vmem:[#allocation163_spill] sm:$0xff] %v16069_v56  ;;  %v2519_v56 = vsel %vm14372_vm7, %v18570_v52, %v18569_v29  ;;  %v4732_v13 = vcombine.high %v15404_v49, %v15404_v49  ;;  %v16104_v37 = vrot.slane %v4715_v33, %v14079_v59  ;;  %v4730_v46 = vcombine.high %v4722_v34, %v4722_v34 }
 0x28c   : > { %v3280_v19 = vadd.f32 %v18566_v9, %v2662_v58  ;;  %v3282_v23 = vadd.f32 %v18568_v50, %v2664_v51  ;;  %v2666_v21 = vadd.f32 %v2519_v56, %v18572_v28  ;;  %v4739_v58 = vrot.slane %v15404_v49, %v14079_v59  ;;  %v16109_v9 = vpop.f32.mrb[126].mxu1  ;;  %v16117_v50 = vpop.f32.mrb[124].mxu0  ;;  %v18575_v28 = vld [vmem:[#allocation123_spill] sm:$0xff] }
 0x28d   : > { %18571 = vst [vmem:[#allocation117_spill] sm:$0xff] %v16104_v37  ;;  %18573 = vst [vmem:[#allocation26_spill] sm:$0xff] %v16109_v9  ;;  %v4746_v39 = vrot.slane %v4732_v13, %v14079_v59  ;;  %v5575_v29 = vsel %vm14372_vm7, %v5573_v8, %v16061_v14  ;;  %v5370_v32 = vcombine.high %v15412_v63, %v15412_v63  ;;  %v12048_v33 = vpop.f32.mrb[127].mxu1  ;;  %v12171_v9 = vpop.f32.mrb[125].mxu0 }
 0x28e   : > { %v4896_v51 = vadd.f32 %v4722_v34, %v3280_v19  ;;  %18574 = vst [vmem:[#allocation28_spill] sm:$0xff] %v16117_v50  ;;  %v16122_v49 = vadd.f32 %v4730_v46, %v18575_v28  ;;  %v4898_v34 = vadd.f32 %v16104_v37, %v3282_v23  ;;  %v18576_v19 = vld [vmem:[#allocation122_spill] sm:$0xff]  ;;  %v4747_v14 = vcombine.high %v4739_v58, %v4739_v58 }
 0x28f   : > { %v18577_v52 = vcombine.high %v18576_v19, %v18576_v19  ;;  %v4748_v18 = vcombine.high %v4746_v39, %v4746_v39  ;;  %v16132_v33 = vrot.slane %v15412_v63, %v14079_v59  ;;  %v16137_v46 = vrot.slane %v5370_v32, %v14079_v59  ;;  %v18582_v28 = vld [vmem:[#allocation126_spill] sm:$0xff] }
 0x290   : > { %v16128_v8 = vadd.f32 %v5563_v26, %v4896_v51  ;;  %v16134_v50 = vadd.f32 %v5569_v60, %v4898_v34  ;;  %v5387_v23 = vcombine.high %v15433_v25, %v15433_v25  ;;  %v18584_v26 = vld [vmem:[#allocation30_spill] sm:$0xff]  ;;  %v16157_v32 = vrot.slane %v15433_v25, %v14079_v59 }
 0x291   : > { %v3284_v13 = vadd.f32 %v18577_v52, %v2666_v21  ;;  %18579 = vst [vmem:[#allocation120_spill] sm:$0xff] %v16132_v33  ;;  %18581 = vst [vmem:[#allocation115_spill] sm:$0xff] %v16137_v46  ;;  %v16142_v21 = vadd.f32 %v4747_v14, %v18582_v28  ;;  %v16145_v9 = vadd.f32 %v4748_v18, %v18584_v26  ;;  %v18136_v63 = vrot.slane %v16132_v33, 7  ;;  %v16159_v14 = vpop.f32.mrb[128].mxu1 }
 0x292   : > { %18578 = vst [vmem:[#allocation119_spill] sm:$0xff] %v16128_v8  ;;  %18580 = vst [vmem:[#allocation116_spill] sm:$0xff] %v16134_v50  ;;  %v5385_v51 = vcombine.high %v16132_v33, %v16132_v33  ;;  %v18138_v39 = vrot.slane %v16137_v46, 7  ;;  %v16166_v19 = vrot.slane %v5387_v23, %v14079_v59  ;;  %v5402_v26 = vcombine.high %v16157_v32, %v16157_v32  ;;  %v18597_v50 = vld [vmem:[#allocation34_spill] sm:$0xff] }
 0x293   : > { %v4900_v56 = vadd.f32 %v4739_v58, %v3284_v13  ;;  %18583 = vst [vmem:[#allocation29_spill] sm:$0xff] %v16142_v21  ;;  %18585 = vst [vmem:[#allocation123_spill] sm:$0xff] %v16145_v9  ;;  %v5386_v58 = vcombine.high %v16137_v46, %v16137_v46  ;;  %v5583_v18 = vrot.slane %v18136_v63, 2  ;;  %v12119_v13 = vpop.f32.mrb[129].mxu1  ;;  %v4749_v37 = vcombine.high %v15452_v22, %v15452_v22 }
 0x294   : > { %18587 = vst [vmem:[#allocation126_spill] sm:$0xff] %v16157_v32  ;;  %18588 = vst [vmem:[#allocation30_spill] sm:$0xff] %v16159_v14  ;;  %v16163_v34 = vrot.slane %v5385_v51, 7  ;;  %v5589_v25 = vrot.slane %v18138_v39, 2  ;;  %v18145_v51 = vrot.slane %v16157_v32, 7  ;;  %v16179_v63 = vpop.f32.mrb[130].mxu1  ;;  %v5403_v14 = vcombine.high %v16166_v19, %v16166_v19 }
 0x295   : > { %v16150_v60 = vadd.f32 %v5575_v29, %v4900_v56  ;;  %18589 = vst [vmem:[#allocation164_spill] sm:$0xff] %v16166_v19  ;;  %v18590_v29 = vld [vmem:[#allocation129_spill] sm:$0xff]  ;;  %v18591_v56 = vld [vmem:[#allocation128_spill] sm:$0xff]  ;;  %v16174_v28 = vrot.slane %v5386_v58, 7  ;;  %v18595_v13 = vld [vmem:[#allocation130_spill] sm:$0xff]  ;;  %v12120_v39 = vpop.f32.mrb[131].mxu1  ;;  %v4766_v32 = vcombine.high %v15471_v3, %v15471_v3 }
 0x296   : > { %v2529_v52 = vsel %vm14372_vm7, %v18591_v56, %v18590_v29  ;;  %18593 = vst [vmem:[#allocation128_spill] sm:$0xff] %v16179_v63  ;;  %v18144_v29 = vrot.slane %v16166_v19, 7  ;;  %v18594_v56 = vld [vmem:[#allocation131_spill] sm:$0xff]  ;;  %v5595_v9 = vrot.slane %v18145_v51, 2  ;;  %v16192_v46 = vrot.slane %v5402_v26, 7 }
 0x297   : > { %18586 = vst [vmem:[#allocation122_spill] sm:$0xff] %v16150_v60  ;;  %18592 = vst [vmem:[#allocation129_spill] sm:$0xff] %v16174_v28  ;;  %v2535_v58 = vsel %vm14372_vm7, %v18595_v13, %v18594_v56  ;;  %v18596_v63 = vld [vmem:[#allocation31_spill] sm:$0xff]  ;;  %v5602_v21 = vrot.slane %v5403_v14, 7  ;;  %v18598_v56 = vld [vmem:[#allocation124_spill] sm:$0xff]  ;;  %v4756_v26 = vrot.slane %v15452_v22, %v14079_v59  ;;  %v5591_v39 = vsel %vm14372_vm7, %v5589_v25, %v16174_v28 }
 0x298   : > { %v2669_v23 = vadd.f32 %v2529_v52, %v18596_v63  ;;  %v5601_v33 = vrot.slane %v18144_v29, 2  ;;  %v2671_v8 = vadd.f32 %v2535_v58, %v18597_v50  ;;  %v18599_v13 = vcombine.high %v18598_v56, %v18598_v56  ;;  %v18600_v52 = vld [vmem:[#allocation127_spill] sm:$0xff]  ;;  %v18602_v56 = vld [vmem:[#allocation132_spill] sm:$0xff] }
 0x299   : > { %v5585_v63 = vsel %vm14372_vm7, %v5583_v18, %v16163_v34  ;;  %v18601_v14 = vcombine.high %v18600_v52, %v18600_v52  ;;  %v16213_v58 = vrot.slane %v4749_v37, %v14079_v59  ;;  %v18604_v51 = vld [vmem:[#allocation135_spill] sm:$0xff]  ;;  %v18605_v18 = vld [vmem:[#allocation134_spill] sm:$0xff]  ;;  %v18607_v25 = vld [vmem:[#allocation36_spill] sm:$0xff]  ;;  %v4780_v37 = vrot.slane %v4766_v32, %v14079_v59 }
 0x29a   : > { %v3287_v60 = vadd.f32 %v18599_v13, %v2669_v23  ;;  %v18603_v23 = vld [vmem:[#allocation133_spill] sm:$0xff]  ;;  %v4764_v13 = vcombine.high %v4756_v26, %v4756_v26  ;;  %v2547_v52 = vsel %vm14372_vm7, %v18605_v18, %v18604_v51  ;;  %v5920_v32 = vcombine.high %v15531_v61, %v15531_v61 }
 0x29b   : > { %v3289_v50 = vadd.f32 %v18601_v14, %v2671_v8  ;;  %v2541_v22 = vsel %vm14372_vm7, %v18603_v23, %v18602_v56  ;;  %v18606_v8 = vld [vmem:[#allocation35_spill] sm:$0xff]  ;;  %v2675_v28 = vadd.f32 %v2547_v52, %v18607_v25  ;;  %v18608_v56 = vld [vmem:[#allocation138_spill] sm:$0xff] }
 0x29c   : > { %v4903_v29 = vadd.f32 %v4756_v26, %v3287_v60  ;;  %v2673_v14 = vadd.f32 %v2541_v22, %v18606_v8  ;;  %v16234_v23 = vadd.f32 %v4764_v13, %v18608_v56  ;;  %v18609_v26 = vld [vmem:[#allocation136_spill] sm:$0xff]  ;;  %v4773_v22 = vrot.slane %v15471_v3, %v14079_v59 }
 0x29d   : > { %v4905_v19 = vadd.f32 %v16213_v58, %v3289_v50  ;;  %v18610_v51 = vcombine.high %v18609_v26, %v18609_v26  ;;  %v18611_v50 = vld [vmem:[#allocation137_spill] sm:$0xff]  ;;  %v18613_v56 = vld [vmem:[#allocation140_spill] sm:$0xff]  ;;  %v18615_v3 = vrot.slane %v15186_v43, 2  ;;  %v7536_v43 = vcombine.high %v15482_v7, %v15482_v7 }
 0x29e   : > { %v16236_v60 = vadd.f32 %v5585_v63, %v4903_v29  ;;  %v18612_v52 = vcombine.high %v18611_v50, %v18611_v50  ;;  %v5597_v29 = vsel %vm14372_vm7, %v5595_v9, %v16192_v46  ;;  %v4781_v63 = vcombine.high %v4773_v22, %v4773_v22  ;;  %v18620_v50 = vld [vmem:[#allocation43_spill] sm:$0xff] }
 0x29f   : > { %v3291_v18 = vadd.f32 %v18610_v51, %v2673_v14  ;;  %v16243_v8 = vadd.f32 %v5591_v39, %v4905_v19  ;;  %v5603_v14 = vsel %vm14372_vm7, %v5601_v33, %v5602_v21  ;;  %v18614_v26 = vrot.slane %v18613_v56, 7  ;;  %v18616_v51 = vld [vmem:[#allocation143_spill] sm:$0xff] }
 0x2a0   : > { %v3293_v25 = vadd.f32 %v18612_v52, %v2675_v28  ;;  %v5927_v9 = vrot.slane %v15531_v61, %v14079_v59  ;;  %v7543_v21 = vrot.slane %v15482_v7, %v14079_v59  ;;  %v18621_v52 = vld [vmem:[#allocation145_spill] sm:$0xff] }
 0x2a1   : > { %v4907_v13 = vadd.f32 %v4773_v22, %v3291_v18  ;;  %v5410_v19 = vsel %vm14372_vm7, %v18615_v3, %v18614_v26  ;;  %v16266_v18 = vadd.f32 %v4781_v63, %v18616_v51  ;;  %v18622_v61 = vcombine.high %v18621_v52, %v18621_v52  ;;  %v18625_v26 = vld [vmem:[#allocation38_spill] sm:$0xff]  ;;  %v18631_v52 = vld [vmem:[#allocation39_spill] sm:$0xff] }
 0x2a2   : > { %v4909_v39 = vadd.f32 %v4780_v37, %v3293_v25  ;;  %v5669_v28 = vadd.f32 %v5410_v19, %v15254_v57  ;;  %v5934_v57 = vrot.slane %v5920_v32, %v14079_v59  ;;  %v5935_v22 = vcombine.high %v5927_v9, %v5927_v9 }
 0x2a3   : > { %18617 = vst [vmem:[#allocation131_spill] sm:$0xff] %v16266_v18  ;;  %v16268_v33 = vadd.f32 %v5597_v29, %v4907_v13  ;;  %v4849_v25 = vadd.f32 %v18622_v61, %v18620_v50  ;;  %v7550_v63 = vrot.slane %v7536_v43, %v14079_v59  ;;  %v7551_v29 = vcombine.high %v7543_v21, %v7543_v21  ;;  %v18623_v13 = vld [vmem:[#allocation141_spill] sm:$0xff] }
 0x2a4   : > { %v16274_v37 = vadd.f32 %v5603_v14, %v4909_v39  ;;  %v18624_v56 = vrot.slane %v18623_v13, 7  ;;  %v18626_v3 = vrot.slane %v18625_v26, 2  ;;  %v18627_v14 = vld [vmem:[#allocation142_spill] sm:$0xff]  ;;  %v18629_v39 = vld [vmem:[#allocation37_spill] sm:$0xff]  ;;  %v5936_v51 = vcombine.high %v5934_v57, %v5934_v57 }
 0x2a5   : > { %18618 = vst [vmem:[#allocation130_spill] sm:$0xff] %v16268_v33  ;;  %v18628_v19 = vrot.slane %v18627_v14, 7  ;;  %v18630_v32 = vrot.slane %v18629_v39, 2  ;;  %v6286_v50 = vadd.f32 %v5935_v22, %v18631_v52  ;;  %v6287_v61 = vadd.f32 %v5934_v57, %v5669_v28  ;;  %v18632_v33 = vld [vmem:[#allocation44_spill] sm:$0xff] }
 0x2a6   : > { %18619 = vst [vmem:[#allocation31_spill] sm:$0xff] %v16274_v37  ;;  %v5416_v7 = vsel %vm14372_vm7, %v18626_v3, %v18624_v56  ;;  %v7552_v37 = vcombine.high %v7550_v63, %v7550_v63  ;;  %v5937_v26 = vcombine.high %v15548_v54, %v15548_v54  ;;  %v5944_v56 = vrot.slane %v15548_v54, %v14079_v59  ;;  %v18633_v3 = vld [vmem:[#allocation40_spill] sm:$0xff] }
 0x2a7   : > { %v5422_v9 = vsel %vm14372_vm7, %v18630_v32, %v18628_v19  ;;  %v5671_v43 = vadd.f32 %v5416_v7, %v4849_v25  ;;  %v6288_v14 = vadd.f32 %v5936_v51, %v18633_v3  ;;  %v16301_v39 = vadd.f32 %v7543_v21, %v6286_v50  ;;  %v18634_v19 = vld [vmem:[#allocation51_spill] sm:$0xff]  ;;  %v18635_v32 = vld [vmem:[#allocation41_spill] sm:$0xff]  ;;  %v18639_v52 = vld [vmem:[#allocation144_spill] sm:$0xff] }
 0x2a8   : > { %v5673_v13 = vadd.f32 %v5422_v9, %v18632_v33  ;;  %v16303_v18 = vadd.f32 %v7551_v29, %v6287_v61  ;;  %v7553_v22 = vcombine.high %v15498_v4, %v15498_v4  ;;  %v5951_v28 = vrot.slane %v5937_v26, %v14079_v59  ;;  %v18637_v9 = vld [vmem:[#allocation42_spill] sm:$0xff] }
 0x2a9   : > { %v5952_v57 = vcombine.high %v5944_v56, %v5944_v56  ;;  %v6289_v25 = vadd.f32 %v5944_v56, %v5671_v43  ;;  %v7560_v33 = vrot.slane %v15498_v4, %v14079_v59  ;;  %v16310_v7 = vadd.f32 %v7550_v63, %v6288_v14  ;;  %v18642_v4 = vld [vmem:[#allocation146_spill] sm:$0xff] }
 0x2aa   : > { %v7567_v54 = vrot.slane %v7553_v22, %v14079_v59  ;;  %v18636_v21 = vcombine.high %v18635_v32, %v18635_v32  ;;  %v18638_v51 = vrot.slane %v18637_v9, 7  ;;  %v18640_v50 = vrot.slane %v18639_v52, 2 }
 0x2ab   : > { %v5953_v43 = vcombine.high %v5951_v28, %v5951_v28  ;;  %v6291_v26 = vadd.f32 %v5951_v28, %v5673_v13  ;;  %v16323_v56 = vadd.f32 %v7552_v37, %v6289_v25  ;;  %v6290_v63 = vadd.f32 %v5952_v57, %v18642_v4 }
 0x2ac   : > { %v4853_v29 = vadd.f32 %v18636_v21, %v18634_v19  ;;  %v5428_v61 = vsel %vm14372_vm7, %v18640_v50, %v18638_v51  ;;  %v7568_v3 = vcombine.high %v7560_v33, %v7560_v33  ;;  %v7569_v14 = vcombine.high %v7567_v54, %v7567_v54  ;;  %v16328_v19 = vpop.f32.mrb[126].mxu0  ;;  %v18644_v21 = vld [vmem:[#allocation147_spill] sm:$0xff] }
 0x2ad   : > { %18641 = vst [vmem:[#allocation34_spill] sm:$0xff] %v16323_v56  ;;  %v5954_v32 = vcombine.high %v15600_v16, %v15600_v16  ;;  %18643 = vst [vmem:[#allocation124_spill] sm:$0xff] %v16328_v19  ;;  %v6292_v9 = vadd.f32 %v5953_v43, %v18644_v21  ;;  %v16331_v52 = vadd.f32 %v7560_v33, %v6290_v63  ;;  %v12172_v13 = vpop.f32.mrb[127].mxu0  ;;  %v18648_v50 = vld [vmem:[#allocation151_spill] sm:$0xff]  ;;  %v18650_v63 = vld [vmem:[#allocation148_spill] sm:$0xff] }
 0x2ae   : > { %v5675_v22 = vadd.f32 %v5428_v61, %v4853_v29  ;;  %v5961_v51 = vrot.slane %v15600_v16, %v14079_v59  ;;  %v7570_v37 = vcombine.high %v15557_v48, %v15557_v48  ;;  %v16337_v28 = vadd.f32 %v7568_v3, %v6291_v26  ;;  %v18647_v29 = vld [vmem:[#allocation55_spill] sm:$0xff]  ;;  %v18652_v13 = vld [vmem:[#allocation46_spill] sm:$0xff] }
 0x2af   : > { %18645 = vst [vmem:[#allocation127_spill] sm:$0xff] %v16331_v52  ;;  %v5968_v57 = vrot.slane %v5954_v32, %v14079_v59  ;;  %v7577_v25 = vrot.slane %v15557_v48, %v14079_v59  ;;  %v18649_v61 = vcombine.high %v18648_v50, %v18648_v50  ;;  %v16346_v43 = vadd.f32 %v7567_v54, %v6292_v9  ;;  %v18654_v19 = vld [vmem:[#allocation50_spill] sm:$0xff]  ;;  %v18655_v52 = vld [vmem:[#allocation149_spill] sm:$0xff] }
 0x2b0   : > { %18646 = vst [vmem:[#allocation132_spill] sm:$0xff] %v16337_v28  ;;  %v6293_v4 = vadd.f32 %v5961_v51, %v5675_v22  ;;  %v7584_v16 = vrot.slane %v7570_v37, %v14079_v59  ;;  %v18651_v21 = vrot.slane %v18650_v63, 7  ;;  %v18653_v26 = vrot.slane %v18652_v13, 2  ;;  %v18657_v50 = vld [vmem:[#allocation45_spill] sm:$0xff]  ;;  %v18660_v37 = vld [vmem:[#allocation23_spill] sm:$0xff]  ;;  %v18661_v63 = vld [vmem:[#allocation48_spill] sm:$0xff] }
 0x2b1   : > { %v4856_v33 = vadd.f32 %v18649_v61, %v18647_v29  ;;  %v5969_v32 = vcombine.high %v5968_v57, %v5968_v57  ;;  %v6294_v48 = vadd.f32 %v5968_v57, %v18654_v19  ;;  %v7585_v28 = vcombine.high %v7577_v25, %v7577_v25  ;;  %v18664_v25 = vld [vmem:[#allocation47_spill] sm:$0xff] }
 0x2b2   : > { %v5438_v3 = vsel %vm14372_vm7, %v18653_v26, %v18651_v21  ;;  %v18656_v56 = vrot.slane %v18655_v52, 7  ;;  %v18658_v29 = vrot.slane %v18657_v50, 2  ;;  %v16362_v22 = vadd.f32 %v7569_v14, %v6293_v4  ;;  %v18663_v14 = vld [vmem:[#allocation63_spill] sm:$0xff]  ;;  %v18666_v26 = vld [vmem:[#allocation49_spill] sm:$0xff] }
 0x2b3   : > { %v7586_v9 = vcombine.high %v7584_v16, %v7584_v16  ;;  %v5678_v51 = vadd.f32 %v5438_v3, %v4856_v33  ;;  %v6295_v13 = vadd.f32 %v5969_v32, %v18661_v63  ;;  %v16366_v21 = vadd.f32 %v7585_v28, %v6294_v48  ;;  %v18668_v3 = vld [vmem:[#allocation150_spill] sm:$0xff] }
 0x2b4   : > { %v5444_v54 = vsel %vm14372_vm7, %v18658_v29, %v18656_v56  ;;  %18659 = vst [vmem:[#allocation133_spill] sm:$0xff] %v16362_v22  ;;  %v5970_v19 = vcombine.high %v15614_v35, %v15614_v35  ;;  %v5977_v52 = vrot.slane %v15614_v35, %v14079_v59  ;;  %v7587_v57 = vcombine.high %v15573_v38, %v15573_v38 }
 0x2b5   : > { %v5680_v61 = vadd.f32 %v5444_v54, %v18660_v37  ;;  %18662 = vst [vmem:[#allocation135_spill] sm:$0xff] %v16366_v21  ;;  %v7594_v56 = vrot.slane %v15573_v38, %v14079_v59  ;;  %v18665_v33 = vcombine.high %v18664_v25, %v18664_v25  ;;  %v18667_v28 = vrot.slane %v18666_v26, 7 }
 0x2b6   : > { %v18669_v32 = vrot.slane %v18668_v3, 2  ;;  %v16386_v50 = vadd.f32 %v7584_v16, %v6295_v13  ;;  %v5984_v35 = vrot.slane %v5970_v19, %v14079_v59  ;;  %v5985_v29 = vcombine.high %v5977_v52, %v5977_v52  ;;  %v18672_v3 = vld [vmem:[#allocation53_spill] sm:$0xff]  ;;  %v18673_v19 = vld [vmem:[#allocation54_spill] sm:$0xff] }
 0x2b7   : > { %v4860_v4 = vadd.f32 %v18665_v33, %v18663_v14  ;;  %v6296_v54 = vadd.f32 %v5977_v52, %v5678_v51  ;;  %v7601_v38 = vrot.slane %v7587_v57, %v14079_v59  ;;  %v7602_v37 = vcombine.high %v7594_v56, %v7594_v56 }
 0x2b8   : > { %v5450_v48 = vsel %vm14372_vm7, %v18669_v32, %v18667_v28  ;;  %18670 = vst [vmem:[#allocation134_spill] sm:$0xff] %v16386_v50  ;;  %v5987_v14 = vcombine.high %v15671_v55, %v15671_v55  ;;  %v5986_v25 = vcombine.high %v5984_v35, %v5984_v35  ;;  %v6298_v33 = vadd.f32 %v5984_v35, %v5680_v61  ;;  %v18709_v50 = vld [vmem:[#allocation71_spill] sm:$0xff] }
 0x2b9   : > { %v5682_v63 = vadd.f32 %v5450_v48, %v4860_v4  ;;  %v16392_v26 = vadd.f32 %v7586_v9, %v6296_v54  ;;  %v6297_v21 = vadd.f32 %v5985_v29, %v18672_v3  ;;  %v7603_v28 = vcombine.high %v7601_v38, %v7601_v38  ;;  %v16410_v29 = vpop.f32.mrb[128].mxu0  ;;  %v18683_v3 = vld [vmem:[#allocation58_spill] sm:$0xff] }
 0x2ba   : > { %v5994_v16 = vrot.slane %v15671_v55, %v14079_v59  ;;  %v6001_v13 = vrot.slane %v5987_v14, %v14079_v59  ;;  %v7604_v51 = vcombine.high %v15624_v27, %v15624_v27  ;;  %v6299_v52 = vadd.f32 %v5986_v25, %v18673_v19  ;;  %v16408_v55 = vpop.f32.mrb[132].mxu1  ;;  %18676 = vst [vmem:[#allocation136_spill] sm:$0xff] %v16410_v29  ;;  %v18678_v14 = vld [vmem:[#allocation67_spill] sm:$0xff]  ;;  %v18679_v25 = vld [vmem:[#allocation152_spill] sm:$0xff] }
 0x2bb   : > { %18671 = vst [vmem:[#allocation35_spill] sm:$0xff] %v16392_v26  ;;  %v16401_v57 = vadd.f32 %v7594_v56, %v6297_v21  ;;  %v16403_v4 = vadd.f32 %v7602_v37, %v6298_v33  ;;  %v7611_v9 = vrot.slane %v15624_v27, %v14079_v59  ;;  %v18680_v21 = vcombine.high %v18679_v25, %v18679_v25  ;;  %v18681_v37 = vld [vmem:[#allocation52_spill] sm:$0xff] }
 0x2bc   : > { %v6002_v61 = vcombine.high %v5994_v16, %v5994_v16  ;;  %v6003_v32 = vcombine.high %v6001_v13, %v6001_v13  ;;  %v6300_v48 = vadd.f32 %v5994_v16, %v5682_v63  ;;  %v7618_v35 = vrot.slane %v7604_v51, %v14079_v59  ;;  %v18685_v16 = vld [vmem:[#allocation56_spill] sm:$0xff]  ;;  %v18687_v51 = vld [vmem:[#allocation57_spill] sm:$0xff] }
 0x2bd   : > { %18674 = vst [vmem:[#allocation36_spill] sm:$0xff] %v16401_v57  ;;  %18675 = vst [vmem:[#allocation138_spill] sm:$0xff] %v16403_v4  ;;  %v16412_v54 = vadd.f32 %v7601_v38, %v6299_v52  ;;  %v4863_v56 = vadd.f32 %v18680_v21, %v18678_v14  ;;  %v18682_v33 = vrot.slane %v18681_v37, 7  ;;  %v18684_v27 = vrot.slane %v18683_v3, 2  ;;  %v12123_v52 = vpop.f32.mrb[133].mxu1  ;;  %v18689_v4 = vld [vmem:[#allocation61_spill] sm:$0xff] }
 0x2be   : > { %v18686_v13 = vrot.slane %v18685_v16, 7  ;;  %v18688_v19 = vrot.slane %v18687_v51, 2  ;;  %v6302_v57 = vadd.f32 %v6003_v32, %v18689_v4  ;;  %v16431_v25 = vadd.f32 %v7603_v28, %v6300_v48  ;;  %v18691_v14 = vld [vmem:[#allocation59_spill] sm:$0xff]  ;;  %v16434_v3 = vpop.f32.mrb[134].mxu1  ;;  %v18693_v16 = vld [vmem:[#allocation81_spill] sm:$0xff]  ;;  %v18696_v28 = vld [vmem:[#allocation32_spill] sm:$0xff] }
 0x2bf   : > { %18677 = vst [vmem:[#allocation137_spill] sm:$0xff] %v16412_v54  ;;  %v5460_v63 = vsel %vm14372_vm7, %v18684_v27, %v18682_v33  ;;  %v12175_v54 = vpop.f32.mrb[129].mxu0  ;;  %v6301_v21 = vadd.f32 %v6002_v61, %v18691_v14  ;;  %v7619_v37 = vcombine.high %v7618_v35, %v7618_v35  ;;  %v18692_v33 = vld [vmem:[#allocation27_spill] sm:$0xff]  ;;  %v6004_v51 = vcombine.high %v18693_v16, %v18693_v16  ;;  %v18698_v52 = vld [vmem:[#allocation66_spill] sm:$0xff] }
 0x2c0   : > { %v5466_v38 = vsel %vm14372_vm7, %v18688_v19, %v18686_v13  ;;  %18690 = vst [vmem:[#allocation140_spill] sm:$0xff] %v16431_v25  ;;  %v5685_v26 = vadd.f32 %v5460_v63, %v4863_v56  ;;  %v6011_v13 = vrot.slane %v18693_v16, %v14079_v59  ;;  %v12124_v19 = vpop.f32.mrb[135].mxu1  ;;  %v16443_v4 = vadd.f32 %v7618_v35, %v6302_v57  ;;  %v18700_v57 = vld [vmem:[#allocation60_spill] sm:$0xff]  ;;  %v18702_v16 = vld [vmem:[#allocation17_spill] sm:$0xff] }
 0x2c1   : > { %v5687_v27 = vadd.f32 %v5466_v38, %v18692_v33  ;;  %v16441_v54 = vadd.f32 %v7611_v9, %v6301_v21  ;;  %v7620_v61 = vcombine.high %v18696_v28, %v18696_v28  ;;  %v7627_v32 = vrot.slane %v18696_v28, %v14079_v59  ;;  %v18697_v38 = vld [vmem:[#allocation74_spill] sm:$0xff]  ;;  %v18704_v28 = vld [vmem:[#allocation64_spill] sm:$0xff] }
 0x2c2   : > { %18695 = vst [vmem:[#allocation43_spill] sm:$0xff] %v16443_v4  ;;  %v6018_v48 = vrot.slane %v6004_v51, %v14079_v59  ;;  %v6019_v56 = vcombine.high %v6011_v13, %v6011_v13  ;;  %v6303_v63 = vadd.f32 %v6011_v13, %v5685_v26  ;;  %v18699_v14 = vcombine.high %v18698_v52, %v18698_v52  ;;  %v18706_v51 = vld [vmem:[#allocation154_spill] sm:$0xff] }
 0x2c3   : > { %18694 = vst [vmem:[#allocation143_spill] sm:$0xff] %v16441_v54  ;;  %v7634_v9 = vrot.slane %v7620_v61, %v14079_v59  ;;  %v7635_v21 = vcombine.high %v7627_v32, %v7627_v32  ;;  %v18701_v35 = vrot.slane %v18700_v57, 7  ;;  %v18703_v19 = vrot.slane %v18702_v16, 2  ;;  %v18708_v61 = vld [vmem:[#allocation68_spill] sm:$0xff] }
 0x2c4   : > { %v4867_v33 = vadd.f32 %v18699_v14, %v18697_v38  ;;  %v18705_v54 = vrot.slane %v18704_v28, 7  ;;  %v18707_v25 = vrot.slane %v18706_v51, 2  ;;  %v6020_v13 = vcombine.high %v6018_v48, %v6018_v48 }
 0x2c5   : > { %v5472_v4 = vsel %vm14372_vm7, %v18703_v19, %v18701_v35  ;;  %v6305_v52 = vadd.f32 %v6018_v48, %v5687_v27  ;;  %v16467_v38 = vadd.f32 %v7619_v37, %v6303_v63  ;;  %v6304_v14 = vadd.f32 %v6019_v56, %v18708_v61  ;;  %v18710_v19 = vld [vmem:[#allocation153_spill] sm:$0xff]  ;;  %v18712_v27 = vld [vmem:[#allocation80_spill] sm:$0xff] }
 0x2c6   : > { %v5478_v26 = vsel %vm14372_vm7, %v18707_v25, %v18705_v54  ;;  %v7636_v29 = vcombine.high %v7634_v9, %v7634_v9  ;;  %v5689_v57 = vadd.f32 %v5472_v4, %v4867_v33  ;;  %v6021_v35 = vcombine.high %v15734_v62, %v15734_v62  ;;  %v18713_v4 = vld [vmem:[#allocation62_spill] sm:$0xff]  ;;  %v18715_v56 = vld [vmem:[#allocation156_spill] sm:$0xff] }
 0x2c7   : > { %v5691_v16 = vadd.f32 %v5478_v26, %v18709_v50  ;;  %v6306_v28 = vadd.f32 %v6020_v13, %v18710_v19  ;;  %v16474_v22 = vadd.f32 %v7627_v32, %v6304_v14  ;;  %v16476_v51 = vadd.f32 %v7635_v21, %v6305_v52  ;;  %v18716_v26 = vld [vmem:[#allocation65_spill] sm:$0xff]  ;;  %v18718_v13 = vld [vmem:[#allocation155_spill] sm:$0xff] }
 0x2c8   : > { %v6028_v25 = vrot.slane %v15734_v62, %v14079_v59  ;;  %v6035_v37 = vrot.slane %v6021_v35, %v14079_v59  ;;  %v7637_v54 = vcombine.high %v18712_v27, %v18712_v27  ;;  %v7644_v50 = vrot.slane %v18712_v27, %v14079_v59  ;;  %v18720_v27 = vld [vmem:[#allocation69_spill] sm:$0xff] }
 0x2c9   : > { %18711 = vst [vmem:[#allocation145_spill] sm:$0xff] %v16476_v51  ;;  %v18714_v48 = vrot.slane %v18713_v4, 7  ;;  %v16490_v63 = vadd.f32 %v7634_v9, %v6306_v28  ;;  %v18717_v62 = vrot.slane %v18716_v26, 7  ;;  %v18719_v52 = vrot.slane %v18718_v13, 2  ;;  %v18722_v28 = vld [vmem:[#allocation75_spill] sm:$0xff] }
 0x2ca   : > { %v6036_v33 = vcombine.high %v6028_v25, %v6028_v25  ;;  %v6307_v21 = vadd.f32 %v6028_v25, %v5689_v57  ;;  %v6309_v14 = vadd.f32 %v6035_v37, %v5691_v16  ;;  %v7651_v35 = vrot.slane %v7637_v54, %v14079_v59 }
 0x2cb   : > { %v5482_v32 = vsel %vm14372_vm7, %v18715_v56, %v18714_v48  ;;  %v5488_v61 = vsel %vm14372_vm7, %v18719_v52, %v18717_v62  ;;  %v7652_v19 = vcombine.high %v7644_v50, %v7644_v50  ;;  %v18721_v48 = vld [vmem:[#allocation73_spill] sm:$0xff]  ;;  %v6037_v57 = vcombine.high %v15754_v1, %v15754_v1 }
 0x2cc   : > { %v5692_v4 = vadd.f32 %v5482_v32, %v18720_v27  ;;  %v16500_v51 = vadd.f32 %v7636_v29, %v6307_v21  ;;  %v6308_v9 = vadd.f32 %v6036_v33, %v18721_v48  ;;  %v5694_v56 = vadd.f32 %v5488_v61, %v18722_v28  ;;  %v18725_v33 = vld [vmem:[#allocation88_spill] sm:$0xff] }
 0x2cd   : > { %v7653_v25 = vcombine.high %v7651_v35, %v7651_v35  ;;  %v16506_v26 = vadd.f32 %v7652_v19, %v6309_v14  ;;  %v6044_v16 = vrot.slane %v15754_v1, %v14079_v59  ;;  %v7654_v37 = vcombine.high %v15710_v45, %v15710_v45  ;;  %v18726_v21 = vld [vmem:[#allocation72_spill] sm:$0xff]  ;;  %v18728_v1 = vld [vmem:[#allocation33_spill] sm:$0xff]  ;;  %v18730_v19 = vld [vmem:[#allocation70_spill] sm:$0xff] }
 0x2ce   : > { %v16512_v54 = vadd.f32 %v7644_v50, %v6308_v9  ;;  %v6051_v29 = vrot.slane %v6037_v57, %v14079_v59  ;;  %v7661_v32 = vrot.slane %v15710_v45, %v14079_v59  ;;  %v18727_v62 = vcombine.high %v18726_v21, %v18726_v21  ;;  %v18732_v45 = vld [vmem:[#allocation77_spill] sm:$0xff] }
 0x2cf   : > { %18723 = vst [vmem:[#allocation141_spill] sm:$0xff] %v16506_v26  ;;  %v6052_v52 = vcombine.high %v6044_v16, %v6044_v16  ;;  %v6310_v61 = vadd.f32 %v6044_v16, %v5692_v4  ;;  %v7668_v14 = vrot.slane %v7654_v37, %v14079_v59  ;;  %v18729_v35 = vrot.slane %v18728_v1, 7  ;;  %v18735_v16 = vld [vmem:[#allocation76_spill] sm:$0xff]  ;;  %v18736_v1 = vld [vmem:[#allocation78_spill] sm:$0xff] }
 0x2d0   : > { %18724 = vst [vmem:[#allocation38_spill] sm:$0xff] %v16512_v54  ;;  %v4874_v13 = vadd.f32 %v18727_v62, %v18725_v33  ;;  %v18731_v27 = vrot.slane %v18730_v19, 2  ;;  %v6053_v48 = vcombine.high %v6051_v29, %v6051_v29  ;;  %v6312_v9 = vadd.f32 %v6051_v29, %v5694_v56 }
 0x2d1   : > { %v7669_v28 = vcombine.high %v7661_v32, %v7661_v32  ;;  %v18733_v57 = vrot.slane %v18732_v45, 7  ;;  %v18734_v26 = vrot.slane %v15684_v30, 2  ;;  %v16534_v4 = vadd.f32 %v7653_v25, %v6310_v61  ;;  %v18737_v25 = vld [vmem:[#allocation79_spill] sm:$0xff] }
 0x2d2   : > { %v5494_v50 = vsel %vm14372_vm7, %v18731_v27, %v18729_v35  ;;  %v6311_v37 = vadd.f32 %v6052_v52, %v18735_v16  ;;  %v7670_v21 = vcombine.high %v7668_v14, %v7668_v14  ;;  %v6313_v19 = vadd.f32 %v6053_v48, %v18736_v1  ;;  %v16555_v27 = vpop.f32.mrb[130].mxu0 }
 0x2d3   : > { %v5500_v33 = vsel %vm14372_vm7, %v18734_v26, %v18733_v57  ;;  %v5696_v62 = vadd.f32 %v5494_v50, %v4874_v13  ;;  %v16538_v54 = vadd.f32 %v7669_v28, %v6312_v9  ;;  %v6054_v29 = vcombine.high %v15809_v12, %v15809_v12  ;;  %v12176_v48 = vpop.f32.mrb[131].mxu0 }
 0x2d4   : > { %v5698_v56 = vadd.f32 %v5500_v33, %v15747_v31  ;;  %v16543_v35 = vadd.f32 %v7661_v32, %v6311_v37  ;;  %v6061_v30 = vrot.slane %v15809_v12, %v14079_v59  ;;  %v18738_v26 = vrot.slane %v18737_v25, 7 }
 0x2d5   : > { %v18739_v52 = vrot.slane %v15691_v24, 2  ;;  %v6071_v61 = vcombine.high %v15821_v5, %v15821_v5  ;;  %v16557_v31 = vadd.f32 %v7668_v14, %v6313_v19  ;;  %v6068_v32 = vrot.slane %v6054_v29, %v14079_v59  ;;  %v16571_v19 = vpop.f32.mrb[136].mxu1 }
 0x2d6   : > { %v6078_v12 = vrot.slane %v15821_v5, %v14079_v59  ;;  %v6069_v9 = vcombine.high %v6061_v30, %v6061_v30  ;;  %v6314_v24 = vadd.f32 %v6061_v30, %v5696_v62  ;;  %v7671_v45 = vcombine.high %v15762_v47, %v15762_v47 }
 0x2d7   : > { %v5510_v13 = vsel %vm14372_vm7, %v18739_v52, %v18738_v26  ;;  %v6085_v28 = vrot.slane %v6071_v61, %v14079_v59  ;;  %v6070_v57 = vcombine.high %v6068_v32, %v6068_v32  ;;  %v6316_v33 = vadd.f32 %v6068_v32, %v5698_v56  ;;  %v12127_v56 = vpop.f32.mrb[137].mxu1  ;;  %v18740_v52 = vld [vmem:[#allocation86_spill] sm:$0xff]  ;;  %v16585_v32 = vpop.f32.mrb[132].mxu0 }
 0x2d8   : > { %v5701_v50 = vadd.f32 %v5510_v13, %v15779_v17  ;;  %v6086_v16 = vcombine.high %v6078_v12, %v6078_v12  ;;  %v7678_v14 = vrot.slane %v15762_v47, %v14079_v59  ;;  %v16568_v37 = vadd.f32 %v7670_v21, %v6314_v24  ;;  %v18741_v21 = vld [vmem:[#allocation84_spill] sm:$0xff]  ;;  %v16583_v61 = vpop.f32.mrb[138].mxu1  ;;  %v18744_v12 = vld [vmem:[#allocation82_spill] sm:$0xff] }
 0x2d9   : > { %v6087_v17 = vcombine.high %v6085_v28, %v6085_v28  ;;  %v6315_v5 = vadd.f32 %v6069_v9, %v15749_v15  ;;  %v6317_v29 = vadd.f32 %v6070_v57, %v15764_v44  ;;  %v7685_v30 = vrot.slane %v7671_v45, %v14079_v59  ;;  %v18746_v24 = vld [vmem:[#allocation18_spill] sm:$0xff]  ;;  %v18748_v45 = vld [vmem:[#allocation83_spill] sm:$0xff] }
 0x2da   : > { %v6319_v1 = vadd.f32 %v6085_v28, %v5701_v50  ;;  %v6318_v62 = vadd.f32 %v6086_v16, %v15782_v53  ;;  %v7686_v25 = vcombine.high %v7678_v14, %v7678_v14  ;;  %v7687_v13 = vcombine.high %v18741_v21, %v18741_v21  ;;  %v18743_v50 = vld [vmem:[#allocation95_spill] sm:$0xff] }
 0x2db   : > { %v16576_v26 = vadd.f32 %v7678_v14, %v6315_v5  ;;  %v6320_v47 = vadd.f32 %v6087_v17, %v18740_v52  ;;  %v7694_v15 = vrot.slane %v18741_v21, %v14079_v59  ;;  %v16589_v44 = vadd.f32 %v7685_v30, %v6317_v29  ;;  %v12128_v14 = vpop.f32.mrb[139].mxu1  ;;  %v12179_v17 = vpop.f32.mrb[133].mxu0  ;;  %v18751_v29 = vld [vmem:[#allocation85_spill] sm:$0xff] }
 0x2dc   : > { %v16587_v53 = vadd.f32 %v7686_v25, %v6316_v33  ;;  %v18745_v48 = vcombine.high %v18744_v12, %v18744_v12  ;;  %v18747_v28 = vrot.slane %v18746_v24, 7  ;;  %v18749_v57 = vrot.slane %v18748_v45, 2  ;;  %v16610_v21 = vpop.f32.mrb[134].mxu0  ;;  %v18757_v17 = vld [vmem:[#allocation98_spill] sm:$0xff] }
 0x2dd   : > { %18742 = vst [vmem:[#allocation142_spill] sm:$0xff] %v16589_v44  ;;  %v7701_v5 = vrot.slane %v7687_v13, %v14079_v59  ;;  %v7702_v33 = vcombine.high %v7694_v15, %v7694_v15  ;;  %v16602_v25 = vadd.f32 %v7694_v15, %v6318_v62  ;;  %v18752_v30 = vrot.slane %v18751_v29, 7  ;;  %v12180_v62 = vpop.f32.mrb[135].mxu0  ;;  %v18769_v44 = vld [vmem:[#allocation21_spill] sm:$0xff] }
 0x2de   : > { %v4881_v9 = vadd.f32 %v18745_v48, %v18743_v50  ;;  %v5516_v16 = vsel %vm14372_vm7, %v18749_v57, %v18747_v28  ;;  %v18753_v56 = vrot.slane %v15806_v20, 2  ;;  %v6088_v48 = vcombine.high %v15873_v11, %v15873_v11  ;;  %v18756_v20 = vld [vmem:[#allocation90_spill] sm:$0xff] }
 0x2df   : > { %18750 = vst [vmem:[#allocation37_spill] sm:$0xff] %v16602_v25  ;;  %v6095_v13 = vrot.slane %v15873_v11, %v14079_v59  ;;  %v7703_v15 = vcombine.high %v7701_v5, %v7701_v5  ;;  %v16617_v24 = vadd.f32 %v7702_v33, %v6319_v1  ;;  %v16619_v28 = vadd.f32 %v7701_v5, %v6320_v47  ;;  %v18758_v11 = vld [vmem:[#allocation20_spill] sm:$0xff]  ;;  %v18760_v33 = vld [vmem:[#allocation19_spill] sm:$0xff] }
 0x2e0   : > { %v5522_v52 = vsel %vm14372_vm7, %v18753_v56, %v18752_v30  ;;  %v5703_v50 = vadd.f32 %v5516_v16, %v4881_v9  ;;  %v7704_v45 = vcombine.high %v18756_v20, %v18756_v20  ;;  %v6102_v57 = vrot.slane %v6088_v48, %v14079_v59  ;;  %v18762_v5 = vld [vmem:[#allocation87_spill] sm:$0xff]  ;;  %v16639_v48 = vpop.f32.mrb[140].mxu1 }
 0x2e1   : > { %v5705_v12 = vadd.f32 %v5522_v52, %v15864_v6  ;;  %18754 = vst [vmem:[#allocation39_spill] sm:$0xff] %v16617_v24  ;;  %18755 = vst [vmem:[#allocation44_spill] sm:$0xff] %v16619_v28  ;;  %v6103_v9 = vcombine.high %v6095_v13, %v6095_v13  ;;  %v7711_v6 = vrot.slane %v18756_v20, %v14079_v59  ;;  %v18761_v47 = vrot.slane %v18760_v33, 7  ;;  %v18764_v52 = vld [vmem:[#allocation22_spill] sm:$0xff]  ;;  %v18767_v24 = vld [vmem:[#allocation92_spill] sm:$0xff] }
 0x2e2   : > { %v6321_v16 = vadd.f32 %v6095_v13, %v5703_v50  ;;  %v7718_v14 = vrot.slane %v7704_v45, %v14079_v59  ;;  %v18759_v29 = vcombine.high %v18758_v11, %v18758_v11  ;;  %v18763_v30 = vrot.slane %v18762_v5, 2  ;;  %v18766_v45 = vld [vmem:[#allocation93_spill] sm:$0xff]  ;;  %v12131_v11 = vpop.f32.mrb[141].mxu1 }
 0x2e3   : > { %v6105_v50 = vcombine.high %v18764_v52, %v18764_v52  ;;  %v6104_v13 = vcombine.high %v6102_v57, %v6102_v57  ;;  %v6323_v62 = vadd.f32 %v6102_v57, %v5705_v12  ;;  %v6322_v28 = vadd.f32 %v6103_v9, %v18766_v45  ;;  %v18777_v11 = vld [vmem:[#allocation91_spill] sm:$0xff] }
 0x2e4   : > { %v4885_v1 = vadd.f32 %v18759_v29, %v18757_v17  ;;  %v5528_v56 = vsel %vm14372_vm7, %v18763_v30, %v18761_v47  ;;  %v16641_v20 = vadd.f32 %v7703_v15, %v6321_v16  ;;  %v7719_v17 = vcombine.high %v7711_v6, %v7711_v6  ;;  %v18771_v16 = vld [vmem:[#allocation109_spill] sm:$0xff] }
 0x2e5   : > { %v7720_v29 = vcombine.high %v7718_v14, %v7718_v14  ;;  %v6112_v5 = vrot.slane %v18764_v52, %v14079_v59  ;;  %v6324_v47 = vadd.f32 %v6104_v13, %v18767_v24  ;;  %v16647_v30 = vadd.f32 %v7711_v6, %v6322_v28  ;;  %v18775_v28 = vld [vmem:[#allocation103_spill] sm:$0xff] }
 0x2e6   : > { %18765 = vst [vmem:[#allocation40_spill] sm:$0xff] %v16641_v20  ;;  %v5707_v33 = vadd.f32 %v5528_v56, %v4885_v1  ;;  %v6119_v25 = vrot.slane %v6105_v50, %v14079_v59  ;;  %v7721_v12 = vcombine.high %v18769_v44, %v18769_v44  ;;  %v16652_v15 = vadd.f32 %v7719_v17, %v6323_v62  ;;  %v18772_v1 = vld [vmem:[#allocation94_spill] sm:$0xff] }
 0x2e7   : > { %18768 = vst [vmem:[#allocation51_spill] sm:$0xff] %v16647_v30  ;;  %v7728_v9 = vrot.slane %v18769_v44, %v14079_v59  ;;  %v18773_v56 = vcombine.high %v18772_v1, %v18772_v1  ;;  %v16660_v45 = vadd.f32 %v7718_v14, %v6324_v47  ;;  %v18778_v17 = vrot.slane %v18777_v11, 7  ;;  %v18787_v11 = vld [vmem:[#allocation107_spill] sm:$0xff] }
 0x2e8   : > { %18770 = vst [vmem:[#allocation41_spill] sm:$0xff] %v16652_v15  ;;  %v6325_v57 = vadd.f32 %v6112_v5, %v5707_v33  ;;  %v6120_v24 = vcombine.high %v6119_v25, %v6119_v25  ;;  %v6326_v6 = vadd.f32 %v6119_v25, %v18775_v28  ;;  %v7735_v50 = vrot.slane %v7721_v12, %v14079_v59  ;;  %v18779_v33 = vld [vmem:[#allocation89_spill] sm:$0xff]  ;;  %v18781_v15 = vld [vmem:[#allocation99_spill] sm:$0xff]  ;;  %v18785_v25 = vld [vmem:[#allocation102_spill] sm:$0xff] }
 0x2e9   : > { %v4888_v52 = vadd.f32 %v18773_v56, %v18771_v16  ;;  %18774 = vst [vmem:[#allocation42_spill] sm:$0xff] %v16660_v45  ;;  %v7736_v62 = vcombine.high %v7728_v9, %v7728_v9  ;;  %v18780_v5 = vrot.slane %v18779_v33, 2  ;;  %v18782_v1 = vrot.slane %v18781_v15, 7  ;;  %v18783_v16 = vld [vmem:[#allocation158_spill] sm:$0xff]  ;;  %v16680_v9 = vpop.f32.mrb[142].mxu1  ;;  %v18788_v33 = vld [vmem:[#allocation97_spill] sm:$0xff] }
 0x2ea   : > { %v16664_v13 = vadd.f32 %v7720_v29, %v6325_v57  ;;  %v18784_v14 = vrot.slane %v18783_v16, 2  ;;  %v6327_v56 = vadd.f32 %v6120_v24, %v18785_v25  ;;  %v7737_v12 = vcombine.high %v7735_v50, %v7735_v50  ;;  %v18800_v45 = vld [vmem:[#allocation157_spill] sm:$0xff] }
 0x2eb   : > { %v5538_v44 = vsel %vm14372_vm7, %v18780_v5, %v18778_v17  ;;  %v16682_v28 = vadd.f32 %v7736_v62, %v6326_v6  ;;  %v6121_v17 = vcombine.high %v18787_v11, %v18787_v11  ;;  %v6128_v15 = vrot.slane %v18787_v11, %v14079_v59  ;;  %v18792_v62 = vld [vmem:[#allocation96_spill] sm:$0xff]  ;;  %v16704_v11 = vpop.f32.mrb[136].mxu0 }
 0x2ec   : > { %18776 = vst [vmem:[#allocation144_spill] sm:$0xff] %v16664_v13  ;;  %v5544_v47 = vsel %vm14372_vm7, %v18784_v14, %v18782_v1  ;;  %v5710_v29 = vadd.f32 %v5538_v44, %v4888_v52  ;;  %v7738_v5 = vcombine.high %v18788_v33, %v18788_v33  ;;  %v12132_v1 = vpop.f32.mrb[143].mxu1  ;;  %v16690_v16 = vadd.f32 %v7735_v50, %v6327_v56  ;;  %v18794_v14 = vld [vmem:[#allocation159_spill] sm:$0xff] }
 0x2ed   : > { %v5712_v57 = vadd.f32 %v5544_v47, %v15989_v10  ;;  %18786 = vst [vmem:[#allocation146_spill] sm:$0xff] %v16682_v28  ;;  %v7745_v52 = vrot.slane %v18788_v33, %v14079_v59  ;;  %v18790_v10 = vld [vmem:[#allocation111_spill] sm:$0xff]  ;;  %v18791_v24 = vcombine.high %v15968_v36, %v15968_v36  ;;  %v18793_v44 = vrot.slane %v18792_v62, 7  ;;  %v18796_v36 = vld [vmem:[#allocation24_spill] sm:$0xff] }
 0x2ee   : > { %18789 = vst [vmem:[#allocation147_spill] sm:$0xff] %v16690_v16  ;;  %v18795_v47 = vrot.slane %v18794_v14, 2  ;;  %v6135_v50 = vrot.slane %v6121_v17, %v14079_v59  ;;  %v6136_v56 = vcombine.high %v6128_v15, %v6128_v15  ;;  %v6328_v1 = vadd.f32 %v6128_v15, %v5710_v29  ;;  %v12183_v16 = vpop.f32.mrb[137].mxu0 }
 0x2ef   : > { %v4892_v6 = vadd.f32 %v18791_v24, %v18790_v10  ;;  %v7752_v33 = vrot.slane %v7738_v5, %v14079_v59  ;;  %v7753_v28 = vcombine.high %v7745_v52, %v7745_v52  ;;  %v6138_v10 = vcombine.high %v18796_v36, %v18796_v36 }
 0x2f0   : > { %v5550_v25 = vsel %vm14372_vm7, %v18795_v47, %v18793_v44  ;;  %v6145_v24 = vrot.slane %v18796_v36, %v14079_v59  ;;  %v6137_v62 = vcombine.high %v6135_v50, %v6135_v50  ;;  %v6330_v14 = vadd.f32 %v6135_v50, %v5712_v57 }
 0x2f1   : > { %v5714_v13 = vadd.f32 %v5550_v25, %v4892_v6  ;;  %v16712_v44 = vadd.f32 %v7737_v12, %v6328_v1  ;;  %v6329_v47 = vadd.f32 %v6136_v56, %v15999_v2  ;;  %v7754_v17 = vcombine.high %v7752_v33, %v7752_v33  ;;  %v18805_v56 = vld [vmem:[#allocation101_spill] sm:$0xff] }
 0x2f2   : > { %v6152_v29 = vrot.slane %v6138_v10, %v14079_v59  ;;  %v6153_v15 = vcombine.high %v6145_v24, %v6145_v24  ;;  %v6331_v16 = vadd.f32 %v6137_v62, %v16001_v40  ;;  %v16719_v25 = vadd.f32 %v7753_v28, %v6330_v14  ;;  %v18803_v40 = vld [vmem:[#allocation121_spill] sm:$0xff]  ;;  %v18807_v10 = vld [vmem:[#allocation106_spill] sm:$0xff] }
 0x2f3   : > { %18797 = vst [vmem:[#allocation55_spill] sm:$0xff] %v16712_v44  ;;  %v6332_v5 = vadd.f32 %v6145_v24, %v5714_v13  ;;  %v16717_v6 = vadd.f32 %v7745_v52, %v6329_v47  ;;  %v7755_v36 = vcombine.high %v18800_v45, %v18800_v45  ;;  %v7762_v2 = vrot.slane %v18800_v45, %v14079_v59  ;;  %v18811_v45 = vld [vmem:[#allocation104_spill] sm:$0xff] }
 0x2f4   : > { %18799 = vst [vmem:[#allocation148_spill] sm:$0xff] %v16719_v25  ;;  %v6154_v30 = vcombine.high %v6152_v29, %v6152_v29  ;;  %v6333_v12 = vadd.f32 %v6153_v15, %v16041_v0  ;;  %v16728_v50 = vadd.f32 %v7752_v33, %v6331_v16  ;;  %v18804_v28 = vcombine.high %v15992_v41, %v15992_v41  ;;  %v18809_v0 = vld [vmem:[#allocation110_spill] sm:$0xff]  ;;  %v18815_v41 = vld [vmem:[#allocation105_spill] sm:$0xff] }
 0x2f5   : > { %18798 = vst [vmem:[#allocation151_spill] sm:$0xff] %v16717_v6  ;;  %v16723_v57 = vadd.f32 %v7754_v17, %v6332_v5  ;;  %v7769_v13 = vrot.slane %v7755_v36, %v14079_v59  ;;  %v18806_v1 = vrot.slane %v18805_v56, 7  ;;  %v18808_v24 = vrot.slane %v18807_v10, 2  ;;  %v18813_v17 = vld [vmem:[#allocation113_spill] sm:$0xff] }
 0x2f6   : > { %18802 = vst [vmem:[#allocation50_spill] sm:$0xff] %v16728_v50  ;;  %v4895_v52 = vadd.f32 %v18804_v28, %v18803_v40  ;;  %v6334_v14 = vadd.f32 %v6154_v30, %v18809_v0  ;;  %v16742_v47 = vadd.f32 %v7762_v2, %v6333_v12  ;;  %v18812_v33 = vrot.slane %v18811_v45, 7  ;;  %v18817_v2 = vld [vmem:[#allocation25_spill] sm:$0xff] }
 0x2f7   : > { %18801 = vst [vmem:[#allocation46_spill] sm:$0xff] %v16723_v57  ;;  %v5560_v62 = vsel %vm14372_vm7, %v18808_v24, %v18806_v1  ;;  %v18814_v29 = vrot.slane %v18813_v17, 2  ;;  %v6155_v5 = vcombine.high %v18815_v41, %v18815_v41  ;;  %v7770_v16 = vcombine.high %v7769_v13, %v7769_v13  ;;  %v18818_v0 = vld [vmem:[#allocation125_spill] sm:$0xff]  ;;  %v18823_v17 = vld [vmem:[#allocation160_spill] sm:$0xff] }
 0x2f8   : > { %18810 = vst [vmem:[#allocation149_spill] sm:$0xff] %v16742_v47  ;;  %v5717_v36 = vadd.f32 %v5560_v62, %v4895_v52  ;;  %v6162_v28 = vrot.slane %v18815_v41, %v14079_v59  ;;  %v16755_v30 = vadd.f32 %v7769_v13, %v6334_v14  ;;  %v7771_v56 = vcombine.high %v18817_v2, %v18817_v2  ;;  %v18819_v45 = vld [vmem:[#allocation117_spill] sm:$0xff]  ;;  %v18821_v62 = vld [vmem:[#allocation16_spill] sm:$0xff] }
 0x2f9   : > { %v5566_v15 = vsel %vm14372_vm7, %v18814_v29, %v18812_v33  ;;  %v6169_v12 = vrot.slane %v6155_v5, %v14079_v59  ;;  %v7778_v1 = vrot.slane %v18817_v2, %v14079_v59  ;;  %v18820_v52 = vcombine.high %v18819_v45, %v18819_v45  ;;  %v16773_v2 = vpop.f32.mrb[138].mxu0  ;;  %v18827_v45 = vld [vmem:[#allocation108_spill] sm:$0xff]  ;;  %v18833_v57 = vld [vmem:[#allocation29_spill] sm:$0xff] }
 0x2fa   : > { %v5719_v40 = vadd.f32 %v5566_v15, %v16122_v49  ;;  %18816 = vst [vmem:[#allocation45_spill] sm:$0xff] %v16755_v30  ;;  %v6170_v10 = vcombine.high %v6162_v28, %v6162_v28  ;;  %v6335_v24 = vadd.f32 %v6162_v28, %v5717_v36  ;;  %v18822_v33 = vrot.slane %v18821_v62, 7  ;;  %v18826_v28 = vld [vmem:[#allocation119_spill] sm:$0xff] }
 0x2fb   : > { %v4899_v49 = vadd.f32 %v18820_v52, %v18818_v0  ;;  %v18824_v13 = vrot.slane %v18823_v17, 2  ;;  %v6171_v29 = vcombine.high %v6169_v12, %v6169_v12  ;;  %v7785_v41 = vrot.slane %v7771_v56, %v14079_v59  ;;  %v18829_v52 = vld [vmem:[#allocation161_spill] sm:$0xff] }
 0x2fc   : > { %v6337_v15 = vadd.f32 %v6169_v12, %v5719_v40  ;;  %v7786_v5 = vcombine.high %v7778_v1, %v7778_v1  ;;  %v16775_v36 = vadd.f32 %v7770_v16, %v6335_v24  ;;  %v6336_v30 = vadd.f32 %v6170_v10, %v18826_v28  ;;  %v18835_v24 = vld [vmem:[#allocation112_spill] sm:$0xff] }
 0x2fd   : > { %v5572_v14 = vsel %vm14372_vm7, %v18824_v13, %v18822_v33  ;;  %v18828_v0 = vrot.slane %v18827_v45, 7  ;;  %v18830_v62 = vrot.slane %v18829_v52, 2  ;;  %v12184_v33 = vpop.f32.mrb[139].mxu0  ;;  %v18831_v13 = vld [vmem:[#allocation116_spill] sm:$0xff]  ;;  %v7787_v12 = vcombine.high %v7785_v41, %v7785_v41 }
 0x2fe   : > { %18825 = vst [vmem:[#allocation23_spill] sm:$0xff] %v16775_v36  ;;  %v5721_v47 = vadd.f32 %v5572_v14, %v4899_v49  ;;  %v6338_v40 = vadd.f32 %v6171_v29, %v18831_v13  ;;  %v16785_v56 = vadd.f32 %v7786_v5, %v6337_v15  ;;  %v16788_v16 = vadd.f32 %v7778_v1, %v6336_v30  ;;  %v18836_v45 = vld [vmem:[#allocation100_spill] sm:$0xff]  ;;  %v18840_v5 = vld [vmem:[#allocation163_spill] sm:$0xff] }
 0x2ff   : > { %v5578_v17 = vsel %vm14372_vm7, %v18830_v62, %v18828_v0  ;;  %v6172_v10 = vcombine.high %v18835_v24, %v18835_v24  ;;  %v6179_v28 = vrot.slane %v18835_v24, %v14079_v59  ;;  %v7788_v0 = vcombine.high %v18836_v45, %v18836_v45  ;;  %v18838_v29 = vld [vmem:[#allocation120_spill] sm:$0xff]  ;;  %v18841_v30 = vld [vmem:[#allocation115_spill] sm:$0xff] }
 0x300   : > { %18832 = vst [vmem:[#allocation48_spill] sm:$0xff] %v16785_v56  ;;  %v5723_v50 = vadd.f32 %v5578_v17, %v18833_v57  ;;  %18834 = vst [vmem:[#allocation63_spill] sm:$0xff] %v16788_v16  ;;  %v16796_v49 = vadd.f32 %v7785_v41, %v6338_v40  ;;  %v7795_v14 = vrot.slane %v18836_v45, %v14079_v59  ;;  %v18839_v15 = vrot.slane %v18838_v29, 7  ;;  %v18844_v24 = vld [vmem:[#allocation123_spill] sm:$0xff] }
 0x301   : > { %v18842_v1 = vrot.slane %v18841_v30, 7  ;;  %v18843_v52 = vrot.slane %v16163_v34, 2  ;;  %v6186_v17 = vrot.slane %v6172_v10, %v14079_v59  ;;  %v6187_v41 = vcombine.high %v6179_v28, %v6179_v28  ;;  %v18847_v34 = vld [vmem:[#allocation122_spill] sm:$0xff] }
 0x302   : > { %18837 = vst [vmem:[#allocation47_spill] sm:$0xff] %v16796_v49  ;;  %v5582_v57 = vsel %vm14372_vm7, %v18840_v5, %v18839_v15  ;;  %v6339_v33 = vadd.f32 %v6179_v28, %v5721_v47  ;;  %v7802_v13 = vrot.slane %v7788_v0, %v14079_v59  ;;  %v7803_v40 = vcombine.high %v7795_v14, %v7795_v14  ;;  %v18845_v49 = vld [vmem:[#allocation118_spill] sm:$0xff] }
 0x303   : > { %v5588_v62 = vsel %vm14372_vm7, %v18843_v52, %v18842_v1  ;;  %v5724_v45 = vadd.f32 %v5582_v57, %v18844_v24  ;;  %v6188_v15 = vcombine.high %v18845_v49, %v18845_v49  ;;  %v6341_v5 = vadd.f32 %v6186_v17, %v5723_v50  ;;  %v18848_v28 = vld [vmem:[#allocation114_spill] sm:$0xff]  ;;  %v18851_v50 = vld [vmem:[#allocation139_spill] sm:$0xff] }
 0x304   : > { %v5726_v29 = vadd.f32 %v5588_v62, %v16234_v23  ;;  %v16817_v30 = vadd.f32 %v7787_v12, %v6339_v33  ;;  %v6340_v56 = vadd.f32 %v6187_v41, %v18847_v34  ;;  %v7804_v1 = vcombine.high %v7802_v13, %v7802_v13  ;;  %v18853_v17 = vld [vmem:[#allocation126_spill] sm:$0xff] }
 0x305   : > { %v6195_v10 = vrot.slane %v18845_v49, %v14079_v59  ;;  %v6202_v47 = vrot.slane %v6188_v15, %v14079_v59  ;;  %v7805_v0 = vcombine.high %v18848_v28, %v18848_v28  ;;  %v7812_v23 = vrot.slane %v18848_v28, %v14079_v59  ;;  %v18855_v49 = vld [vmem:[#allocation129_spill] sm:$0xff] }
 0x306   : > { %18846 = vst [vmem:[#allocation49_spill] sm:$0xff] %v16817_v30  ;;  %v16827_v57 = vadd.f32 %v7795_v14, %v6340_v56  ;;  %v16829_v52 = vadd.f32 %v7803_v40, %v6341_v5  ;;  %v18852_v12 = vcombine.high %v16213_v58, %v16213_v58  ;;  %v18854_v41 = vrot.slane %v18853_v17, 7  ;;  %v18857_v40 = vld [vmem:[#allocation164_spill] sm:$0xff] }
 0x307   : > { %v18856_v33 = vrot.slane %v18855_v49, 2  ;;  %v6203_v24 = vcombine.high %v6195_v10, %v6195_v10  ;;  %v6204_v15 = vcombine.high %v6202_v47, %v6202_v47  ;;  %v6342_v34 = vadd.f32 %v6195_v10, %v5724_v45  ;;  %v18861_v49 = vld [vmem:[#allocation131_spill] sm:$0xff] }
 0x308   : > { %18849 = vst [vmem:[#allocation150_spill] sm:$0xff] %v16827_v57  ;;  %18850 = vst [vmem:[#allocation53_spill] sm:$0xff] %v16829_v52  ;;  %v4906_v62 = vadd.f32 %v18852_v12, %v18851_v50  ;;  %v6344_v28 = vadd.f32 %v6202_v47, %v5726_v29  ;;  %v7819_v56 = vrot.slane %v7805_v0, %v14079_v59  ;;  %v18858_v5 = vrot.slane %v18857_v40, 7  ;;  %v16853_v29 = vpop.f32.mrb[144].mxu1  ;;  %v18863_v0 = vld [vmem:[#allocation26_spill] sm:$0xff] }
 0x309   : > { %v5594_v13 = vsel %vm14372_vm7, %v18856_v33, %v18854_v41  ;;  %v7820_v14 = vcombine.high %v7812_v23, %v7812_v23  ;;  %v18859_v52 = vrot.slane %v16192_v46, 2  ;;  %v16848_v12 = vadd.f32 %v7804_v1, %v6342_v34 }
 0x30a   : > { %v5728_v50 = vadd.f32 %v5594_v13, %v4906_v62  ;;  %v6343_v17 = vadd.f32 %v6203_v24, %v16236_v60  ;;  %v6345_v41 = vadd.f32 %v6204_v15, %v16243_v8  ;;  %v7821_v10 = vcombine.high %v7819_v56, %v7819_v56  ;;  %v12135_v62 = vpop.f32.mrb[145].mxu1  ;;  %v18866_v60 = vld [vmem:[#allocation162_spill] sm:$0xff] }
 0x30b   : > { %v5600_v58 = vsel %vm14372_vm7, %v18859_v52, %v18858_v5  ;;  %18860 = vst [vmem:[#allocation54_spill] sm:$0xff] %v16848_v12  ;;  %v16855_v47 = vadd.f32 %v7820_v14, %v6344_v28  ;;  %v6205_v46 = vcombine.high %v18863_v0, %v18863_v0  ;;  %v6212_v52 = vrot.slane %v18863_v0, %v14079_v59  ;;  %v18867_v28 = vld [vmem:[#allocation30_spill] sm:$0xff]  ;;  %v16880_v62 = vpop.f32.mrb[146].mxu1 }
 0x30c   : > { %v5730_v45 = vadd.f32 %v5600_v58, %v18861_v49  ;;  %v16861_v1 = vadd.f32 %v7812_v23, %v6343_v17  ;;  %v16863_v33 = vadd.f32 %v7819_v56, %v6345_v41  ;;  %v7822_v8 = vcombine.high %v18866_v60, %v18866_v60  ;;  %v18868_v56 = vld [vmem:[#allocation128_spill] sm:$0xff]  ;;  %v18870_v0 = vld [vmem:[#allocation130_spill] sm:$0xff] }
 0x30d   : > { %18862 = vst [vmem:[#allocation67_spill] sm:$0xff] %v16855_v47  ;;  %v7829_v13 = vrot.slane %v18866_v60, %v14079_v59  ;;  %v6219_v24 = vrot.slane %v6205_v46, %v14079_v59  ;;  %v6220_v15 = vcombine.high %v6212_v52, %v6212_v52  ;;  %v6346_v34 = vadd.f32 %v6212_v52, %v5728_v50 }
 0x30e   : > { %18864 = vst [vmem:[#allocation152_spill] sm:$0xff] %v16861_v1  ;;  %18865 = vst [vmem:[#allocation52_spill] sm:$0xff] %v16863_v33  ;;  %v8154_v14 = vcombine.high %v18867_v28, %v18867_v28  ;;  %v7836_v40 = vrot.slane %v7822_v8, %v14079_v59  ;;  %v8161_v23 = vrot.slane %v18867_v28, %v14079_v59  ;;  %v12136_v33 = vpop.f32.mrb[147].mxu1  ;;  %v18871_v28 = vld [vmem:[#allocation31_spill] sm:$0xff] }
 0x30f   : > { %v7837_v5 = vcombine.high %v7829_v13, %v7829_v13  ;;  %v8171_v58 = vcombine.high %v18868_v56, %v18868_v56  ;;  %v6221_v17 = vcombine.high %v6219_v24, %v6219_v24  ;;  %v6348_v41 = vadd.f32 %v6219_v24, %v5730_v45 }
 0x310   : > { %v16877_v49 = vadd.f32 %v7821_v10, %v6346_v34  ;;  %v6347_v46 = vadd.f32 %v6220_v15, %v18870_v0  ;;  %v8168_v50 = vrot.slane %v8154_v14, %v14079_v59  ;;  %v8169_v52 = vcombine.high %v8161_v23, %v8161_v23 }
 0x311   : > { %v11494_v60 = vrot.slane %v8161_v23, 9  ;;  %v8178_v8 = vrot.slane %v18868_v56, %v14079_v59  ;;  %v6349_v47 = vadd.f32 %v6221_v17, %v18871_v28  ;;  %v16888_v12 = vadd.f32 %v7837_v5, %v6348_v41  ;;  %v16893_v17 = vpop.f32.mrb[140].mxu0 }
 0x312   : > { %18869 = vst [vmem:[#allocation58_spill] sm:$0xff] %v16877_v49  ;;  %v16886_v1 = vadd.f32 %v7829_v13, %v6347_v46  ;;  %v8185_v45 = vrot.slane %v8171_v58, %v14079_v59  ;;  %v8170_v10 = vcombine.high %v8168_v50, %v8168_v50  ;;  %v8462_v24 = vrot.slane %v8169_v52, 7  ;;  %v11510_v46 = vld [vmem:[#allocation7] ss:$0 sm:$0xff] }
 0x313   : > { %18873 = vst [vmem:[#allocation57_spill] sm:$0xff] %v16888_v12  ;;  %v8465_v15 = vrot.slane %v8168_v50, 7  ;;  %v8186_v34 = vcombine.high %v8178_v8, %v8178_v8  ;;  %v16891_v0 = vadd.f32 %v7836_v40, %v6349_v47  ;;  %v8471_v23 = vrot.slane %v8178_v8, 7  ;;  %v12187_v50 = vpop.f32.mrb[141].mxu0 }
 0x314   : > { %18872 = vst [vmem:[#allocation56_spill] sm:$0xff] %v16886_v1  ;;  %v8187_v14 = vcombine.high %v8185_v45, %v8185_v45  ;;  %v8477_v49 = vrot.slane %v8185_v45, 7  ;;  %v8464_v57 = vrot.slane %v8462_v24, 2  ;;  %v8468_v33 = vrot.slane %v8170_v10, 7 }
 0x315   : > { %18874 = vst [vmem:[#allocation61_spill] sm:$0xff] %v16891_v0  ;;  %v8467_v56 = vrot.slane %v8465_v15, 2  ;;  %v8474_v30 = vrot.slane %v8186_v34, 7  ;;  %v8473_v13 = vrot.slane %v8471_v23, 2  ;;  %v8463_v58 = vsel %vm14372_vm7, %v11494_v60, %v8462_v24  ;;  %v18875_v34 = vld [vmem:[#allocation28_spill] sm:$0xff] }
 0x316   : > { %v8479_v5 = vrot.slane %v8477_v49, 2  ;;  %v16895_v41 = vrot.slane %v8187_v14, 7  ;;  %v8470_v47 = vrot.slane %v8468_v33, 2  ;;  %v8466_v52 = vsel %vm14372_vm7, %v8464_v57, %v8465_v15 }
 0x317   : > { %v8476_v40 = vrot.slane %v8474_v30, 2  ;;  %v8469_v8 = vsel %vm14372_vm7, %v8467_v56, %v8468_v33  ;;  %v8724_v28 = vadd.f32 %v8463_v58, %v16301_v39  ;;  %v8725_v45 = vadd.f32 %v8466_v52, %v16303_v18  ;;  %v16934_v52 = vpop.f32.mrb[142].mxu0 }
 0x318   : > { %v8726_v10 = vadd.f32 %v8469_v8, %v16310_v7  ;;  %v8976_v14 = vcombine.high %v18875_v34, %v18875_v34  ;;  %v8983_v60 = vrot.slane %v18875_v34, %v14079_v59  ;;  %v9412_v24 = vcombine.high %v11510_v46, %v11510_v46  ;;  %18879 = vst [vmem:[#allocation59_spill] sm:$0xff] %v16934_v52 }
 0x319   : > { %v16911_v50 = vrot.slane %v11510_v46, %v14079_v59  ;;  %v8472_v57 = vsel %vm14372_vm7, %v8470_v47, %v8471_v23  ;;  %v8475_v39 = vsel %vm14372_vm7, %v8473_v13, %v8474_v30  ;;  %v8478_v18 = vsel %vm14372_vm7, %v8476_v40, %v8477_v49  ;;  %v18876_v23 = vld [vmem:[#allocation34_spill] sm:$0xff]  ;;  %v18877_v30 = vld [vmem:[#allocation127_spill] sm:$0xff]  ;;  %v18878_v47 = vld [vmem:[#allocation132_spill] sm:$0xff] }
 0x31a   : > { %v8481_v7 = vsel %vm14372_vm7, %v8479_v5, %v16895_v41  ;;  %v8990_v15 = vrot.slane %v8976_v14, %v14079_v59  ;;  %v8991_v56 = vcombine.high %v8983_v60, %v8983_v60  ;;  %v16924_v33 = vrot.slane %v9412_v24, %v14079_v59  ;;  %v18880_v14 = vld [vmem:[#allocation124_spill] sm:$0xff]  ;;  %v12188_v24 = vpop.f32.mrb[143].mxu0 }
 0x31b   : > { %v16928_v58 = vcombine.high %v16911_v50, %v16911_v50  ;;  %v8727_v46 = vadd.f32 %v8472_v57, %v18876_v23  ;;  %v8728_v13 = vadd.f32 %v8475_v39, %v18877_v30  ;;  %v8729_v49 = vadd.f32 %v8478_v18, %v18878_v47 }
 0x31c   : > { %v8730_v40 = vadd.f32 %v8481_v7, %v16346_v43  ;;  %v8992_v5 = vcombine.high %v8990_v15, %v8990_v15  ;;  %v9342_v8 = vadd.f32 %v8991_v56, %v8724_v28  ;;  %v9343_v34 = vadd.f32 %v8990_v15, %v8725_v45 }
 0x31d   : > { %v8993_v60 = vcombine.high %v18880_v14, %v18880_v14  ;;  %v9000_v57 = vrot.slane %v18880_v14, %v14079_v59  ;;  %v16946_v28 = vcombine.high %v16924_v33, %v16924_v33  ;;  %v18881_v45 = vlaneseq }
 0x31e   : > { %v9344_v23 = vadd.f32 %v8992_v5, %v8726_v10  ;;  %v9433_v39 = vadd.f32 %v16911_v50, %v9342_v8  ;;  %v9434_v18 = vadd.f32 %v16928_v58, %v9343_v34 }
 0x31f   : > { %v9007_v43 = vrot.slane %v8993_v60, %v14079_v59  ;;  %v9008_v7 = vcombine.high %v9000_v57, %v9000_v57  ;;  %v9345_v30 = vadd.f32 %v9000_v57, %v8727_v46  ;;  %v16949_v15 = vand.u32 127, %v18881_v45 }
 0x320   : > { %v9435_v56 = vadd.f32 %v16924_v33, %v9344_v23  ;;  %v9500_v47 = vmul.f32 %v9433_v39, %v9433_v39  ;;  %v9501_v14 = vmul.f32 %v9434_v18, %v9434_v18  ;;  %v10044_v10 = vcombine.low %v9433_v39, %v9434_v18 }
 0x321   : > { %v11511_v5 = vmul.f32 -1.442695, %v9433_v39  ;;  %v11512_v8 = vmul.f32 -1.442695, %v9434_v18  ;;  %v9009_v24 = vcombine.high %v9007_v43, %v9007_v43  ;;  %v9346_v34 = vadd.f32 %v9008_v7, %v8728_v13 }
 0x322   : > { %v9502_v0 = vmul.f32 %v9435_v56, %v9435_v56  ;;  %v9564_v60 = vadd.f32 1.0, %v9500_v47  ;;  %v9565_v12 = vadd.f32 1.0, %v9501_v14  ;;  %v8188_v46 = vcombine.high %v16408_v55, %v16408_v55 }
 0x323   : > { %12427 = vpow2.f32 %v11511_v5  ;;  %v11513_v57 = vmul.f32 -1.442695, %v9435_v56  ;;  %v9347_v1 = vadd.f32 %v9007_v43, %v8729_v49  ;;  %v9348_v45 = vadd.f32 %v9009_v24, %v8730_v40 }
 0x324   : > { %v9692_v16 = vcombine.low %v9564_v60, %v9565_v12  ;;  %12429 = vpow2.f32 %v11512_v8  ;;  %v9436_v23 = vadd.f32 %v16946_v28, %v9345_v30  ;;  %v9437_v36 = vadd.f32 %v16911_v50, %v9346_v34 }
 0x325   : > { %v10052_v39 = vrot.slane %v10044_v10, %v14079_v59  ;;  %12431 = vpow2.f32 %v11513_v57  ;;  %v9438_v13 = vadd.f32 %v16928_v58, %v9347_v1  ;;  %v16959_v18 = vadd.f32 %v16924_v33, %v9348_v45 }
 0x326   : > { %vm9499_vm8 = vcmp.eq.s32.totalorder %v16949_v15, 8  ;;  %v9503_v7 = vmul.f32 %v9436_v23, %v9436_v23  ;;  %v9504_v47 = vmul.f32 %v9437_v36, %v9437_v36  ;;  %v9566_v49 = vadd.f32 1.0, %v9502_v0 }
 0x327   : > { %v10045_v40 = vcombine.low %v9435_v56, %v9436_v23  ;;  %v9700_v12 = vrot.slane %v9692_v16, %v14079_v59  ;;  %v9505_v43 = vmul.f32 %v9438_v13, %v9438_v13  ;;  %v16965_v30 = vmul.f32 %v16959_v18, %v16959_v18 }
 0x328   : > { %v10061_v14 = vcombine.low %v9437_v36, %v9438_v13  ;;  %v9567_v10 = vadd.f32 1.0, %v9503_v7  ;;  %v9568_v5 = vadd.f32 1.0, %v9504_v47  ;;  %v11514_v8 = vmul.f32 -1.442695, %v9436_v23 }
 0x329   : > { %v10059_v1 = vrot.slane %v10045_v40, %v14079_v59  ;;  %v9569_v24 = vadd.f32 1.0, %v9505_v43  ;;  %v11515_v60 = vmul.f32 -1.442695, %v9437_v36  ;;  %v11516_v0 = vmul.f32 -1.442695, %v9438_v13  ;;  %v16975_v40 = vpop.f32.mrb[148].mxu1 }
 0x32a   : > { %v16969_v34 = vrot.slane %v10061_v14, %v14079_v59  ;;  %v9693_v56 = vcombine.low %v9566_v49, %v9567_v10  ;;  %12433 = vpow2.f32 %v11514_v8  ;;  %v11517_v16 = vmul.f32 -1.442695, %v16959_v18  ;;  %18882 = vst [vmem:[#allocation27_spill] sm:$0xff] %v16975_v40  ;;  %v12139_v13 = vpop.f32.mrb[149].mxu1 }
 0x32b   : > { %v10060_v57 = vcombine.low %v10052_v39, %v10059_v1  ;;  %v9709_v45 = vcombine.low %v9568_v5, %v9569_v24  ;;  %12435 = vpow2.f32 %v11515_v60  ;;  %v8195_v7 = vrot.slane %v16408_v55, %v14079_v59 }
 0x32c   : > { %v8202_v47 = vrot.slane %v8188_v46, %v14079_v59  ;;  %v9707_v23 = vrot.slane %v9693_v56, %v14079_v59  ;;  %12437 = vpow2.f32 %v11516_v0  ;;  %v8205_v36 = vcombine.high %v16434_v3, %v16434_v3 }
 0x32d   : > { %v8212_v39 = vrot.slane %v16434_v3, %v14079_v59  ;;  %v12428_v49 = vpop.eup %12427  ;;  %v16983_v43 = vrot.slane %v9709_v45, %v14079_v59  ;;  %12439 = vpow2.f32 %v11517_v16  ;;  %v8203_v55 = vcombine.high %v8195_v7, %v8195_v7 }
 0x32e   : > { %v8204_v14 = vcombine.high %v8202_v47, %v8202_v47  ;;  %v12430_v46 = vpop.eup %12429  ;;  %v10543_v10 = vadd.f32 1.0, %v12428_v49  ;;  %v9708_v5 = vcombine.low %v9700_v12, %v9707_v23  ;;  %v8483_v1 = vrot.slane %v8195_v7, 7 }
 0x32f   : > { %v8487_v8 = vrot.slane %v8202_v47, 7  ;;  %v12432_v24 = vpop.eup %12431  ;;  %v10544_v60 = vadd.f32 1.0, %v12430_v46  ;;  %v11495_v0 = vrot.slane %v8203_v55, 9  ;;  %v8219_v25 = vrot.slane %v8205_v36, %v14079_v59  ;;  %v16994_v36 = vpop.f32.mrb[150].mxu1 }
 0x330   : > { %v8490_v56 = vrot.slane %v8204_v14, 7  ;;  %v10545_v3 = vadd.f32 1.0, %v12432_v24  ;;  %12441 = vrcp.f32 %v10543_v10  ;;  %v16988_v45 = vsel %vm9499_vm8, %v9708_v5, %v10060_v57  ;;  %18884 = vst [vmem:[#allocation81_spill] sm:$0xff] %v16994_v36  ;;  %v12140_v10 = vpop.f32.mrb[151].mxu1  ;;  %v18885_v24 = vld [vmem:[#allocation133_spill] sm:$0xff] }
 0x331   : > { %v8489_v16 = vrot.slane %v8487_v8, 2  ;;  %12443 = vrcp.f32 %v10544_v60  ;;  %v8220_v6 = vcombine.high %v8212_v39, %v8212_v39  ;;  %v8221_v49 = vcombine.high %v8219_v25, %v8219_v25  ;;  %v18886_v60 = vld [vmem:[#allocation135_spill] sm:$0xff] }
 0x332   : > { %v8492_v13 = vrot.slane %v8490_v56, 2  ;;  %12445 = vrcp.f32 %v10545_v3  ;;  %v8493_v12 = vrot.slane %v8212_v39, 7  ;;  %v8499_v7 = vrot.slane %v8219_v25, 7 }
 0x333   : > { %v18883_v47 = vrot.slane %v16895_v41, 2  ;;  %v8496_v55 = vrot.slane %v8220_v6, 7  ;;  %v16996_v14 = vrot.slane %v8221_v49, 7  ;;  %v8488_v57 = vsel %vm14372_vm7, %v11495_v0, %v8487_v8  ;;  %v18887_v49 = vld [vmem:[#allocation134_spill] sm:$0xff]  ;;  %v18888_v0 = vld [vmem:[#allocation136_spill] sm:$0xff] }
 0x334   : > { %v8491_v46 = vsel %vm14372_vm7, %v8489_v16, %v8490_v56  ;;  %v12434_v5 = vpop.eup %12433  ;;  %v8495_v39 = vrot.slane %v8493_v12, 2  ;;  %v8501_v25 = vrot.slane %v8499_v7, 2  ;;  %v8732_v3 = vadd.f32 %v8488_v57, %v18886_v60 }
 0x335   : > { %v8484_v23 = vsel %vm14372_vm7, %v18883_v47, %v8483_v1  ;;  %v12436_v1 = vpop.eup %12435  ;;  %v10546_v47 = vadd.f32 1.0, %v12434_v5  ;;  %v8498_v44 = vrot.slane %v8496_v55, 2  ;;  %v8733_v20 = vadd.f32 %v8491_v46, %v18887_v49 }
 0x336   : > { %v8731_v41 = vadd.f32 %v8484_v23, %v18885_v24  ;;  %v12438_v36 = vpop.eup %12437  ;;  %v10547_v8 = vadd.f32 1.0, %v12436_v1  ;;  %v9010_v56 = vcombine.high %v18888_v0, %v18888_v0  ;;  %v9017_v16 = vrot.slane %v18888_v0, %v14079_v59  ;;  %v17011_v23 = vpop.f32.mrb[144].mxu0 }
 0x337   : > { %v9570_v10 = vadd.f32 1.0, %v16965_v30  ;;  %18889 = vst [vmem:[#allocation32_spill] sm:$0xff] %v17011_v23  ;;  %v12440_v57 = vpop.eup %12439  ;;  %v10548_v24 = vadd.f32 1.0, %v12438_v36  ;;  %12447 = vrcp.f32 %v10546_v47  ;;  %v8494_v5 = vsel %vm14372_vm7, %v8492_v13, %v8493_v12  ;;  %v12191_v60 = vpop.f32.mrb[145].mxu0  ;;  %v18890_v47 = vld [vmem:[#allocation35_spill] sm:$0xff] }
 0x338   : > { %v8497_v46 = vsel %vm14372_vm7, %v8495_v39, %v8496_v55  ;;  %v10549_v1 = vadd.f32 1.0, %v12440_v57  ;;  %12449 = vrcp.f32 %v10547_v8  ;;  %v9024_v49 = vrot.slane %v9010_v56, %v14079_v59  ;;  %v18891_v8 = vld [vmem:[#allocation36_spill] sm:$0xff] }
 0x339   : > { %v9349_v6 = vadd.f32 %v9017_v16, %v8731_v41  ;;  %12451 = vrcp.f32 %v10548_v24  ;;  %v8500_v30 = vsel %vm14372_vm7, %v8498_v44, %v8499_v7  ;;  %v8503_v36 = vsel %vm14372_vm7, %v8501_v25, %v16996_v14  ;;  %v18892_v44 = vld [vmem:[#allocation138_spill] sm:$0xff]  ;;  %v18893_v16 = vld [vmem:[#allocation137_spill] sm:$0xff] }
 0x33a   : > { %v8734_v0 = vadd.f32 %v8494_v5, %v18890_v47  ;;  %v12442_v13 = vpop.eup %12441  ;;  %vm10348_vm9 = vcmp.ge.s32.totalorder %v16949_v15, 9  ;;  %vm10349_vm10 = vcmp.lt.s32.totalorder %v16949_v15, 17  ;;  %12453 = vrcp.f32 %v10549_v1 }
 0x33b   : > { %v9025_v12 = vcombine.high %v9024_v49, %v9024_v49  ;;  %v9350_v55 = vadd.f32 %v9024_v49, %v8732_v3  ;;  %v9440_v39 = vadd.f32 %v16946_v28, %v9349_v6  ;;  %v12444_v41 = vpop.eup %12443  ;;  %v8735_v56 = vadd.f32 %v8497_v46, %v18891_v8  ;;  %vm17058_vm11 = vmand %vm10348_vm9, %vm10349_vm10 }
 0x33c   : > { %v8736_v7 = vadd.f32 %v8500_v30, %v18892_v44  ;;  %v8737_v57 = vadd.f32 %v8503_v36, %v18893_v16  ;;  %v9026_v25 = vcombine.high %v16555_v27, %v16555_v27  ;;  %v12446_v24 = vpop.eup %12445  ;;  %v10799_v5 = vcombine.low %v12442_v13, %v12444_v41 }
 0x33d   : > { %v9351_v60 = vadd.f32 %v9025_v12, %v8733_v20  ;;  %v9441_v1 = vadd.f32 %v16911_v50, %v9350_v55  ;;  %v9507_v47 = vmul.f32 %v9440_v39, %v9440_v39  ;;  %v10062_v3 = vcombine.low %v16959_v18, %v9440_v39 }
 0x33e   : > { %v11518_v6 = vmul.f32 -1.442695, %v9440_v39  ;;  %v9033_v46 = vrot.slane %v16555_v27, %v14079_v59  ;;  %v9040_v49 = vrot.slane %v9026_v25, %v14079_v59  ;;  %v10807_v30 = vrot.slane %v10799_v5, %v14079_v59  ;;  %v17041_v27 = vpop.f32.mrb[146].mxu0 }
 0x33f   : > { %v9442_v36 = vadd.f32 %v16928_v58, %v9351_v60  ;;  %v9508_v8 = vmul.f32 %v9441_v1, %v9441_v1  ;;  %v9571_v44 = vadd.f32 1.0, %v9507_v47  ;;  %v10076_v13 = vrot.slane %v10062_v3, %v14079_v59  ;;  %18894 = vst [vmem:[#allocation74_spill] sm:$0xff] %v17041_v27  ;;  %v12192_v47 = vpop.f32.mrb[147].mxu0 }
 0x340   : > { %12455 = vpow2.f32 %v11518_v6  ;;  %v11519_v20 = vmul.f32 -1.442695, %v9441_v1  ;;  %v9041_v12 = vcombine.high %v9033_v46, %v9033_v46  ;;  %v9042_v60 = vcombine.high %v9040_v49, %v9040_v49 }
 0x341   : > { %v9509_v55 = vmul.f32 %v9442_v36, %v9442_v36  ;;  %v9572_v18 = vadd.f32 1.0, %v9508_v8  ;;  %v9710_v39 = vcombine.low %v9570_v10, %v9571_v44  ;;  %v10078_v41 = vcombine.low %v9441_v1, %v9442_v36  ;;  %v12448_v16 = vpop.eup %12447 }
 0x342   : > { %v10077_v25 = vcombine.low %v16969_v34, %v10076_v13  ;;  %12457 = vpow2.f32 %v11519_v20  ;;  %v11520_v5 = vmul.f32 -1.442695, %v9442_v36  ;;  %v12450_v23 = vpop.eup %12449  ;;  %v10800_v3 = vcombine.low %v12446_v24, %v12448_v16 }
 0x343   : > { %v9573_v6 = vadd.f32 1.0, %v9509_v55  ;;  %v9724_v40 = vrot.slane %v9710_v39, %v14079_v59  ;;  %v17046_v52 = vrot.slane %v10078_v41, %v14079_v59  ;;  %v12452_v8 = vpop.eup %12451  ;;  %v9352_v10 = vadd.f32 %v9033_v46, %v8734_v0 }
 0x344   : > { %12459 = vpow2.f32 %v11520_v5  ;;  %v9353_v1 = vadd.f32 %v9041_v12, %v8735_v56  ;;  %v9354_v44 = vadd.f32 %v9040_v49, %v8736_v7  ;;  %v17050_v34 = vpop.eup %12453  ;;  %v10814_v36 = vrot.slane %v10800_v3, %v14079_v59 }
 0x345   : > { %v10816_v13 = vcombine.low %v12450_v23, %v12452_v8  ;;  %v9725_v24 = vcombine.low %v16983_v43, %v9724_v40  ;;  %v9726_v20 = vcombine.low %v9572_v18, %v9573_v6  ;;  %v9355_v39 = vadd.f32 %v9042_v60, %v8737_v57 }
 0x346   : > { %v9443_v0 = vadd.f32 %v16924_v33, %v9352_v10  ;;  %v9444_v56 = vadd.f32 %v16946_v28, %v9353_v1  ;;  %v9445_v7 = vadd.f32 %v16911_v50, %v9354_v44  ;;  %v10815_v46 = vcombine.low %v10807_v30, %v10814_v36 }
 0x347   : > { %v9734_v23 = vrot.slane %v9726_v20, %v14079_v59  ;;  %v17068_v40 = vsel %vm9499_vm8, %v9725_v24, %v10077_v25  ;;  %v17071_v43 = vrot.slane %v10816_v13, %v14079_v59  ;;  %v9446_v49 = vadd.f32 %v16928_v58, %v9355_v39 }
 0x348   : > { %v9510_v12 = vmul.f32 %v9443_v0, %v9443_v0  ;;  %v9511_v57 = vmul.f32 %v9444_v56, %v9444_v56  ;;  %v9512_v18 = vmul.f32 %v9445_v7, %v9445_v7  ;;  %v11087_v41 = vsel %vm17058_vm11, %v10815_v46, %v16988_v45 }
 0x349   : > { %v10079_v16 = vcombine.low %v9443_v0, %v9444_v56  ;;  %v11521_v30 = vmul.f32 -1.442695, %v9443_v0  ;;  %v11522_v5 = vmul.f32 -1.442695, %v9444_v56  ;;  %11103 = vst [vmem:[%s17077_s29] sm:$0xff] %v11087_v41  ;;  %v9513_v25 = vmul.f32 %v9446_v49, %v9446_v49 }
 0x34a   : > { %v12456_v60 = vpop.eup %12455  ;;  %v9574_v47 = vadd.f32 1.0, %v9510_v12  ;;  %v9575_v3 = vadd.f32 1.0, %v9511_v57  ;;  %v9576_v6 = vadd.f32 1.0, %v9512_v18  ;;  %v10095_v1 = vcombine.low %v9445_v7, %v9446_v49  ;;  %v17086_v57 = vpop.f32.mrb[152].mxu1 }
 0x34b   : > { %v10550_v8 = vadd.f32 1.0, %v12456_v60  ;;  %v10093_v10 = vrot.slane %v10079_v16, %v14079_v59  ;;  %12461 = vpow2.f32 %v11521_v30  ;;  %v9577_v36 = vadd.f32 1.0, %v9513_v25  ;;  %18897 = vst [vmem:[#allocation66_spill] sm:$0xff] %v17086_v57 }
 0x34c   : > { %v12458_v44 = vpop.eup %12457  ;;  %v9727_v45 = vcombine.low %v9574_v47, %v9575_v3  ;;  %12463 = vpow2.f32 %v11522_v5  ;;  %v11523_v13 = vmul.f32 -1.442695, %v9445_v7  ;;  %v17083_v39 = vrot.slane %v10095_v1, %v14079_v59 }
 0x34d   : > { %v10551_v24 = vadd.f32 1.0, %v12458_v44  ;;  %12465 = vrcp.f32 %v10550_v8  ;;  %v10094_v20 = vcombine.low %v17046_v52, %v10093_v10  ;;  %v9743_v46 = vcombine.low %v9576_v6, %v9577_v36  ;;  %v12143_v52 = vpop.f32.mrb[153].mxu1 }
 0x34e   : > { %v12460_v0 = vpop.eup %12459  ;;  %v9741_v56 = vrot.slane %v9727_v45, %v14079_v59  ;;  %12467 = vpow2.f32 %v11523_v13  ;;  %v11524_v12 = vmul.f32 -1.442695, %v9446_v49  ;;  %v8222_v7 = vcombine.high %v16571_v19, %v16571_v19  ;;  %v17107_v6 = vpop.f32.mrb[154].mxu1 }
 0x34f   : > { %v10552_v18 = vadd.f32 1.0, %v12460_v0  ;;  %12469 = vrcp.f32 %v10551_v24  ;;  %v8229_v41 = vrot.slane %v16571_v19, %v14079_v59  ;;  %v17093_v30 = vrot.slane %v9743_v46, %v14079_v59  ;;  %18898 = vst [vmem:[#allocation60_spill] sm:$0xff] %v17107_v6  ;;  %v12144_v36 = vpop.f32.mrb[155].mxu1 }
 0x350   : > { %v9742_v16 = vcombine.low %v9734_v23, %v9741_v56  ;;  %12471 = vpow2.f32 %v11524_v12  ;;  %v8239_v5 = vcombine.high %v16583_v61, %v16583_v61  ;;  %v8236_v49 = vrot.slane %v8222_v7, %v14079_v59  ;;  %v17125_v36 = vpop.f32.mrb[148].mxu0 }
 0x351   : > { %12473 = vrcp.f32 %v10552_v18  ;;  %v8237_v60 = vcombine.high %v8229_v41, %v8229_v41  ;;  %v8505_v25 = vrot.slane %v8229_v41, 7  ;;  %v8246_v19 = vrot.slane %v16583_v61, %v14079_v59  ;;  %v12195_v6 = vpop.f32.mrb[149].mxu0 }
 0x352   : > { %v17100_v47 = vsel %vm9499_vm8, %v9742_v16, %v10094_v20  ;;  %v8253_v23 = vrot.slane %v8239_v5, %v14079_v59  ;;  %v9043_v3 = vcombine.high %v16585_v32, %v16585_v32  ;;  %v8238_v8 = vcombine.high %v8236_v49, %v8236_v49 }
 0x353   : > { %v8507_v10 = vrot.slane %v8505_v25, 2  ;;  %v8508_v1 = vrot.slane %v8237_v60, 7  ;;  %v11496_v44 = vrot.slane %v8236_v49, 9  ;;  %v8254_v45 = vcombine.high %v8246_v19, %v8246_v19 }
 0x354   : > { %v8255_v13 = vcombine.high %v8253_v23, %v8253_v23  ;;  %v8515_v24 = vrot.slane %v8246_v19, 7  ;;  %v8521_v20 = vrot.slane %v8253_v23, 7  ;;  %v8512_v56 = vrot.slane %v8238_v8, 7 }
 0x355   : > { %v12462_v0 = vpop.eup %12461  ;;  %v18899_v61 = vrot.slane %v16996_v14, 2  ;;  %v8509_v12 = vsel %vm14372_vm7, %v8507_v10, %v8508_v1  ;;  %v9050_v18 = vrot.slane %v16585_v32, %v14079_v59  ;;  %v8518_v16 = vrot.slane %v8254_v45, 7  ;;  %v18900_v32 = vld [vmem:[#allocation140_spill] sm:$0xff] }
 0x356   : > { %v12464_v7 = vpop.eup %12463  ;;  %v10553_v41 = vadd.f32 1.0, %v12462_v0  ;;  %v8517_v52 = vrot.slane %v8515_v24, 2  ;;  %v17117_v5 = vrot.slane %v8521_v20, 2  ;;  %v8514_v19 = vrot.slane %v8512_v56, 2 }
 0x357   : > { %v8506_v46 = vsel %vm14372_vm7, %v18899_v61, %v8505_v25  ;;  %v12466_v49 = vpop.eup %12465  ;;  %v10554_v60 = vadd.f32 1.0, %v12464_v7  ;;  %v17119_v23 = vrot.slane %v8255_v13, 7  ;;  %v8513_v14 = vsel %vm14372_vm7, %v11496_v44, %v8512_v56  ;;  %v18901_v7 = vld [vmem:[#allocation143_spill] sm:$0xff] }
 0x358   : > { %v12468_v25 = vpop.eup %12467  ;;  %v10817_v8 = vcombine.low %v17050_v34, %v12466_v49  ;;  %12475 = vrcp.f32 %v10553_v41  ;;  %v8520_v10 = vrot.slane %v8518_v16, 2  ;;  %v8738_v1 = vadd.f32 %v8506_v46, %v18900_v32  ;;  %v18902_v56 = vld [vmem:[#allocation43_spill] sm:$0xff] }
 0x359   : > { %v12470_v45 = vpop.eup %12469  ;;  %v10555_v0 = vadd.f32 1.0, %v12468_v25  ;;  %12477 = vrcp.f32 %v10554_v60  ;;  %v8526_v61 = vrot.slane %v17119_v23, 2  ;;  %v8739_v13 = vadd.f32 %v8509_v12, %v18901_v7 }
 0x35a   : > { %v12472_v57 = vpop.eup %12471  ;;  %v10831_v44 = vrot.slane %v10817_v8, %v14079_v59  ;;  %v8740_v27 = vadd.f32 %v8513_v14, %v18902_v56  ;;  %v9057_v34 = vrot.slane %v9043_v3, %v14079_v59  ;;  %v9058_v41 = vcombine.high %v9050_v18, %v9050_v18  ;;  %v18903_v56 = vld [vmem:[#allocation145_spill] sm:$0xff] }
 0x35b   : > { %v12474_v49 = vpop.eup %12473  ;;  %v10556_v46 = vadd.f32 1.0, %v12472_v57  ;;  %12479 = vrcp.f32 %v10555_v0  ;;  %v9356_v32 = vadd.f32 %v9050_v18, %v8738_v1  ;;  %v8516_v60 = vsel %vm14372_vm7, %v8514_v19, %v8515_v24 }
 0x35c   : > { %v10832_v25 = vcombine.low %v17071_v43, %v10831_v44  ;;  %v10833_v12 = vcombine.low %v12470_v45, %v12474_v49  ;;  %v9059_v6 = vcombine.high %v9057_v34, %v9057_v34  ;;  %v9357_v7 = vadd.f32 %v9058_v41, %v8739_v13 }
 0x35d   : > { %12481 = vrcp.f32 %v10556_v46  ;;  %v9447_v8 = vadd.f32 %v16924_v33, %v9356_v32  ;;  %v8519_v3 = vsel %vm14372_vm7, %v8517_v52, %v8518_v16  ;;  %v8522_v57 = vsel %vm14372_vm7, %v8520_v10, %v8521_v20  ;;  %v17151_v20 = vpop.f32.mrb[150].mxu0 }
 0x35e   : > { %v11088_v18 = vsel %vm17058_vm11, %v10832_v25, %v17068_v40  ;;  %v10841_v24 = vrot.slane %v10833_v12, %v14079_v59  ;;  %v9358_v19 = vadd.f32 %v9059_v6, %v8740_v27  ;;  %v9448_v43 = vadd.f32 %v16946_v28, %v9357_v7  ;;  %v12196_v27 = vpop.f32.mrb[151].mxu0 }
 0x35f   : > { %11104 = vst [vmem:[%s17077_s29 + $0x8] sm:$0xff] %v11088_v18  ;;  %v9514_v14 = vmul.f32 %v9447_v8, %v9447_v8  ;;  %v11525_v1 = vmul.f32 -1.442695, %v9447_v8  ;;  %v8525_v52 = vsel %vm14372_vm7, %v17117_v5, %v17119_v23  ;;  %v8741_v16 = vadd.f32 %v8516_v60, %v16467_v38 }
 0x360   : > { %v9449_v10 = vadd.f32 %v16911_v50, %v9358_v19  ;;  %v9515_v40 = vmul.f32 %v9448_v43, %v9448_v43  ;;  %v10096_v45 = vcombine.low %v9447_v8, %v9448_v43  ;;  %v11526_v0 = vmul.f32 -1.442695, %v9448_v43 }
 0x361   : > { %v9578_v13 = vadd.f32 1.0, %v9514_v14  ;;  %12483 = vpow2.f32 %v11525_v1  ;;  %v8742_v44 = vadd.f32 %v8519_v3, %v16474_v22  ;;  %v8743_v34 = vadd.f32 %v8522_v57, %v18903_v56 }
 0x362   : > { %v12476_v41 = vpop.eup %12475  ;;  %v9516_v49 = vmul.f32 %v9449_v10, %v9449_v10  ;;  %v9579_v46 = vadd.f32 1.0, %v9515_v40  ;;  %v10110_v5 = vrot.slane %v10096_v45, %v14079_v59  ;;  %12485 = vpow2.f32 %v11526_v0 }
 0x363   : > { %v12478_v38 = vpop.eup %12477  ;;  %v11527_v32 = vmul.f32 -1.442695, %v9449_v10  ;;  %v8744_v60 = vadd.f32 %v8525_v52, %v16490_v63  ;;  %v9060_v25 = vcombine.high %v16610_v21, %v16610_v21  ;;  %v9067_v12 = vrot.slane %v16610_v21, %v14079_v59 }
 0x364   : > { %v10834_v6 = vcombine.low %v12476_v41, %v12478_v38  ;;  %v9580_v22 = vadd.f32 1.0, %v9516_v49  ;;  %v9744_v7 = vcombine.low %v9578_v13, %v9579_v46  ;;  %v10111_v8 = vcombine.low %v17083_v39, %v10110_v5 }
 0x365   : > { %v12480_v3 = vpop.eup %12479  ;;  %12487 = vpow2.f32 %v11527_v32  ;;  %v9074_v57 = vrot.slane %v9060_v25, %v14079_v59  ;;  %v9075_v18 = vcombine.high %v9067_v12, %v9067_v12  ;;  %v9359_v19 = vadd.f32 %v9067_v12, %v8741_v16 }
 0x366   : > { %v10848_v43 = vrot.slane %v10834_v6, %v14079_v59  ;;  %v9758_v63 = vrot.slane %v9744_v7, %v14079_v59  ;;  %v8256_v14 = vcombine.high %v16639_v48, %v16639_v48  ;;  %v17170_v21 = vrot.slane %v16639_v48, %v14079_v59 }
 0x367   : > { %v12482_v1 = vpop.eup %12481  ;;  %v9076_v52 = vcombine.high %v9074_v57, %v9074_v57  ;;  %v9360_v39 = vadd.f32 %v9075_v18, %v8742_v44  ;;  %v9361_v40 = vadd.f32 %v9074_v57, %v8743_v34  ;;  %v9450_v45 = vadd.f32 %v16928_v58, %v9359_v19 }
 0x368   : > { %v10849_v0 = vcombine.low %v10841_v24, %v10848_v43  ;;  %v10850_v16 = vcombine.low %v12480_v3, %v12482_v1  ;;  %v9759_v27 = vcombine.low %v17093_v30, %v9758_v63  ;;  %v17175_v13 = vrot.slane %v8256_v14, %v14079_v59 }
 0x369   : > { %v9362_v56 = vadd.f32 %v9076_v52, %v8744_v60  ;;  %v9451_v41 = vadd.f32 %v16924_v33, %v9360_v39  ;;  %v9452_v48 = vadd.f32 %v16946_v28, %v9361_v40  ;;  %v9517_v49 = vmul.f32 %v9450_v45, %v9450_v45 }
 0x36a   : > { %v11089_v44 = vsel %vm17058_vm11, %v10849_v0, %v17100_v47  ;;  %v17184_v34 = vsel %vm9499_vm8, %v9759_v27, %v10111_v8  ;;  %v17187_v24 = vrot.slane %v10850_v16, %v14079_v59  ;;  %v10112_v30 = vcombine.low %v9449_v10, %v9450_v45  ;;  %v17201_v0 = vpop.f32.mrb[156].mxu1 }
 0x36b   : > { %v12484_v46 = vpop.eup %12483  ;;  %11105 = vst [vmem:[%s17077_s29 + $0x10] sm:$0xff] %v11089_v44  ;;  %v17191_v5 = vadd.f32 %v16911_v50, %v9362_v56  ;;  %v9518_v38 = vmul.f32 %v9451_v41, %v9451_v41  ;;  %v9519_v32 = vmul.f32 %v9452_v48, %v9452_v48  ;;  %v9581_v60 = vadd.f32 1.0, %v9517_v49  ;;  %v12147_v56 = vpop.f32.mrb[157].mxu1 }
 0x36c   : > { %v12486_v25 = vpop.eup %12485  ;;  %v10557_v12 = vadd.f32 1.0, %v12484_v46  ;;  %v10113_v6 = vcombine.low %v9451_v41, %v9452_v48  ;;  %v10120_v47 = vrot.slane %v10112_v30, %v14079_v59  ;;  %v11528_v7 = vmul.f32 -1.442695, %v9450_v45 }
 0x36d   : > { %v10558_v8 = vadd.f32 1.0, %v12486_v25  ;;  %v17196_v3 = vmul.f32 %v17191_v5, %v17191_v5  ;;  %v9582_v10 = vadd.f32 1.0, %v9518_v38  ;;  %v9583_v57 = vadd.f32 1.0, %v9519_v32  ;;  %v17217_v25 = vpop.f32.mrb[158].mxu1 }
 0x36e   : > { %12489 = vrcp.f32 %v10557_v12  ;;  %v9760_v18 = vcombine.low %v9580_v22, %v9581_v60  ;;  %v10127_v19 = vrot.slane %v10113_v6, %v14079_v59  ;;  %v11529_v43 = vmul.f32 -1.442695, %v9451_v41 }
 0x36f   : > { %v12488_v63 = vpop.eup %12487  ;;  %12491 = vrcp.f32 %v10558_v8  ;;  %v9761_v14 = vcombine.low %v9582_v10, %v9583_v57  ;;  %v11530_v1 = vmul.f32 -1.442695, %v9452_v48  ;;  %v11531_v52 = vmul.f32 -1.442695, %v17191_v5 }
 0x370   : > { %v10559_v39 = vadd.f32 1.0, %v12488_v63  ;;  %v9768_v40 = vrot.slane %v9760_v18, %v14079_v59  ;;  %v10128_v45 = vcombine.low %v10120_v47, %v10127_v19  ;;  %12493 = vpow2.f32 %v11528_v7  ;;  %v12148_v47 = vpop.f32.mrb[159].mxu1 }
 0x371   : > { %v9775_v16 = vrot.slane %v9761_v14, %v14079_v59  ;;  %12495 = vpow2.f32 %v11529_v43  ;;  %v8271_v22 = vcombine.high %v17170_v21, %v17170_v21  ;;  %v8272_v27 = vcombine.high %v17175_v13, %v17175_v13 }
 0x372   : > { %12497 = vrcp.f32 %v10559_v39  ;;  %v8527_v41 = vrot.slane %v17170_v21, 7  ;;  %v8533_v48 = vrot.slane %v17175_v13, 7  ;;  %v8273_v49 = vcombine.high %v16680_v9, %v16680_v9  ;;  %v18904_v39 = vld [vmem:[#allocation38_spill] sm:$0xff] }
 0x373   : > { %v9776_v44 = vcombine.low %v9768_v40, %v9775_v16  ;;  %12499 = vpow2.f32 %v11530_v1  ;;  %v8530_v30 = vrot.slane %v8271_v22, 7  ;;  %v11497_v46 = vrot.slane %v8272_v27, 9 }
 0x374   : > { %12501 = vpow2.f32 %v11531_v52  ;;  %v8529_v38 = vrot.slane %v8527_v41, 2  ;;  %v8280_v32 = vrot.slane %v16680_v9, %v14079_v59  ;;  %v17215_v60 = vrot.slane %v8273_v49, %v14079_v59 }
 0x375   : > { %v17221_v21 = vsel %vm9499_vm8, %v9776_v44, %v10128_v45  ;;  %v8532_v13 = vrot.slane %v8530_v30, 2  ;;  %v8528_v12 = vsel %vm14372_vm7, %v8526_v61, %v8527_v41  ;;  %v9077_v6 = vcombine.high %v16704_v11, %v16704_v11  ;;  %v18905_v45 = vld [vmem:[#allocation141_spill] sm:$0xff] }
 0x376   : > { %v8288_v9 = vcombine.high %v8280_v32, %v8280_v32  ;;  %v8289_v7 = vcombine.high %v17215_v60, %v17215_v60  ;;  %v8537_v8 = vrot.slane %v8280_v32, 7  ;;  %v8543_v10 = vrot.slane %v17215_v60, 7 }
 0x377   : > { %v8531_v57 = vsel %vm14372_vm7, %v8529_v38, %v8530_v30  ;;  %v8534_v23 = vsel %vm14372_vm7, %v8532_v13, %v8533_v48  ;;  %v8745_v18 = vadd.f32 %v8528_v12, %v16500_v51  ;;  %v9084_v61 = vrot.slane %v16704_v11, %v14079_v59  ;;  %v17252_v11 = vpop.f32.mrb[152].mxu0 }
 0x378   : > { %v12490_v19 = vpop.eup %12489  ;;  %v17239_v43 = vrot.slane %v8537_v8, 2  ;;  %v17241_v63 = vrot.slane %v8288_v9, 7  ;;  %v17245_v14 = vrot.slane %v8543_v10, 2  ;;  %v17247_v1 = vrot.slane %v8289_v7, 7  ;;  %v12199_v44 = vpop.f32.mrb[153].mxu0 }
 0x379   : > { %v12492_v52 = vpop.eup %12491  ;;  %v8746_v40 = vadd.f32 %v8531_v57, %v18904_v39  ;;  %v8747_v16 = vadd.f32 %v8534_v23, %v18905_v45  ;;  %v9091_v51 = vrot.slane %v9077_v6, %v14079_v59  ;;  %v9092_v22 = vcombine.high %v9084_v61, %v9084_v61 }
 0x37a   : > { %v12494_v27 = vpop.eup %12493  ;;  %v10851_v56 = vcombine.low %v12490_v19, %v12492_v52  ;;  %v8542_v41 = vrot.slane %v17241_v63, 2  ;;  %v8548_v48 = vrot.slane %v17247_v1, 2  ;;  %v9363_v49 = vadd.f32 %v9084_v61, %v8745_v18 }
 0x37b   : > { %v12496_v30 = vpop.eup %12495  ;;  %v10560_v38 = vadd.f32 1.0, %v12494_v27  ;;  %v9364_v32 = vadd.f32 %v9092_v22, %v8746_v40  ;;  %v9365_v13 = vadd.f32 %v9091_v51, %v8747_v16  ;;  %v9584_v12 = vadd.f32 1.0, %v17196_v3 }
 0x37c   : > { %v17257_v47 = vpop.eup %12497  ;;  %v10865_v6 = vrot.slane %v10851_v56, %v14079_v59  ;;  %v10561_v9 = vadd.f32 1.0, %v12496_v30  ;;  %v9454_v7 = vadd.f32 %v16928_v58, %v9363_v49  ;;  %v8538_v57 = vsel %vm14372_vm7, %v11497_v46, %v8537_v8 }
 0x37d   : > { %v12500_v23 = vpop.eup %12499  ;;  %12503 = vrcp.f32 %v10560_v38  ;;  %v9455_v18 = vadd.f32 %v16924_v33, %v9364_v32  ;;  %v9456_v61 = vadd.f32 %v16946_v28, %v9365_v13  ;;  %v8541_v3 = vsel %vm14372_vm7, %v17239_v43, %v17241_v63  ;;  %v17277_v38 = vpop.f32.mrb[154].mxu0 }
 0x37e   : > { %v12502_v19 = vpop.eup %12501  ;;  %v10866_v52 = vcombine.low %v17187_v24, %v10865_v6  ;;  %v10562_v39 = vadd.f32 1.0, %v12500_v23  ;;  %12505 = vrcp.f32 %v10561_v9  ;;  %v9521_v40 = vmul.f32 %v9454_v7, %v9454_v7  ;;  %v12200_v6 = vpop.f32.mrb[155].mxu0 }
 0x37f   : > { %v10563_v45 = vadd.f32 1.0, %v12502_v19  ;;  %v9522_v46 = vmul.f32 %v9455_v18, %v9455_v18  ;;  %v9523_v8 = vmul.f32 %v9456_v61, %v9456_v61  ;;  %v10129_v16 = vcombine.low %v17191_v5, %v9454_v7 }
 0x380   : > { %v11090_v51 = vsel %vm17058_vm11, %v10866_v52, %v17184_v34  ;;  %12507 = vrcp.f32 %v10562_v39  ;;  %v9585_v22 = vadd.f32 1.0, %v9521_v40  ;;  %v10130_v27 = vcombine.low %v9455_v18, %v9456_v61 }
 0x381   : > { %11106 = vst [vmem:[%s17077_s29 + $0x18] sm:$0xff] %v11090_v51  ;;  %12509 = vrcp.f32 %v10563_v45  ;;  %v9586_v43 = vadd.f32 1.0, %v9522_v46  ;;  %v9587_v63 = vadd.f32 1.0, %v9523_v8  ;;  %v10137_v24 = vrot.slane %v10129_v16, %v14079_v59 }
 0x382   : > { %v9777_v56 = vcombine.low %v9584_v12, %v9585_v22  ;;  %v10144_v49 = vrot.slane %v10130_v27, %v14079_v59  ;;  %v11532_v44 = vmul.f32 -1.442695, %v9454_v7  ;;  %v11533_v30 = vmul.f32 -1.442695, %v9455_v18 }
 0x383   : > { %v9778_v5 = vcombine.low %v9586_v43, %v9587_v63  ;;  %v11534_v32 = vmul.f32 -1.442695, %v9456_v61  ;;  %v8544_v34 = vsel %vm14372_vm7, %v8542_v41, %v8543_v10  ;;  %v8547_v13 = vsel %vm14372_vm7, %v17245_v14, %v17247_v1 }
 0x384   : > { %v9785_v12 = vrot.slane %v9777_v56, %v14079_v59  ;;  %v10145_v9 = vcombine.low %v10137_v24, %v10144_v49  ;;  %12511 = vpow2.f32 %v11532_v44  ;;  %v8748_v7 = vadd.f32 %v8538_v57, %v16534_v4 }
 0x385   : > { %v9792_v23 = vrot.slane %v9778_v5, %v14079_v59  ;;  %12513 = vpow2.f32 %v11533_v30  ;;  %v8749_v60 = vadd.f32 %v8541_v3, %v16543_v35  ;;  %v8750_v18 = vadd.f32 %v8544_v34, %v16538_v54 }
 0x386   : > { %12515 = vpow2.f32 %v11534_v32  ;;  %v8751_v10 = vadd.f32 %v8547_v13, %v16557_v31  ;;  %v9093_v14 = vcombine.high %v16773_v2, %v16773_v2  ;;  %v9100_v41 = vrot.slane %v16773_v2, %v14079_v59 }
 0x387   : > { %v12504_v61 = vpop.eup %12503  ;;  %v9793_v19 = vcombine.low %v9785_v12, %v9792_v23  ;;  %v8290_v4 = vcombine.high %v16853_v29, %v16853_v29  ;;  %v17301_v57 = vrot.slane %v16853_v29, %v14079_v59  ;;  %v8307_v54 = vcombine.high %v16880_v62, %v16880_v62 }
 0x388   : > { %v12506_v35 = vpop.eup %12505  ;;  %v10867_v31 = vcombine.low %v17257_v47, %v12504_v61  ;;  %v9107_v3 = vrot.slane %v9093_v14, %v14079_v59  ;;  %v9108_v52 = vcombine.high %v9100_v41, %v9100_v41  ;;  %v9366_v39 = vadd.f32 %v9100_v41, %v8748_v7 }
 0x389   : > { %v17309_v2 = vsel %vm9499_vm8, %v9793_v19, %v10145_v9  ;;  %v17312_v40 = vrot.slane %v8290_v4, %v14079_v59  ;;  %v8305_v29 = vcombine.high %v17301_v57, %v17301_v57  ;;  %v8549_v45 = vrot.slane %v17301_v57, 7 }
 0x38a   : > { %v12508_v46 = vpop.eup %12507  ;;  %v10875_v8 = vrot.slane %v10867_v31, %v14079_v59  ;;  %v9109_v47 = vcombine.high %v9107_v3, %v9107_v3  ;;  %v9367_v16 = vadd.f32 %v9108_v52, %v8749_v60  ;;  %v9368_v51 = vadd.f32 %v9107_v3, %v8750_v18 }
 0x38b   : > { %v17318_v22 = vpop.eup %12509  ;;  %v10868_v27 = vcombine.low %v12506_v35, %v12508_v46  ;;  %v9457_v43 = vadd.f32 %v16911_v50, %v9366_v39  ;;  %v8306_v63 = vcombine.high %v17312_v40, %v17312_v40  ;;  %v17325_v24 = vrot.slane %v8549_v45, 2  ;;  %v17335_v39 = vpop.f32.mrb[160].mxu1 }
 0x38c   : > { %v9369_v56 = vadd.f32 %v9109_v47, %v8751_v10  ;;  %v9458_v49 = vadd.f32 %v16928_v58, %v9367_v16  ;;  %v9459_v44 = vadd.f32 %v16924_v33, %v9368_v51  ;;  %v8552_v30 = vrot.slane %v8305_v29, 7 }
 0x38d   : > { %v10882_v5 = vrot.slane %v10868_v27, %v14079_v59  ;;  %v9524_v32 = vmul.f32 %v9457_v43, %v9457_v43  ;;  %v11535_v34 = vmul.f32 -1.442695, %v9457_v43  ;;  %v8555_v13 = vrot.slane %v17312_v40, 7 }
 0x38e   : > { %v12512_v6 = vpop.eup %12511  ;;  %v9460_v12 = vadd.f32 %v16946_v28, %v9369_v56  ;;  %v9525_v9 = vmul.f32 %v9458_v49, %v9458_v49  ;;  %v9526_v7 = vmul.f32 %v9459_v44, %v9459_v44  ;;  %v10146_v23 = vcombine.low %v9457_v43, %v9458_v49 }
 0x38f   : > { %v12514_v60 = vpop.eup %12513  ;;  %v10883_v18 = vcombine.low %v10875_v8, %v10882_v5  ;;  %v10564_v10 = vadd.f32 1.0, %v12512_v6  ;;  %v9588_v14 = vadd.f32 1.0, %v9524_v32  ;;  %12517 = vpow2.f32 %v11535_v34  ;;  %v12151_v8 = vpop.f32.mrb[161].mxu1 }
 0x390   : > { %v12516_v41 = vpop.eup %12515  ;;  %v10565_v61 = vadd.f32 1.0, %v12514_v60  ;;  %v9527_v19 = vmul.f32 %v9460_v12, %v9460_v12  ;;  %v9589_v4 = vadd.f32 1.0, %v9525_v9  ;;  %v9590_v35 = vadd.f32 1.0, %v9526_v7  ;;  %v17359_v7 = vpop.f32.mrb[162].mxu1 }
 0x391   : > { %v11091_v31 = vsel %vm17058_vm11, %v10883_v18, %v17221_v21  ;;  %v10566_v3 = vadd.f32 1.0, %v12516_v41  ;;  %12519 = vrcp.f32 %v10564_v10  ;;  %v10147_v52 = vcombine.low %v9459_v44, %v9460_v12  ;;  %v12152_v18 = vpop.f32.mrb[163].mxu1 }
 0x392   : > { %11107 = vst [vmem:[%s17077_s29 + $0x20] sm:$0xff] %v11091_v31  ;;  %12521 = vrcp.f32 %v10565_v61  ;;  %v9591_v40 = vadd.f32 1.0, %v9527_v19  ;;  %v9794_v29 = vcombine.low %v9588_v14, %v9589_v4  ;;  %v10154_v46 = vrot.slane %v10146_v23, %v14079_v59  ;;  %v18906_v4 = vld [vmem:[#allocation142_spill] sm:$0xff] }
 0x393   : > { %12523 = vrcp.f32 %v10566_v3  ;;  %v10161_v47 = vrot.slane %v10147_v52, %v14079_v59  ;;  %v11536_v16 = vmul.f32 -1.442695, %v9458_v49  ;;  %v11537_v51 = vmul.f32 -1.442695, %v9459_v44 }
 0x394   : > { %v9795_v27 = vcombine.low %v9590_v35, %v9591_v40  ;;  %v9802_v21 = vrot.slane %v9794_v29, %v14079_v59  ;;  %v11538_v43 = vmul.f32 -1.442695, %v9460_v12  ;;  %v8554_v56 = vrot.slane %v8552_v30, 2 }
 0x395   : > { %v10162_v5 = vcombine.low %v10154_v46, %v10161_v47  ;;  %12525 = vpow2.f32 %v11536_v16  ;;  %v8557_v32 = vrot.slane %v8555_v13, 2  ;;  %v8558_v34 = vrot.slane %v8306_v63, 7  ;;  %v17385_v47 = vpop.f32.mrb[156].mxu0 }
 0x396   : > { %v9809_v6 = vrot.slane %v9795_v27, %v14079_v59  ;;  %12527 = vpow2.f32 %v11537_v51  ;;  %v8314_v9 = vrot.slane %v16880_v62, %v14079_v59  ;;  %v8321_v49 = vrot.slane %v8307_v54, %v14079_v59  ;;  %v18907_v27 = vld [vmem:[#allocation37_spill] sm:$0xff] }
 0x397   : > { %12529 = vpow2.f32 %v11538_v43  ;;  %v8550_v44 = vsel %vm14372_vm7, %v8548_v48, %v8549_v45  ;;  %v8553_v63 = vsel %vm14372_vm7, %v17325_v24, %v8552_v30  ;;  %v8556_v12 = vsel %vm14372_vm7, %v8554_v56, %v8555_v13 }
 0x398   : > { %v9810_v23 = vcombine.low %v9802_v21, %v9809_v6  ;;  %v8322_v62 = vcombine.high %v8314_v9, %v8314_v9  ;;  %v8323_v54 = vcombine.high %v8321_v49, %v8321_v49  ;;  %v11498_v60 = vrot.slane %v8314_v9, 9 }
 0x399   : > { %v12518_v57 = vpop.eup %12517  ;;  %v8565_v10 = vrot.slane %v8321_v49, 7  ;;  %v8559_v1 = vsel %vm14372_vm7, %v8557_v32, %v8558_v34  ;;  %v8752_v48 = vadd.f32 %v8550_v44, %v16568_v37  ;;  %v8753_v45 = vadd.f32 %v8553_v63, %v16576_v26  ;;  %v18908_v44 = vld [vmem:[#allocation39_spill] sm:$0xff] }
 0x39a   : > { %v17367_v24 = vsel %vm9499_vm8, %v9810_v23, %v10162_v5  ;;  %v10567_v30 = vadd.f32 1.0, %v12518_v57  ;;  %v8562_v13 = vrot.slane %v8322_v62, 7  ;;  %v17369_v14 = vrot.slane %v8323_v54, 7 }
 0x39b   : > { %v12520_v41 = vpop.eup %12519  ;;  %v8567_v61 = vrot.slane %v8565_v10, 2  ;;  %v8754_v19 = vadd.f32 %v8556_v12, %v16587_v53  ;;  %v8755_v35 = vadd.f32 %v8559_v1, %v18906_v4  ;;  %v9110_v31 = vcombine.high %v16893_v17, %v16893_v17  ;;  %v18909_v12 = vld [vmem:[#allocation44_spill] sm:$0xff] }
 0x39c   : > { %v12522_v37 = vpop.eup %12521  ;;  %v10884_v26 = vcombine.low %v17318_v22, %v12520_v41  ;;  %12531 = vrcp.f32 %v10567_v30  ;;  %v8564_v3 = vrot.slane %v8562_v13, 2  ;;  %v8570_v52 = vrot.slane %v17369_v14, 2 }
 0x39d   : > { %v12524_v40 = vpop.eup %12523  ;;  %v9117_v29 = vrot.slane %v16893_v17, %v14079_v59  ;;  %v9124_v46 = vrot.slane %v9110_v31, %v14079_v59  ;;  %v8563_v53 = vsel %vm14372_vm7, %v11498_v60, %v8562_v13  ;;  %v8569_v8 = vsel %vm14372_vm7, %v8567_v61, %v17369_v14  ;;  %v12203_v17 = vpop.f32.mrb[157].mxu0 }
 0x39e   : > { %v10885_v22 = vcombine.low %v12522_v37, %v12524_v40  ;;  %v10892_v16 = vrot.slane %v10884_v26, %v14079_v59  ;;  %v8566_v51 = vsel %vm14372_vm7, %v8564_v3, %v8565_v10  ;;  %v17391_v21 = vadd.f32 %v8563_v53, %v18907_v27  ;;  %v17400_v61 = vpop.f32.mrb[158].mxu0  ;;  %v18910_v17 = vld [vmem:[#allocation59_spill] sm:$0xff] }
 0x39f   : > { %v12526_v43 = vpop.eup %12525  ;;  %v9125_v56 = vcombine.high %v9117_v29, %v9117_v29  ;;  %v9126_v5 = vcombine.high %v9124_v46, %v9124_v46  ;;  %v9370_v32 = vadd.f32 %v9117_v29, %v8752_v48  ;;  %v9372_v34 = vadd.f32 %v9124_v46, %v8754_v19 }
 0x3a0   : > { %v12528_v6 = vpop.eup %12527  ;;  %v10899_v9 = vrot.slane %v10885_v22, %v14079_v59  ;;  %v10568_v49 = vadd.f32 1.0, %v12526_v43  ;;  %v8757_v63 = vadd.f32 %v8566_v51, %v18908_v44  ;;  %v8758_v23 = vadd.f32 %v8569_v8, %v18909_v12 }
 0x3a1   : > { %v12530_v62 = vpop.eup %12529  ;;  %v10569_v54 = vadd.f32 1.0, %v12528_v6  ;;  %v9371_v60 = vadd.f32 %v9125_v56, %v8753_v45  ;;  %v9373_v18 = vadd.f32 %v9126_v5, %v8755_v35  ;;  %v9461_v57 = vadd.f32 %v16911_v50, %v9370_v32  ;;  %v12204_v35 = vpop.f32.mrb[159].mxu0 }
 0x3a2   : > { %v10900_v10 = vcombine.low %v10892_v16, %v10899_v9  ;;  %v10570_v1 = vadd.f32 1.0, %v12530_v62  ;;  %12533 = vrcp.f32 %v10568_v49  ;;  %v9463_v48 = vadd.f32 %v16924_v33, %v9372_v34  ;;  %v18911_v9 = vld [vmem:[#allocation27_spill] sm:$0xff] }
 0x3a3   : > { %12535 = vrcp.f32 %v10569_v54  ;;  %v9462_v30 = vadd.f32 %v16928_v58, %v9371_v60  ;;  %v9464_v13 = vadd.f32 %v16946_v28, %v9373_v18  ;;  %v9528_v41 = vmul.f32 %v9461_v57, %v9461_v57 }
 0x3a4   : > { %v11092_v45 = vsel %vm17058_vm11, %v10900_v10, %v17309_v2  ;;  %12537 = vrcp.f32 %v10570_v1  ;;  %v9530_v19 = vmul.f32 %v9463_v48, %v9463_v48  ;;  %v11539_v4 = vmul.f32 -1.442695, %v9461_v57  ;;  %v18912_v1 = vld [vmem:[#allocation81_spill] sm:$0xff] }
 0x3a5   : > { %11108 = vst [vmem:[%s17077_s29 + $0x28] sm:$0xff] %v11092_v45  ;;  %v9529_v31 = vmul.f32 %v9462_v30, %v9462_v30  ;;  %v9531_v37 = vmul.f32 %v9464_v13, %v9464_v13  ;;  %v9592_v26 = vadd.f32 1.0, %v9528_v41  ;;  %v10163_v3 = vcombine.low %v9461_v57, %v9462_v30 }
 0x3a6   : > { %v12532_v40 = vpop.eup %12531  ;;  %v9594_v29 = vadd.f32 1.0, %v9530_v19  ;;  %v10164_v46 = vcombine.low %v9463_v48, %v9464_v13  ;;  %12539 = vpow2.f32 %v11539_v4  ;;  %v11540_v53 = vmul.f32 -1.442695, %v9462_v30 }
 0x3a7   : > { %v9593_v8 = vadd.f32 1.0, %v9529_v31  ;;  %v9595_v22 = vadd.f32 1.0, %v9531_v37  ;;  %v10171_v16 = vrot.slane %v10163_v3, %v14079_v59  ;;  %v11541_v51 = vmul.f32 -1.442695, %v9463_v48 }
 0x3a8   : > { %v10178_v2 = vrot.slane %v10164_v46, %v14079_v59  ;;  %12541 = vpow2.f32 %v11540_v53  ;;  %v11542_v27 = vmul.f32 -1.442695, %v9464_v13  ;;  %v9127_v43 = vcombine.high %v18910_v17, %v18910_v17 }
 0x3a9   : > { %v9811_v56 = vcombine.low %v9592_v26, %v9593_v8  ;;  %v9812_v5 = vcombine.low %v9594_v29, %v9595_v22  ;;  %12543 = vpow2.f32 %v11541_v51  ;;  %v9134_v32 = vrot.slane %v18910_v17, %v14079_v59 }
 0x3aa   : > { %v10179_v34 = vcombine.low %v10171_v16, %v10178_v2  ;;  %12545 = vpow2.f32 %v11542_v27  ;;  %v9141_v6 = vrot.slane %v9127_v43, %v14079_v59  ;;  %v8324_v49 = vcombine.high %v18911_v9, %v18911_v9 }
 0x3ab   : > { %v9819_v44 = vrot.slane %v9811_v56, %v14079_v59  ;;  %v9826_v12 = vrot.slane %v9812_v5, %v14079_v59  ;;  %v9142_v62 = vcombine.high %v9134_v32, %v9134_v32  ;;  %v17419_v54 = vrot.slane %v18911_v9, %v14079_v59 }
 0x3ac   : > { %v12534_v60 = vpop.eup %12533  ;;  %v9143_v18 = vcombine.high %v9141_v6, %v9141_v6  ;;  %v9375_v57 = vadd.f32 %v9141_v6, %v8757_v63  ;;  %v17422_v10 = vrot.slane %v8324_v49, %v14079_v59  ;;  %v8341_v48 = vcombine.high %v18912_v1, %v18912_v1 }
 0x3ad   : > { %v12536_v30 = vpop.eup %12535  ;;  %v10901_v13 = vcombine.low %v12532_v40, %v12534_v60  ;;  %v9827_v41 = vcombine.low %v9819_v44, %v9826_v12  ;;  %v9374_v45 = vadd.f32 %v9142_v62, %v17391_v21  ;;  %v8339_v19 = vcombine.high %v17419_v54, %v17419_v54 }
 0x3ae   : > { %v12538_v4 = vpop.eup %12537  ;;  %v9376_v35 = vadd.f32 %v9143_v18, %v8758_v23  ;;  %v9466_v31 = vadd.f32 %v16928_v58, %v9375_v57  ;;  %v8340_v63 = vcombine.high %v17422_v10, %v17422_v10  ;;  %v8571_v37 = vrot.slane %v17419_v54, 7 }
 0x3af   : > { %v10902_v26 = vcombine.low %v12536_v30, %v12538_v4  ;;  %v10909_v3 = vrot.slane %v10901_v13, %v14079_v59  ;;  %v17436_v40 = vsel %vm9499_vm8, %v9827_v41, %v10179_v34  ;;  %v9465_v21 = vadd.f32 %v16911_v50, %v9374_v45 }
 0x3b0   : > { %v12540_v29 = vpop.eup %12539  ;;  %v17440_v46 = vadd.f32 %v16924_v33, %v9376_v35  ;;  %v9533_v23 = vmul.f32 %v9466_v31, %v9466_v31  ;;  %v11544_v53 = vmul.f32 -1.442695, %v9466_v31  ;;  %v8573_v8 = vrot.slane %v8571_v37, 2 }
 0x3b1   : > { %v10916_v22 = vrot.slane %v10902_v26, %v14079_v59  ;;  %v10571_v16 = vadd.f32 1.0, %v12540_v29  ;;  %v9532_v51 = vmul.f32 %v9465_v21, %v9465_v21  ;;  %v10180_v2 = vcombine.low %v9465_v21, %v9466_v31 }
 0x3b2   : > { %v12542_v27 = vpop.eup %12541  ;;  %v9534_v17 = vmul.f32 %v17440_v46, %v17440_v46  ;;  %v9597_v43 = vadd.f32 1.0, %v9533_v23  ;;  %v11543_v56 = vmul.f32 -1.442695, %v9465_v21  ;;  %12547 = vpow2.f32 %v11544_v53  ;;  %v18913_v53 = vld [vmem:[#allocation40_spill] sm:$0xff] }
 0x3b3   : > { %v12544_v5 = vpop.eup %12543  ;;  %v10917_v32 = vcombine.low %v10909_v3, %v10916_v22  ;;  %v10572_v34 = vadd.f32 1.0, %v12542_v27  ;;  %12549 = vrcp.f32 %v10571_v16  ;;  %v9596_v6 = vadd.f32 1.0, %v9532_v51  ;;  %v18914_v16 = vld [vmem:[#allocation51_spill] sm:$0xff]  ;;  %v18917_v27 = vld [vmem:[#allocation32_spill] sm:$0xff] }
 0x3b4   : > { %v12546_v9 = vpop.eup %12545  ;;  %v10573_v49 = vadd.f32 1.0, %v12544_v5  ;;  %v17446_v44 = vrot.slane %v10180_v2, %v14079_v59  ;;  %12551 = vpow2.f32 %v11543_v56  ;;  %v11545_v12 = vmul.f32 -1.442695, %v17440_v46  ;;  %v18916_v2 = vld [vmem:[#allocation42_spill] sm:$0xff] }
 0x3b5   : > { %v11093_v62 = vsel %vm17058_vm11, %v10917_v32, %v17367_v24  ;;  %v10574_v54 = vadd.f32 1.0, %v12546_v9  ;;  %12553 = vrcp.f32 %v10572_v34  ;;  %v9828_v60 = vcombine.low %v9596_v6, %v9597_v43 }
 0x3b6   : > { %11109 = vst [vmem:[%s17077_s29 + $0x30] sm:$0xff] %v11093_v62  ;;  %12555 = vrcp.f32 %v10573_v49  ;;  %v8574_v18 = vrot.slane %v8339_v19, 7  ;;  %v8577_v57 = vrot.slane %v17422_v10, 7  ;;  %v8580_v30 = vrot.slane %v8340_v63, 7 }
 0x3b7   : > { %12557 = vrcp.f32 %v10574_v54  ;;  %v17455_v13 = vrot.slane %v9828_v60, %v14079_v59  ;;  %v8348_v41 = vrot.slane %v18912_v1, %v14079_v59  ;;  %v8355_v45 = vrot.slane %v8341_v48, %v14079_v59 }
 0x3b8   : > { %12559 = vpow2.f32 %v11545_v12  ;;  %v8576_v24 = vrot.slane %v8574_v18, 2  ;;  %v8579_v4 = vrot.slane %v8577_v57, 2  ;;  %v8582_v35 = vrot.slane %v8580_v30, 2 }
 0x3b9   : > { %v8356_v31 = vcombine.high %v8348_v41, %v8348_v41  ;;  %v8357_v26 = vcombine.high %v8355_v45, %v8355_v45  ;;  %v8583_v3 = vrot.slane %v8348_v41, 7  ;;  %v8587_v19 = vrot.slane %v8355_v45, 7 }
 0x3ba   : > { %v8572_v10 = vsel %vm14372_vm7, %v8570_v52, %v8571_v37  ;;  %v8575_v63 = vsel %vm14372_vm7, %v8573_v8, %v8574_v18  ;;  %v8578_v1 = vsel %vm14372_vm7, %v8576_v24, %v8577_v57  ;;  %v8581_v48 = vsel %vm14372_vm7, %v8579_v4, %v8580_v30  ;;  %v18915_v52 = vld [vmem:[#allocation41_spill] sm:$0xff]  ;;  %v18918_v4 = vld [vmem:[#allocation144_spill] sm:$0xff] }
 0x3bb   : > { %v11499_v21 = vrot.slane %v8356_v31, 9  ;;  %v17470_v29 = vrot.slane %v8587_v19, 2  ;;  %v17472_v23 = vrot.slane %v8357_v26, 7  ;;  %v8759_v22 = vadd.f32 %v8572_v10, %v18913_v53 }
 0x3bc   : > { %v12548_v14 = vpop.eup %12547  ;;  %v8760_v51 = vadd.f32 %v8575_v63, %v18914_v16  ;;  %v8761_v37 = vadd.f32 %v8578_v1, %v18915_v52  ;;  %v8762_v8 = vadd.f32 %v8581_v48, %v18916_v2  ;;  %v9144_v43 = vcombine.high %v18917_v27, %v18917_v27 }
 0x3bd   : > { %v12550_v56 = vpop.eup %12549  ;;  %v10576_v5 = vadd.f32 1.0, %v12548_v14  ;;  %v8592_v32 = vrot.slane %v17472_v23, 2  ;;  %v9151_v34 = vrot.slane %v18917_v27, %v14079_v59  ;;  %v9598_v6 = vadd.f32 1.0, %v9534_v17 }
 0x3be   : > { %v12552_v9 = vpop.eup %12551  ;;  %v9158_v49 = vrot.slane %v9144_v43, %v14079_v59  ;;  %v8584_v12 = vsel %vm14372_vm7, %v8582_v35, %v8583_v3  ;;  %v8588_v62 = vsel %vm14372_vm7, %v11499_v21, %v8587_v19  ;;  %v8591_v54 = vsel %vm14372_vm7, %v17470_v29, %v17472_v23  ;;  %v18919_v19 = vld [vmem:[#allocation146_spill] sm:$0xff] }
 0x3bf   : > { %v12554_v60 = vpop.eup %12553  ;;  %v10575_v18 = vadd.f32 1.0, %v12552_v9  ;;  %12561 = vrcp.f32 %v10576_v5  ;;  %v9159_v57 = vcombine.high %v9151_v34, %v9151_v34  ;;  %v9377_v30 = vadd.f32 %v9151_v34, %v8759_v22 }
 0x3c0   : > { %v12556_v17 = vpop.eup %12555  ;;  %v10918_v41 = vcombine.low %v12550_v56, %v12554_v60  ;;  %v9160_v45 = vcombine.high %v9158_v49, %v9158_v49  ;;  %v9379_v24 = vadd.f32 %v9158_v49, %v8761_v37  ;;  %v8763_v31 = vadd.f32 %v8584_v12, %v18918_v4 }
 0x3c1   : > { %v12558_v35 = vpop.eup %12557  ;;  %12563 = vrcp.f32 %v10575_v18  ;;  %v9378_v26 = vadd.f32 %v9159_v57, %v8760_v51  ;;  %v9468_v3 = vadd.f32 %v16946_v28, %v9377_v30  ;;  %v8764_v10 = vadd.f32 %v8588_v62, %v18919_v19 }
 0x3c2   : > { %v12560_v63 = vpop.eup %12559  ;;  %v10919_v1 = vcombine.low %v12556_v17, %v12558_v35  ;;  %v10926_v48 = vrot.slane %v10918_v41, %v14079_v59  ;;  %v9380_v21 = vadd.f32 %v9160_v45, %v8762_v8  ;;  %v9470_v29 = vadd.f32 %v16928_v58, %v9379_v24 }
 0x3c3   : > { %v10577_v53 = vadd.f32 1.0, %v12560_v63  ;;  %v9469_v22 = vadd.f32 %v16911_v50, %v9378_v26  ;;  %v9535_v14 = vmul.f32 %v9468_v3, %v9468_v3  ;;  %v10181_v16 = vcombine.low %v17440_v46, %v9468_v3  ;;  %v18922_v63 = vld [vmem:[#allocation66_spill] sm:$0xff] }
 0x3c4   : > { %v10933_v52 = vrot.slane %v10919_v1, %v14079_v59  ;;  %v17501_v51 = vadd.f32 %v16924_v33, %v9380_v21  ;;  %v9537_v37 = vmul.f32 %v9470_v29, %v9470_v29  ;;  %v11546_v2 = vmul.f32 -1.442695, %v9468_v3 }
 0x3c5   : > { %12565 = vrcp.f32 %v10577_v53  ;;  %v9536_v27 = vmul.f32 %v9469_v22, %v9469_v22  ;;  %v9599_v43 = vadd.f32 1.0, %v9535_v14  ;;  %v10195_v8 = vrot.slane %v10181_v16, %v14079_v59 }
 0x3c6   : > { %v10934_v56 = vcombine.low %v10926_v48, %v10933_v52  ;;  %v9538_v5 = vmul.f32 %v17501_v51, %v17501_v51  ;;  %v9601_v34 = vadd.f32 1.0, %v9537_v37  ;;  %v10197_v9 = vcombine.low %v9469_v22, %v9470_v29 }
 0x3c7   : > { %v9600_v46 = vadd.f32 1.0, %v9536_v27  ;;  %v9829_v49 = vcombine.low %v9598_v6, %v9599_v43  ;;  %v10196_v12 = vcombine.low %v17446_v44, %v10195_v8  ;;  %12567 = vpow2.f32 %v11546_v2  ;;  %v18920_v6 = vld [vmem:[#allocation147_spill] sm:$0xff]  ;;  %v18921_v44 = vld [vmem:[#allocation74_spill] sm:$0xff] }
 0x3c8   : > { %v11094_v62 = vsel %vm17058_vm11, %v10934_v56, %v17436_v40  ;;  %v17511_v60 = vrot.slane %v10197_v9, %v14079_v59  ;;  %v11547_v18 = vmul.f32 -1.442695, %v9469_v22  ;;  %v11548_v57 = vmul.f32 -1.442695, %v9470_v29  ;;  %v18923_v22 = vld [vmem:[#allocation60_spill] sm:$0xff] }
 0x3c9   : > { %v12562_v30 = vpop.eup %12561  ;;  %11110 = vst [vmem:[%s17077_s29 + $0x38] sm:$0xff] %v11094_v62  ;;  %v9843_v17 = vrot.slane %v9829_v49, %v14079_v59  ;;  %v9845_v41 = vcombine.low %v9600_v46, %v9601_v34  ;;  %v11549_v45 = vmul.f32 -1.442695, %v17501_v51  ;;  %v8765_v24 = vadd.f32 %v8591_v54, %v18920_v6 }
 0x3ca   : > { %12569 = vpow2.f32 %v11547_v18  ;;  %v9161_v4 = vcombine.high %v18921_v44, %v18921_v44  ;;  %v9168_v40 = vrot.slane %v18921_v44, %v14079_v59  ;;  %v9602_v35 = vadd.f32 1.0, %v9538_v5 }
 0x3cb   : > { %v12564_v26 = vpop.eup %12563  ;;  %v9844_v3 = vcombine.low %v17455_v13, %v9843_v17  ;;  %v17523_v19 = vrot.slane %v9845_v41, %v14079_v59  ;;  %12571 = vpow2.f32 %v11548_v57  ;;  %v8358_v1 = vcombine.high %v18922_v63, %v18922_v63 }
 0x3cc   : > { %v10935_v48 = vcombine.low %v12564_v26, %v12562_v30  ;;  %12573 = vpow2.f32 %v11549_v45  ;;  %v9175_v54 = vrot.slane %v9161_v4, %v14079_v59  ;;  %v9381_v21 = vadd.f32 %v9168_v40, %v8763_v31 }
 0x3cd   : > { %v17530_v29 = vsel %vm9499_vm8, %v9844_v3, %v10196_v12  ;;  %v8365_v53 = vrot.slane %v18922_v63, %v14079_v59  ;;  %v17535_v13 = vrot.slane %v8358_v1, %v14079_v59  ;;  %v8375_v14 = vcombine.high %v18923_v22, %v18923_v22 }
 0x3ce   : > { %v17540_v16 = vrot.slane %v10935_v48, %v14079_v59  ;;  %v9176_v52 = vcombine.high %v9175_v54, %v9175_v54  ;;  %v9382_v37 = vadd.f32 %v9175_v54, %v8764_v10  ;;  %v9472_v31 = vadd.f32 %v16946_v28, %v9381_v21 }
 0x3cf   : > { %v17543_v2 = vpop.eup %12565  ;;  %v8373_v27 = vcombine.high %v8365_v53, %v8365_v53  ;;  %v8374_v43 = vcombine.high %v17535_v13, %v17535_v13  ;;  %v8593_v8 = vrot.slane %v8365_v53, 7  ;;  %v8599_v56 = vrot.slane %v17535_v13, 7 }
 0x3d0   : > { %v9383_v5 = vadd.f32 %v9176_v52, %v8765_v24  ;;  %v9473_v34 = vadd.f32 %v16911_v50, %v9382_v37  ;;  %v9539_v9 = vmul.f32 %v9472_v31, %v9472_v31  ;;  %v10198_v46 = vcombine.low %v17501_v51, %v9472_v31 }
 0x3d1   : > { %v12568_v49 = vpop.eup %12567  ;;  %v11550_v12 = vmul.f32 -1.442695, %v9472_v31  ;;  %v8595_v10 = vrot.slane %v8593_v8, 2  ;;  %v8596_v62 = vrot.slane %v8373_v27, 7  ;;  %v8601_v18 = vrot.slane %v8599_v56, 2 }
 0x3d2   : > { %v10578_v57 = vadd.f32 1.0, %v12568_v49  ;;  %v9474_v30 = vadd.f32 %v16928_v58, %v9383_v5  ;;  %v9540_v17 = vmul.f32 %v9473_v34, %v9473_v34  ;;  %v9603_v41 = vadd.f32 1.0, %v9539_v9 }
 0x3d3   : > { %v10212_v45 = vrot.slane %v10198_v46, %v14079_v59  ;;  %12575 = vpow2.f32 %v11550_v12  ;;  %v11551_v6 = vmul.f32 -1.442695, %v9473_v34  ;;  %v8598_v24 = vrot.slane %v8596_v62, 2 }
 0x3d4   : > { %v12570_v44 = vpop.eup %12569  ;;  %12577 = vrcp.f32 %v10578_v57  ;;  %v9541_v4 = vmul.f32 %v9474_v30, %v9474_v30  ;;  %v9604_v40 = vadd.f32 1.0, %v9540_v17  ;;  %v9846_v51 = vcombine.low %v9602_v35, %v9603_v41 }
 0x3d5   : > { %v12572_v26 = vpop.eup %12571  ;;  %v10579_v3 = vadd.f32 1.0, %v12570_v44  ;;  %v10213_v63 = vcombine.low %v17511_v60, %v10212_v45  ;;  %v10214_v1 = vcombine.low %v9473_v34, %v9474_v30  ;;  %12579 = vpow2.f32 %v11551_v6  ;;  %v18925_v6 = vld [vmem:[#allocation151_spill] sm:$0xff] }
 0x3d6   : > { %v12574_v48 = vpop.eup %12573  ;;  %v10580_v54 = vadd.f32 1.0, %v12572_v26  ;;  %v9605_v21 = vadd.f32 1.0, %v9541_v4  ;;  %v9860_v53 = vrot.slane %v9846_v51, %v14079_v59  ;;  %v11552_v13 = vmul.f32 -1.442695, %v9474_v30  ;;  %v18926_v4 = vld [vmem:[#allocation148_spill] sm:$0xff] }
 0x3d7   : > { %v10581_v52 = vadd.f32 1.0, %v12574_v48  ;;  %12581 = vrcp.f32 %v10579_v3  ;;  %v17555_v37 = vrot.slane %v10214_v1, %v14079_v59  ;;  %v8602_v31 = vrot.slane %v8374_v43, 7 }
 0x3d8   : > { %12583 = vrcp.f32 %v10580_v54  ;;  %v9861_v35 = vcombine.low %v17523_v19, %v9860_v53  ;;  %v9862_v27 = vcombine.low %v9604_v40, %v9605_v21  ;;  %v8382_v60 = vrot.slane %v18923_v22, %v14079_v59 }
 0x3d9   : > { %12585 = vrcp.f32 %v10581_v52  ;;  %v8604_v5 = vrot.slane %v8602_v31, 2  ;;  %v8389_v34 = vrot.slane %v8375_v14, %v14079_v59  ;;  %v8594_v9 = vsel %vm14372_vm7, %v8592_v32, %v8593_v8  ;;  %v18924_v8 = vld [vmem:[#allocation55_spill] sm:$0xff] }
 0x3da   : > { %v17566_v46 = vrot.slane %v9862_v27, %v14079_v59  ;;  %v17570_v43 = vsel %vm9499_vm8, %v9861_v35, %v10213_v63  ;;  %12587 = vpow2.f32 %v11552_v13  ;;  %v8390_v19 = vcombine.high %v8382_v60, %v8382_v60 }
 0x3db   : > { %v8391_v49 = vcombine.high %v8389_v34, %v8389_v34  ;;  %v8605_v22 = vrot.slane %v8382_v60, 7  ;;  %v11500_v12 = vrot.slane %v8389_v34, 9  ;;  %v8597_v14 = vsel %vm14372_vm7, %v8595_v10, %v8596_v62  ;;  %v18927_v10 = vld [vmem:[#allocation50_spill] sm:$0xff] }
 0x3dc   : > { %v8608_v57 = vrot.slane %v8390_v19, 7  ;;  %v8600_v23 = vsel %vm14372_vm7, %v8598_v24, %v8599_v56  ;;  %v8603_v32 = vsel %vm14372_vm7, %v8601_v18, %v8602_v31  ;;  %v8766_v30 = vadd.f32 %v8594_v9, %v18924_v8  ;;  %v18928_v31 = vld [vmem:[#allocation46_spill] sm:$0xff] }
 0x3dd   : > { %v12576_v17 = vpop.eup %12575  ;;  %v8607_v41 = vrot.slane %v8605_v22, 2  ;;  %v17579_v45 = vrot.slane %v8391_v49, 7  ;;  %v8767_v44 = vadd.f32 %v8597_v14, %v18925_v6  ;;  %v8768_v40 = vadd.f32 %v8600_v23, %v18926_v4  ;;  %v18929_v14 = vld [vmem:[#allocation149_spill] sm:$0xff] }
 0x3de   : > { %v12578_v51 = vpop.eup %12577  ;;  %v10582_v26 = vadd.f32 1.0, %v12576_v17  ;;  %v8769_v62 = vadd.f32 %v8603_v32, %v18927_v10  ;;  %v9177_v56 = vcombine.high %v17125_v36, %v17125_v36  ;;  %v9184_v18 = vrot.slane %v17125_v36, %v14079_v59 }
 0x3df   : > { %v12580_v24 = vpop.eup %12579  ;;  %v10936_v3 = vcombine.low %v17543_v2, %v12578_v51  ;;  %v8614_v63 = vrot.slane %v17579_v45, 2  ;;  %v8606_v1 = vsel %vm14372_vm7, %v8604_v5, %v8605_v22  ;;  %v8609_v48 = vsel %vm14372_vm7, %v8607_v41, %v8608_v57 }
 0x3e0   : > { %v10583_v54 = vadd.f32 1.0, %v12580_v24  ;;  %12589 = vrcp.f32 %v10582_v26  ;;  %v9191_v21 = vrot.slane %v9177_v56, %v14079_v59  ;;  %v9192_v53 = vcombine.high %v9184_v18, %v9184_v18 }
 0x3e1   : > { %v12582_v13 = vpop.eup %12581  ;;  %v10950_v52 = vrot.slane %v10936_v3, %v14079_v59  ;;  %v9384_v36 = vadd.f32 %v9184_v18, %v8766_v30  ;;  %v8613_v2 = vsel %vm14372_vm7, %v11500_v12, %v17579_v45  ;;  %v8770_v35 = vadd.f32 %v8606_v1, %v18928_v31  ;;  %v18930_v30 = vld [vmem:[#allocation45_spill] sm:$0xff] }
 0x3e2   : > { %v12584_v27 = vpop.eup %12583  ;;  %12591 = vrcp.f32 %v10583_v54  ;;  %v9193_v60 = vcombine.high %v9191_v21, %v9191_v21  ;;  %v9385_v5 = vadd.f32 %v9192_v53, %v8767_v44  ;;  %v9386_v34 = vadd.f32 %v9191_v21, %v8768_v40 }
 0x3e3   : > { %v12586_v9 = vpop.eup %12585  ;;  %v10951_v19 = vcombine.low %v17540_v16, %v10950_v52  ;;  %v10952_v49 = vcombine.low %v12582_v13, %v12584_v27  ;;  %v9475_v22 = vadd.f32 %v16924_v33, %v9384_v36  ;;  %v8771_v57 = vadd.f32 %v8609_v48, %v18929_v14 }
 0x3e4   : > { %v12588_v23 = vpop.eup %12587  ;;  %v9387_v32 = vadd.f32 %v9193_v60, %v8769_v62  ;;  %v9476_v12 = vadd.f32 %v16946_v28, %v9385_v5  ;;  %v9477_v8 = vadd.f32 %v16911_v50, %v9386_v34  ;;  %v8772_v17 = vadd.f32 %v8613_v2, %v18930_v30 }
 0x3e5   : > { %v11095_v41 = vsel %vm17058_vm11, %v10951_v19, %v17530_v29  ;;  %v10584_v6 = vadd.f32 1.0, %v12588_v23  ;;  %v10960_v16 = vrot.slane %v10952_v49, %v14079_v59  ;;  %v9542_v44 = vmul.f32 %v9475_v22, %v9475_v22 }
 0x3e6   : > { %11111 = vst [vmem:[%s17077_s29 + $0x40] sm:$0xff] %v11095_v41  ;;  %v9478_v4 = vadd.f32 %v16928_v58, %v9387_v32  ;;  %v9543_v40 = vmul.f32 %v9476_v12, %v9476_v12  ;;  %v9544_v51 = vmul.f32 %v9477_v8, %v9477_v8  ;;  %v10215_v26 = vcombine.low %v9475_v22, %v9476_v12 }
 0x3e7   : > { %12593 = vrcp.f32 %v10584_v6  ;;  %v9606_v10 = vadd.f32 1.0, %v9542_v44  ;;  %v11553_v62 = vmul.f32 -1.442695, %v9475_v22  ;;  %v11554_v56 = vmul.f32 -1.442695, %v9476_v12 }
 0x3e8   : > { %v9545_v18 = vmul.f32 %v9478_v4, %v9478_v4  ;;  %v9607_v24 = vadd.f32 1.0, %v9543_v40  ;;  %v9608_v3 = vadd.f32 1.0, %v9544_v51  ;;  %v10229_v1 = vrot.slane %v10215_v26, %v14079_v59 }
 0x3e9   : > { %v10231_v29 = vcombine.low %v9477_v8, %v9478_v4  ;;  %12595 = vpow2.f32 %v11553_v62  ;;  %v11555_v48 = vmul.f32 -1.442695, %v9477_v8  ;;  %v11556_v54 = vmul.f32 -1.442695, %v9478_v4 }
 0x3ea   : > { %v12590_v21 = vpop.eup %12589  ;;  %v9609_v53 = vadd.f32 1.0, %v9545_v18  ;;  %v9863_v13 = vcombine.low %v9606_v10, %v9607_v24  ;;  %v10230_v52 = vcombine.low %v17555_v37, %v10229_v1  ;;  %12597 = vpow2.f32 %v11554_v56 }
 0x3eb   : > { %v10953_v36 = vcombine.low %v12586_v9, %v12590_v21  ;;  %v17615_v2 = vrot.slane %v10231_v29, %v14079_v59  ;;  %12599 = vpow2.f32 %v11555_v48  ;;  %v9194_v31 = vcombine.high %v17151_v20, %v17151_v20 }
 0x3ec   : > { %v12592_v27 = vpop.eup %12591  ;;  %v9877_v60 = vrot.slane %v9863_v13, %v14079_v59  ;;  %v9879_v5 = vcombine.low %v9608_v3, %v9609_v53  ;;  %12601 = vpow2.f32 %v11556_v54  ;;  %v9201_v34 = vrot.slane %v17151_v20, %v14079_v59 }
 0x3ed   : > { %v10967_v19 = vrot.slane %v10953_v36, %v14079_v59  ;;  %v9208_v37 = vrot.slane %v9194_v31, %v14079_v59  ;;  %v8392_v9 = vcombine.high %v17201_v0, %v17201_v0  ;;  %v8399_v49 = vrot.slane %v17201_v0, %v14079_v59 }
 0x3ee   : > { %v9878_v22 = vcombine.low %v17566_v46, %v9877_v60  ;;  %v17630_v14 = vrot.slane %v9879_v5, %v14079_v59  ;;  %v9209_v23 = vcombine.high %v9201_v34, %v9201_v34  ;;  %v9388_v32 = vadd.f32 %v9201_v34, %v8770_v35 }
 0x3ef   : > { %v10968_v12 = vcombine.low %v10960_v16, %v10967_v19  ;;  %v9210_v20 = vcombine.high %v9208_v37, %v9208_v37  ;;  %v8406_v8 = vrot.slane %v8392_v9, %v14079_v59  ;;  %v8407_v30 = vcombine.high %v8399_v49, %v8399_v49 }
 0x3f0   : > { %v17635_v41 = vsel %vm9499_vm8, %v9878_v22, %v10230_v52  ;;  %v9389_v6 = vadd.f32 %v9209_v23, %v8771_v57  ;;  %v9479_v0 = vadd.f32 %v16924_v33, %v9388_v32  ;;  %v8615_v44 = vrot.slane %v8399_v49, 7 }
 0x3f1   : > { %v12594_v46 = vpop.eup %12593  ;;  %v11096_v4 = vsel %vm17058_vm11, %v10968_v12, %v17570_v43  ;;  %v9390_v40 = vadd.f32 %v9210_v20, %v8772_v17  ;;  %v8408_v35 = vcombine.high %v8406_v8, %v8406_v8  ;;  %v8618_v16 = vrot.slane %v8407_v30, 7 }
 0x3f2   : > { %v10969_v51 = vcombine.low %v12592_v27, %v12594_v46  ;;  %11112 = vst [vmem:[%s17077_s29 + $0x48] sm:$0xff] %v11096_v4  ;;  %v9480_v26 = vadd.f32 %v16946_v28, %v9389_v6  ;;  %v9546_v10 = vmul.f32 %v9479_v0, %v9479_v0  ;;  %v11557_v62 = vmul.f32 -1.442695, %v9479_v0 }
 0x3f3   : > { %v12596_v56 = vpop.eup %12595  ;;  %v17644_v57 = vadd.f32 %v16911_v50, %v9390_v40  ;;  %v8617_v18 = vrot.slane %v8615_v44, 2  ;;  %v8620_v24 = vrot.slane %v8618_v16, 2  ;;  %v8621_v3 = vrot.slane %v8406_v8, 7 }
 0x3f4   : > { %v12598_v1 = vpop.eup %12597  ;;  %v10585_v29 = vadd.f32 1.0, %v12596_v56  ;;  %v17647_v43 = vrot.slane %v10969_v51, %v14079_v59  ;;  %v9547_v17 = vmul.f32 %v9480_v26, %v9480_v26  ;;  %v9610_v48 = vadd.f32 1.0, %v9546_v10  ;;  %v18933_v56 = vld [vmem:[#allocation48_spill] sm:$0xff] }
 0x3f5   : > { %v12600_v54 = vpop.eup %12599  ;;  %v10586_v21 = vadd.f32 1.0, %v12598_v1  ;;  %v9548_v53 = vmul.f32 %v17644_v57, %v17644_v57  ;;  %v10232_v13 = vcombine.low %v9479_v0, %v9480_v26  ;;  %12603 = vpow2.f32 %v11557_v62 }
 0x3f6   : > { %v12602_v52 = vpop.eup %12601  ;;  %v10587_v36 = vadd.f32 1.0, %v12600_v54  ;;  %12605 = vrcp.f32 %v10585_v29  ;;  %v9611_v31 = vadd.f32 1.0, %v9547_v17  ;;  %v11558_v27 = vmul.f32 -1.442695, %v9480_v26  ;;  %v18932_v26 = vld [vmem:[#allocation63_spill] sm:$0xff] }
 0x3f7   : > { %v10588_v60 = vadd.f32 1.0, %v12602_v52  ;;  %12607 = vrcp.f32 %v10586_v21  ;;  %v17651_v5 = vadd.f32 1.0, %v9548_v53  ;;  %v10246_v34 = vrot.slane %v10232_v13, %v14079_v59 }
 0x3f8   : > { %12609 = vrcp.f32 %v10587_v36  ;;  %v9880_v19 = vcombine.low %v9610_v48, %v9611_v31  ;;  %v11559_v37 = vmul.f32 -1.442695, %v17644_v57  ;;  %v8623_v9 = vrot.slane %v8621_v3, 2  ;;  %v18935_v36 = vld [vmem:[#allocation49_spill] sm:$0xff] }
 0x3f9   : > { %12611 = vrcp.f32 %v10588_v60  ;;  %v10247_v49 = vcombine.low %v17615_v2, %v10246_v34  ;;  %v8624_v22 = vrot.slane %v8408_v35, 7  ;;  %v8409_v23 = vcombine.high %v17217_v25, %v17217_v25 }
 0x3fa   : > { %v9894_v32 = vrot.slane %v9880_v19, %v14079_v59  ;;  %12613 = vpow2.f32 %v11558_v27  ;;  %v8416_v12 = vrot.slane %v17217_v25, %v14079_v59  ;;  %v8616_v20 = vsel %vm14372_vm7, %v8614_v63, %v8615_v44  ;;  %v18931_v63 = vld [vmem:[#allocation23_spill] sm:$0xff] }
 0x3fb   : > { %12615 = vpow2.f32 %v11559_v37  ;;  %v8626_v8 = vrot.slane %v8624_v22, 2  ;;  %v8423_v30 = vrot.slane %v8409_v23, %v14079_v59  ;;  %v8619_v2 = vsel %vm14372_vm7, %v8617_v18, %v8618_v16  ;;  %v18936_v23 = vld [vmem:[#allocation150_spill] sm:$0xff] }
 0x3fc   : > { %v9895_v6 = vcombine.low %v17630_v14, %v9894_v32  ;;  %v8424_v0 = vcombine.high %v8416_v12, %v8416_v12  ;;  %v8627_v46 = vrot.slane %v8416_v12, 7  ;;  %v8622_v4 = vsel %vm14372_vm7, %v8620_v24, %v8621_v3  ;;  %v18934_v24 = vld [vmem:[#allocation47_spill] sm:$0xff] }
 0x3fd   : > { %v8425_v25 = vcombine.high %v8423_v30, %v8423_v30  ;;  %v8633_v40 = vrot.slane %v8423_v30, 7  ;;  %v8625_v45 = vsel %vm14372_vm7, %v8623_v9, %v8624_v22  ;;  %v8773_v44 = vadd.f32 %v8616_v20, %v18931_v63 }
 0x3fe   : > { %v17676_v35 = vsel %vm9499_vm8, %v9895_v6, %v10247_v49  ;;  %v8629_v51 = vrot.slane %v8627_v46, 2  ;;  %v8630_v16 = vrot.slane %v8424_v0, 7  ;;  %v8774_v14 = vadd.f32 %v8619_v2, %v18932_v26 }
 0x3ff   : > { %v12604_v10 = vpop.eup %12603  ;;  %v17679_v62 = vrot.slane %v8425_v25, 9  ;;  %v8775_v18 = vadd.f32 %v8622_v4, %v18933_v56  ;;  %v8776_v3 = vadd.f32 %v8625_v45, %v18934_v24  ;;  %v9211_v1 = vcombine.high %v17252_v11, %v17252_v11  ;;  %v18937_v25 = vld [vmem:[#allocation53_spill] sm:$0xff] }
 0x400   : > { %v12606_v29 = vpop.eup %12605  ;;  %v10589_v17 = vadd.f32 1.0, %v12604_v10  ;;  %v8632_v48 = vrot.slane %v8630_v16, 2  ;;  %v9218_v54 = vrot.slane %v17252_v11, %v14079_v59  ;;  %v8628_v21 = vsel %vm14372_vm7, %v8626_v8, %v8627_v46 }
 0x401   : > { %v12608_v53 = vpop.eup %12607  ;;  %v9225_v13 = vrot.slane %v9211_v1, %v14079_v59  ;;  %v8631_v52 = vsel %vm14372_vm7, %v8629_v51, %v8630_v16  ;;  %v8777_v31 = vadd.f32 %v8628_v21, %v18935_v36  ;;  %v9228_v27 = vcombine.high %v17277_v38, %v17277_v38 }
 0x402   : > { %v12610_v60 = vpop.eup %12609  ;;  %v10970_v34 = vcombine.low %v12606_v29, %v12608_v53  ;;  %12617 = vrcp.f32 %v10589_v17  ;;  %v9226_v19 = vcombine.high %v9218_v54, %v9218_v54  ;;  %v9391_v37 = vadd.f32 %v9218_v54, %v8773_v44 }
 0x403   : > { %v12612_v11 = vpop.eup %12611  ;;  %v9227_v9 = vcombine.high %v9225_v13, %v9225_v13  ;;  %v9393_v49 = vadd.f32 %v9225_v13, %v8775_v18  ;;  %v8634_v22 = vsel %vm14372_vm7, %v8632_v48, %v8633_v40  ;;  %v8778_v32 = vadd.f32 %v8631_v52, %v18936_v23 }
 0x404   : > { %v12614_v12 = vpop.eup %12613  ;;  %v10984_v20 = vrot.slane %v10970_v34, %v14079_v59  ;;  %v10986_v8 = vcombine.low %v12610_v60, %v12612_v11  ;;  %v9392_v30 = vadd.f32 %v9226_v19, %v8774_v14  ;;  %v9482_v2 = vadd.f32 %v16928_v58, %v9391_v37 }
 0x405   : > { %v12616_v6 = vpop.eup %12615  ;;  %v10590_v0 = vadd.f32 1.0, %v12614_v12  ;;  %v9394_v46 = vadd.f32 %v9227_v9, %v8776_v3  ;;  %v9484_v4 = vadd.f32 %v16946_v28, %v9393_v49  ;;  %v8779_v45 = vadd.f32 %v8634_v22, %v18937_v25 }
 0x406   : > { %v10985_v63 = vcombine.low %v17647_v43, %v10984_v20  ;;  %v10591_v40 = vadd.f32 1.0, %v12616_v6  ;;  %v17704_v44 = vrot.slane %v10986_v8, %v14079_v59  ;;  %v9483_v51 = vadd.f32 %v16924_v33, %v9392_v30 }
 0x407   : > { %12619 = vrcp.f32 %v10590_v0  ;;  %v9485_v16 = vadd.f32 %v16911_v50, %v9394_v46  ;;  %v9549_v26 = vmul.f32 %v9482_v2, %v9482_v2  ;;  %v9551_v14 = vmul.f32 %v9484_v4, %v9484_v4 }
 0x408   : > { %v11097_v10 = vsel %vm17058_vm11, %v10985_v63, %v17635_v41  ;;  %12621 = vrcp.f32 %v10591_v40  ;;  %v9550_v56 = vmul.f32 %v9483_v51, %v9483_v51  ;;  %v10248_v18 = vcombine.low %v17644_v57, %v9482_v2 }
 0x409   : > { %11113 = vst [vmem:[%s17077_s29 + $0x50] sm:$0xff] %v11097_v10  ;;  %v9552_v43 = vmul.f32 %v9485_v16, %v9485_v16  ;;  %v9613_v24 = vadd.f32 1.0, %v9549_v26  ;;  %v9615_v3 = vadd.f32 1.0, %v9551_v14  ;;  %v10249_v1 = vcombine.low %v9483_v51, %v9484_v4 }
 0x40a   : > { %v9614_v29 = vadd.f32 1.0, %v9550_v56  ;;  %v10256_v17 = vrot.slane %v10248_v18, %v14079_v59  ;;  %v11560_v48 = vmul.f32 -1.442695, %v9482_v2  ;;  %v11561_v54 = vmul.f32 -1.442695, %v9483_v51 }
 0x40b   : > { %v9896_v21 = vcombine.low %v17651_v5, %v9613_v24  ;;  %v10263_v53 = vrot.slane %v10249_v1, %v14079_v59  ;;  %v11562_v13 = vmul.f32 -1.442695, %v9484_v4  ;;  %v11563_v41 = vmul.f32 -1.442695, %v9485_v16 }
 0x40c   : > { %v12618_v52 = vpop.eup %12617  ;;  %v9897_v36 = vcombine.low %v9614_v29, %v9615_v3  ;;  %12623 = vpow2.f32 %v11560_v48  ;;  %v9235_v57 = vrot.slane %v17277_v38, %v14079_v59  ;;  %v9242_v60 = vrot.slane %v9228_v27, %v14079_v59 }
 0x40d   : > { %v9904_v34 = vrot.slane %v9896_v21, %v14079_v59  ;;  %v10264_v19 = vcombine.low %v10256_v17, %v10263_v53  ;;  %12625 = vpow2.f32 %v11561_v54  ;;  %v9616_v37 = vadd.f32 1.0, %v9552_v43 }
 0x40e   : > { %v9911_v11 = vrot.slane %v9897_v36, %v14079_v59  ;;  %12627 = vpow2.f32 %v11562_v13  ;;  %v9243_v5 = vcombine.high %v9235_v57, %v9235_v57  ;;  %v9395_v9 = vadd.f32 %v9235_v57, %v8777_v31 }
 0x40f   : > { %12629 = vpow2.f32 %v11563_v41  ;;  %v9397_v49 = vadd.f32 %v9242_v60, %v8779_v45  ;;  %v8426_v22 = vcombine.high %v17335_v39, %v17335_v39  ;;  %v17725_v38 = vrot.slane %v17335_v39, %v14079_v59 }
 0x410   : > { %v9912_v27 = vcombine.low %v9904_v34, %v9911_v11  ;;  %v9396_v23 = vadd.f32 %v9243_v5, %v8778_v32  ;;  %v9486_v12 = vadd.f32 %v16928_v58, %v9395_v9  ;;  %v8443_v20 = vcombine.high %v17359_v7, %v17359_v7 }
 0x411   : > { %v12620_v8 = vpop.eup %12619  ;;  %v9488_v30 = vadd.f32 %v16946_v28, %v9397_v49  ;;  %v17732_v31 = vrot.slane %v8426_v22, %v14079_v59  ;;  %v8441_v2 = vcombine.high %v17725_v38, %v17725_v38  ;;  %v8637_v6 = vrot.slane %v17725_v38, 7 }
 0x412   : > { %v17737_v39 = vpop.eup %12621  ;;  %v10987_v0 = vcombine.low %v12618_v52, %v12620_v8  ;;  %v17741_v32 = vsel %vm9499_vm8, %v9912_v27, %v10264_v19  ;;  %v9487_v46 = vadd.f32 %v16924_v33, %v9396_v23  ;;  %v9553_v4 = vmul.f32 %v9486_v12, %v9486_v12 }
 0x413   : > { %v9555_v25 = vmul.f32 %v9488_v30, %v9488_v30  ;;  %v10265_v45 = vcombine.low %v9485_v16, %v9486_v12  ;;  %v11564_v63 = vmul.f32 -1.442695, %v9486_v12  ;;  %v11566_v40 = vmul.f32 -1.442695, %v9488_v30 }
 0x414   : > { %v11001_v51 = vrot.slane %v10987_v0, %v14079_v59  ;;  %v9554_v26 = vmul.f32 %v9487_v46, %v9487_v46  ;;  %v9617_v14 = vadd.f32 1.0, %v9553_v4  ;;  %v10266_v10 = vcombine.low %v9487_v46, %v9488_v30 }
 0x415   : > { %v9619_v56 = vadd.f32 1.0, %v9555_v25  ;;  %v10273_v18 = vrot.slane %v10265_v45, %v14079_v59  ;;  %12631 = vpow2.f32 %v11564_v63  ;;  %v11565_v43 = vmul.f32 -1.442695, %v9487_v46 }
 0x416   : > { %v12624_v24 = vpop.eup %12623  ;;  %v11002_v3 = vcombine.low %v17704_v44, %v11001_v51  ;;  %v9618_v1 = vadd.f32 1.0, %v9554_v26  ;;  %v9913_v29 = vcombine.low %v9616_v37, %v9617_v14  ;;  %v10280_v16 = vrot.slane %v10266_v10, %v14079_v59  ;;  %v18938_v14 = vld [vmem:[#allocation54_spill] sm:$0xff] }
 0x417   : > { %v12626_v17 = vpop.eup %12625  ;;  %v10592_v48 = vadd.f32 1.0, %v12624_v24  ;;  %12633 = vpow2.f32 %v11565_v43  ;;  %v8442_v54 = vcombine.high %v17732_v31, %v17732_v31  ;;  %v8639_v21 = vrot.slane %v8637_v6, 2  ;;  %v18941_v24 = vld [vmem:[#allocation52_spill] sm:$0xff] }
 0x418   : > { %v12628_v53 = vpop.eup %12627  ;;  %v11098_v13 = vsel %vm17058_vm11, %v11002_v3, %v17676_v35  ;;  %v10593_v41 = vadd.f32 1.0, %v12626_v17  ;;  %v9914_v52 = vcombine.low %v9618_v1, %v9619_v56  ;;  %v9921_v44 = vrot.slane %v9913_v29, %v14079_v59  ;;  %v18940_v56 = vld [vmem:[#allocation67_spill] sm:$0xff] }
 0x419   : > { %v12630_v36 = vpop.eup %12629  ;;  %11114 = vst [vmem:[%s17077_s29 + $0x58] sm:$0xff] %v11098_v13  ;;  %v10594_v57 = vadd.f32 1.0, %v12628_v53  ;;  %12635 = vrcp.f32 %v10592_v48  ;;  %v10281_v60 = vcombine.low %v10273_v18, %v10280_v16  ;;  %v8640_v34 = vrot.slane %v8441_v2, 7 }
 0x41a   : > { %v10595_v19 = vadd.f32 1.0, %v12630_v36  ;;  %12637 = vrcp.f32 %v10593_v41  ;;  %v9928_v37 = vrot.slane %v9914_v52, %v14079_v59  ;;  %v8643_v11 = vrot.slane %v17732_v31, 7  ;;  %v18942_v36 = vld [vmem:[#allocation58_spill] sm:$0xff] }
 0x41b   : > { %12639 = vrcp.f32 %v10594_v57  ;;  %v8642_v5 = vrot.slane %v8640_v34, 2  ;;  %v8646_v9 = vrot.slane %v8442_v54, 7  ;;  %v8450_v35 = vrot.slane %v17359_v7, %v14079_v59 }
 0x41c   : > { %12641 = vrcp.f32 %v10595_v19  ;;  %v9929_v49 = vcombine.low %v9921_v44, %v9928_v37  ;;  %v8645_v22 = vrot.slane %v8643_v11, 2  ;;  %v8457_v38 = vrot.slane %v8443_v20, %v14079_v59 }
 0x41d   : > { %12643 = vpow2.f32 %v11566_v40  ;;  %v8648_v27 = vrot.slane %v8646_v9, 2  ;;  %v8458_v23 = vcombine.high %v8450_v35, %v8450_v35  ;;  %v8649_v12 = vrot.slane %v8450_v35, 7 }
 0x41e   : > { %v17762_v8 = vsel %vm9499_vm8, %v9929_v49, %v10281_v60  ;;  %v8459_v30 = vcombine.high %v8457_v38, %v8457_v38  ;;  %v8655_v31 = vrot.slane %v8457_v38, 7  ;;  %v8638_v2 = vsel %vm14372_vm7, %v17679_v62, %v8637_v6  ;;  %v18939_v62 = vld [vmem:[#allocation152_spill] sm:$0xff]  ;;  %v18945_v38 = vld [vmem:[#allocation61_spill] sm:$0xff] }
 0x41f   : > { %v12632_v7 = vpop.eup %12631  ;;  %v8651_v0 = vrot.slane %v8649_v12, 2  ;;  %v8652_v46 = vrot.slane %v8458_v23, 7  ;;  %v8641_v20 = vsel %vm14372_vm7, %v8639_v21, %v8640_v34  ;;  %v8644_v4 = vsel %vm14372_vm7, %v8642_v5, %v8643_v11  ;;  %v18943_v60 = vld [vmem:[#allocation56_spill] sm:$0xff] }
 0x420   : > { %v10596_v25 = vadd.f32 1.0, %v12632_v7  ;;  %v8657_v45 = vrot.slane %v8655_v31, 2  ;;  %v8658_v63 = vrot.slane %v8459_v30, 7  ;;  %v8647_v40 = vsel %vm14372_vm7, %v8645_v22, %v8646_v9  ;;  %v18944_v22 = vld [vmem:[#allocation57_spill] sm:$0xff] }
 0x421   : > { %v12634_v51 = vpop.eup %12633  ;;  %v8654_v26 = vrot.slane %v8652_v46, 2  ;;  %v8780_v10 = vadd.f32 %v8638_v2, %v18938_v14  ;;  %v8781_v6 = vadd.f32 %v8641_v20, %v18939_v62  ;;  %v8782_v18 = vadd.f32 %v8644_v4, %v18940_v56 }
 0x422   : > { %v10597_v43 = vadd.f32 1.0, %v12634_v51  ;;  %12645 = vrcp.f32 %v10596_v25  ;;  %v8783_v3 = vadd.f32 %v8647_v40, %v18941_v24  ;;  %v9244_v1 = vcombine.high %v17385_v47, %v17385_v47 }
 0x423   : > { %v12636_v29 = vpop.eup %12635  ;;  %v9251_v16 = vrot.slane %v17385_v47, %v14079_v59  ;;  %v8650_v17 = vsel %vm14372_vm7, %v8648_v27, %v8649_v12  ;;  %v8653_v48 = vsel %vm14372_vm7, %v8651_v0, %v8652_v46  ;;  %v8656_v54 = vsel %vm14372_vm7, %v8654_v26, %v8655_v31 }
 0x424   : > { %v12638_v21 = vpop.eup %12637  ;;  %v11003_v53 = vcombine.low %v17737_v39, %v12636_v29  ;;  %12647 = vrcp.f32 %v10597_v43  ;;  %v9258_v13 = vrot.slane %v9244_v1, %v14079_v59  ;;  %v8659_v41 = vsel %vm14372_vm7, %v8657_v45, %v8658_v63 }
 0x425   : > { %v12640_v52 = vpop.eup %12639  ;;  %v9259_v47 = vcombine.high %v9251_v16, %v9251_v16  ;;  %v9398_v44 = vadd.f32 %v9251_v16, %v8780_v10  ;;  %v8784_v57 = vadd.f32 %v8650_v17, %v18942_v36  ;;  %v8785_v34 = vadd.f32 %v8653_v48, %v18943_v60 }
 0x426   : > { %v12642_v19 = vpop.eup %12641  ;;  %v11004_v37 = vcombine.low %v12638_v21, %v12640_v52  ;;  %v11011_v11 = vrot.slane %v11003_v53, %v14079_v59  ;;  %v9260_v5 = vcombine.high %v9258_v13, %v9258_v13  ;;  %v9400_v9 = vadd.f32 %v9258_v13, %v8782_v18 }
 0x427   : > { %v12644_v39 = vpop.eup %12643  ;;  %v9399_v35 = vadd.f32 %v9259_v47, %v8781_v6  ;;  %v9489_v49 = vadd.f32 %v16911_v50, %v9398_v44  ;;  %v8786_v42 = vadd.f32 %v8656_v54, %v18944_v22  ;;  %v8787_v27 = vadd.f32 %v8659_v41, %v18945_v38 }
 0x428   : > { %v11018_v23 = vrot.slane %v11004_v37, %v14079_v59  ;;  %v10598_v12 = vadd.f32 1.0, %v12644_v39  ;;  %v9401_v30 = vadd.f32 %v9260_v5, %v8783_v3  ;;  %v9491_v31 = vadd.f32 %v16924_v33, %v9400_v9 }
 0x429   : > { %v9490_v2 = vadd.f32 %v16928_v58, %v9399_v35  ;;  %v9556_v7 = vmul.f32 %v9489_v49, %v9489_v49  ;;  %v11567_v0 = vmul.f32 -1.442695, %v9489_v49  ;;  %v9261_v46 = vcombine.high %v17400_v61, %v17400_v61 }
 0x42a   : > { %v11019_v20 = vcombine.low %v11011_v11, %v11018_v23  ;;  %12649 = vrcp.f32 %v10598_v12  ;;  %v9492_v4 = vadd.f32 %v16946_v28, %v9401_v30  ;;  %v9558_v25 = vmul.f32 %v9491_v31, %v9491_v31 }
 0x42b   : > { %v9557_v45 = vmul.f32 %v9490_v2, %v9490_v2  ;;  %v9620_v63 = vadd.f32 1.0, %v9556_v7  ;;  %v10282_v40 = vcombine.low %v9489_v49, %v9490_v2  ;;  %12651 = vpow2.f32 %v11567_v0 }
 0x42c   : > { %v12646_v51 = vpop.eup %12645  ;;  %v11099_v26 = vsel %vm17058_vm11, %v11019_v20, %v17741_v32  ;;  %v9559_v14 = vmul.f32 %v9492_v4, %v9492_v4  ;;  %v9622_v10 = vadd.f32 1.0, %v9558_v25  ;;  %v10283_v62 = vcombine.low %v9491_v31, %v9492_v4 }
 0x42d   : > { %11115 = vst [vmem:[%s17077_s29 + $0x60] sm:$0xff] %v11099_v26  ;;  %v11020_v6 = vcombine.low %v12642_v19, %v12646_v51  ;;  %v9621_v56 = vadd.f32 1.0, %v9557_v45  ;;  %v10290_v18 = vrot.slane %v10282_v40, %v14079_v59  ;;  %v11568_v43 = vmul.f32 -1.442695, %v9490_v2 }
 0x42e   : > { %v12648_v24 = vpop.eup %12647  ;;  %v9623_v3 = vadd.f32 1.0, %v9559_v14  ;;  %v10297_v1 = vrot.slane %v10283_v62, %v14079_v59  ;;  %v11569_v29 = vmul.f32 -1.442695, %v9491_v31  ;;  %v11570_v16 = vmul.f32 -1.442695, %v9492_v4 }
 0x42f   : > { %v9930_v17 = vcombine.low %v9620_v63, %v9621_v56  ;;  %12653 = vpow2.f32 %v11568_v43  ;;  %v9268_v32 = vrot.slane %v17400_v61, %v14079_v59  ;;  %v9275_v21 = vrot.slane %v9261_v46, %v14079_v59 }
 0x430   : > { %v9931_v48 = vcombine.low %v9622_v10, %v9623_v3  ;;  %v10298_v54 = vcombine.low %v10290_v18, %v10297_v1  ;;  %12655 = vpow2.f32 %v11569_v29  ;;  %v11028_v61 = vrot.slane %v11020_v6, %v14079_v59 }
 0x431   : > { %12657 = vpow2.f32 %v11570_v16  ;;  %v9276_v53 = vcombine.high %v9268_v32, %v9268_v32  ;;  %v9402_v13 = vadd.f32 %v9268_v32, %v8784_v57  ;;  %v9938_v41 = vrot.slane %v9930_v17, %v14079_v59 }
 0x432   : > { %v9945_v52 = vrot.slane %v9931_v48, %v14079_v59  ;;  %v9277_v47 = vcombine.high %v9275_v21, %v9275_v21  ;;  %v9404_v44 = vadd.f32 %v9275_v21, %v8786_v42 }
 0x433   : > { %v9403_v36 = vadd.f32 %v9276_v53, %v8785_v34  ;;  %v9493_v60 = vadd.f32 %v16911_v50, %v9402_v13 }
 0x434   : > { %v12650_v19 = vpop.eup %12649  ;;  %v9946_v37 = vcombine.low %v9938_v41, %v9945_v52  ;;  %v9405_v11 = vadd.f32 %v9277_v47, %v8787_v27  ;;  %v9495_v5 = vadd.f32 %v16924_v33, %v9404_v44 }
 0x435   : > { %v12652_v9 = vpop.eup %12651  ;;  %v11021_v39 = vcombine.low %v12648_v24, %v12650_v19  ;;  %v9494_v57 = vadd.f32 %v16928_v58, %v9403_v36  ;;  %v9560_v35 = vmul.f32 %v9493_v60, %v9493_v60  ;;  %v11571_v49 = vmul.f32 -1.442695, %v9493_v60 }
 0x436   : > { %v17820_v22 = vsel %vm9499_vm8, %v9946_v37, %v10298_v54  ;;  %v10599_v34 = vadd.f32 1.0, %v12652_v9  ;;  %v9496_v50 = vadd.f32 %v16946_v28, %v9405_v11  ;;  %v9562_v42 = vmul.f32 %v9495_v5, %v9495_v5 }
 0x437   : > { %v11035_v38 = vrot.slane %v11021_v39, %v14079_v59  ;;  %v9561_v23 = vmul.f32 %v9494_v57, %v9494_v57  ;;  %v9624_v27 = vadd.f32 1.0, %v9560_v35  ;;  %v10299_v12 = vcombine.low %v9493_v60, %v9494_v57 }
 0x438   : > { %12659 = vrcp.f32 %v10599_v34  ;;  %v9563_v33 = vmul.f32 %v9496_v50, %v9496_v50  ;;  %v9626_v30 = vadd.f32 1.0, %v9562_v42  ;;  %v10300_v31 = vcombine.low %v9495_v5, %v9496_v50 }
 0x439   : > { %v12654_v58 = vpop.eup %12653  ;;  %v11036_v2 = vcombine.low %v11028_v61, %v11035_v38  ;;  %v9625_v7 = vadd.f32 1.0, %v9561_v23  ;;  %v10307_v0 = vrot.slane %v10299_v12, %v14079_v59  ;;  %12661 = vpow2.f32 %v11571_v49 }
 0x43a   : > { %v12656_v46 = vpop.eup %12655  ;;  %v10600_v20 = vadd.f32 1.0, %v12654_v58  ;;  %v9627_v28 = vadd.f32 1.0, %v9563_v33  ;;  %v10314_v4 = vrot.slane %v10300_v31, %v14079_v59  ;;  %v11572_v25 = vmul.f32 -1.442695, %v9494_v57 }
 0x43b   : > { %v12658_v45 = vpop.eup %12657  ;;  %v11100_v63 = vsel %vm17058_vm11, %v11036_v2, %v17762_v8  ;;  %v10601_v40 = vadd.f32 1.0, %v12656_v46  ;;  %v9947_v51 = vcombine.low %v9624_v27, %v9625_v7  ;;  %v11573_v26 = vmul.f32 -1.442695, %v9495_v5 }
 0x43c   : > { %11116 = vst [vmem:[%s17077_s29 + $0x68] sm:$0xff] %v11100_v63  ;;  %v10602_v14 = vadd.f32 1.0, %v12658_v45  ;;  %12663 = vrcp.f32 %v10600_v20  ;;  %v9948_v10 = vcombine.low %v9626_v30, %v9627_v28  ;;  %v10315_v62 = vcombine.low %v10307_v0, %v10314_v4 }
 0x43d   : > { %12665 = vrcp.f32 %v10601_v40  ;;  %v9955_v6 = vrot.slane %v9947_v51, %v14079_v59  ;;  %v11574_v56 = vmul.f32 -1.442695, %v9496_v50 }
 0x43e   : > { %12667 = vrcp.f32 %v10602_v14  ;;  %v9962_v18 = vrot.slane %v9948_v10, %v14079_v59 }
 0x43f   : > { %12669 = vpow2.f32 %v11572_v25 }
 0x440   : > { %v9963_v43 = vcombine.low %v9955_v6, %v9962_v18  ;;  %12671 = vpow2.f32 %v11573_v26 }
 0x441   : > { %12673 = vpow2.f32 %v11574_v56 }
 0x442   : > { %v12660_v8 = vpop.eup %12659  ;;  %v10347_v24 = vsel %vm9499_vm8, %v9963_v43, %v10315_v62 }
 0x443   : > { %v12662_v3 = vpop.eup %12661 }
 0x444   : > { %v10603_v29 = vadd.f32 1.0, %v12662_v3 }
 0x446   : > { %v12664_v1 = vpop.eup %12663  ;;  %12675 = vrcp.f32 %v10603_v29 }
 0x447   : > { %v12666_v16 = vpop.eup %12665  ;;  %v11037_v17 = vcombine.low %v12660_v8, %v12664_v1 }
 0x448   : > { %v12668_v32 = vpop.eup %12667 }
 0x449   : > { %v12670_v48 = vpop.eup %12669  ;;  %v11038_v54 = vcombine.low %v12666_v16, %v12668_v32  ;;  %v11045_v41 = vrot.slane %v11037_v17, %v14079_v59 }
 0x44a   : > { %v12672_v21 = vpop.eup %12671  ;;  %v10604_v53 = vadd.f32 1.0, %v12670_v48 }
 0x44b   : > { %v12674_v13 = vpop.eup %12673  ;;  %v11052_v15 = vrot.slane %v11038_v54, %v14079_v59  ;;  %v10605_v52 = vadd.f32 1.0, %v12672_v21 }
 0x44c   : > { %v10606_v47 = vadd.f32 1.0, %v12674_v13  ;;  %12677 = vrcp.f32 %v10604_v53 }
 0x44d   : > { %v11053_v44 = vcombine.low %v11045_v41, %v11052_v15  ;;  %12679 = vrcp.f32 %v10605_v52 }
 0x44e   : > { %12681 = vrcp.f32 %v10606_v47 }
 0x44f   : > { %v11101_v36 = vsel %vm17058_vm11, %v11053_v44, %v17820_v22 }
 0x450   : > { %11117 = vst [vmem:[%s17077_s29 + $0x70] sm:$0xff] %v11101_v36  ;;  %v12676_v60 = vpop.eup %12675 }
 0x456   : > { %v12678_v19 = vpop.eup %12677 }
 0x457   : > { %v12680_v61 = vpop.eup %12679  ;;  %v11054_v37 = vcombine.low %v12676_v60, %v12678_v19 }
 0x458   : > { %v12682_v11 = vpop.eup %12681 }
 0x459   : > { %v11055_v5 = vcombine.low %v12680_v61, %v12682_v11  ;;  %v11062_v9 = vrot.slane %v11054_v37, %v14079_v59 }
 0x45b   : > { %v11069_v39 = vrot.slane %v11055_v5, %v14079_v59 }
 0x45d   : > { %v11070_v57 = vcombine.low %v11062_v9, %v11069_v39 }
 0x45f   : > { %v11102_v35 = vsel %vm17058_vm11, %v11070_v57, %v10347_v24 }
 0x460   : > { %11118 = vst [vmem:[%s17077_s29 + $0x78] sm:$0xff] %v11102_v35 }
 0x461   : > { %12782 = shalt.err (!%p12779_p5)
}
 0x462   : > { %s12783_s4 = scalar_lea.hbm %s17848_s18, 2048  ;;  %s12787_s27 = scalar_lea.hbm %s17921_s3, 8192 }
 0x463   : > { %p12784_p8 = scmp.ne.s32.totalorder %s17848_s18, %s12783_s4  ;;  %p12788_p6 = scmp.lt.u32.totalorder %s17848_s18, %s17921_s3 }
 0x464   : > { %p12789_p10 = scmp.lt.u32.totalorder %s12787_s27, %s12783_s4  ;;  %p12791_p4 = scmp.lt.u32.totalorder %s12783_s4, %s17848_s18 }
 0x465   : > { %p12785_p12 = pnand %p12784_p8, %p18946_p3 }
 0x466   : > { %p12790_p1 = por %p12789_p10, %p12788_p6 }
 0x467   : > { %p12786_p2 = pneg %p12785_p12 }
 0x468   : > { %p12792_p7 = por %p12791_p4, %p12790_p1 }
 0x46a   : > { %p12793_p13 = pnand %p12792_p7, %p12786_p2 }
 0x46c   : > { %12796 = shalt.err (!%p12793_p13)
}
 0x46d   : > { %s12907_s26 = smov 128   ;;  %s12908_s24 = smov 8  }
 0x46e   : > { %12234 = dma.vmem_to_hbm [thread:$0]  (%p18946_p3), %s17850_s5, 2048, %s17848_s18, %s17857_s19, %s12907_s26, %s12907_s26, %s12908_s24  }
 0x46f PF: > { %s18947_s8 = sld [smem:[#allocation12_spill]]  ;;  %s18948_s7 = sld [smem:[#allocation14_spill]] }
 0x470   : > { %p12256_p9 = scmp.ge.s32.totalorder %s12895_s22, 2 }
 0x475   : > { %s11151_s12 = sand.u32 1, %s18947_s8   ;;  %p18949_p11 = scmp.ne.s32.totalorder %s18948_s7, 0 }
 0x476   : > { %s11152_s9 = scalar_lea.sflag [#allocation4], %s11151_s12 }
 0x477   : > { %p12248_p0 = pnand %p12256_p9, %p18949_p11 }
 0x479   : > { %12850 = dma.done.wait (!%p12248_p0), %s11152_s9, 2048  }
 0x47a   : > { %12852 = vsyncadd (!%p12248_p0), %s11152_s9, 4294965248  ;;  %s20_s22 = sadd.s32 1, %s12895_s22   ;;  %s18950_s18 = sld [smem:[#allocation13_spill]] }
 0x47b   : > { %p17_p5 = scmp.ge.s32.totalorder %s20_s22, 6   ;;  %s18951_s20 = sld [smem:[#allocation15_spill]] }
 0x47c   : > { %s18952_s28 = smov %s18966_s15  ;;  %s18953_s12 = smov %s12859_s13 }
 0x47d   : > { %s18954_s13 = smov %s12863_s14  ;;  %s18955_s14 = smov %s13108_s2 }
 0x47e   : > { %s18956_s15 = smov %s12871_s16  ;;  %s18957_s16 = smov %s12875_s17 }
 0x47f   : > { %s18958_s17 = smov %s13103_s10  ;;  %s18959_s19 = smov %s12891_s21 }
 0x480   : > { %s18960_s21 = smov %s18952_s28  ;;  %19 = sbr.rel (!%p17_p5) target bundleno = 13 (0xd), region = 96 }
 0x487   :  { %11157 = vsyncpa [#allocation3], 1 }
 0x488   :  { %11159 = vsyncpa [#allocation3 + $0x1], 1 }
 0x489   :  { %11160 = vsyncpa [#allocation6], 1 }
 0x48a   :  { %11161 = vsyncpa [#allocation4], 1 }
 0x48b   :  { %11163 = vsyncpa [#allocation4 + $0x1], 1 }

</bundles_post_ra>
